<compile_context>
chip_gen: v6e
topology: v6e:2x2x1
jax: 0.10.0
libtpu: 0.0.40
codegen_flags: <defaults>
</compile_context>

<pallas_src>
import functools

import jax
import jax.numpy as jnp
import numpy as np
from jax.experimental import pallas as pl
from jax.experimental.pallas import tpu as pltpu

EPS = 1e-5  # nn.InstanceNorm2d default eps (affine=False, no running stats)


def _resnet_block_kernel(x_ref, w1_ref, w2_ref, out_ref, xp_ref):
    """Fused ResnetBlock forward for one batch element.

      x_ref   : (1, H, W, C)   input block (also the residual source)
      w1_ref  : (9, Cin, Cout) conv1 taps, tap index = dy*3 + dx (matmul dtype)
      w2_ref  : (9, Cin, Cout) conv2 taps
      out_ref : (1, H, W, C)   output block
      xp_ref  : (H+2, W+2, C)  VMEM scratch holding the reflection-padded map
                               in the matmul dtype; reused by both stages.
    """
    _, H, W, C = out_ref.shape
    hw = H * W
    inv_hw = 1.0 / float(hw)

    def conv3x3_instance_norm(a, w_ref, apply_relu):
        # a: (H, W, C) -> (H*W, C) float32 instance-normalized conv output.
        # ReflectionPad2d(1) into the scratch; the cast to the MXU operand
        # dtype (bf16 by default) happens exactly once, here.
        ap = a.astype(xp_ref.dtype)
        xp_ref[1:H + 1, 1:W + 1, :] = ap
        xp_ref[0:1, 1:W + 1, :] = ap[1:2]                   # top    <- row 1
        xp_ref[H + 1:H + 2, 1:W + 1, :] = ap[H - 2:H - 1]   # bottom <- row H-2
        xp_ref[:, 0:1, :] = xp_ref[:, 2:3, :]               # left  (+corners)
        xp_ref[:, W + 1:W + 2, :] = xp_ref[:, W - 1:W, :]   # right (+corners)

        # 3x3 conv = 9 MXU matmuls.  Only 3 dx-shifted slabs are materialized;
        # the 3 dy taps per slab are contiguous row-range slices.  The
        # accumulator is initialized by the first dot (no zero-fill store).
        acc = None
        for dx in range(3):
            slab = xp_ref[:, dx:dx + W, :].reshape((H + 2) * W, C)
            for dy in range(3):
                patch = slab[dy * W:(dy + H) * W, :]
                part = jnp.dot(patch, w_ref[dy * 3 + dx],
                               preferred_element_type=jnp.float32)
                acc = part if acc is None else acc + part

        # Two-pass InstanceNorm (subtract mean, then centered sum of squares):
        # avoids the catastrophic cancellation of E[x^2] - E[x]^2.  acc is
        # VMEM-resident, so the extra pass is cheap.
        mean = jnp.sum(acc, axis=0, keepdims=True) * inv_hw
        centered = acc - mean
        var = jnp.sum(centered * centered, axis=0, keepdims=True) * inv_hw
        y = centered * jax.lax.rsqrt(var + EPS)
        if apply_relu:
            y = jnp.maximum(y, 0.0)
        return y

    # Stage 1 reads the input block directly; no long-lived f32 copy of x.
    h = conv3x3_instance_norm(x_ref[0], w1_ref, apply_relu=True)   # stays VMEM
    y = conv3x3_instance_norm(h.reshape(H, W, C), w2_ref, apply_relu=False)
    # Residual add: re-read the (still VMEM-resident) input block at the end.
    out = x_ref[0].astype(jnp.float32) + y.reshape(H, W, C)
    out_ref[0] = out.astype(out_ref.dtype)


def prepare_resnet_block_weights(w_oihw, matmul_dtype=jnp.bfloat16):
    """PyTorch OIHW (C, C, 3, 3) -> (9, Cin, Cout) taps, tap index = dy*3+dx."""
    C = w_oihw.shape[0]
    return jnp.transpose(w_oihw, (2, 3, 1, 0)).reshape(9, C, C).astype(matmul_dtype)


def _vmem_limit_bytes(H, W, C, x_itemsize, mm_itemsize):
    """Shape-derived VMEM budget (replaces the old hard-coded 32 MiB)."""
    hw = H * W
    io_blocks = 2 * 2 * hw * C * x_itemsize           # x & out, double-buffered
    weights = 2 * 9 * C * C * mm_itemsize             # both stages, single copy
    pad_scratch = (H + 2) * (W + 2) * C * mm_itemsize
    # In-body temporaries: acc / centered / h / y (f32) + one dx slab.
    temps = 4 * hw * C * 4 + (H + 2) * W * C * mm_itemsize
    total = int((io_blocks + weights + pad_scratch + temps) * 1.3) + (2 << 20)
    # Floor keeps small shapes at a known-good setting; ceiling stays under the
    # 128 MiB physical VMEM of v5e/v6e.  On v7x (64 MiB) CycleGAN-size maps
    # (256 x 64 x 64) fit only with the bf16 footprint; anything larger needs
    # the row-tiled variant (see TODO in resnet_block_nhwc).
    return max(32 << 20, min(total, 100 << 20))


@jax.jit
def resnet_block_nhwc(x_nhwc, w1_taps, w2_taps):
    """Fused ResnetBlock on NHWC activations.

    x_nhwc : (N, H, W, C); w*_taps : (9, C, C) from prepare_resnet_block_weights.
    Keep activations NHWC across a chain of blocks (CycleGAN stacks 9) and
    prepare weights once outside, so there are no per-block layout transposes.
    """
    N, H, W, C = x_nhwc.shape
    mm_dtype = w1_taps.dtype

    # TODO(synk): for feature maps much larger than 64x64x256 (or to feed both
    # v7x TensorCores at N=1) add a row-band grid axis with halo'd reflection
    # padding and a cross-band InstanceNorm stats pass, so whole images need
    # not be VMEM-resident.
    return pl.pallas_call(
        _resnet_block_kernel,
        out_shape=jax.ShapeDtypeStruct((N, H, W, C), x_nhwc.dtype),
        grid_spec=pltpu.PrefetchScalarGridSpec(
            num_scalar_prefetch=0,
            grid=(N,),
            in_specs=[
                pl.BlockSpec((1, H, W, C), lambda n: (n, 0, 0, 0)),
                # Weights: whole array resident in VMEM for the entire grid
                # (no per-step DMA, no double-buffer copy).
                pl.BlockSpec(memory_space=pltpu.MemorySpace.VMEM),
                pl.BlockSpec(memory_space=pltpu.MemorySpace.VMEM),
            ],
            out_specs=pl.BlockSpec((1, H, W, C), lambda n: (n, 0, 0, 0)),
            scratch_shapes=[pltpu.VMEM((H + 2, W + 2, C), mm_dtype)],
        ),
        compiler_params=pltpu.CompilerParams(
            dimension_semantics=("parallel",),
            vmem_limit_bytes=_vmem_limit_bytes(
                H, W, C, x_nhwc.dtype.itemsize, w1_taps.dtype.itemsize),
        ),
    )(x_nhwc, w1_taps, w2_taps)


@functools.partial(jax.jit, static_argnames=("matmul_dtype",))
def resnet_block_forward(x_nchw, w1_oihw, w2_oihw, *, matmul_dtype=jnp.bfloat16):
    """PyTorch-layout wrapper: x (N,C,H,W), weights (C,C,3,3) OIHW, no bias."""
    x = jnp.transpose(x_nchw, (0, 2, 3, 1))  # NCHW -> NHWC (channels on lanes)
    w1 = prepare_resnet_block_weights(w1_oihw, matmul_dtype)
    w2 = prepare_resnet_block_weights(w2_oihw, matmul_dtype)
    out = resnet_block_nhwc(x, w1, w2)
    return jnp.transpose(out, (0, 3, 1, 2))  # NHWC -> NCHW


def _reference_resnet_block(x_nchw, w1, w2, conv_dtype=jnp.float32):
    """Pure-JAX/XLA reference; conv_dtype lets us build a bf16-operand ref."""
    def stage(x, w, relu):
        xp = jnp.pad(x.astype(conv_dtype), ((0, 0), (0, 0), (1, 1), (1, 1)),
                     mode="reflect")
        y = jax.lax.conv_general_dilated(
            xp, w.astype(conv_dtype), window_strides=(1, 1), padding="VALID",
            dimension_numbers=("NCHW", "OIHW", "NCHW"),
            preferred_element_type=jnp.float32)
        mean = jnp.mean(y, axis=(2, 3), keepdims=True)
        var = jnp.var(y, axis=(2, 3), keepdims=True)
        y = (y - mean) * jax.lax.rsqrt(var + EPS)
        if relu:
            y = jnp.maximum(y, 0.0)
        return y

    h = stage(x_nchw, w1, True)
    h = stage(h, w2, False)
    return x_nchw + h


if __name__ == "__main__":
    N, C, H, W = 2, 4, 16, 16

    key = jax.random.PRNGKey(0)
    kx, kw1, kw2 = jax.random.split(key, 3)
    x = jax.random.normal(kx, (N, C, H, W), dtype=jnp.float32)
    # Deterministic synthetic conv weights (PyTorch OIHW layout, no bias).
    w1 = 0.2 * jax.random.normal(kw1, (C, C, 3, 3), dtype=jnp.float32)
    w2 = 0.2 * jax.random.normal(kw2, (C, C, 3, 3), dtype=jnp.float32)

    # Default path (bf16 MXU operands, f32 accumulation + InstanceNorm math),
    # checked against a bf16-operand XLA reference so the tolerance is tight
    # enough to catch tap-indexing / padding bugs.
    out_bf16 = jax.block_until_ready(resnet_block_forward(x, w1, w2))
    ref_bf16 = jax.block_until_ready(
        _reference_resnet_block(x, w1, w2, conv_dtype=jnp.bfloat16))
    np.testing.assert_allclose(np.asarray(out_bf16), np.asarray(ref_bf16),
                               rtol=5e-3, atol=5e-3)

    # f32 MXU-operand path vs f32 reference.
    out_f32 = jax.block_until_ready(
        resnet_block_forward(x, w1, w2, matmul_dtype=jnp.float32))
    ref_f32 = jax.block_until_ready(_reference_resnet_block(x, w1, w2))
    np.testing.assert_allclose(np.asarray(out_f32), np.asarray(ref_f32),
                               rtol=2e-3, atol=2e-3)

    print("KERNEL_OK")
</pallas_src>

<mosaic_0001>
module attributes {stable_mosaic.version = 11 : i64} {
  func.func @_resnet_block_kernel(%arg0: i32, %arg1: memref<1x16x16x4xf32, #tpu.memory_space<vmem>>, %arg2: memref<9x4x4xbf16, #tpu.memory_space<vmem>>, %arg3: memref<9x4x4xbf16, #tpu.memory_space<vmem>>, %arg4: memref<1x16x16x4xf32, #tpu.memory_space<vmem>>, %arg5: memref<18x18x4xbf16, #tpu.memory_space<vmem>>) attributes {dimension_semantics = [#tpu.dimension_semantics<parallel>], iteration_bounds = array<i64: 2>, scalar_prefetch = 0 : i64, scratch_operands = 1 : i64, tpu.core_type = #tpu.core_type<tc>, window_params = [{transform_indices = @transform_0, window_bounds = array<i64: 1, 16, 16, 4>}, {pipeline_mode = #tpu.pipeline_mode<synchronous>, transform_indices = @transform_1, window_bounds = array<i64: 9, 4, 4>}, {pipeline_mode = #tpu.pipeline_mode<synchronous>, transform_indices = @transform_2, window_bounds = array<i64: 9, 4, 4>}, {transform_indices = @transform_3, window_bounds = array<i64: 1, 16, 16, 4>}]} {
    %c0 = arith.constant 0 : index
    %c0_0 = arith.constant 0 : index
    %c0_1 = arith.constant 0 : index
    %c0_2 = arith.constant 0 : index
    %0 = vector.load %arg1[%c0, %c0_0, %c0_1, %c0_2] : memref<1x16x16x4xf32, #tpu.memory_space<vmem>>, vector<1x16x16x4xf32>
    %1 = vector.shape_cast %0 : vector<1x16x16x4xf32> to vector<16x16x4xf32>
    %2 = arith.truncf %1 : vector<16x16x4xf32> to vector<16x16x4xbf16>
    %c1 = arith.constant 1 : index
    %c1_3 = arith.constant 1 : index
    %c0_4 = arith.constant 0 : index
    %3 = vector.load %arg5[%c1, %c1_3, %c0_4] : memref<18x18x4xbf16, #tpu.memory_space<vmem>>, vector<16x16x4xbf16>
    tpu.vector_store %arg5[%c1, %c1_3, %c0_4], %2 {strides = array<i32>} : memref<18x18x4xbf16, #tpu.memory_space<vmem>>, vector<16x16x4xbf16>,
    %4 = vector.extract_strided_slice %2 {offsets = [1, 0, 0], sizes = [1, 16, 4], strides = [1, 1, 1]} : vector<16x16x4xbf16> to vector<1x16x4xbf16>
    %c0_5 = arith.constant 0 : index
    %c1_6 = arith.constant 1 : index
    %c0_7 = arith.constant 0 : index
    %5 = vector.load %arg5[%c0_5, %c1_6, %c0_7] : memref<18x18x4xbf16, #tpu.memory_space<vmem>>, vector<1x16x4xbf16>
    tpu.vector_store %arg5[%c0_5, %c1_6, %c0_7], %4 {strides = array<i32>} : memref<18x18x4xbf16, #tpu.memory_space<vmem>>, vector<1x16x4xbf16>,
    %6 = vector.extract_strided_slice %2 {offsets = [14, 0, 0], sizes = [1, 16, 4], strides = [1, 1, 1]} : vector<16x16x4xbf16> to vector<1x16x4xbf16>
    %c17 = arith.constant 17 : index
    %c1_8 = arith.constant 1 : index
    %c0_9 = arith.constant 0 : index
    %7 = vector.load %arg5[%c17, %c1_8, %c0_9] : memref<18x18x4xbf16, #tpu.memory_space<vmem>>, vector<1x16x4xbf16>
    tpu.vector_store %arg5[%c17, %c1_8, %c0_9], %6 {strides = array<i32>} : memref<18x18x4xbf16, #tpu.memory_space<vmem>>, vector<1x16x4xbf16>,
    %c0_10 = arith.constant 0 : index
    %c2 = arith.constant 2 : index
    %c0_11 = arith.constant 0 : index
    %8 = vector.load %arg5[%c0_10, %c2, %c0_11] : memref<18x18x4xbf16, #tpu.memory_space<vmem>>, vector<18x1x4xbf16>
    %c0_12 = arith.constant 0 : index
    %c0_13 = arith.constant 0 : index
    %c0_14 = arith.constant 0 : index
    %9 = vector.load %arg5[%c0_12, %c0_13, %c0_14] : memref<18x18x4xbf16, #tpu.memory_space<vmem>>, vector<18x1x4xbf16>
    tpu.vector_store %arg5[%c0_12, %c0_13, %c0_14], %8 {strides = array<i32>} : memref<18x18x4xbf16, #tpu.memory_space<vmem>>, vector<18x1x4xbf16>,
    %c0_15 = arith.constant 0 : index
    %c15 = arith.constant 15 : index
    %c0_16 = arith.constant 0 : index
    %10 = vector.load %arg5[%c0_15, %c15, %c0_16] : memref<18x18x4xbf16, #tpu.memory_space<vmem>>, vector<18x1x4xbf16>
    %c0_17 = arith.constant 0 : index
    %c17_18 = arith.constant 17 : index
    %c0_19 = arith.constant 0 : index
    %11 = vector.load %arg5[%c0_17, %c17_18, %c0_19] : memref<18x18x4xbf16, #tpu.memory_space<vmem>>, vector<18x1x4xbf16>
    tpu.vector_store %arg5[%c0_17, %c17_18, %c0_19], %10 {strides = array<i32>} : memref<18x18x4xbf16, #tpu.memory_space<vmem>>, vector<18x1x4xbf16>,
    %c0_20 = arith.constant 0 : index
    %c0_21 = arith.constant 0 : index
    %c0_22 = arith.constant 0 : index
    %12 = vector.load %arg5[%c0_20, %c0_21, %c0_22] : memref<18x18x4xbf16, #tpu.memory_space<vmem>>, vector<18x16x4xbf16>
    %13 = vector.shape_cast %12 : vector<18x16x4xbf16> to vector<288x4xbf16>
    %14 = vector.extract_strided_slice %13 {offsets = [0, 0], sizes = [256, 4], strides = [1, 1]} : vector<288x4xbf16> to vector<256x4xbf16>
    %c0_23 = arith.constant 0 : index
    %c0_24 = arith.constant 0 : index
    %c0_25 = arith.constant 0 : index
    %15 = vector.load %arg2[%c0_23, %c0_24, %c0_25] : memref<9x4x4xbf16, #tpu.memory_space<vmem>>, vector<1x4x4xbf16>
    %16 = vector.shape_cast %15 : vector<1x4x4xbf16> to vector<4x4xbf16>
    %cst = arith.constant dense<0.000000e+00> : vector<256x4xf32>
    %17 = tpu.matmul %14, %16, %cst {dimension_numbers = #tpu.dot_dimension_numbers<[1], [0], [0], [1], [0, 0, 1, 1], [], []>} : vector<256x4xbf16>, vector<4x4xbf16>, vector<256x4xf32> -> vector<256x4xf32>
    %18 = vector.extract_strided_slice %13 {offsets = [16, 0], sizes = [256, 4], strides = [1, 1]} : vector<288x4xbf16> to vector<256x4xbf16>
    %c3 = arith.constant 3 : index
    %c0_26 = arith.constant 0 : index
    %c0_27 = arith.constant 0 : index
    %19 = vector.load %arg2[%c3, %c0_26, %c0_27] : memref<9x4x4xbf16, #tpu.memory_space<vmem>>, vector<1x4x4xbf16>
    %20 = vector.shape_cast %19 : vector<1x4x4xbf16> to vector<4x4xbf16>
    %cst_28 = arith.constant dense<0.000000e+00> : vector<256x4xf32>
    %21 = tpu.matmul %18, %20, %cst_28 {dimension_numbers = #tpu.dot_dimension_numbers<[1], [0], [0], [1], [0, 0, 1, 1], [], []>} : vector<256x4xbf16>, vector<4x4xbf16>, vector<256x4xf32> -> vector<256x4xf32>
    %22 = arith.addf %17, %21 : vector<256x4xf32>
    %23 = vector.extract_strided_slice %13 {offsets = [32, 0], sizes = [256, 4], strides = [1, 1]} : vector<288x4xbf16> to vector<256x4xbf16>
    %c6 = arith.constant 6 : index
    %c0_29 = arith.constant 0 : index
    %c0_30 = arith.constant 0 : index
    %24 = vector.load %arg2[%c6, %c0_29, %c0_30] : memref<9x4x4xbf16, #tpu.memory_space<vmem>>, vector<1x4x4xbf16>
    %25 = vector.shape_cast %24 : vector<1x4x4xbf16> to vector<4x4xbf16>
    %cst_31 = arith.constant dense<0.000000e+00> : vector<256x4xf32>
    %26 = tpu.matmul %23, %25, %cst_31 {dimension_numbers = #tpu.dot_dimension_numbers<[1], [0], [0], [1], [0, 0, 1, 1], [], []>} : vector<256x4xbf16>, vector<4x4xbf16>, vector<256x4xf32> -> vector<256x4xf32>
    %27 = arith.addf %22, %26 : vector<256x4xf32>
    %c0_32 = arith.constant 0 : index
    %c1_33 = arith.constant 1 : index
    %c0_34 = arith.constant 0 : index
    %28 = vector.load %arg5[%c0_32, %c1_33, %c0_34] : memref<18x18x4xbf16, #tpu.memory_space<vmem>>, vector<18x16x4xbf16>
    %29 = vector.shape_cast %28 : vector<18x16x4xbf16> to vector<288x4xbf16>
    %30 = vector.extract_strided_slice %29 {offsets = [0, 0], sizes = [256, 4], strides = [1, 1]} : vector<288x4xbf16> to vector<256x4xbf16>
    %c1_35 = arith.constant 1 : index
    %c0_36 = arith.constant 0 : index
    %c0_37 = arith.constant 0 : index
    %31 = vector.load %arg2[%c1_35, %c0_36, %c0_37] : memref<9x4x4xbf16, #tpu.memory_space<vmem>>, vector<1x4x4xbf16>
    %32 = vector.shape_cast %31 : vector<1x4x4xbf16> to vector<4x4xbf16>
    %cst_38 = arith.constant dense<0.000000e+00> : vector<256x4xf32>
    %33 = tpu.matmul %30, %32, %cst_38 {dimension_numbers = #tpu.dot_dimension_numbers<[1], [0], [0], [1], [0, 0, 1, 1], [], []>} : vector<256x4xbf16>, vector<4x4xbf16>, vector<256x4xf32> -> vector<256x4xf32>
    %34 = arith.addf %27, %33 : vector<256x4xf32>
    %35 = vector.extract_strided_slice %29 {offsets = [16, 0], sizes = [256, 4], strides = [1, 1]} : vector<288x4xbf16> to vector<256x4xbf16>
    %c4 = arith.constant 4 : index
    %c0_39 = arith.constant 0 : index
    %c0_40 = arith.constant 0 : index
    %36 = vector.load %arg2[%c4, %c0_39, %c0_40] : memref<9x4x4xbf16, #tpu.memory_space<vmem>>, vector<1x4x4xbf16>
    %37 = vector.shape_cast %36 : vector<1x4x4xbf16> to vector<4x4xbf16>
    %cst_41 = arith.constant dense<0.000000e+00> : vector<256x4xf32>
    %38 = tpu.matmul %35, %37, %cst_41 {dimension_numbers = #tpu.dot_dimension_numbers<[1], [0], [0], [1], [0, 0, 1, 1], [], []>} : vector<256x4xbf16>, vector<4x4xbf16>, vector<256x4xf32> -> vector<256x4xf32>
    %39 = arith.addf %34, %38 : vector<256x4xf32>
    %40 = vector.extract_strided_slice %29 {offsets = [32, 0], sizes = [256, 4], strides = [1, 1]} : vector<288x4xbf16> to vector<256x4xbf16>
    %c7 = arith.constant 7 : index
    %c0_42 = arith.constant 0 : index
    %c0_43 = arith.constant 0 : index
    %41 = vector.load %arg2[%c7, %c0_42, %c0_43] : memref<9x4x4xbf16, #tpu.memory_space<vmem>>, vector<1x4x4xbf16>
    %42 = vector.shape_cast %41 : vector<1x4x4xbf16> to vector<4x4xbf16>
    %cst_44 = arith.constant dense<0.000000e+00> : vector<256x4xf32>
    %43 = tpu.matmul %40, %42, %cst_44 {dimension_numbers = #tpu.dot_dimension_numbers<[1], [0], [0], [1], [0, 0, 1, 1], [], []>} : vector<256x4xbf16>, vector<4x4xbf16>, vector<256x4xf32> -> vector<256x4xf32>
    %44 = arith.addf %39, %43 : vector<256x4xf32>
    %c0_45 = arith.constant 0 : index
    %c2_46 = arith.constant 2 : index
    %c0_47 = arith.constant 0 : index
    %45 = vector.load %arg5[%c0_45, %c2_46, %c0_47] : memref<18x18x4xbf16, #tpu.memory_space<vmem>>, vector<18x16x4xbf16>
    %46 = vector.shape_cast %45 : vector<18x16x4xbf16> to vector<288x4xbf16>
    %47 = vector.extract_strided_slice %46 {offsets = [0, 0], sizes = [256, 4], strides = [1, 1]} : vector<288x4xbf16> to vector<256x4xbf16>
    %c2_48 = arith.constant 2 : index
    %c0_49 = arith.constant 0 : index
    %c0_50 = arith.constant 0 : index
    %48 = vector.load %arg2[%c2_48, %c0_49, %c0_50] : memref<9x4x4xbf16, #tpu.memory_space<vmem>>, vector<1x4x4xbf16>
    %49 = vector.shape_cast %48 : vector<1x4x4xbf16> to vector<4x4xbf16>
    %cst_51 = arith.constant dense<0.000000e+00> : vector<256x4xf32>
    %50 = tpu.matmul %47, %49, %cst_51 {dimension_numbers = #tpu.dot_dimension_numbers<[1], [0], [0], [1], [0, 0, 1, 1], [], []>} : vector<256x4xbf16>, vector<4x4xbf16>, vector<256x4xf32> -> vector<256x4xf32>
    %51 = arith.addf %44, %50 : vector<256x4xf32>
    %52 = vector.extract_strided_slice %46 {offsets = [16, 0], sizes = [256, 4], strides = [1, 1]} : vector<288x4xbf16> to vector<256x4xbf16>
    %c5 = arith.constant 5 : index
    %c0_52 = arith.constant 0 : index
    %c0_53 = arith.constant 0 : index
    %53 = vector.load %arg2[%c5, %c0_52, %c0_53] : memref<9x4x4xbf16, #tpu.memory_space<vmem>>, vector<1x4x4xbf16>
    %54 = vector.shape_cast %53 : vector<1x4x4xbf16> to vector<4x4xbf16>
    %cst_54 = arith.constant dense<0.000000e+00> : vector<256x4xf32>
    %55 = tpu.matmul %52, %54, %cst_54 {dimension_numbers = #tpu.dot_dimension_numbers<[1], [0], [0], [1], [0, 0, 1, 1], [], []>} : vector<256x4xbf16>, vector<4x4xbf16>, vector<256x4xf32> -> vector<256x4xf32>
    %56 = arith.addf %51, %55 : vector<256x4xf32>
    %57 = vector.extract_strided_slice %46 {offsets = [32, 0], sizes = [256, 4], strides = [1, 1]} : vector<288x4xbf16> to vector<256x4xbf16>
    %c8 = arith.constant 8 : index
    %c0_55 = arith.constant 0 : index
    %c0_56 = arith.constant 0 : index
    %58 = vector.load %arg2[%c8, %c0_55, %c0_56] : memref<9x4x4xbf16, #tpu.memory_space<vmem>>, vector<1x4x4xbf16>
    %59 = vector.shape_cast %58 : vector<1x4x4xbf16> to vector<4x4xbf16>
    %cst_57 = arith.constant dense<0.000000e+00> : vector<256x4xf32>
    %60 = tpu.matmul %57, %59, %cst_57 {dimension_numbers = #tpu.dot_dimension_numbers<[1], [0], [0], [1], [0, 0, 1, 1], [], []>} : vector<256x4xbf16>, vector<4x4xbf16>, vector<256x4xf32> -> vector<256x4xf32>
    %61 = arith.addf %56, %60 : vector<256x4xf32>
    %cst_58 = arith.constant dense<0.000000e+00> : vector<4xf32>
    %62 = vector.multi_reduction <add>, %61, %cst_58 [0] : vector<256x4xf32> to vector<4xf32>
    %63 = vector.shape_cast %62 : vector<4xf32> to vector<1x4xf32>
    %cst_59 = arith.constant 3.906250e-03 : f32
    %64 = vector.broadcast %cst_59 : f32 to vector<1x4xf32>
    %65 = arith.mulf %63, %64 : vector<1x4xf32>
    %66 = vector.broadcast %65 : vector<1x4xf32> to vector<256x4xf32>
    %67 = arith.subf %61, %66 : vector<256x4xf32>
    %68 = arith.mulf %67, %67 : vector<256x4xf32>
    %cst_60 = arith.constant dense<0.000000e+00> : vector<4xf32>
    %69 = vector.multi_reduction <add>, %68, %cst_60 [0] : vector<256x4xf32> to vector<4xf32>
    %70 = vector.shape_cast %69 : vector<4xf32> to vector<1x4xf32>
    %cst_61 = arith.constant 3.906250e-03 : f32
    %71 = vector.broadcast %cst_61 : f32 to vector<1x4xf32>
    %72 = arith.mulf %70, %71 : vector<1x4xf32>
    %cst_62 = arith.constant 9.99999974E-6 : f32
    %73 = vector.broadcast %cst_62 : f32 to vector<1x4xf32>
    %74 = arith.addf %72, %73 : vector<1x4xf32>
    %75 = math.rsqrt %74 : vector<1x4xf32>
    %76 = vector.broadcast %75 : vector<1x4xf32> to vector<256x4xf32>
    %77 = arith.mulf %67, %76 : vector<256x4xf32>
    %cst_63 = arith.constant 0.000000e+00 : f32
    %78 = vector.broadcast %cst_63 : f32 to vector<256x4xf32>
    %79 = arith.maximumf %77, %78 : vector<256x4xf32>
    %80 = vector.shape_cast %79 : vector<256x4xf32> to vector<16x16x4xf32>
    %81 = arith.truncf %80 : vector<16x16x4xf32> to vector<16x16x4xbf16>
    %c1_64 = arith.constant 1 : index
    %c1_65 = arith.constant 1 : index
    %c0_66 = arith.constant 0 : index
    %82 = vector.load %arg5[%c1_64, %c1_65, %c0_66] : memref<18x18x4xbf16, #tpu.memory_space<vmem>>, vector<16x16x4xbf16>
    tpu.vector_store %arg5[%c1_64, %c1_65, %c0_66], %81 {strides = array<i32>} : memref<18x18x4xbf16, #tpu.memory_space<vmem>>, vector<16x16x4xbf16>,
    %83 = vector.extract_strided_slice %81 {offsets = [1, 0, 0], sizes = [1, 16, 4], strides = [1, 1, 1]} : vector<16x16x4xbf16> to vector<1x16x4xbf16>
    %c0_67 = arith.constant 0 : index
    %c1_68 = arith.constant 1 : index
    %c0_69 = arith.constant 0 : index
    %84 = vector.load %arg5[%c0_67, %c1_68, %c0_69] : memref<18x18x4xbf16, #tpu.memory_space<vmem>>, vector<1x16x4xbf16>
    tpu.vector_store %arg5[%c0_67, %c1_68, %c0_69], %83 {strides = array<i32>} : memref<18x18x4xbf16, #tpu.memory_space<vmem>>, vector<1x16x4xbf16>,
    %85 = vector.extract_strided_slice %81 {offsets = [14, 0, 0], sizes = [1, 16, 4], strides = [1, 1, 1]} : vector<16x16x4xbf16> to vector<1x16x4xbf16>
    %c17_70 = arith.constant 17 : index
    %c1_71 = arith.constant 1 : index
    %c0_72 = arith.constant 0 : index
    %86 = vector.load %arg5[%c17_70, %c1_71, %c0_72] : memref<18x18x4xbf16, #tpu.memory_space<vmem>>, vector<1x16x4xbf16>
    tpu.vector_store %arg5[%c17_70, %c1_71, %c0_72], %85 {strides = array<i32>} : memref<18x18x4xbf16, #tpu.memory_space<vmem>>, vector<1x16x4xbf16>,
    %c0_73 = arith.constant 0 : index
    %c2_74 = arith.constant 2 : index
    %c0_75 = arith.constant 0 : index
    %87 = vector.load %arg5[%c0_73, %c2_74, %c0_75] : memref<18x18x4xbf16, #tpu.memory_space<vmem>>, vector<18x1x4xbf16>
    %c0_76 = arith.constant 0 : index
    %c0_77 = arith.constant 0 : index
    %c0_78 = arith.constant 0 : index
    %88 = vector.load %arg5[%c0_76, %c0_77, %c0_78] : memref<18x18x4xbf16, #tpu.memory_space<vmem>>, vector<18x1x4xbf16>
    tpu.vector_store %arg5[%c0_76, %c0_77, %c0_78], %87 {strides = array<i32>} : memref<18x18x4xbf16, #tpu.memory_space<vmem>>, vector<18x1x4xbf16>,
    %c0_79 = arith.constant 0 : index
    %c15_80 = arith.constant 15 : index
    %c0_81 = arith.constant 0 : index
    %89 = vector.load %arg5[%c0_79, %c15_80, %c0_81] : memref<18x18x4xbf16, #tpu.memory_space<vmem>>, vector<18x1x4xbf16>
    %c0_82 = arith.constant 0 : index
    %c17_83 = arith.constant 17 : index
    %c0_84 = arith.constant 0 : index
    %90 = vector.load %arg5[%c0_82, %c17_83, %c0_84] : memref<18x18x4xbf16, #tpu.memory_space<vmem>>, vector<18x1x4xbf16>
    tpu.vector_store %arg5[%c0_82, %c17_83, %c0_84], %89 {strides = array<i32>} : memref<18x18x4xbf16, #tpu.memory_space<vmem>>, vector<18x1x4xbf16>,
    %c0_85 = arith.constant 0 : index
    %c0_86 = arith.constant 0 : index
    %c0_87 = arith.constant 0 : index
    %91 = vector.load %arg5[%c0_85, %c0_86, %c0_87] : memref<18x18x4xbf16, #tpu.memory_space<vmem>>, vector<18x16x4xbf16>
    %92 = vector.shape_cast %91 : vector<18x16x4xbf16> to vector<288x4xbf16>
    %93 = vector.extract_strided_slice %92 {offsets = [0, 0], sizes = [256, 4], strides = [1, 1]} : vector<288x4xbf16> to vector<256x4xbf16>
    %c0_88 = arith.constant 0 : index
    %c0_89 = arith.constant 0 : index
    %c0_90 = arith.constant 0 : index
    %94 = vector.load %arg3[%c0_88, %c0_89, %c0_90] : memref<9x4x4xbf16, #tpu.memory_space<vmem>>, vector<1x4x4xbf16>
    %95 = vector.shape_cast %94 : vector<1x4x4xbf16> to vector<4x4xbf16>
    %cst_91 = arith.constant dense<0.000000e+00> : vector<256x4xf32>
    %96 = tpu.matmul %93, %95, %cst_91 {dimension_numbers = #tpu.dot_dimension_numbers<[1], [0], [0], [1], [0, 0, 1, 1], [], []>} : vector<256x4xbf16>, vector<4x4xbf16>, vector<256x4xf32> -> vector<256x4xf32>
    %97 = vector.extract_strided_slice %92 {offsets = [16, 0], sizes = [256, 4], strides = [1, 1]} : vector<288x4xbf16> to vector<256x4xbf16>
    %c3_92 = arith.constant 3 : index
    %c0_93 = arith.constant 0 : index
    %c0_94 = arith.constant 0 : index
    %98 = vector.load %arg3[%c3_92, %c0_93, %c0_94] : memref<9x4x4xbf16, #tpu.memory_space<vmem>>, vector<1x4x4xbf16>
    %99 = vector.shape_cast %98 : vector<1x4x4xbf16> to vector<4x4xbf16>
    %cst_95 = arith.constant dense<0.000000e+00> : vector<256x4xf32>
    %100 = tpu.matmul %97, %99, %cst_95 {dimension_numbers = #tpu.dot_dimension_numbers<[1], [0], [0], [1], [0, 0, 1, 1], [], []>} : vector<256x4xbf16>, vector<4x4xbf16>, vector<256x4xf32> -> vector<256x4xf32>
    %101 = arith.addf %96, %100 : vector<256x4xf32>
    %102 = vector.extract_strided_slice %92 {offsets = [32, 0], sizes = [256, 4], strides = [1, 1]} : vector<288x4xbf16> to vector<256x4xbf16>
    %c6_96 = arith.constant 6 : index
    %c0_97 = arith.constant 0 : index
    %c0_98 = arith.constant 0 : index
    %103 = vector.load %arg3[%c6_96, %c0_97, %c0_98] : memref<9x4x4xbf16, #tpu.memory_space<vmem>>, vector<1x4x4xbf16>
    %104 = vector.shape_cast %103 : vector<1x4x4xbf16> to vector<4x4xbf16>
    %cst_99 = arith.constant dense<0.000000e+00> : vector<256x4xf32>
    %105 = tpu.matmul %102, %104, %cst_99 {dimension_numbers = #tpu.dot_dimension_numbers<[1], [0], [0], [1], [0, 0, 1, 1], [], []>} : vector<256x4xbf16>, vector<4x4xbf16>, vector<256x4xf32> -> vector<256x4xf32>
    %106 = arith.addf %101, %105 : vector<256x4xf32>
    %c0_100 = arith.constant 0 : index
    %c1_101 = arith.constant 1 : index
    %c0_102 = arith.constant 0 : index
    %107 = vector.load %arg5[%c0_100, %c1_101, %c0_102] : memref<18x18x4xbf16, #tpu.memory_space<vmem>>, vector<18x16x4xbf16>
    %108 = vector.shape_cast %107 : vector<18x16x4xbf16> to vector<288x4xbf16>
    %109 = vector.extract_strided_slice %108 {offsets = [0, 0], sizes = [256, 4], strides = [1, 1]} : vector<288x4xbf16> to vector<256x4xbf16>
    %c1_103 = arith.constant 1 : index
    %c0_104 = arith.constant 0 : index
    %c0_105 = arith.constant 0 : index
    %110 = vector.load %arg3[%c1_103, %c0_104, %c0_105] : memref<9x4x4xbf16, #tpu.memory_space<vmem>>, vector<1x4x4xbf16>
    %111 = vector.shape_cast %110 : vector<1x4x4xbf16> to vector<4x4xbf16>
    %cst_106 = arith.constant dense<0.000000e+00> : vector<256x4xf32>
    %112 = tpu.matmul %109, %111, %cst_106 {dimension_numbers = #tpu.dot_dimension_numbers<[1], [0], [0], [1], [0, 0, 1, 1], [], []>} : vector<256x4xbf16>, vector<4x4xbf16>, vector<256x4xf32> -> vector<256x4xf32>
    %113 = arith.addf %106, %112 : vector<256x4xf32>
    %114 = vector.extract_strided_slice %108 {offsets = [16, 0], sizes = [256, 4], strides = [1, 1]} : vector<288x4xbf16> to vector<256x4xbf16>
    %c4_107 = arith.constant 4 : index
    %c0_108 = arith.constant 0 : index
    %c0_109 = arith.constant 0 : index
    %115 = vector.load %arg3[%c4_107, %c0_108, %c0_109] : memref<9x4x4xbf16, #tpu.memory_space<vmem>>, vector<1x4x4xbf16>
    %116 = vector.shape_cast %115 : vector<1x4x4xbf16> to vector<4x4xbf16>
    %cst_110 = arith.constant dense<0.000000e+00> : vector<256x4xf32>
    %117 = tpu.matmul %114, %116, %cst_110 {dimension_numbers = #tpu.dot_dimension_numbers<[1], [0], [0], [1], [0, 0, 1, 1], [], []>} : vector<256x4xbf16>, vector<4x4xbf16>, vector<256x4xf32> -> vector<256x4xf32>
    %118 = arith.addf %113, %117 : vector<256x4xf32>
    %119 = vector.extract_strided_slice %108 {offsets = [32, 0], sizes = [256, 4], strides = [1, 1]} : vector<288x4xbf16> to vector<256x4xbf16>
    %c7_111 = arith.constant 7 : index
    %c0_112 = arith.constant 0 : index
    %c0_113 = arith.constant 0 : index
    %120 = vector.load %arg3[%c7_111, %c0_112, %c0_113] : memref<9x4x4xbf16, #tpu.memory_space<vmem>>, vector<1x4x4xbf16>
    %121 = vector.shape_cast %120 : vector<1x4x4xbf16> to vector<4x4xbf16>
    %cst_114 = arith.constant dense<0.000000e+00> : vector<256x4xf32>
    %122 = tpu.matmul %119, %121, %cst_114 {dimension_numbers = #tpu.dot_dimension_numbers<[1], [0], [0], [1], [0, 0, 1, 1], [], []>} : vector<256x4xbf16>, vector<4x4xbf16>, vector<256x4xf32> -> vector<256x4xf32>
    %123 = arith.addf %118, %122 : vector<256x4xf32>
    %c0_115 = arith.constant 0 : index
    %c2_116 = arith.constant 2 : index
    %c0_117 = arith.constant 0 : index
    %124 = vector.load %arg5[%c0_115, %c2_116, %c0_117] : memref<18x18x4xbf16, #tpu.memory_space<vmem>>, vector<18x16x4xbf16>
    %125 = vector.shape_cast %124 : vector<18x16x4xbf16> to vector<288x4xbf16>
    %126 = vector.extract_strided_slice %125 {offsets = [0, 0], sizes = [256, 4], strides = [1, 1]} : vector<288x4xbf16> to vector<256x4xbf16>
    %c2_118 = arith.constant 2 : index
    %c0_119 = arith.constant 0 : index
    %c0_120 = arith.constant 0 : index
    %127 = vector.load %arg3[%c2_118, %c0_119, %c0_120] : memref<9x4x4xbf16, #tpu.memory_space<vmem>>, vector<1x4x4xbf16>
    %128 = vector.shape_cast %127 : vector<1x4x4xbf16> to vector<4x4xbf16>
    %cst_121 = arith.constant dense<0.000000e+00> : vector<256x4xf32>
    %129 = tpu.matmul %126, %128, %cst_121 {dimension_numbers = #tpu.dot_dimension_numbers<[1], [0], [0], [1], [0, 0, 1, 1], [], []>} : vector<256x4xbf16>, vector<4x4xbf16>, vector<256x4xf32> -> vector<256x4xf32>
    %130 = arith.addf %123, %129 : vector<256x4xf32>
    %131 = vector.extract_strided_slice %125 {offsets = [16, 0], sizes = [256, 4], strides = [1, 1]} : vector<288x4xbf16> to vector<256x4xbf16>
    %c5_122 = arith.constant 5 : index
    %c0_123 = arith.constant 0 : index
    %c0_124 = arith.constant 0 : index
    %132 = vector.load %arg3[%c5_122, %c0_123, %c0_124] : memref<9x4x4xbf16, #tpu.memory_space<vmem>>, vector<1x4x4xbf16>
    %133 = vector.shape_cast %132 : vector<1x4x4xbf16> to vector<4x4xbf16>
    %cst_125 = arith.constant dense<0.000000e+00> : vector<256x4xf32>
    %134 = tpu.matmul %131, %133, %cst_125 {dimension_numbers = #tpu.dot_dimension_numbers<[1], [0], [0], [1], [0, 0, 1, 1], [], []>} : vector<256x4xbf16>, vector<4x4xbf16>, vector<256x4xf32> -> vector<256x4xf32>
    %135 = arith.addf %130, %134 : vector<256x4xf32>
    %136 = vector.extract_strided_slice %125 {offsets = [32, 0], sizes = [256, 4], strides = [1, 1]} : vector<288x4xbf16> to vector<256x4xbf16>
    %c8_126 = arith.constant 8 : index
    %c0_127 = arith.constant 0 : index
    %c0_128 = arith.constant 0 : index
    %137 = vector.load %arg3[%c8_126, %c0_127, %c0_128] : memref<9x4x4xbf16, #tpu.memory_space<vmem>>, vector<1x4x4xbf16>
    %138 = vector.shape_cast %137 : vector<1x4x4xbf16> to vector<4x4xbf16>
    %cst_129 = arith.constant dense<0.000000e+00> : vector<256x4xf32>
    %139 = tpu.matmul %136, %138, %cst_129 {dimension_numbers = #tpu.dot_dimension_numbers<[1], [0], [0], [1], [0, 0, 1, 1], [], []>} : vector<256x4xbf16>, vector<4x4xbf16>, vector<256x4xf32> -> vector<256x4xf32>
    %140 = arith.addf %135, %139 : vector<256x4xf32>
    %cst_130 = arith.constant dense<0.000000e+00> : vector<4xf32>
    %141 = vector.multi_reduction <add>, %140, %cst_130 [0] : vector<256x4xf32> to vector<4xf32>
    %142 = vector.shape_cast %141 : vector<4xf32> to vector<1x4xf32>
    %cst_131 = arith.constant 3.906250e-03 : f32
    %143 = vector.broadcast %cst_131 : f32 to vector<1x4xf32>
    %144 = arith.mulf %142, %143 : vector<1x4xf32>
    %145 = vector.broadcast %144 : vector<1x4xf32> to vector<256x4xf32>
    %146 = arith.subf %140, %145 : vector<256x4xf32>
    %147 = arith.mulf %146, %146 : vector<256x4xf32>
    %cst_132 = arith.constant dense<0.000000e+00> : vector<4xf32>
    %148 = vector.multi_reduction <add>, %147, %cst_132 [0] : vector<256x4xf32> to vector<4xf32>
    %149 = vector.shape_cast %148 : vector<4xf32> to vector<1x4xf32>
    %cst_133 = arith.constant 3.906250e-03 : f32
    %150 = vector.broadcast %cst_133 : f32 to vector<1x4xf32>
    %151 = arith.mulf %149, %150 : vector<1x4xf32>
    %cst_134 = arith.constant 9.99999974E-6 : f32
    %152 = vector.broadcast %cst_134 : f32 to vector<1x4xf32>
    %153 = arith.addf %151, %152 : vector<1x4xf32>
    %154 = math.rsqrt %153 : vector<1x4xf32>
    %155 = vector.broadcast %154 : vector<1x4xf32> to vector<256x4xf32>
    %156 = arith.mulf %146, %155 : vector<256x4xf32>
    %c0_135 = arith.constant 0 : index
    %c0_136 = arith.constant 0 : index
    %c0_137 = arith.constant 0 : index
    %c0_138 = arith.constant 0 : index
    %157 = vector.load %arg1[%c0_135, %c0_136, %c0_137, %c0_138] : memref<1x16x16x4xf32, #tpu.memory_space<vmem>>, vector<1x16x16x4xf32>
    %158 = vector.shape_cast %157 : vector<1x16x16x4xf32> to vector<16x16x4xf32>
    %159 = vector.shape_cast %156 : vector<256x4xf32> to vector<16x16x4xf32>
    %160 = arith.addf %158, %159 : vector<16x16x4xf32>
    %c0_139 = arith.constant 0 : index
    %c0_140 = arith.constant 0 : index
    %c0_141 = arith.constant 0 : index
    %c0_142 = arith.constant 0 : index
    %161 = vector.load %arg4[%c0_139, %c0_140, %c0_141, %c0_142] : memref<1x16x16x4xf32, #tpu.memory_space<vmem>>, vector<1x16x16x4xf32>
    %162 = vector.shape_cast %161 : vector<1x16x16x4xf32> to vector<16x16x4xf32>
    %163 = vector.shape_cast %160 : vector<16x16x4xf32> to vector<1x16x16x4xf32>
    tpu.vector_store %arg4[%c0_139, %c0_140, %c0_141, %c0_142], %163 {strides = array<i32>} : memref<1x16x16x4xf32, #tpu.memory_space<vmem>>, vector<1x16x16x4xf32>,
    return
  }
  func.func @transform_0(%arg0: i32) -> (i32, i32, i32, i32) {
    %c0_i32 = arith.constant 0 : i32
    %c0_i32_0 = arith.constant 0 : i32
    %c0_i32_1 = arith.constant 0 : i32
    %c0_i32_2 = arith.constant 0 : i32
    return %arg0, %c0_i32, %c0_i32_0, %c0_i32_1 : i32, i32, i32, i32
  }
  func.func @transform_1(%arg0: i32) -> (i32, i32, i32) {
    %c0_i32 = arith.constant 0 : i32
    %c0_i32_0 = arith.constant 0 : i32
    %c0_i32_1 = arith.constant 0 : i32
    %c0_i32_2 = arith.constant 0 : i32
    return %c0_i32, %c0_i32_0, %c0_i32_1 : i32, i32, i32
  }
  func.func @transform_2(%arg0: i32) -> (i32, i32, i32) {
    %c0_i32 = arith.constant 0 : i32
    %c0_i32_0 = arith.constant 0 : i32
    %c0_i32_1 = arith.constant 0 : i32
    %c0_i32_2 = arith.constant 0 : i32
    return %c0_i32, %c0_i32_0, %c0_i32_1 : i32, i32, i32
  }
  func.func @transform_3(%arg0: i32) -> (i32, i32, i32, i32) {
    %c0_i32 = arith.constant 0 : i32
    %c0_i32_0 = arith.constant 0 : i32
    %c0_i32_1 = arith.constant 0 : i32
    %c0_i32_2 = arith.constant 0 : i32
    return %arg0, %c0_i32, %c0_i32_0, %c0_i32_1 : i32, i32, i32, i32
  }
}

</mosaic_0001>

<bundles_post_ra>
// kernel: resnet_block_nhwc.1
= control target key start
LH: loop header
LB: loop body
LE: loop exit
PB: predicated region body
PF: predicated region fallthrough
CT: control target
= control target key end

     0   :  { %s9826_s12 = smov 0   ;;  %s14334_s0 = inlined_call_operand.vmem [shape: f32[2,16,16,4], index: 0, kind: input, shape index: {}]   ;;  %s14335_s1 = inlined_call_operand.vmem [shape: bf16[9,4,4], index: 1, kind: input, shape index: {}]   ;;  %s14336_s2 = inlined_call_operand.vmem [shape: bf16[9,4,4], index: 2, kind: input, shape index: {}]   ;;  %s14337_s3 = inlined_call_operand.vmem [shape: f32[2,16,16,4], index: 3, kind: output, shape index: {}]  }
   0x1 LB: > { %s8137_s13 = sadd.s32 4294967295, %s9804_s12   ;;  %p8141_p0 = scmp.ge.s32.totalorder %s9804_s12, 1  ;;  %s9804_s12 = sphi %s9826_s12, %s13_s12  }
   0x2   : > { %p137_p1 = scmp.lt.s32.totalorder %s9804_s12, 3 }
   0x4   : > { %p138_p2 = pnand %p8141_p0, %p137_p1 }
   0x6   : > { %141 = sbr.rel (%p138_p2) target bundleno = 1485 (0x5cd), region = 32 }
   0xb   : > { %v8214_v0 = vld [vmem:[%s14335_s1 + $0x6] sm:$0x3]  ;;  %vm1214_vm0 = vcmask 1041408   ;;  %v1082_v1 = vld [vmem:[%s14335_s1] sm:$0x3]  ;;  %p161_p3 = scmp.lt.s32.totalorder %s8137_s13, 1 }
   0xc   : > { %9716 = vmatprep.subr.msk.bf16.mxu0 %vm1214_vm0, %v8214_v0  ;;  %v1216_v2 = vsel %vm1214_vm0, %v8214_v0, 0  ;;  %9717 = vmatprep.subr.msk.bf16.mxu1 %vm1214_vm0, %v1082_v1  ;;  %v1388_v3 = vsel %vm1214_vm0, %v1082_v1, 0  ;;  %vm300_vm1 = vsmask.f32 256  ;;  %v9857_v4 = vld [vmem:[%s14335_s1 + $0xc] sm:$0x3] }
   0xd   : > { %9105 = vmatpush3.bf16.msra.mxu0 %v1216_v2  ;;  %9139 = vmatpush3.bf16.msra.mxu1 %v1388_v3  ;;  %s14632_s13 = smov (!%p161_p3, %s8137_s13), 1  ;;  %vm301_vm2 = vsmask.f32 4368  ;;  %vm624_vm3 = vcmask 27648   ;;  %vm625_vm4 = vsmask.f32 7938 }
   0xe   : > { %s8732_s18 = sshll.u32 %s14632_s13, 8  ;;  %9718 = vmatprep.subr.msk.bf16.mxu0 %vm1214_vm0, %v9857_v4  ;;  %vm632_vm5 = vcmask 24576   ;;  %v627_v21 = vld [vmem:[#allocation2 + $0xc] sm:$0xf]  ;;  %vm9871_vm6 = vmor %vm300_vm1, %vm301_vm2  ;;  %v14382_v26 = vmov 0  ;;  %v14385_v32 = vmov 0 }
   0xf   : > { %s9852_s21 = scalar_lea.vmem %s14334_s0, %s8732_s18  ;;  %v14383_v26 = vsel %vm9871_vm6, 4294967295, %v14382_v26  ;;  %v634_v29 = vld [vmem:[#allocation2 + $0x14] sm:$0x1]  ;;  %vm9877_vm7 = vmand %vm624_vm3, %vm625_vm4  ;;  %v641_v35 = vld [vmem:[#allocation2 + $0x20] sm:$0x1]  ;;  %v14388_v44 = vmov 0  ;;  %s14215_s8 = scalar_lea.vmem %s14337_s3, %s8732_s18 }
  0x10   : > { %v172_v5 = vld [vmem:[%s9852_s21] sm:$0xff]  ;;  %v173_v6 = vld [vmem:[%s9852_s21 + $0x8] sm:$0xff]  ;;  %v174_v7 = vld [vmem:[%s9852_s21 + $0x10] sm:$0xff]  ;;  %14384 = vst [vmem:[#allocation3_spill] sm:$0xff] %v14383_v26  ;;  %v14386_v32 = vsel %vm9877_vm7, 4294967295, %v14385_v32  ;;  %vm1165_vm10 = vcmask 31744  }
  0x11   : > { %v8734_v8 = vpack.c.bf16 %v172_v5, %v172_v5  ;;  %v8735_v9 = vpack.c.bf16 %v173_v6, %v173_v6  ;;  %v175_v10 = vld [vmem:[%s9852_s21 + $0x18] sm:$0xff]  ;;  %v8736_v11 = vpack.c.bf16 %v174_v7, %v174_v7  ;;  %v176_v12 = vld [vmem:[%s9852_s21 + $0x20] sm:$0xff]  ;;  %v177_v13 = vld [vmem:[%s9852_s21 + $0x28] sm:$0xff]  ;;  %14387 = vst [vmem:[#allocation4_spill] sm:$0xff] %v14386_v32  ;;  %vm1811_vm11 = vsmask.f32 3328 }
  0x12   : > { %v8737_v14 = vpack.c.bf16 %v175_v10, %v175_v10  ;;  %v8738_v15 = vpack.c.bf16 %v176_v12, %v176_v12  ;;  %v9867_v16 = vpack.c.bf16 %v177_v13, %v177_v13  ;;  %v742_v42 = vld [vmem:[#allocation2] sm:$0xf]  ;;  %v746_v43 = vld [vmem:[#allocation2 + $0x8] sm:$0x1]  ;;  %vm9885_vm8 = vmand %vm632_vm5, %vm300_vm1  ;;  %vm1812_vm12 = vsmask.f32 7440 }
  0x13   : > { %v304_v17 = vshrl.u32 %v8734_v8, 16  ;;  %v307_v18 = vshll.u32 %v8734_v8, 16  ;;  %v312_v19 = vshrl.u32 %v8735_v9, 16  ;;  %v315_v20 = vshll.u32 %v8735_v9, 16  ;;  %v637_v49 = vld [vmem:[#allocation2 + $0x18] sm:$0xf]  ;;  %vm9936_vm9 = vmand %vm632_vm5, %vm625_vm4 }
  0x14   : > { %v321_v22 = vshrl.u32 %v8736_v11, 16  ;;  %v324_v23 = vshll.u32 %v8736_v11, 16  ;;  %v329_v24 = vshrl.u32 %v8737_v14, 16  ;;  %v332_v25 = vshll.u32 %v8737_v14, 16  ;;  %v178_v50 = vld [vmem:[%s9852_s21 + $0x30] sm:$0xff]  ;;  %v179_v55 = vld [vmem:[%s9852_s21 + $0x38] sm:$0xff]  ;;  %vm10283_vm13 = vmor %vm1811_vm11, %vm1812_vm12 }
  0x15   : > { %v306_v27 = vrot.slane %v304_v17, 7  ;;  %v314_v28 = vrot.slane %v312_v19, 7  ;;  %v338_v30 = vshrl.u32 %v8738_v15, 16  ;;  %v341_v31 = vshll.u32 %v8738_v15, 16  ;;  %v180_v56 = vld [vmem:[%s9852_s21 + $0x40] sm:$0xff]  ;;  %v181_v57 = vld [vmem:[%s9852_s21 + $0x48] sm:$0xff] }
  0x16   : > { %v323_v33 = vrot.slane %v321_v22, 7  ;;  %v331_v34 = vrot.slane %v329_v24, 7  ;;  %v346_v36 = vshrl.u32 %v9867_v16, 16  ;;  %v349_v37 = vshll.u32 %v9867_v16, 16  ;;  %v644_v62 = vld [vmem:[#allocation2 + $0x24] sm:$0xf] }
  0x17   : > { %v309_v38 = vor.u32 %v307_v18, %v306_v27  ;;  %v310_v39 = vrot.slane %v306_v27, 4  ;;  %v317_v40 = vor.u32 %v315_v20, %v314_v28  ;;  %v319_v41 = vrot.slane %v314_v28, 4  ;;  %v182_v15 = vld [vmem:[%s9852_s21 + $0x50] sm:$0xff]  ;;  %v183_v19 = vld [vmem:[%s9852_s21 + $0x58] sm:$0xff]  ;;  %v184_v20 = vld [vmem:[%s9852_s21 + $0x60] sm:$0xff] }
  0x18   : > { %v14389_v44 = vsel %vm9885_vm8, 4294967295, %v14388_v44  ;;  %v326_v45 = vor.u32 %v324_v23, %v323_v33  ;;  %v327_v46 = vrot.slane %v323_v33, 4  ;;  %v334_v47 = vor.u32 %v332_v25, %v331_v34  ;;  %v651_v25 = vld [vmem:[#allocation2 + $0x30] sm:$0xf] }
  0x19   : > { %14390 = vst [vmem:[#allocation5_spill] sm:$0xff] %v14389_v44  ;;  %v336_v48 = vrot.slane %v331_v34, 4  ;;  %v318_v51 = vsel %vm9871_vm6, %v310_v39, %v317_v40  ;;  %v628_v52 = vsel %vm9877_vm7, %v309_v38, %v627_v21  ;;  %v635_v53 = vsel %vm9885_vm8, %v319_v41, %v634_v29  ;;  %v185_v21 = vld [vmem:[%s9852_s21 + $0x68] sm:$0xff]  ;;  %v186_v29 = vld [vmem:[%s9852_s21 + $0x70] sm:$0xff] }
  0x1a   : > { %v340_v54 = vrot.slane %v338_v30, 7  ;;  %629 = vst [vmem:[#allocation2 + $0xc] sm:$0xf] %v628_v52  ;;  %631 = vst.msk [vmem:[#allocation2 + $0x10] sm:$0xf] %vm624_vm3, %v318_v51  ;;  %v335_v58 = vsel %vm9871_vm6, %v327_v46, %v334_v47  ;;  %v743_v60 = vsel %vm9877_vm7, %v326_v45, %v742_v42  ;;  %v638_v63 = vsel %vm9877_vm7, %v326_v45, %v637_v49  ;;  %v187_v30 = vld [vmem:[%s9852_s21 + $0x78] sm:$0xff] }
  0x1b   : > { %636 = vst [vmem:[#allocation2 + $0x14] sm:$0x1] %v635_v53  ;;  %v642_v59 = vsel %vm9885_vm8, %v336_v48, %v641_v35  ;;  %v747_v61 = vsel %vm9885_vm8, %v336_v48, %v746_v43  ;;  %640 = vst.msk [vmem:[#allocation2 + $0x1c] sm:$0xf] %vm624_vm3, %v335_v58  ;;  %v9912_v2 = vrot.slane %v346_v36, 7  ;;  %v8740_v3 = vpack.c.bf16 %v178_v50, %v178_v50 }
  0x1c   : > { %643 = vst [vmem:[#allocation2 + $0x20] sm:$0x1] %v642_v59  ;;  %744 = vst [vmem:[#allocation2] sm:$0xf] %v743_v60  ;;  %v343_v0 = vor.u32 %v341_v31, %v340_v54  ;;  %v344_v1 = vrot.slane %v340_v54, 4  ;;  %v8741_v5 = vpack.c.bf16 %v179_v55, %v179_v55  ;;  %v9914_v6 = vpack.c.bf16 %v180_v56, %v180_v56 }
  0x1d   : > { %745 = vst.msk [vmem:[#allocation2 + $0x4] sm:$0xf] %vm624_vm3, %v335_v58  ;;  %748 = vst [vmem:[#allocation2 + $0x8] sm:$0x1] %v747_v61  ;;  %v9916_v7 = vpack.c.bf16 %v181_v57, %v181_v57  ;;  %v9920_v8 = vsel %vm1214_vm0, %v9857_v4, 0  ;;  %v351_v9 = vor.u32 %v349_v37, %v9912_v2  ;;  %v355_v11 = vshrl.u32 %v8740_v3, 16 }
  0x1e   : > { %639 = vst [vmem:[#allocation2 + $0x18] sm:$0xf] %v638_v63  ;;  %v645_v10 = vsel %vm9877_vm7, %v343_v0, %v644_v62  ;;  %v358_v12 = vshll.u32 %v8740_v3, 16  ;;  %v363_v13 = vshrl.u32 %v8741_v5, 16  ;;  %v366_v14 = vshll.u32 %v8741_v5, 16  ;;  %v188_v0 = vld [vmem:[%s9852_s21 + $0x80] sm:$0xff] }
  0x1f   : > { %646 = vst [vmem:[#allocation2 + $0x24] sm:$0xf] %v645_v10  ;;  %v352_v16 = vsel %vm9871_vm6, %v344_v1, %v351_v9  ;;  %v353_v17 = vrot.slane %v9912_v2, 4  ;;  %v372_v4 = vshrl.u32 %v9914_v6, 16  ;;  %v375_v18 = vshll.u32 %v9914_v6, 16 }
  0x20   : > { %v14391_v22 = vmov 0  ;;  %647 = vst.msk [vmem:[#allocation2 + $0x28] sm:$0xf] %vm624_vm3, %v352_v16  ;;  %v357_v23 = vrot.slane %v355_v11, 7  ;;  %v9941_v24 = vrot.slane %v363_v13, 7  ;;  %v380_v27 = vshrl.u32 %v9916_v7, 16 }
  0x21   : > { %v14392_v22 = vsel %vm9936_vm9, 4294967295, %v14391_v22  ;;  %v383_v28 = vshll.u32 %v9916_v7, 16  ;;  %v758_v31 = vld [vmem:[#allocation2 + $0xc] sm:$0x2]  ;;  %v850_v33 = vld [vmem:[#allocation2 + $0xc] sm:$0x1]  ;;  %v8744_v42 = vpack.c.bf16 %v182_v15, %v182_v15  ;;  %v8745_v43 = vpack.c.bf16 %v183_v19, %v183_v19 }
  0x22   : > { %14393 = vst [vmem:[#allocation6_spill] sm:$0xff] %v14392_v22  ;;  %v902_v34 = vld [vmem:[#allocation2 + $0x10] sm:$0x8]  ;;  %v8179_v35 = vrot.slane %v758_v31, 9  ;;  %v995_v37 = vld [vmem:[#allocation2 + $0x14] sm:$0x1]  ;;  %v360_v38 = vor.u32 %v358_v12, %v357_v23  ;;  %v368_v39 = vor.u32 %v366_v14, %v9941_v24  ;;  %v9948_v45 = vpack.c.bf16 %v184_v20, %v184_v20 }
  0x23   : > { %v8197_v36 = vrot.slane %v902_v34, 11  ;;  %v757_v40 = vld [vmem:[#allocation2] sm:$0x2]  ;;  %v847_v41 = vld [vmem:[#allocation2] sm:$0x1]  ;;  %v9950_v46 = vpack.c.bf16 %v185_v21, %v185_v21  ;;  %v361_v52 = vrot.slane %v357_v23, 4  ;;  %v9958_v57 = vpack.c.bf16 %v186_v29, %v186_v29 }
  0x24   : > { %v851_v47 = vsel %vm9885_vm8, %v8179_v35, %v850_v33  ;;  %v8178_v49 = vrot.slane %v757_v40, 9  ;;  %v652_v55 = vsel %vm9877_vm7, %v360_v38, %v651_v25  ;;  %v658_v56 = vld [vmem:[#allocation2 + $0x3c] sm:$0xf]  ;;  %v9960_v58 = vpack.c.bf16 %v187_v30, %v187_v30  ;;  %v189_v15 = vld [vmem:[%s9852_s21 + $0x88] sm:$0xff]  ;;  %v190_v25 = vld [vmem:[%s9852_s21 + $0x90] sm:$0xff] }
  0x25   : > { %v996_v48 = vsel %vm9936_vm9, %v8197_v36, %v995_v37  ;;  %v759_v50 = vld [vmem:[#allocation2 + $0x18] sm:$0x2]  ;;  %v853_v51 = vld [vmem:[#allocation2 + $0x18] sm:$0x1]  ;;  %852 = vst [vmem:[#allocation2 + $0xc] sm:$0x1] %v851_v47  ;;  %v369_v62 = vsel %vm9871_vm6, %v361_v52, %v368_v39  ;;  %v9976_v16 = vpack.c.bf16 %v188_v0, %v188_v0  ;;  %v9999_v38 = vpack.c.bf16 %v189_v15, %v189_v15 }
  0x26   : > { %997 = vst [vmem:[#allocation2 + $0x14] sm:$0x1] %v996_v48  ;;  %v8180_v53 = vrot.slane %v759_v50, 9  ;;  %v760_v54 = vld [vmem:[#allocation2 + $0x24] sm:$0x2]  ;;  %v848_v59 = vsel %vm9885_vm8, %v8178_v49, %v847_v41  ;;  %v374_v63 = vrot.slane %v372_v4, 7 }
  0x27   : > { %v8181_v60 = vrot.slane %v760_v54, 9  ;;  %v856_v61 = vld [vmem:[#allocation2 + $0x24] sm:$0x1]  ;;  %653 = vst [vmem:[#allocation2 + $0x30] sm:$0xf] %v652_v55  ;;  %v9970_v3 = vrot.slane %v380_v27, 7 }
  0x28   : > { %849 = vst [vmem:[#allocation2] sm:$0x1] %v848_v59  ;;  %v854_v1 = vsel %vm9885_vm8, %v8180_v53, %v853_v51  ;;  %654 = vst.msk [vmem:[#allocation2 + $0x34] sm:$0xf] %vm624_vm3, %v369_v62  ;;  %v389_v5 = vshrl.u32 %v8744_v42, 16  ;;  %v392_v6 = vshll.u32 %v8744_v42, 16  ;;  %v377_v9 = vor.u32 %v375_v18, %v374_v63 }
  0x29   : > { %855 = vst [vmem:[#allocation2 + $0x18] sm:$0x1] %v854_v1  ;;  %v857_v7 = vsel %vm9885_vm8, %v8181_v60, %v856_v61  ;;  %v378_v10 = vrot.slane %v374_v63, 4  ;;  %v397_v11 = vshrl.u32 %v8745_v43, 16  ;;  %v385_v12 = vor.u32 %v383_v28, %v9970_v3  ;;  %v9981_v4 = vld [vmem:[%s14335_s1 + $0x2] sm:$0x3] }
  0x2a   : > { %858 = vst [vmem:[#allocation2 + $0x24] sm:$0x1] %v857_v7  ;;  %v391_v13 = vrot.slane %v389_v5, 7  ;;  %v400_v14 = vshll.u32 %v8745_v43, 16  ;;  %v659_v19 = vsel %vm9877_vm7, %v377_v9, %v658_v56  ;;  %v665_v20 = vld [vmem:[#allocation2 + $0x48] sm:$0xf]  ;;  %9719 = vmatprep.subr.msk.bf16.mxu1 %vm1214_vm0, %v9981_v4 }
  0x2b   : > { %v9985_v18 = vrot.slane %v397_v11, 7  ;;  %v406_v21 = vshrl.u32 %v9948_v45, 16  ;;  %v409_v23 = vshll.u32 %v9948_v45, 16  ;;  %v386_v27 = vsel %vm9871_vm6, %v378_v10, %v385_v12  ;;  %660 = vst [vmem:[#allocation2 + $0x3c] sm:$0xf] %v659_v19  ;;  %v191_v33 = vld [vmem:[%s9852_s21 + $0x98] sm:$0xff] }
  0x2c   : > { %v394_v28 = vor.u32 %v392_v6, %v391_v13  ;;  %v395_v29 = vrot.slane %v391_v13, 4  ;;  %v414_v30 = vshrl.u32 %v9950_v46, 16  ;;  %v672_v31 = vld [vmem:[#allocation2 + $0x54] sm:$0xf]  ;;  %v9742_v34 = vld [vmem:[#allocation2 + $0xc] sm:$0xff]   ;;  %v417_v37 = vshll.u32 %v9950_v46, 16 }
  0x2d   : > { %661 = vst.msk [vmem:[#allocation2 + $0x40] sm:$0xf] %vm624_vm3, %v386_v27  ;;  %v402_v35 = vor.u32 %v400_v14, %v9985_v18  ;;  %v408_v36 = vrot.slane %v406_v21, 7  ;;  %v423_v43 = vshrl.u32 %v9958_v57, 16  ;;  %v10006_v45 = vpack.c.bf16 %v190_v25, %v190_v25  ;;  %v192_v47 = vld [vmem:[%s9852_s21 + $0xa0] sm:$0xff]  ;;  %9106 = vmatprep.mubr.msk.bf16.mxu0 %vm1165_vm10, %v9742_v34  ;;  %v193_v27 = vld [vmem:[%s9852_s21 + $0xa8] sm:$0xff] }
  0x2e   : > { %v761_v39 = vld [vmem:[#allocation2 + $0x30] sm:$0x2]  ;;  %v859_v40 = vld [vmem:[#allocation2 + $0x30] sm:$0x1]  ;;  %v666_v41 = vsel %vm9877_vm7, %v394_v28, %v665_v20  ;;  %v10003_v42 = vrot.slane %v414_v30, 7  ;;  %v10012_v51 = vpack.c.bf16 %v191_v33, %v191_v33  ;;  %v370_v54 = vrot.slane %v9941_v24, 4 }
  0x2f   : > { %v9743_v48 = vld [vmem:[#allocation2] sm:$0xff]   ;;  %v8182_v49 = vrot.slane %v761_v39, 9  ;;  %v403_v46 = vsel %vm9871_vm6, %v395_v29, %v402_v35  ;;  %667 = vst [vmem:[#allocation2 + $0x48] sm:$0xf] %v666_v41  ;;  %v411_v50 = vor.u32 %v409_v23, %v408_v36  ;;  %v10017_v52 = vld [vmem:[%s14335_s1 + $0x8] sm:$0x3] }
  0x30   : > { %v10019_v53 = vld [vmem:[#allocation2 + $0x18] sm:$0xff]   ;;  %668 = vst.msk [vmem:[#allocation2 + $0x4c] sm:$0xf] %vm624_vm3, %v403_v46  ;;  %v412_v55 = vrot.slane %v408_v36, 4  ;;  %v419_v56 = vor.u32 %v417_v37, %v10003_v42  ;;  %v425_v59 = vrot.slane %v423_v43, 7  ;;  %9140 = vmatprep.mubr.msk.bf16.mxu1 %vm1165_vm10, %v9743_v48  ;;  %v426_v63 = vshll.u32 %v9958_v57, 16 }
  0x31   : > { %v10025_v60 = vld [vmem:[#allocation2 + $0x24] sm:$0xff]   ;;  %v860_v61 = vsel %vm9885_vm8, %v8182_v49, %v859_v40  ;;  %v673_v62 = vsel %vm9877_vm7, %v411_v50, %v672_v31  ;;  %v431_v0 = vshrl.u32 %v9960_v58, 16  ;;  %9107 = vmatmul.mubr.msk.bf16.vlgmr.msra.gmra.mxu0 %vm1165_vm10, %v10019_v53  ;;  %9141 = vmatmul.mubr.msk.bf16.vlgmr.msra.gmra.mxu1 %vm1165_vm10, %v9742_v34  ;;  %v434_v6 = vshll.u32 %v9960_v58, 16  ;;  %v679_v7 = vld [vmem:[#allocation2 + $0x60] sm:$0xf]  ;;  %v194_v28 = vld [vmem:[%s9852_s21 + $0xb0] sm:$0xff] }
  0x32   : > { %861 = vst [vmem:[#allocation2 + $0x30] sm:$0x1] %v860_v61  ;;  %v420_v1 = vsel %vm9871_vm6, %v412_v55, %v419_v56  ;;  %674 = vst [vmem:[#allocation2 + $0x54] sm:$0xf] %v673_v62  ;;  %v429_v5 = vrot.slane %v425_v59, 4  ;;  %v440_v9 = vshrl.u32 %v9976_v16, 16  ;;  %9173 = vmatpush3.bf16.msra.mxu0 %v9920_v8  ;;  %9110 = vmatprep.mubr.msk.bf16.mxu0 %vm1165_vm10, %v10025_v60 }
  0x33   : > { %v762_v57 = vld [vmem:[#allocation2 + $0x3c] sm:$0x2]  ;;  %v862_v10 = vld [vmem:[#allocation2 + $0x3c] sm:$0x1]  ;;  %675 = vst.msk [vmem:[#allocation2 + $0x58] sm:$0xf] %vm624_vm3, %v420_v1  ;;  %v428_v11 = vor.u32 %v426_v63, %v425_v59  ;;  %v10047_v58 = vpack.c.bf16 %v192_v47, %v192_v47  ;;  %9144 = vmatprep.mubr.msk.bf16.mxu1 %vm1165_vm10, %v10019_v53  ;;  %9720 = vmatprep.subr.msk.bf16.mxu0 %vm1214_vm0, %v10017_v52 }
  0x34   : > { %v10044_v12 = vrot.slane %v431_v0, 7  ;;  %v443_v13 = vshll.u32 %v9976_v16, 16  ;;  %v8183_v8 = vrot.slane %v762_v57, 9  ;;  %v442_v14 = vrot.slane %v440_v9, 7  ;;  %v686_v23 = vld [vmem:[#allocation2 + $0x6c] sm:$0xf] }
  0x35   : > { %v448_v15 = vshrl.u32 %v9999_v38, 16  ;;  %v451_v19 = vshll.u32 %v9999_v38, 16  ;;  %v387_v20 = vrot.slane %v9970_v3, 4  ;;  %v680_v16 = vsel %vm9877_vm7, %v428_v11, %v679_v7  ;;  %v195_v40 = vld [vmem:[%s9852_s21 + $0xb8] sm:$0xff]  ;;  %v196_v46 = vld [vmem:[%s9852_s21 + $0xc0] sm:$0xff]  ;;  %v197_v50 = vld [vmem:[%s9852_s21 + $0xc8] sm:$0xff] }
  0x36   : > { %v436_v21 = vor.u32 %v434_v6, %v10044_v12  ;;  %v457_v25 = vshrl.u32 %v10006_v45, 16  ;;  %v863_v29 = vsel %vm9885_vm8, %v8183_v8, %v862_v10  ;;  %v763_v30 = vld [vmem:[#allocation2 + $0x48] sm:$0x2]  ;;  %v865_v31 = vld [vmem:[#allocation2 + $0x48] sm:$0x1]  ;;  %v445_v33 = vor.u32 %v443_v13, %v442_v14  ;;  %v198_v11 = vld [vmem:[%s9852_s21 + $0xd0] sm:$0xff] }
  0x37   : > { %681 = vst [vmem:[#allocation2 + $0x60] sm:$0xf] %v680_v16  ;;  %v446_v34 = vrot.slane %v442_v14, 4  ;;  %v10064_v35 = vrot.slane %v448_v15, 7  ;;  %864 = vst [vmem:[#allocation2 + $0x3c] sm:$0x1] %v863_v29  ;;  %v8755_v49 = vpack.c.bf16 %v193_v27, %v193_v27  ;;  %v8756_v62 = vpack.c.bf16 %v194_v28, %v194_v28 }
  0x38   : > { %v8184_v36 = vrot.slane %v763_v30, 9  ;;  %v437_v37 = vsel %vm9871_vm6, %v429_v5, %v436_v21  ;;  %v459_v38 = vrot.slane %v457_v25, 7  ;;  %v460_v39 = vshll.u32 %v10006_v45, 16  ;;  %v693_v48 = vld [vmem:[#allocation2 + $0x78] sm:$0xf] }
  0x39   : > { %682 = vst.msk [vmem:[#allocation2 + $0x64] sm:$0xf] %vm624_vm3, %v437_v37  ;;  %v453_v41 = vor.u32 %v451_v19, %v10064_v35  ;;  %v687_v43 = vsel %vm9877_vm7, %v445_v33, %v686_v23  ;;  %v465_v47 = vshrl.u32 %v10012_v51, 16  ;;  %v10077_v55 = vld [vmem:[#allocation2 + $0x30] sm:$0xff]   ;;  %9145 = vmatmul.mubr.msk.bf16.gmra.mxu1 %vm1165_vm10, %v10025_v60  ;;  %v10087_v6 = vpack.c.bf16 %v195_v40, %v195_v40  ;;  %v700_v15 = vld [vmem:[#allocation2 + $0x84] sm:$0xf] }
  0x3a   : > { %v866_v56 = vsel %vm9885_vm8, %v8184_v36, %v865_v31  ;;  %v764_v45 = vld [vmem:[#allocation2 + $0x54] sm:$0x2]  ;;  %688 = vst [vmem:[#allocation2 + $0x6c] sm:$0xf] %v687_v43  ;;  %v462_v59 = vor.u32 %v460_v39, %v459_v38  ;;  %v463_v61 = vrot.slane %v459_v38, 4  ;;  %9111 = vmatmul.mubr.msk.bf16.gmra.mxu0 %vm1165_vm10, %v10077_v55  ;;  %9148 = vmatprep.mubr.msk.bf16.mxu1 %vm1165_vm10, %v10077_v55  ;;  %v468_v7 = vshll.u32 %v10012_v51, 16 }
  0x3b   : > { %867 = vst [vmem:[#allocation2 + $0x48] sm:$0x1] %v866_v56  ;;  %v8185_v63 = vrot.slane %v764_v45, 9  ;;  %v868_v0 = vld [vmem:[#allocation2 + $0x54] sm:$0x1]  ;;  %v454_v1 = vsel %vm9871_vm6, %v446_v34, %v453_v41  ;;  %v10085_v5 = vrot.slane %v465_v47, 7  ;;  %v10102_v19 = vpack.c.bf16 %v196_v46, %v196_v46 }
  0x3c   : > { %689 = vst.msk [vmem:[#allocation2 + $0x70] sm:$0xf] %vm624_vm3, %v454_v1  ;;  %v694_v9 = vsel %vm9877_vm7, %v462_v59, %v693_v48  ;;  %v474_v57 = vshrl.u32 %v10047_v58, 16  ;;  %v477_v10 = vshll.u32 %v10047_v58, 16  ;;  %v482_v8 = vshrl.u32 %v8755_v49, 16  ;;  %v199_v21 = vld [vmem:[%s9852_s21 + $0xd8] sm:$0xff] }
  0x3d   : > { %v869_v13 = vsel %vm9885_vm8, %v8185_v63, %v868_v0  ;;  %695 = vst [vmem:[#allocation2 + $0x78] sm:$0xf] %v694_v9  ;;  %v485_v14 = vshll.u32 %v8755_v49, 16  ;;  %v470_v23 = vor.u32 %v468_v7, %v10085_v5  ;;  %v491_v27 = vshrl.u32 %v8756_v62, 16  ;;  %v707_v39 = vld [vmem:[#allocation2 + $0x90] sm:$0xf] }
  0x3e   : > { %870 = vst [vmem:[#allocation2 + $0x54] sm:$0x1] %v869_v13  ;;  %v765_v51 = vld [vmem:[#allocation2 + $0x60] sm:$0x2]  ;;  %v871_v16 = vld [vmem:[#allocation2 + $0x60] sm:$0x1]  ;;  %v10106_v28 = vpack.c.bf16 %v197_v50, %v197_v50  ;;  %v10112_v33 = vpack.c.bf16 %v198_v11, %v198_v11  ;;  %v10123_v49 = vpack.c.bf16 %v199_v21, %v199_v21 }
  0x3f   : > { %v476_v25 = vrot.slane %v474_v57, 7  ;;  %v10108_v58 = vld [vmem:[#allocation2 + $0x3c] sm:$0xff]   ;;  %v8186_v29 = vrot.slane %v765_v51, 9  ;;  %v10110_v30 = vrot.slane %v482_v8, 7  ;;  %v494_v31 = vshll.u32 %v8756_v62, 16 }
  0x40   : > { %v471_v34 = vsel %vm9871_vm6, %v463_v61, %v470_v23  ;;  %v493_v38 = vrot.slane %v491_v27, 7  ;;  %9114 = vmatprep.mubr.msk.bf16.mxu0 %vm1165_vm10, %v10108_v58  ;;  %v499_v48 = vshrl.u32 %v10087_v6, 16  ;;  %v502_v63 = vshll.u32 %v10087_v6, 16  ;;  %v714_v11 = vld [vmem:[#allocation2 + $0x9c] sm:$0xf]  ;;  %v201_v27 = vld [vmem:[%s9852_s21 + $0xe8] sm:$0xff] }
  0x41   : > { %v479_v36 = vor.u32 %v477_v10, %v476_v25  ;;  %v480_v37 = vrot.slane %v476_v25, 4  ;;  %v872_v40 = vsel %vm9885_vm8, %v8186_v29, %v871_v16  ;;  %v766_v41 = vld [vmem:[#allocation2 + $0x6c] sm:$0x2]  ;;  %v874_v43 = vld [vmem:[#allocation2 + $0x6c] sm:$0x1]  ;;  %v487_v47 = vor.u32 %v485_v14, %v10110_v30  ;;  %9149 = vmatmul.mubr.msk.bf16.gmra.mxu1 %vm1165_vm10, %v10108_v58  ;;  %v200_v25 = vld [vmem:[%s9852_s21 + $0xe0] sm:$0xff] }
  0x42   : > { %696 = vst.msk [vmem:[#allocation2 + $0x7c] sm:$0xf] %vm624_vm3, %v471_v34  ;;  %v10125_v46 = vld [vmem:[#allocation2 + $0x48] sm:$0xff]   ;;  %873 = vst [vmem:[#allocation2 + $0x60] sm:$0x1] %v872_v40  ;;  %v8187_v50 = vrot.slane %v766_v41, 9  ;;  %v496_v45 = vor.u32 %v494_v31, %v493_v38 }
  0x43   : > { %v701_v56 = vsel %vm9877_vm7, %v479_v36, %v700_v15  ;;  %v497_v59 = vrot.slane %v493_v38, 4  ;;  %v488_v61 = vsel %vm9871_vm6, %v480_v37, %v487_v47  ;;  %v10133_v62 = vrot.slane %v499_v48, 7  ;;  %9115 = vmatmul.mubr.msk.bf16.gmra.mxu0 %vm1165_vm10, %v10125_v46  ;;  %9152 = vmatprep.mubr.msk.bf16.mxu1 %vm1165_vm10, %v10125_v46  ;;  %v202_v40 = vld [vmem:[%s9852_s21 + $0xf0] sm:$0xff]  ;;  %v1773_v37 = vld [vmem:[#allocation2 + $0x40] sm:$0xf] }
  0x44   : > { %702 = vst [vmem:[#allocation2 + $0x84] sm:$0xf] %v701_v56  ;;  %v508_v0 = vshrl.u32 %v10102_v19, 16  ;;  %v875_v1 = vsel %vm9885_vm8, %v8187_v50, %v874_v43  ;;  %v767_v7 = vld [vmem:[#allocation2 + $0x78] sm:$0x2]  ;;  %v708_v57 = vsel %vm9877_vm7, %v496_v45, %v707_v39  ;;  %v511_v6 = vshll.u32 %v10102_v19, 16 }
  0x45   : > { %v877_v9 = vld [vmem:[#allocation2 + $0x78] sm:$0x1]  ;;  %703 = vst.msk [vmem:[#allocation2 + $0x88] sm:$0xf] %vm624_vm3, %v488_v61  ;;  %v516_v10 = vshrl.u32 %v10106_v28, 16  ;;  %v404_v13 = vrot.slane %v9985_v18, 4  ;;  %v504_v15 = vor.u32 %v502_v63, %v10133_v62  ;;  %v8762_v48 = vpack.c.bf16 %v200_v25, %v200_v25 }
  0x46   : > { %v10149_v8 = vld [vmem:[#allocation2 + $0x54] sm:$0xff]   ;;  %876 = vst [vmem:[#allocation2 + $0x6c] sm:$0x1] %v875_v1  ;;  %v8188_v14 = vrot.slane %v767_v7, 9  ;;  %709 = vst [vmem:[#allocation2 + $0x90] sm:$0xf] %v708_v57  ;;  %v8763_v50 = vpack.c.bf16 %v201_v27, %v201_v27 }
  0x47   : > { %v510_v21 = vrot.slane %v508_v0, 7  ;;  %v10152_v51 = vrot.slane %v516_v10, 7  ;;  %v519_v16 = vshll.u32 %v10106_v28, 16  ;;  %v525_v23 = vshrl.u32 %v10112_v33, 16  ;;  %9118 = vmatprep.mubr.msk.bf16.mxu0 %vm1165_vm10, %v10149_v8  ;;  %v721_v28 = vld [vmem:[#allocation2 + $0xa8] sm:$0xf] }
  0x48   : > { %v528_v19 = vshll.u32 %v10112_v33, 16  ;;  %v878_v29 = vsel %vm9885_vm8, %v8188_v14, %v877_v9  ;;  %v505_v31 = vsel %vm9871_vm6, %v497_v59, %v504_v15  ;;  %v533_v39 = vshrl.u32 %v10123_v49, 16  ;;  %v203_v56 = vld [vmem:[%s9852_s21 + $0xf8] sm:$0xff]  ;;  %v648_v7 = vld [vmem:[#allocation2 + $0x2c] sm:$0x1] }
  0x49   : > { %v513_v34 = vor.u32 %v511_v6, %v510_v21  ;;  %v514_v36 = vrot.slane %v510_v21, 4  ;;  %879 = vst [vmem:[#allocation2 + $0x78] sm:$0x1] %v878_v29  ;;  %710 = vst.msk [vmem:[#allocation2 + $0x94] sm:$0xf] %vm624_vm3, %v505_v31  ;;  %v521_v33 = vor.u32 %v519_v16, %v10152_v51  ;;  %v527_v38 = vrot.slane %v525_v23, 7  ;;  %9153 = vmatmul.mubr.msk.bf16.gmra.mxu1 %vm1165_vm10, %v10149_v8 }
  0x4a   : > { %v10170_v41 = vld [vmem:[#allocation2 + $0x60] sm:$0xff]   ;;  %v536_v47 = vshll.u32 %v10123_v49, 16  ;;  %v10178_v1 = vrot.slane %v533_v39, 7  ;;  %v542_v49 = vshrl.u32 %v8762_v48, 16  ;;  %v545_v57 = vshll.u32 %v8762_v48, 16 }
  0x4b   : > { %v715_v43 = vsel %vm9877_vm7, %v513_v34, %v714_v11  ;;  %v768_v45 = vld [vmem:[#allocation2 + $0x84] sm:$0x2]  ;;  %v880_v59 = vld [vmem:[#allocation2 + $0x84] sm:$0x1]  ;;  %v522_v61 = vsel %vm9871_vm6, %v514_v36, %v521_v33  ;;  %v530_v63 = vor.u32 %v528_v19, %v527_v38  ;;  %v531_v0 = vrot.slane %v527_v38, 4  ;;  %9119 = vmatmul.mubr.msk.bf16.gmra.mxu0 %vm1165_vm10, %v10170_v41  ;;  %9156 = vmatprep.mubr.msk.bf16.mxu1 %vm1165_vm10, %v10170_v41 }
  0x4c   : > { %716 = vst [vmem:[#allocation2 + $0x9c] sm:$0xf] %v715_v43  ;;  %v8189_v9 = vrot.slane %v768_v45, 9  ;;  %717 = vst.msk [vmem:[#allocation2 + $0xa0] sm:$0xf] %vm624_vm3, %v522_v61  ;;  %v550_v6 = vshrl.u32 %v8763_v50, 16  ;;  %v538_v15 = vor.u32 %v536_v47, %v10178_v1  ;;  %v8764_v23 = vpack.c.bf16 %v202_v40, %v202_v40 }
  0x4d   : > { %v10186_v11 = vld [vmem:[#allocation2 + $0x6c] sm:$0xff]   ;;  %v722_v21 = vsel %vm9877_vm7, %v530_v63, %v721_v28  ;;  %v728_v16 = vld [vmem:[#allocation2 + $0xb4] sm:$0xf]  ;;  %v544_v29 = vrot.slane %v542_v49, 7  ;;  %v553_v36 = vshll.u32 %v8763_v50, 16  ;;  %v8765_v28 = vpack.c.bf16 %v203_v56, %v203_v56 }
  0x4e   : > { %v769_v14 = vld [vmem:[#allocation2 + $0x90] sm:$0x2]  ;;  %v881_v19 = vsel %vm9885_vm8, %v8189_v9, %v880_v59  ;;  %v883_v27 = vld [vmem:[#allocation2 + $0x90] sm:$0x1]  ;;  %723 = vst [vmem:[#allocation2 + $0xa8] sm:$0xf] %v722_v21  ;;  %9122 = vmatprep.mubr.msk.bf16.mxu0 %vm1165_vm10, %v10186_v11  ;;  %v539_v34 = vsel %vm9871_vm6, %v531_v0, %v538_v15  ;;  %v649_v45 = vsel %vm9885_vm8, %v353_v17, %v648_v7 }
  0x4f   : > { %v8190_v25 = vrot.slane %v769_v14, 9  ;;  %v10195_v31 = vrot.slane %v550_v6, 7  ;;  %882 = vst [vmem:[#allocation2 + $0x84] sm:$0x1] %v881_v19  ;;  %v559_v33 = vshrl.u32 %v8764_v23, 16  ;;  %v10204_v43 = vor.u32 %v545_v57, %v544_v29 }
  0x50   : > { %v901_v38 = vld [vmem:[#allocation2 + $0x4] sm:$0x8]  ;;  %v655_v39 = vld [vmem:[#allocation2 + $0x38] sm:$0x1]  ;;  %724 = vst.msk [vmem:[#allocation2 + $0xac] sm:$0xf] %vm624_vm3, %v539_v34 }
  0x51   : > { %v884_v40 = vsel %vm9885_vm8, %v8190_v25, %v883_v27  ;;  %v548_v47 = vrot.slane %v544_v29, 4  ;;  %v735_v48 = vld [vmem:[#allocation2 + $0xc0] sm:$0xf]  ;;  %v10211_v56 = vld [vmem:[#allocation2 + $0x78] sm:$0xff]   ;;  %v555_v59 = vor.u32 %v553_v36, %v10195_v31  ;;  %v561_v61 = vrot.slane %v559_v33, 7  ;;  %9157 = vmatmul.mubr.msk.bf16.gmra.mxu1 %vm1165_vm10, %v10186_v11 }
  0x52   : > { %885 = vst [vmem:[#allocation2 + $0x90] sm:$0x1] %v884_v40  ;;  %v562_v63 = vshll.u32 %v8764_v23, 16  ;;  %v992_v0 = vld [vmem:[#allocation2 + $0x8] sm:$0x1]  ;;  %v729_v2 = vsel %vm9877_vm7, %v10204_v43, %v728_v16  ;;  %v567_v6 = vshrl.u32 %v8765_v28, 16  ;;  %v656_v14 = vsel %vm9885_vm8, %v370_v54, %v655_v39  ;;  %9160 = vmatprep.mubr.msk.bf16.mxu1 %vm1165_vm10, %v10211_v56 }
  0x53   : > { %v1757_v9 = vld [vmem:[#allocation2] sm:$0xf]  ;;  %650 = vst [vmem:[#allocation2 + $0x2c] sm:$0x1] %v649_v45  ;;  %v770_v49 = vld [vmem:[#allocation2 + $0x9c] sm:$0x2]  ;;  %v556_v23 = vsel %vm9871_vm6, %v548_v47, %v555_v59  ;;  %9123 = vmatmul.mubr.msk.bf16.gmra.mxu0 %vm1165_vm10, %v10211_v56 }
  0x54   : > { %v886_v57 = vld [vmem:[#allocation2 + $0x9c] sm:$0x1]  ;;  %v570_v17 = vshll.u32 %v8765_v28, 16  ;;  %v1758_v7 = vld [vmem:[#allocation2 + $0x4] sm:$0xf]  ;;  %v8191_v21 = vrot.slane %v770_v49, 9  ;;  %v564_v19 = vor.u32 %v562_v63, %v561_v61 }
  0x55   : > { %730 = vst [vmem:[#allocation2 + $0xb4] sm:$0xf] %v729_v2  ;;  %v1760_v25 = vld [vmem:[#allocation2 + $0xc] sm:$0xf]  ;;  %657 = vst [vmem:[#allocation2 + $0x38] sm:$0x1] %v656_v14 }
  0x56   : > { %731 = vst.msk [vmem:[#allocation2 + $0xb8] sm:$0xf] %vm624_vm3, %v556_v23  ;;  %753 = vst.msk [vmem:[#allocation2 + $0xd0] sm:$0xf] %vm624_vm3, %v556_v23  ;;  %v565_v24 = vrot.slane %v561_v61, 4  ;;  %v10228_v16 = vrot.slane %v567_v6, 7  ;;  %v887_v34 = vsel %vm9885_vm8, %v8191_v21, %v886_v57  ;;  %v736_v33 = vsel %vm9877_vm7, %v564_v19, %v735_v48 }
  0x57   : > { %v2345_v54 = vsel %vm1214_vm0, %v9981_v4, 0  ;;  %v8196_v27 = vrot.slane %v901_v38, 11  ;;  %v10232_v29 = vld [vmem:[#allocation2 + $0x10] sm:$0xf]  ;;  %v771_v36 = vld [vmem:[#allocation2 + $0xa8] sm:$0x2] }
  0x58   : > { %v889_v28 = vld [vmem:[#allocation2 + $0xa8] sm:$0x1]  ;;  %v1815_v4 = vshrl.u32 %v1757_v9, 16  ;;  %v1818_v38 = vshll.u32 %v1757_v9, 16  ;;  %888 = vst [vmem:[#allocation2 + $0x9c] sm:$0x1] %v887_v34  ;;  %v572_v45 = vor.u32 %v570_v17, %v10228_v16  ;;  %9207 = vmatpush3.bf16.msra.mxu1 %v2345_v54 }
  0x59   : > { %v10243_v40 = vld [vmem:[#allocation2 + $0x84] sm:$0xff]   ;;  %v8192_v47 = vrot.slane %v771_v36, 9  ;;  %737 = vst [vmem:[#allocation2 + $0xc0] sm:$0xf] %v736_v33  ;;  %v993_v59 = vsel %vm9936_vm9, %v8196_v27, %v992_v0  ;;  %v1824_v49 = vshll.u32 %v1758_v7, 16  ;;  %v1828_v48 = vshrl.u32 %v1758_v7, 16 }
  0x5a   : > { %994 = vst [vmem:[#allocation2 + $0x8] sm:$0x1] %v993_v59  ;;  %v1817_v61 = vrot.slane %v1815_v4, 4  ;;  %v1820_v63 = vrot.slane %v1818_v38, 5  ;;  %v1762_v57 = vld [vmem:[#allocation2 + $0x14] sm:$0x1]  ;;  %9126 = vmatprep.mubr.msk.bf16.mxu0 %vm1165_vm10, %v10243_v40  ;;  %v573_v2 = vsel %vm9871_vm6, %v565_v24, %v572_v45  ;;  %9161 = vmatmul.mubr.msk.bf16.gmra.mxu1 %vm1165_vm10, %v10243_v40 }
  0x5b   : > { %v890_v9 = vsel %vm9885_vm8, %v8192_v47, %v889_v28  ;;  %v1839_v6 = vshrl.u32 %v1760_v25, 16  ;;  %v1842_v17 = vshll.u32 %v1760_v25, 16  ;;  %v903_v14 = vld [vmem:[#allocation2 + $0x1c] sm:$0x8]  ;;  %v10254_v21 = vld [vmem:[#allocation2 + $0x90] sm:$0xff]   ;;  %v10257_v7 = vrot.slane %v1824_v49, 5 }
  0x5c   : > { %891 = vst [vmem:[#allocation2 + $0xa8] sm:$0x1] %v890_v9  ;;  %738 = vst.msk [vmem:[#allocation2 + $0xc4] sm:$0xf] %vm624_vm3, %v573_v2  ;;  %v1821_v0 = vor.u32 %v1820_v63, %v1817_v61  ;;  %v1830_v23 = vrot.slane %v1828_v48, 4  ;;  %v1848_v19 = vshll.u32 %v10232_v29, 16  ;;  %9127 = vmatmul.mubr.msk.bf16.gmra.mxu0 %vm1165_vm10, %v10254_v21  ;;  %9164 = vmatprep.mubr.msk.bf16.mxu1 %vm1165_vm10, %v10254_v21 }
  0x5d   : > { %v998_v54 = vld [vmem:[#allocation2 + $0x20] sm:$0x1]  ;;  %v772_v27 = vld [vmem:[#allocation2 + $0xb4] sm:$0x2]  ;;  %v892_v34 = vld [vmem:[#allocation2 + $0xb4] sm:$0x1] }
  0x5e   : > { %v1841_v36 = vrot.slane %v1839_v6, 4  ;;  %v1844_v28 = vrot.slane %v1842_v17, 5  ;;  %v1763_v24 = vld [vmem:[#allocation2 + $0x18] sm:$0xf]  ;;  %v8193_v33 = vrot.slane %v772_v27, 9  ;;  %v10261_v4 = vrot.slane %v1821_v0, 4 }
  0x5f   : > { %v1831_v38 = vor.u32 %v1830_v23, %v10257_v7  ;;  %v1852_v45 = vshrl.u32 %v10232_v29, 16  ;;  %v1858_v59 = vshll.u32 %v1762_v57, 16  ;;  %v8198_v61 = vrot.slane %v903_v14, 11  ;;  %v1764_v63 = vld [vmem:[#allocation2 + $0x1c] sm:$0xf] }
  0x60   : > { %v1845_v47 = vor.u32 %v1844_v28, %v1841_v36  ;;  %v10269_v49 = vld [vmem:[#allocation2 + $0x9c] sm:$0xff]   ;;  %v893_v48 = vsel %vm9885_vm8, %v8193_v33, %v892_v34  ;;  %v10275_v2 = vrot.slane %v1848_v19, 5  ;;  %v904_v6 = vld [vmem:[#allocation2 + $0x28] sm:$0x8]  ;;  %v1766_v23 = vld [vmem:[#allocation2 + $0x24] sm:$0xf] }
  0x61   : > { %v773_v9 = vld [vmem:[#allocation2 + $0xc0] sm:$0x2]  ;;  %894 = vst [vmem:[#allocation2 + $0xb4] sm:$0x1] %v893_v48  ;;  %v895_v57 = vld [vmem:[#allocation2 + $0xc0] sm:$0x1]  ;;  %v999_v0 = vsel %vm9936_vm9, %v8198_v61, %v998_v54  ;;  %9130 = vmatprep.mubr.msk.bf16.mxu0 %vm1165_vm10, %v10269_v49 }
  0x62   : > { %v8194_v29 = vrot.slane %v773_v9, 9  ;;  %v1759_v17 = vld [vmem:[#allocation2 + $0x8] sm:$0x1]  ;;  %v1832_v14 = vrot.slane %v1831_v38, 4  ;;  %v14394_v27 = vmov 0  ;;  %v1846_v34 = vrot.slane %v1845_v47, 4  ;;  %9165 = vmatmul.mubr.msk.bf16.gmra.mxu1 %vm1165_vm10, %v10269_v49 }
  0x63   : > { %v14395_v27 = vsel %vm10283_vm13, 4294967295, %v14394_v27  ;;  %v1834_v19 = vshll.u32 %v1759_v17, 16  ;;  %v1854_v36 = vrot.slane %v1852_v45, 4  ;;  %1000 = vst [vmem:[#allocation2 + $0x20] sm:$0x1] %v999_v0  ;;  %v1863_v28 = vshrl.u32 %v1763_v24, 16 }
  0x64   : > { %14396 = vst [vmem:[#allocation7_spill] sm:$0xff] %v14395_v27  ;;  %v662_v33 = vld [vmem:[#allocation2 + $0x44] sm:$0x1]  ;;  %v896_v38 = vsel %vm9885_vm8, %v8194_v29, %v895_v57  ;;  %v1860_v54 = vrot.slane %v1858_v59, 5  ;;  %v1866_v61 = vshll.u32 %v1763_v24, 16  ;;  %v10293_v9 = vld [vmem:[#allocation2 + $0xa8] sm:$0xff]   ;;  %v1827_v24 = vsel %vm10283_vm13, %v10261_v4, %v10257_v7 }
  0x65   : > { %v663_v48 = vsel %vm9885_vm8, %v387_v20, %v662_v33  ;;  %897 = vst [vmem:[#allocation2 + $0xc0] sm:$0x1] %v896_v38  ;;  %v1836_v25 = vrot.slane %v1834_v19, 5  ;;  %v1855_v47 = vor.u32 %v1854_v36, %v10275_v2  ;;  %v1865_v45 = vrot.slane %v1863_v28, 4  ;;  %v1001_v0 = vld [vmem:[#allocation2 + $0x2c] sm:$0x1]  ;;  %9131 = vmatmul.mubr.msk.bf16.gmra.mxu0 %vm1165_vm10, %v10293_v9  ;;  %9168 = vmatprep.mubr.msk.bf16.mxu1 %vm1165_vm10, %v10293_v9 }
  0x66   : > { %v1872_v17 = vshll.u32 %v1764_v63, 16  ;;  %664 = vst [vmem:[#allocation2 + $0x44] sm:$0x1] %v663_v48  ;;  %v1868_v59 = vrot.slane %v1866_v61, 5  ;;  %v1876_v3 = vshrl.u32 %v1764_v63, 16  ;;  %v8199_v29 = vrot.slane %v904_v6, 11 }
  0x67   : > { %v1767_v57 = vld [vmem:[#allocation2 + $0x28] sm:$0xf]  ;;  %v1837_v20 = vsel %vm10283_vm13, %v1832_v14, %v1836_v25  ;;  %v1856_v33 = vrot.slane %v1855_v47, 4  ;;  %v1887_v36 = vshrl.u32 %v1766_v23, 16  ;;  %v1851_v28 = vsel %vm10283_vm13, %v1846_v34, %v10275_v2  ;;  %v905_v63 = vld [vmem:[#allocation2 + $0x34] sm:$0x8] }
  0x68   : > { %v10302_v19 = vrot.slane %v1872_v17, 5  ;;  %v1869_v38 = vor.u32 %v1868_v59, %v1865_v45  ;;  %v1878_v7 = vrot.slane %v1876_v3, 4  ;;  %v1002_v4 = vsel %vm9936_vm9, %v8199_v29, %v1001_v0  ;;  %v1769_v6 = vld [vmem:[#allocation2 + $0x30] sm:$0xf]  ;;  %v10313_v25 = vld [vmem:[#allocation2 + $0xb4] sm:$0xff]  }
  0x69   : > { %v1861_v14 = vsel %vm10283_vm13, %v1856_v33, %v1860_v54  ;;  %1003 = vst [vmem:[#allocation2 + $0x2c] sm:$0x1] %v1002_v4  ;;  %v1889_v2 = vrot.slane %v1887_v36, 4  ;;  %v1890_v34 = vshll.u32 %v1766_v23, 16  ;;  %v1896_v61 = vshll.u32 %v1767_v57, 16  ;;  %9134 = vmatprep.mubr.msk.bf16.mxu0 %vm1165_vm10, %v10313_v25 }
  0x6a   : > { %v10321_v48 = vsel %vm1214_vm0, %v10017_v52, 0  ;;  %v8283_v47 = vcombine.low %v1827_v24, %v1837_v20  ;;  %v1765_v45 = vld [vmem:[#allocation2 + $0x20] sm:$0x1]  ;;  %v1879_v17 = vor.u32 %v1878_v7, %v10302_v19  ;;  %v1900_v0 = vshrl.u32 %v1767_v57, 16  ;;  %v1770_v59 = vld [vmem:[#allocation2 + $0x34] sm:$0xf]  ;;  %9169 = vmatmul.mubr.msk.bf16.gmra.mxu1 %vm1165_vm10, %v10313_v25 }
  0x6b   : > { %v1870_v3 = vrot.slane %v1869_v38, 4  ;;  %v1882_v29 = vshll.u32 %v1765_v45, 16  ;;  %v1892_v54 = vrot.slane %v1890_v34, 5  ;;  %v1898_v33 = vrot.slane %v1896_v61, 5  ;;  %v1004_v36 = vld [vmem:[#allocation2 + $0x38] sm:$0x1] }
  0x6c   : > { %v10326_v23 = vcombine.low %v1851_v28, %v1861_v14  ;;  %v1880_v4 = vrot.slane %v1879_v17, 4  ;;  %v1902_v39 = vrot.slane %v1900_v0, 4  ;;  %v8200_v52 = vrot.slane %v905_v63, 11  ;;  %v10328_v15 = vld [vmem:[#allocation2 + $0xc0] sm:$0xff]   ;;  %v1772_v61 = vld [vmem:[#allocation2 + $0x3c] sm:$0xf]  ;;  %9208 = vmatprep.mubr.msk.bf16.mxu1 %vm1165_vm10, %v8283_v47 }
  0x6d   : > { %v1884_v24 = vrot.slane %v1882_v29, 5  ;;  %v1893_v20 = vor.u32 %v1892_v54, %v1889_v2  ;;  %v1911_v7 = vshrl.u32 %v1769_v6, 16  ;;  %v1914_v57 = vshll.u32 %v1769_v6, 16  ;;  %v906_v50 = vld [vmem:[#allocation2 + $0x40] sm:$0x8]  ;;  %9135 = vmatmul.mubr.msk.bf16.gmra.mxu0 %vm1165_vm10, %v10328_v15 }
  0x6e   : > { %v1903_v10 = vor.u32 %v1902_v39, %v1898_v33  ;;  %v1005_v38 = vsel %vm9936_vm9, %v8200_v52, %v1004_v36  ;;  %v1920_v45 = vshll.u32 %v1770_v59, 16  ;;  %v1924_v34 = vshrl.u32 %v1770_v59, 16  ;;  %v1007_v2 = vld [vmem:[#allocation2 + $0x44] sm:$0x1]  ;;  %9174 = vmatprep.mubr.msk.bf16.mxu0 %vm1165_vm10, %v10019_v53  ;;  %v1776_v53 = vld [vmem:[#allocation2 + $0x4c] sm:$0xf] }
  0x6f   : > { %v1875_v28 = vsel %vm10283_vm13, %v1870_v3, %v10302_v19  ;;  %v1894_v63 = vrot.slane %v1893_v20, 4  ;;  %1006 = vst [vmem:[#allocation2 + $0x38] sm:$0x1] %v1005_v38  ;;  %v1913_v14 = vrot.slane %v1911_v7, 4  ;;  %v1916_v17 = vrot.slane %v1914_v57, 5 }
  0x70   : > { %v1885_v39 = vsel %vm10283_vm13, %v1880_v4, %v1884_v24  ;;  %v10339_v6 = vld [vmem:[#allocation2 + $0x2c] sm:$0x1]  ;;  %v1904_v0 = vrot.slane %v1903_v10, 4  ;;  %v10341_v59 = vrot.slane %v1920_v45, 5  ;;  %v1926_v29 = vrot.slane %v1924_v34, 4 }
  0x71   : > { %v1899_v19 = vsel %vm10283_vm13, %v1894_v63, %v1898_v33  ;;  %v1906_v3 = vshll.u32 %v10339_v6, 16  ;;  %v1917_v54 = vor.u32 %v1916_v17, %v1913_v14  ;;  %v8201_v36 = vrot.slane %v906_v50, 11  ;;  %v669_v20 = vld [vmem:[#allocation2 + $0x50] sm:$0x1]  ;;  %v1775_v33 = vld [vmem:[#allocation2 + $0x48] sm:$0xf] }
  0x72   : > { %v1927_v10 = vor.u32 %v1926_v29, %v10341_v59  ;;  %v1935_v4 = vshrl.u32 %v1772_v61, 16  ;;  %v1938_v52 = vshll.u32 %v1772_v61, 16  ;;  %v1944_v24 = vshll.u32 %v1773_v37, 16  ;;  %v676_v29 = vld [vmem:[#allocation2 + $0x5c] sm:$0x1]  ;;  %9209 = vmatmul.mubr.msk.bf16.vlgmr.msra.gmra.mxu1 %vm1165_vm10, %v10326_v23 }
  0x73   : > { %v1908_v7 = vrot.slane %v1906_v3, 5  ;;  %v1918_v57 = vrot.slane %v1917_v54, 4  ;;  %v1008_v47 = vsel %vm9936_vm9, %v8201_v36, %v1007_v2  ;;  %v1948_v38 = vshrl.u32 %v1773_v37, 16  ;;  %v907_v37 = vld [vmem:[#allocation2 + $0x4c] sm:$0x8] }
  0x74   : > { %v10354_v45 = vcombine.low %v1875_v28, %v1885_v39  ;;  %1009 = vst [vmem:[#allocation2 + $0x44] sm:$0x1] %v1008_v47  ;;  %v1937_v50 = vrot.slane %v1935_v4, 4  ;;  %v1940_v34 = vrot.slane %v1938_v52, 5  ;;  %v10356_v63 = vrot.slane %v1944_v24, 5 }
  0x75   : > { %v1909_v61 = vsel %vm10283_vm13, %v1904_v0, %v1908_v7  ;;  %v1928_v14 = vrot.slane %v1927_v10, 4  ;;  %v1950_v17 = vrot.slane %v1948_v38, 4  ;;  %v670_v2 = vsel %vm9885_vm8, %v404_v13, %v669_v20  ;;  %v10371_v36 = vld [vmem:[#allocation2 + $0x58] sm:$0x8]  ;;  %v1778_v52 = vld [vmem:[#allocation2 + $0x54] sm:$0xf]  ;;  %9175 = vmatmul.mubr.msk.bf16.vlgmr.msra.gmra.mxu0 %vm1165_vm10, %v10025_v60 }
  0x76   : > { %v10364_v28 = vcombine.low %v1899_v19, %v1909_v61  ;;  %v10366_v39 = vld [vmem:[#allocation2 + $0x38] sm:$0x1]  ;;  %v1923_v3 = vsel %vm10283_vm13, %v1918_v57, %v10341_v59  ;;  %v1941_v54 = vor.u32 %v1940_v34, %v1937_v50  ;;  %671 = vst [vmem:[#allocation2 + $0x50] sm:$0x1] %v670_v2  ;;  %v1959_v0 = vshrl.u32 %v1775_v33, 16  ;;  %9212 = vmatprep.mubr.msk.bf16.mxu1 %vm1165_vm10, %v10354_v45 }
  0x77   : > { %v1930_v18 = vshll.u32 %v10366_v39, 16  ;;  %v1951_v10 = vor.u32 %v1950_v17, %v10356_v63  ;;  %v1962_v13 = vshll.u32 %v1775_v33, 16  ;;  %v1968_v4 = vshll.u32 %v1776_v53, 16  ;;  %v10381_v57 = vld [vmem:[#allocation2 + $0x58] sm:$0xf]  ;;  %9241 = vmatpush3.bf16.msra.mxu0 %v10321_v48  ;;  %9178 = vmatprep.mubr.msk.bf16.mxu0 %vm1165_vm10, %v10077_v55 }
  0x78   : > { %v8202_v19 = vrot.slane %v907_v37, 11  ;;  %v1961_v24 = vrot.slane %v1959_v0, 4  ;;  %v1972_v20 = vshrl.u32 %v1776_v53, 16  ;;  %v14397_v59 = vrot.slane %v10003_v42, 4 }
  0x79   : > { %v1932_v47 = vrot.slane %v1930_v18, 5  ;;  %v1942_v38 = vrot.slane %v1941_v54, 4  ;;  %v1964_v33 = vrot.slane %v1962_v13, 5  ;;  %v10387_v50 = vrot.slane %v1968_v4, 5  ;;  %v683_v54 = vld [vmem:[#allocation2 + $0x68] sm:$0x1] }
  0x7a   : > { %v677_v7 = vsel %vm9885_vm8, %v14397_v59, %v676_v29  ;;  %v1952_v42 = vrot.slane %v1951_v10, 4  ;;  %v1974_v34 = vrot.slane %v1972_v20, 4  ;;  %v8203_v53 = vrot.slane %v10371_v36, 11  ;;  %v1781_v10 = vld [vmem:[#allocation2 + $0x60] sm:$0xf]  ;;  %9213 = vmatmul.mubr.msk.bf16.gmra.mxu1 %vm1165_vm10, %v10364_v28 }
  0x7b   : > { %678 = vst [vmem:[#allocation2 + $0x5c] sm:$0x1] %v677_v7  ;;  %v1983_v61 = vshrl.u32 %v1778_v52, 16  ;;  %v1933_v60 = vsel %vm10283_vm13, %v1928_v14, %v1932_v47  ;;  %v10395_v17 = vld [vmem:[#allocation2 + $0x44] sm:$0x1]  ;;  %v1965_v2 = vor.u32 %v1964_v33, %v1961_v24  ;;  %v1986_v37 = vshll.u32 %v1778_v52, 16 }
  0x7c   : > { %v1992_v29 = vshll.u32 %v10381_v57, 16  ;;  %v10398_v0 = vcombine.low %v1923_v3, %v1933_v60  ;;  %v1954_v48 = vshll.u32 %v10395_v17, 16  ;;  %v1975_v55 = vor.u32 %v1974_v34, %v10387_v50  ;;  %v10402_v36 = vld [vmem:[#allocation2 + $0x64] sm:$0xf] }
  0x7d   : > { %v1985_v18 = vrot.slane %v1983_v61, 4  ;;  %v1010_v13 = vld [vmem:[#allocation2 + $0x50] sm:$0x1]  ;;  %v10404_v4 = vrot.slane %v1965_v2, 4  ;;  %v1988_v14 = vrot.slane %v1986_v37, 5  ;;  %v1996_v52 = vshrl.u32 %v10381_v57, 16  ;;  %9179 = vmatmul.mubr.msk.bf16.gmra.mxu0 %vm1165_vm10, %v10108_v58 }
  0x7e   : > { %v10406_v20 = vrot.slane %v1992_v29, 5  ;;  %v1956_v3 = vrot.slane %v1954_v48, 5  ;;  %v1011_v59 = vsel %vm9936_vm9, %v8202_v19, %v1010_v13  ;;  %v14398_v7 = vrot.slane %v10044_v12, 4  ;;  %v909_v2 = vld [vmem:[#allocation2 + $0x64] sm:$0x8]  ;;  %9216 = vmatprep.mubr.msk.bf16.mxu1 %vm1165_vm10, %v10398_v0  ;;  %9182 = vmatprep.mubr.msk.bf16.mxu0 %vm1165_vm10, %v10125_v46 }
  0x7f   : > { %v1947_v34 = vsel %vm10283_vm13, %v1942_v38, %v10356_v63  ;;  %1012 = vst [vmem:[#allocation2 + $0x50] sm:$0x1] %v1011_v59  ;;  %v1989_v61 = vor.u32 %v1988_v14, %v1985_v18  ;;  %v1998_v60 = vrot.slane %v1996_v52, 4  ;;  %v690_v37 = vld [vmem:[#allocation2 + $0x74] sm:$0x1]  ;;  %v2007_v29 = vshrl.u32 %v1781_v10, 16 }
  0x80   : > { %v684_v47 = vsel %vm9885_vm8, %v14398_v7, %v683_v54  ;;  %v1957_v12 = vsel %vm10283_vm13, %v1952_v42, %v1956_v3  ;;  %v2010_v54 = vshll.u32 %v1781_v10, 16  ;;  %v2016_v48 = vshll.u32 %v10402_v36, 16  ;;  %v1784_v10 = vld [vmem:[#allocation2 + $0x6c] sm:$0xf]  ;;  %v10438_v13 = vld [vmem:[#allocation2 + $0x70] sm:$0xf] }
  0x81   : > { %685 = vst [vmem:[#allocation2 + $0x68] sm:$0x1] %v684_v47  ;;  %v10433_v38 = vrot.slane %v1975_v55, 4  ;;  %v1999_v18 = vor.u32 %v1998_v60, %v10406_v20  ;;  %v10442_v58 = vrot.slane %v1989_v61, 4  ;;  %v2009_v14 = vrot.slane %v2007_v29, 4 }
  0x82   : > { %v1013_v19 = vld [vmem:[#allocation2 + $0x5c] sm:$0x1]  ;;  %v2012_v52 = vrot.slane %v2010_v54, 5  ;;  %v2020_v3 = vshrl.u32 %v10402_v36, 16  ;;  %v697_v55 = vld [vmem:[#allocation2 + $0x80] sm:$0x1]  ;;  %v10445_v59 = vcombine.low %v1947_v34, %v1957_v12 }
  0x83   : > { %v1014_v42 = vsel %vm9936_vm9, %v8203_v53, %v1013_v19  ;;  %v8204_v7 = vrot.slane %v909_v2, 11  ;;  %v10447_v53 = vrot.slane %v2016_v48, 5  ;;  %v14399_v47 = vrot.slane %v10064_v35, 4  ;;  %v910_v19 = vld [vmem:[#allocation2 + $0x70] sm:$0x8] }
  0x84   : > { %1015 = vst [vmem:[#allocation2 + $0x5c] sm:$0x1] %v1014_v42  ;;  %v10453_v46 = vld [vmem:[#allocation2 + $0x7c] sm:$0x8]  ;;  %v704_v61 = vld [vmem:[#allocation2 + $0x8c] sm:$0x1]  ;;  %v2013_v29 = vor.u32 %v2012_v52, %v2009_v14  ;;  %9217 = vmatmul.mubr.msk.bf16.gmra.mxu1 %vm1165_vm10, %v10445_v59 }
  0x85   : > { %v691_v60 = vsel %vm9885_vm8, %v14399_v47, %v690_v37  ;;  %v10455_v42 = vrot.slane %v1999_v18, 4  ;;  %v2031_v54 = vshrl.u32 %v1784_v10, 16  ;;  %v2034_v33 = vshll.u32 %v1784_v10, 16  ;;  %v1787_v34 = vld [vmem:[#allocation2 + $0x78] sm:$0xf]  ;;  %9183 = vmatmul.mubr.msk.bf16.gmra.mxu0 %vm1165_vm10, %v10149_v8 }
  0x86   : > { %692 = vst [vmem:[#allocation2 + $0x74] sm:$0x1] %v691_v60  ;;  %v2022_v12 = vrot.slane %v2020_v3, 4  ;;  %v2040_v2 = vshll.u32 %v10438_v13, 16  ;;  %v2044_v48 = vshrl.u32 %v10438_v13, 16  ;;  %v14400_v35 = vrot.slane %v10085_v5, 4  ;;  %9186 = vmatprep.mubr.msk.bf16.mxu0 %vm1165_vm10, %v10170_v41 }
  0x87   : > { %v10463_v47 = vld [vmem:[#allocation2 + $0x7c] sm:$0xf]  ;;  %v10465_v24 = vld [vmem:[#allocation2 + $0x50] sm:$0x1]  ;;  %v1995_v18 = vsel %vm10283_vm13, %v10442_v58, %v10406_v20  ;;  %v10471_v14 = vrot.slane %v2013_v29, 4  ;;  %v2033_v52 = vrot.slane %v2031_v54, 4 }
  0x88   : > { %v698_v37 = vsel %vm9885_vm8, %v14400_v35, %v697_v55  ;;  %14401 = vst [vmem:[#allocation8_spill] sm:$0xff] %v10463_v47  ;;  %v1016_v10 = vld [vmem:[#allocation2 + $0x68] sm:$0x1]  ;;  %v14402_v3 = vrot.slane %v10110_v30, 4  ;;  %v1978_v55 = vshll.u32 %v10465_v24, 16  ;;  %v2036_v35 = vrot.slane %v2034_v33, 5 }
  0x89   : > { %699 = vst [vmem:[#allocation2 + $0x80] sm:$0x1] %v698_v37  ;;  %v1017_v60 = vsel %vm9936_vm9, %v8204_v7, %v1016_v10  ;;  %v10480_v63 = vrot.slane %v2040_v2, 5  ;;  %v8205_v20 = vrot.slane %v910_v19, 11  ;;  %v2046_v58 = vrot.slane %v2044_v48, 4 }
  0x8a   : > { %v705_v5 = vsel %vm9885_vm8, %v14402_v3, %v704_v61  ;;  %1018 = vst [vmem:[#allocation2 + $0x68] sm:$0x1] %v1017_v60  ;;  %v8206_v30 = vrot.slane %v10453_v46, 11  ;;  %v2055_v29 = vshrl.u32 %v1787_v34, 16  ;;  %v1980_v61 = vrot.slane %v1978_v55, 5 }
  0x8b   : > { %706 = vst [vmem:[#allocation2 + $0x8c] sm:$0x1] %v705_v5  ;;  %v10487_v54 = vld [vmem:[#allocation2 + $0x5c] sm:$0x1]  ;;  %v2037_v7 = vor.u32 %v2036_v35, %v2033_v52  ;;  %v2058_v33 = vshll.u32 %v1787_v34, 16  ;;  %v2064_v2 = vshll.u32 %v10463_v47, 16  ;;  %v2023_v19 = vor.u32 %v2022_v12, %v10447_v53 }
  0x8c   : > { %v2002_v37 = vshll.u32 %v10487_v54, 16  ;;  %v2057_v48 = vrot.slane %v2055_v29, 4  ;;  %v2068_v46 = vshrl.u32 %v10463_v47, 16  ;;  %v912_v10 = vld [vmem:[#allocation2 + $0x88] sm:$0x8]  ;;  %v1981_v8 = vsel %vm10283_vm13, %v10433_v38, %v1980_v61 }
  0x8d   : > { %v1019_v52 = vld [vmem:[#allocation2 + $0x74] sm:$0x1]  ;;  %v2047_v41 = vor.u32 %v2046_v58, %v10480_v63  ;;  %v2060_v3 = vrot.slane %v2058_v33, 5  ;;  %v1790_v5 = vld [vmem:[#allocation2 + $0x84] sm:$0xf]  ;;  %v14403_v12 = vsel %vm10283_vm13, %v10404_v4, %v10387_v50  ;;  %v10512_v35 = vrot.slane %v2037_v7, 4  ;;  %9187 = vmatmul.mubr.msk.bf16.gmra.mxu0 %vm1165_vm10, %v10186_v11 }
  0x8e   : > { %v10508_v55 = vcombine.low %v14403_v12, %v1981_v8  ;;  %v2004_v60 = vrot.slane %v2002_v37, 5  ;;  %v1020_v38 = vsel %vm9936_vm9, %v8205_v20, %v1019_v52  ;;  %v10514_v29 = vld [vmem:[#allocation2 + $0x88] sm:$0xf]  ;;  %v711_v61 = vld [vmem:[#allocation2 + $0x98] sm:$0x1]  ;;  %v10516_v34 = vrot.slane %v2064_v2, 5  ;;  %9190 = vmatprep.mubr.msk.bf16.mxu0 %vm1165_vm10, %v10211_v56 }
  0x8f   : > { %14404 = vst [vmem:[#allocation9_spill] sm:$0xff] %v10514_v29  ;;  %1021 = vst [vmem:[#allocation2 + $0x74] sm:$0x1] %v1020_v38  ;;  %v2061_v33 = vor.u32 %v2060_v3, %v2057_v48  ;;  %v2070_v26 = vrot.slane %v2068_v46, 4  ;;  %v8207_v47 = vrot.slane %v912_v10, 11  ;;  %v2079_v7 = vshrl.u32 %v1790_v5, 16 }
  0x90   : > { %v1022_v58 = vld [vmem:[#allocation2 + $0x80] sm:$0x1]  ;;  %9220 = vmatprep.mubr.msk.bf16.mxu1 %vm1165_vm10, %v10508_v55  ;;  %v2005_v50 = vsel %vm10283_vm13, %v10455_v42, %v2004_v60  ;;  %v2082_v37 = vshll.u32 %v1790_v5, 16  ;;  %v1793_v8 = vld [vmem:[#allocation2 + $0x90] sm:$0xf]  ;;  %v2024_v48 = vrot.slane %v2023_v19, 4 }
  0x91   : > { %v1023_v4 = vsel %vm9936_vm9, %v8206_v30, %v1022_v58  ;;  %v10525_v52 = vcombine.low %v1995_v18, %v2005_v50  ;;  %v10527_v2 = vld [vmem:[#allocation2 + $0x68] sm:$0x1]  ;;  %v10529_v46 = vrot.slane %v2061_v33, 4  ;;  %v10533_v3 = vld [vmem:[#allocation2 + $0x94] sm:$0xf]  ;;  %v2081_v30 = vrot.slane %v2079_v7, 4 }
  0x92   : > { %v1025_v20 = vld [vmem:[#allocation2 + $0x8c] sm:$0x1]  ;;  %1024 = vst [vmem:[#allocation2 + $0x80] sm:$0x1] %v1023_v4  ;;  %14405 = vst [vmem:[#allocation10_spill] sm:$0xff] %v10533_v3  ;;  %v2026_v42 = vshll.u32 %v10527_v2, 16  ;;  %v2071_v60 = vor.u32 %v2070_v26, %v10516_v34 }
  0x93   : > { %v1026_v10 = vsel %vm9936_vm9, %v8207_v47, %v1025_v20  ;;  %v2084_v12 = vrot.slane %v2082_v37, 5  ;;  %v2088_v5 = vshll.u32 %v10514_v29, 16  ;;  %v718_v18 = vld [vmem:[#allocation2 + $0xa4] sm:$0x1]  ;;  %9221 = vmatmul.mubr.msk.bf16.gmra.mxu1 %vm1165_vm10, %v10525_v52  ;;  %v2048_v19 = vrot.slane %v2047_v41, 4 }
  0x94   : > { %1027 = vst [vmem:[#allocation2 + $0x8c] sm:$0x1] %v1026_v10  ;;  %v2092_v47 = vshrl.u32 %v10514_v29, 16  ;;  %v14406_v38 = vrot.slane %v10133_v62, 4  ;;  %v10550_v33 = vld [vmem:[%s14335_s1 + $0xe] sm:$0x3]  ;;  %v2043_v62 = vsel %vm10283_vm13, %v10512_v35, %v10480_v63  ;;  %v2067_v35 = vsel %vm10283_vm13, %v10529_v46, %v10516_v34 }
  0x95   : > { %v10555_v11 = vld [vmem:[%s14335_s1 + $0x4] sm:$0x3]  ;;  %v2028_v26 = vrot.slane %v2026_v42, 5  ;;  %v2085_v41 = vor.u32 %v2084_v12, %v2081_v30  ;;  %9721 = vmatprep.subr.msk.bf16.mxu1 %vm1214_vm0, %v10550_v33  ;;  %v913_v4 = vld [vmem:[#allocation2 + $0x94] sm:$0x8]  ;;  %v2103_v20 = vshrl.u32 %v1793_v8, 16  ;;  %9191 = vmatmul.mubr.msk.bf16.gmra.mxu0 %vm1165_vm10, %v10243_v40 }
  0x96   : > { %v712_v58 = vsel %vm9885_vm8, %v14406_v38, %v711_v61  ;;  %v10563_v61 = vrot.slane %v2088_v5, 5  ;;  %v2094_v50 = vrot.slane %v2092_v47, 4  ;;  %v2106_v7 = vshll.u32 %v1793_v8, 16  ;;  %9722 = vmatprep.subr.msk.bf16.mxu0 %vm1214_vm0, %v10555_v11  ;;  %v10572_v63 = vld [vmem:[#allocation2 + $0x74] sm:$0x1]  ;;  %9194 = vmatprep.mubr.msk.bf16.mxu0 %vm1165_vm10, %v10254_v21 }
  0x97   : > { %713 = vst [vmem:[#allocation2 + $0x98] sm:$0x1] %v712_v58  ;;  %v2112_v37 = vshll.u32 %v10533_v3, 16  ;;  %v2029_v56 = vsel %vm10283_vm13, %v2024_v48, %v2028_v26  ;;  %v2116_v10 = vshrl.u32 %v10533_v3, 16  ;;  %v14407_v42 = vrot.slane %v10152_v51, 4 }
  0x98   : > { %v914_v30 = vld [vmem:[#allocation2 + $0xa0] sm:$0x8]  ;;  %v14408_v48 = vsel %vm10283_vm13, %v10471_v14, %v10447_v53  ;;  %v2050_v5 = vshll.u32 %v10572_v63, 16  ;;  %v2072_v47 = vrot.slane %v2071_v60, 4  ;;  %v2095_v34 = vor.u32 %v2094_v50, %v10563_v61  ;;  %v1796_v46 = vld [vmem:[#allocation2 + $0x9c] sm:$0xf] }
  0x99   : > { %v719_v8 = vsel %vm9885_vm8, %v14407_v42, %v718_v18  ;;  %v10588_v12 = vcombine.low %v14408_v48, %v2029_v56  ;;  %v10592_v38 = vld [vmem:[#allocation2 + $0xa0] sm:$0xf]  ;;  %v2086_v18 = vrot.slane %v2085_v41, 4  ;;  %v8208_v58 = vrot.slane %v913_v4, 11 }
  0x9a   : > { %720 = vst [vmem:[#allocation2 + $0xa4] sm:$0x1] %v719_v8  ;;  %v10594_v51 = vld [vmem:[#allocation2 + $0x80] sm:$0x1]  ;;  %v2105_v26 = vrot.slane %v2103_v20, 4  ;;  %v2108_v42 = vrot.slane %v2106_v7, 5 }
  0x9b   : > { %14409 = vst [vmem:[#allocation11_spill] sm:$0xff] %v10594_v51  ;;  %9224 = vmatprep.mubr.msk.bf16.mxu1 %vm1165_vm10, %v10588_v12  ;;  %v2052_v53 = vrot.slane %v2050_v5, 5  ;;  %v2074_v14 = vshll.u32 %v10594_v51, 16  ;;  %v10599_v56 = vld [vmem:[#allocation2 + $0x8c] sm:$0x1]  ;;  %v10601_v60 = vrot.slane %v2112_v37, 5  ;;  %v2091_v21 = vsel %vm10283_vm13, %v2086_v18, %v10563_v61 }
  0x9c   : > { %v2118_v50 = vrot.slane %v2116_v10, 4  ;;  %v2096_v8 = vrot.slane %v2095_v34, 4  ;;  %v2098_v48 = vshll.u32 %v10599_v56, 16  ;;  %v8209_v3 = vrot.slane %v914_v30, 11 }
  0x9d   : > { %v2127_v29 = vshrl.u32 %v1796_v46, 16  ;;  %v2053_v41 = vsel %vm10283_vm13, %v2048_v19, %v2052_v53  ;;  %v2076_v4 = vrot.slane %v2074_v14, 5  ;;  %v2130_v7 = vshll.u32 %v1796_v46, 16  ;;  %v750_v53 = vld [vmem:[#allocation2 + $0xcc] sm:$0xf]  ;;  %9195 = vmatmul.mubr.msk.bf16.gmra.mxu0 %vm1165_vm10, %v10269_v49 }
  0x9e   : > { %v1028_v20 = vld [vmem:[#allocation2 + $0x98] sm:$0x1]  ;;  %v2136_v5 = vshll.u32 %v10592_v38, 16  ;;  %v10609_v51 = vcombine.low %v2043_v62, %v2053_v41  ;;  %v2100_v37 = vrot.slane %v2098_v48, 5  ;;  %v2109_v30 = vor.u32 %v2108_v42, %v2105_v26  ;;  %v725_v46 = vld [vmem:[#allocation2 + $0xb0] sm:$0x1]  ;;  %9198 = vmatprep.mubr.msk.bf16.mxu0 %vm1165_vm10, %v10293_v9 }
  0x9f   : > { %v1029_v10 = vsel %vm9936_vm9, %v8208_v58, %v1028_v20  ;;  %v2077_v40 = vsel %vm10283_vm13, %v2072_v47, %v2076_v4  ;;  %v2129_v19 = vrot.slane %v2127_v29, 4  ;;  %v2132_v34 = vrot.slane %v2130_v7, 5  ;;  %v1799_v47 = vld [vmem:[#allocation2 + $0xa8] sm:$0xf]  ;;  %v732_v4 = vld [vmem:[#allocation2 + $0xbc] sm:$0x1] }
  0xa0   : > { %1030 = vst [vmem:[#allocation2 + $0x98] sm:$0x1] %v1029_v10  ;;  %v14344_v14 = vrot.slane %v10195_v31, 4  ;;  %9225 = vmatmul.mubr.msk.bf16.gmra.mxu1 %vm1165_vm10, %v10609_v51  ;;  %v10620_v62 = vcombine.low %v2067_v35, %v2077_v40  ;;  %v2119_v58 = vor.u32 %v2118_v50, %v10601_v60  ;;  %v2101_v29 = vsel %vm10283_vm13, %v2096_v8, %v2100_v37  ;;  %v10633_v35 = vld [vmem:[#allocation2 + $0xac] sm:$0xf] }
  0xa1   : > { %v1031_v26 = vld [vmem:[#allocation2 + $0xa4] sm:$0x1]  ;;  %v10630_v48 = vrot.slane %v2136_v5, 5  ;;  %v2140_v41 = vshrl.u32 %v10592_v38, 16  ;;  %14410 = vst [vmem:[#allocation12_spill] sm:$0xff] %v10633_v35  ;;  %v2110_v61 = vrot.slane %v2109_v30, 4  ;;  %v2133_v18 = vor.u32 %v2132_v34, %v2129_v19 }
  0xa2   : > { %v1032_v42 = vsel %vm9936_vm9, %v8209_v3, %v1031_v26  ;;  %9228 = vmatprep.mubr.msk.bf16.mxu1 %vm1165_vm10, %v10620_v62  ;;  %v751_v50 = vsel %vm9877_vm7, %v10204_v43, %v750_v53  ;;  %v14411_v8 = vrot.slane %v10178_v1, 4  ;;  %v915_v7 = vld [vmem:[#allocation2 + $0xac] sm:$0x8]  ;;  %v2151_v5 = vshrl.u32 %v1799_v47, 16  ;;  %v1802_v40 = vld [vmem:[#allocation2 + $0xb4] sm:$0xf] }
  0xa3   : > { %1033 = vst [vmem:[#allocation2 + $0xa4] sm:$0x1] %v1032_v42  ;;  %v2142_v20 = vrot.slane %v2140_v41, 4  ;;  %752 = vst [vmem:[#allocation2 + $0xcc] sm:$0xf] %v751_v50  ;;  %v10644_v37 = vcombine.low %v2091_v21, %v2101_v29  ;;  %v2154_v10 = vshll.u32 %v1799_v47, 16  ;;  %v733_v43 = vsel %vm9885_vm8, %v14344_v14, %v732_v4 }
  0xa4   : > { %v726_v3 = vsel %vm9885_vm8, %v14411_v8, %v725_v46  ;;  %v2160_v30 = vshll.u32 %v10633_v35, 16  ;;  %v574_v1 = vrot.slane %v10228_v16, 4  ;;  %734 = vst [vmem:[#allocation2 + $0xbc] sm:$0x1] %v733_v43  ;;  %v916_v34 = vld [vmem:[#allocation2 + $0xb8] sm:$0x8]  ;;  %v2115_v21 = vsel %vm10283_vm13, %v2110_v61, %v10601_v60 }
  0xa5   : > { %727 = vst [vmem:[#allocation2 + $0xb0] sm:$0x1] %v726_v3  ;;  %v2143_v19 = vor.u32 %v2142_v20, %v10630_v48  ;;  %v10655_v53 = vld [vmem:[#allocation2 + $0xb8] sm:$0xf]  ;;  %v2120_v26 = vrot.slane %v2119_v58, 4  ;;  %v2134_v16 = vrot.slane %v2133_v18, 4  ;;  %9199 = vmatmul.mubr.msk.bf16.gmra.mxu0 %vm1165_vm10, %v10313_v25 }
  0xa6   : > { %14412 = vst [vmem:[#allocation13_spill] sm:$0xff] %v10655_v53  ;;  %v8210_v47 = vrot.slane %v915_v7, 11  ;;  %v2153_v29 = vrot.slane %v2151_v5, 4  ;;  %v2164_v42 = vshrl.u32 %v10633_v35, 16  ;;  %v2175_v41 = vshrl.u32 %v1802_v40, 16  ;;  %9202 = vmatprep.mubr.msk.bf16.mxu0 %vm1165_vm10, %v10328_v15 }
  0xa7   : > { %v10659_v46 = vld [vmem:[#allocation2 + $0x98] sm:$0x1]  ;;  %v739_v4 = vld [vmem:[#allocation2 + $0xc8] sm:$0x1]  ;;  %v2156_v9 = vrot.slane %v2154_v10, 5  ;;  %v10668_v50 = vrot.slane %v2160_v30, 5  ;;  %v2139_v5 = vsel %vm10283_vm13, %v2134_v16, %v10630_v48 }
  0xa8   : > { %v2122_v49 = vshll.u32 %v10659_v46, 16  ;;  %9229 = vmatmul.mubr.msk.bf16.gmra.mxu1 %vm1165_vm10, %v10644_v37  ;;  %v8211_v8 = vrot.slane %v916_v34, 11  ;;  %v2178_v3 = vshll.u32 %v1802_v40, 16  ;;  %v10673_v60 = vld [vmem:[%s14335_s1 + $0xa] sm:$0x3]  ;;  %v2144_v18 = vrot.slane %v2143_v19, 4 }
  0xa9   : > { %v2184_v20 = vshll.u32 %v10655_v53, 16  ;;  %v2753_v7 = vsel %vm1214_vm0, %v10550_v33, 0  ;;  %v2188_v40 = vshrl.u32 %v10655_v53, 16  ;;  %v740_v34 = vsel %vm9885_vm8, %v574_v1, %v739_v4  ;;  %v917_v1 = vld [vmem:[#allocation2 + $0xc4] sm:$0x8] }
  0xaa   : > { %v2124_v58 = vrot.slane %v2122_v49, 5  ;;  %v10675_v61 = vld [vmem:[#allocation2 + $0xa4] sm:$0x1]  ;;  %v774_v30 = vld [vmem:[#allocation2 + $0xcc] sm:$0x2]  ;;  %9275 = vmatpush3.bf16.msra.mxu1 %v2753_v7  ;;  %v2166_v33 = vrot.slane %v2164_v42, 4  ;;  %v2157_v4 = vor.u32 %v2156_v9, %v2153_v29 }
  0xab   : > { %v2146_v10 = vshll.u32 %v10675_v61, 16  ;;  %v898_v43 = vld [vmem:[#allocation2 + $0xcc] sm:$0x1]  ;;  %v8195_v49 = vrot.slane %v774_v30, 9  ;;  %v2177_v32 = vrot.slane %v2175_v41, 4  ;;  %9723 = vmatprep.subr.msk.bf16.mxu1 %vm1214_vm0, %v10673_v60  ;;  %v2180_v35 = vrot.slane %v2178_v3, 5 }
  0xac   : > { %v2125_v19 = vsel %vm10283_vm13, %v2120_v26, %v2124_v58  ;;  %v1034_v14 = vld [vmem:[#allocation2 + $0xb0] sm:$0x1]  ;;  %741 = vst [vmem:[#allocation2 + $0xc8] sm:$0x1] %v740_v34  ;;  %v1037_v53 = vld [vmem:[#allocation2 + $0xbc] sm:$0x1] }
  0xad   : > { %v10691_v48 = vcombine.low %v2115_v21, %v2125_v19  ;;  %v2148_v16 = vrot.slane %v2146_v10, 5  ;;  %v1035_v7 = vsel %vm9936_vm9, %v8210_v47, %v1034_v14  ;;  %v899_v26 = vsel %vm9885_vm8, %v8195_v49, %v898_v43  ;;  %v754_v41 = vld [vmem:[#allocation2 + $0xd4] sm:$0x1]  ;;  %v918_v15 = vld [vmem:[#allocation2 + $0xd0] sm:$0x8] }
  0xae   : > { %1036 = vst [vmem:[#allocation2 + $0xb0] sm:$0x1] %v1035_v7  ;;  %v1038_v42 = vsel %vm9936_vm9, %v8211_v8, %v1037_v53  ;;  %900 = vst [vmem:[#allocation2 + $0xcc] sm:$0x1] %v899_v26  ;;  %v2186_v25 = vrot.slane %v2184_v20, 5  ;;  %v2190_v21 = vrot.slane %v2188_v40, 4  ;;  %v2167_v53 = vor.u32 %v2166_v33, %v10668_v50 }
  0xaf   : > { %9232 = vmatprep.mubr.msk.bf16.mxu1 %vm1165_vm10, %v10691_v48  ;;  %v2149_v14 = vsel %vm10283_vm13, %v2144_v18, %v2148_v16  ;;  %1039 = vst [vmem:[#allocation2 + $0xbc] sm:$0x1] %v1038_v42  ;;  %v8212_v3 = vrot.slane %v917_v1, 11  ;;  %v2181_v8 = vor.u32 %v2180_v35, %v2177_v32  ;;  %v14413_v58 = vrot.slane %v10195_v31, 4 }
  0xb0   : > { %v10707_v47 = vcombine.low %v2139_v5, %v2149_v14  ;;  %v2191_v18 = vor.u32 %v2190_v21, %v2186_v25  ;;  %v2158_v30 = vrot.slane %v2157_v4, 4  ;;  %v2168_v5 = vrot.slane %v2167_v53, 4 }
  0xb1   : > { %v755_v10 = vsel %vm9885_vm8, %v14413_v58, %v754_v41  ;;  %v2182_v32 = vrot.slane %v2181_v8, 4  ;;  %v8213_v31 = vrot.slane %v918_v15, 11  ;;  %vm3020_vm14 = vcmask 1042432  }
  0xb2   : > { %9233 = vmatmul.mubr.msk.bf16.gmra.mxu1 %vm1165_vm10, %v10707_v47  ;;  %756 = vst [vmem:[#allocation2 + $0xd4] sm:$0x1] %v755_v10  ;;  %v2192_v34 = vrot.slane %v2191_v18, 4  ;;  %v2163_v49 = vsel %vm10283_vm13, %v2158_v30, %v10668_v50  ;;  %v9782_v30 = vld [vmem:[#allocation2 + $0x4] sm:$0xf]  ;;  %vm3021_vm15 = vcmask 1046532  }
  0xb3   : > { %v1040_v20 = vld [vmem:[#allocation2 + $0xc8] sm:$0x1]  ;;  %v2187_v16 = vsel %vm10283_vm13, %v2182_v32, %v2186_v25  ;;  %v10753_v25 = vld [vmem:[%s14335_s1 + $0x10] sm:$0x3]  ;;  %vm10822_vm1 = vmor %vm3020_vm14, %vm3021_vm15 }
  0xb4   : > { %v1041_v29 = vsel %vm9936_vm9, %v8212_v3, %v1040_v20 }
  0xb5   : > { %v10718_v9 = vld [vmem:[#allocation2 + $0xb0] sm:$0x1]  ;;  %1042 = vst [vmem:[#allocation2 + $0xc8] sm:$0x1] %v1041_v29  ;;  %v1808_v3 = vld [vmem:[#allocation2 + $0xcc] sm:$0xf] }
  0xb6   : > { %v9759_v35 = vld [vmem:[#allocation2 + $0xcc] sm:$0xff]   ;;  %v2170_v43 = vshll.u32 %v10718_v9, 16  ;;  %v10721_v40 = vld [vmem:[#allocation2 + $0xbc] sm:$0x1]  ;;  %v2223_v8 = vshrl.u32 %v1808_v3, 16  ;;  %v2226_v58 = vshll.u32 %v1808_v3, 16 }
  0xb7   : > { %v2194_v19 = vshll.u32 %v10721_v40, 16  ;;  %9203 = vmatmul.mubr.msk.bf16.gmra.mxu0 %vm1165_vm10, %v9759_v35  ;;  %v3025_v29 = vrot.slane %v9782_v30, 5  ;;  %v2948_v35 = vld [vmem:[#allocation2] sm:$0xe] }
  0xb8   : > { %v2172_v33 = vrot.slane %v2170_v43, 5  ;;  %9242 = vmatprep.mubr.msk.bf16.mxu0 %vm1165_vm10, %v10326_v23  ;;  %v3248_v23 = vsel %vm1214_vm0, %v10555_v11, 0  ;;  %v3452_v11 = vsel %vm1214_vm0, %v10673_v60, 0  ;;  %v2228_v32 = vrot.slane %v2226_v58, 5 }
  0xb9   : > { %v2196_v7 = vrot.slane %v2194_v19, 5  ;;  %v1043_v1 = vld [vmem:[#allocation2 + $0xd4] sm:$0x1] }
  0xba   : > { %v2173_v26 = vsel %vm10283_vm13, %v2168_v5, %v2172_v33  ;;  %v1044_v42 = vsel %vm9936_vm9, %v8213_v31, %v1043_v1  ;;  %v2225_v5 = vrot.slane %v2223_v8, 4  ;;  %v3027_v33 = vrot.slane %v3025_v29, 4  ;;  %v9786_v8 = vld [vmem:[#allocation2 + $0x14] sm:$0x1] }
  0xbb   : > { %v10736_v41 = vcombine.low %v2163_v49, %v2173_v26  ;;  %v2197_v50 = vsel %vm10283_vm13, %v2192_v34, %v2196_v7  ;;  %1045 = vst [vmem:[#allocation2 + $0xd4] sm:$0x1] %v1044_v42  ;;  %v3035_v58 = vrot.slane %v9786_v8, 5 }
  0xbc   : > { %v10740_v14 = vcombine.low %v2187_v16, %v2197_v50  ;;  %v10801_v53 = vld [vmem:[#allocation2 + $0xc8] sm:$0x1]  ;;  %v2229_v1 = vor.u32 %v2228_v32, %v2225_v5  ;;  %v14414_v50 = vmov 0 }
  0xbd   : > { %9236 = vmatprep.mubr.msk.bf16.mxu1 %vm1165_vm10, %v10736_v41  ;;  %v2218_v20 = vshll.u32 %v10801_v53, 16  ;;  %v9783_v16 = vld [vmem:[#allocation2 + $0x8] sm:$0x1]  ;;  %v14415_v50 = vsel %vm10822_vm1, 4294967295, %v14414_v50 }
  0xbe   : > { %9237 = vmatmul.mubr.msk.bf16.gmra.mxu1 %vm1165_vm10, %v10740_v14  ;;  %v3028_v7 = vrot.slane %v9783_v16, 5  ;;  %14416 = vst [vmem:[#allocation14_spill] sm:$0xff] %v14415_v50 }
  0xbf   : > { %9276 = vmatprep.mubr.msk.bf16.mxu1 %vm1165_vm10, %v10354_v45  ;;  %9243 = vmatmul.mubr.msk.bf16.vlgmr.msra.gmra.mxu0 %vm1165_vm10, %v10354_v45  ;;  %v1805_v45 = vld [vmem:[#allocation2 + $0xc0] sm:$0xf]  ;;  %v2220_v19 = vrot.slane %v2218_v20, 5 }
  0xc0   : > { %9309 = vmatpush3.bf16.msra.mxu0 %v3248_v23  ;;  %9246 = vmatprep.mubr.msk.bf16.mxu0 %vm1165_vm10, %v10364_v28 }
  0xc1   : > { %9724 = vmatprep.subr.msk.bf16.mxu0 %vm1214_vm0, %v10753_v25 }
  0xc2   : > { %v10814_v49 = vld [vmem:[#allocation2 + $0xd4] sm:$0x1] }
  0xc3   : > { %v2242_v42 = vshll.u32 %v10814_v49, 16 }
  0xc6   : > { %9277 = vmatmul.mubr.msk.bf16.vlgmr.msra.gmra.mxu1 %vm1165_vm10, %v10364_v28  ;;  %v10787_v28 = vld [vmem:[#allocation2 + $0xc4] sm:$0xf] }
  0xc7   : > { %9280 = vmatprep.mubr.msk.bf16.mxu1 %vm1165_vm10, %v10398_v0  ;;  %9343 = vmatpush3.bf16.msra.mxu1 %v3452_v11  ;;  %v9784_v11 = vld [vmem:[#allocation2 + $0x10] sm:$0xf] }
  0xc8   : > { %9247 = vmatmul.mubr.msk.bf16.gmra.mxu0 %vm1165_vm10, %v10398_v0  ;;  %v2199_v0 = vshrl.u32 %v1805_v45, 16 }
  0xc9   : > { %9250 = vmatprep.mubr.msk.bf16.mxu0 %vm1165_vm10, %v10445_v59 }
  0xca   : > { %v2201_v60 = vrot.slane %v2199_v0, 4  ;;  %v2949_v0 = vld [vmem:[#allocation2 + $0xc] sm:$0xe] }
  0xcb   : > { %v8352_v3 = vrot.slane %v2949_v0, 9  ;;  %v3656_v0 = vsel %vm1214_vm0, %v10753_v25, 0 }
  0xce   : > { %9281 = vmatmul.mubr.msk.bf16.gmra.mxu1 %vm1165_vm10, %v10445_v59  ;;  %v2202_v59 = vshll.u32 %v1805_v45, 16  ;;  %v3032_v45 = vrot.slane %v9784_v11, 5 }
  0xcf   : > { %9284 = vmatprep.mubr.msk.bf16.mxu1 %vm1165_vm10, %v10508_v55 }
  0xd0   : > { %9251 = vmatmul.mubr.msk.bf16.gmra.mxu0 %vm1165_vm10, %v10508_v55  ;;  %v2208_v55 = vshll.u32 %v10787_v28, 16  ;;  %v2204_v21 = vrot.slane %v2202_v59, 5  ;;  %v3033_v32 = vsel %vm10822_vm1, %v8352_v3, %v3032_v45  ;;  %v9790_v3 = vld [vmem:[#allocation2 + $0x40] sm:$0xf] }
  0xd1   : > { %9254 = vmatprep.mubr.msk.bf16.mxu0 %vm1165_vm10, %v10525_v52 }
  0xd2   : > { %v2205_v15 = vor.u32 %v2204_v21, %v2201_v60  ;;  %v2244_v21 = vrot.slane %v2242_v42, 5  ;;  %v9789_v42 = vld [vmem:[#allocation2 + $0x34] sm:$0xf] }
  0xd4   : > { %v2206_v43 = vrot.slane %v2205_v15, 4 }
  0xd6   : > { %9285 = vmatmul.mubr.msk.bf16.gmra.mxu1 %vm1165_vm10, %v10525_v52  ;;  %v2212_v52 = vshrl.u32 %v10787_v28, 16 }
  0xd7   : > { %9288 = vmatprep.mubr.msk.bf16.mxu1 %vm1165_vm10, %v10588_v12 }
  0xd8   : > { %9255 = vmatmul.mubr.msk.bf16.gmra.mxu0 %vm1165_vm10, %v10588_v12  ;;  %v10799_v12 = vld [vmem:[#allocation2 + $0xd0] sm:$0xf]  ;;  %v2214_v4 = vrot.slane %v2212_v52, 4 }
  0xd9   : > { %9258 = vmatprep.mubr.msk.bf16.mxu0 %vm1165_vm10, %v10609_v51  ;;  %v2236_v10 = vshrl.u32 %v10799_v12, 16 }
  0xdb   : > { %v2238_v31 = vrot.slane %v2236_v10, 4  ;;  %v2950_v10 = vld [vmem:[#allocation2 + $0x18] sm:$0xe] }
  0xdc   : > { %v8353_v5 = vrot.slane %v2950_v10, 9 }
  0xde   : > { %9289 = vmatmul.mubr.msk.bf16.gmra.mxu1 %vm1165_vm10, %v10609_v51  ;;  %v2210_v51 = vrot.slane %v2208_v55, 5  ;;  %v3029_v55 = vsel %vm10822_vm1, %v3027_v33, %v3028_v7 }
  0xdf   : > { %9292 = vmatprep.mubr.msk.bf16.mxu1 %vm1165_vm10, %v10620_v62 }
  0xe0   : > { %9259 = vmatmul.mubr.msk.bf16.gmra.mxu0 %vm1165_vm10, %v10620_v62  ;;  %v2232_v62 = vshll.u32 %v10799_v12, 16  ;;  %v2215_v18 = vor.u32 %v2214_v4, %v2210_v51 }
  0xe1   : > { %9262 = vmatprep.mubr.msk.bf16.mxu0 %vm1165_vm10, %v10644_v37 }
  0xe2   : > { %v2216_v34 = vrot.slane %v2215_v18, 4  ;;  %v9787_v18 = vld [vmem:[#allocation2 + $0x20] sm:$0x1] }
  0xe3   : > { %v3042_v20 = vrot.slane %v9787_v18, 5 }
  0xe4   : > { %v2221_v23 = vsel %vm10283_vm13, %v2216_v34, %v2220_v19 }
  0xe6   : > { %9293 = vmatmul.mubr.msk.bf16.gmra.mxu1 %vm1165_vm10, %v10644_v37  ;;  %v2234_v37 = vrot.slane %v2232_v62, 5  ;;  %v3034_v62 = vrot.slane %v3032_v45, 4 }
  0xe7   : > { %9296 = vmatprep.mubr.msk.bf16.mxu1 %vm1165_vm10, %v10691_v48 }
  0xe8   : > { %9263 = vmatmul.mubr.msk.bf16.gmra.mxu0 %vm1165_vm10, %v10691_v48  ;;  %v8351_v48 = vrot.slane %v2948_v35, 9  ;;  %v2239_v26 = vor.u32 %v2238_v31, %v2234_v37  ;;  %v3036_v31 = vsel %vm10822_vm1, %v3034_v62, %v3035_v58  ;;  %v2951_v35 = vld [vmem:[#allocation2 + $0x24] sm:$0xe]  ;;  %v3060_v62 = vrot.slane %v9790_v3, 5  ;;  %v2956_v3 = vld [vmem:[#allocation2 + $0x60] sm:$0xe] }
  0xe9   : > { %9266 = vmatprep.mubr.msk.bf16.mxu0 %vm1165_vm10, %v10707_v47  ;;  %v8354_v33 = vrot.slane %v2951_v35, 9  ;;  %v9791_v35 = vld [vmem:[#allocation2 + $0x4c] sm:$0xf] }
  0xea   : > { %v3026_v59 = vsel %vm10822_vm1, %v8351_v48, %v3025_v29  ;;  %v2240_v60 = vrot.slane %v2239_v26, 4  ;;  %v2952_v26 = vld [vmem:[#allocation2 + $0x30] sm:$0xe] }
  0xeb   : > { %v8370_v15 = vcombine.low %v3026_v59, %v3029_v55 }
  0xec   : > { %v2245_v29 = vsel %vm10283_vm13, %v2240_v60, %v2244_v21  ;;  %v3056_v60 = vrot.slane %v10366_v39, 5 }
  0xee   : > { %9297 = vmatmul.mubr.msk.bf16.gmra.mxu1 %vm1165_vm10, %v10707_v47  ;;  %v2211_v47 = vsel %vm10283_vm13, %v2206_v43, %v2210_v51  ;;  %v9785_v51 = vld [vmem:[#allocation2 + $0x1c] sm:$0xf]  ;;  %v9788_v43 = vld [vmem:[#allocation2 + $0x28] sm:$0xf] }
  0xef   : > { %9300 = vmatprep.mubr.msk.bf16.mxu1 %vm1165_vm10, %v10736_v41  ;;  %v8316_v52 = vcombine.low %v2211_v47, %v2221_v23  ;;  %v3039_v4 = vrot.slane %v9785_v51, 5  ;;  %v3046_v34 = vrot.slane %v9788_v43, 5  ;;  %v3053_v47 = vrot.slane %v9789_v42, 5 }
  0xf0   : > { %9267 = vmatmul.mubr.msk.bf16.gmra.mxu0 %vm1165_vm10, %v10736_v41  ;;  %v2230_v41 = vrot.slane %v2229_v1, 4  ;;  %v3049_v1 = vrot.slane %v10339_v6, 5  ;;  %v3067_v43 = vrot.slane %v9791_v35, 5  ;;  %v3070_v42 = vrot.slane %v10465_v24, 5  ;;  %v2957_v35 = vld [vmem:[#allocation2 + $0x6c] sm:$0xe] }
  0xf1   : > { %9270 = vmatprep.mubr.msk.bf16.mxu0 %vm1165_vm10, %v10740_v14  ;;  %v3040_v48 = vsel %vm10822_vm1, %v8353_v5, %v3039_v4  ;;  %v3048_v7 = vrot.slane %v3046_v34, 4  ;;  %v9108_v23 = vpop.f32.mrf.mxu0  ;;  %v9142_v11 = vpop.f32.mrf.mxu1  ;;  %v3047_v6 = vsel %vm10822_vm1, %v8354_v33, %v3046_v34  ;;  %v3055_v25 = vrot.slane %v3053_v47, 4 }
  0xf2   : > { %v2235_v30 = vsel %vm10283_vm13, %v2230_v41, %v2234_v37  ;;  %v8371_v37 = vcombine.low %v3033_v32, %v3036_v31  ;;  %v10857_v45 = vadd.f32 %v9142_v11, %v9108_v23  ;;  %v8355_v41 = vrot.slane %v2952_v26, 9 }
  0xf3   : > { %v8334_v19 = vcombine.low %v2235_v30, %v2245_v29  ;;  %v1252_v59 = vpop.f32.mrf.mxu0  ;;  %v1424_v55 = vpop.f32.mrf.mxu1  ;;  %v3050_v51 = vsel %vm10822_vm1, %v3048_v7, %v3049_v1  ;;  %v3063_v29 = vrot.slane %v10395_v17, 5  ;;  %v3057_v32 = vsel %vm10822_vm1, %v3055_v25, %v3056_v60 }
  0xf4   : > { %v10868_v21 = vadd.f32 %v1424_v55, %v1252_v59  ;;  %v10876_v18 = vcombine.low %v3047_v6, %v3050_v51  ;;  %v3062_v31 = vrot.slane %v3060_v62, 4  ;;  %v3069_v26 = vrot.slane %v3067_v43, 4 }
  0xf5   : > { %v9109_v8 = vpop.f32.mrf.mxu0  ;;  %v9143_v58 = vpop.f32.mrf.mxu1  ;;  %v3074_v23 = vrot.slane %v10381_v57, 5 }
  0xf6   : > { %9301 = vmatmul.mubr.msk.bf16.gmra.mxu1 %vm1165_vm10, %v10740_v14  ;;  %v3041_v14 = vrot.slane %v3039_v4, 4  ;;  %v2953_v4 = vld [vmem:[#allocation2 + $0x3c] sm:$0xe]  ;;  %v10874_v10 = vadd.f32 %v9143_v58, %v9109_v8  ;;  %v3064_v1 = vsel %vm10822_vm1, %v3062_v31, %v3063_v29  ;;  %v3071_v57 = vsel %vm10822_vm1, %v3069_v26, %v3070_v42 }
  0xf7   : > { %9304 = vmatprep.mubr.msk.bf16.mxu1 %vm1165_vm10, %v8316_v52  ;;  %v1255_v39 = vpop.f32.mrf.mxu0  ;;  %v8356_v30 = vrot.slane %v2953_v4, 9  ;;  %v3076_v25 = vrot.slane %v3074_v23, 4  ;;  %v3077_v4 = vrot.slane %v10487_v54, 5  ;;  %v8359_v29 = vrot.slane %v2956_v3, 9 }
  0xf8   : > { %9271 = vmatmul.mubr.msk.bf16.gmra.mxu0 %vm1165_vm10, %v8316_v52  ;;  %v3043_v16 = vsel %vm10822_vm1, %v3041_v14, %v3042_v20  ;;  %v3054_v20 = vsel %vm10822_vm1, %v8355_v41, %v3053_v47  ;;  %v2954_v14 = vld [vmem:[#allocation2 + $0x48] sm:$0xe]  ;;  %v2955_v47 = vld [vmem:[#allocation2 + $0x54] sm:$0xe]  ;;  %v3091_v26 = vrot.slane %v10572_v63, 5 }
  0xf9   : > { %9310 = vmatprep.mubr.msk.bf16.mxu0 %vm1165_vm10, %v8370_v15  ;;  %v10862_v52 = vcombine.low %v3040_v48, %v3043_v16  ;;  %v1427_v15 = vpop.f32.mrf.mxu1  ;;  %v10891_v48 = vcombine.low %v3054_v20, %v3057_v32  ;;  %v3061_v33 = vsel %vm10822_vm1, %v8356_v30, %v3060_v62  ;;  %v8357_v16 = vrot.slane %v2954_v14, 9 }
  0xfa   : > { %v10881_v5 = vadd.f32 %v1427_v15, %v1255_v39  ;;  %v10907_v41 = vcombine.low %v3061_v33, %v3064_v1  ;;  %v8358_v51 = vrot.slane %v2955_v47, 9  ;;  %v3081_v62 = vrot.slane %v10402_v36, 5 }
  0xfb   : > { %v9146_v34 = vpop.f32.mrf.mxu1  ;;  %v3068_v60 = vsel %vm10822_vm1, %v8357_v16, %v3067_v43  ;;  %v3078_v32 = vsel %vm10822_vm1, %v3076_v25, %v3077_v4  ;;  %v3084_v14 = vrot.slane %v10527_v2, 5  ;;  %v3088_v43 = vrot.slane %v10438_v13, 5 }
  0xfc   : > { %v10923_v30 = vcombine.low %v3068_v60, %v3071_v57  ;;  %v3075_v54 = vsel %vm10822_vm1, %v8358_v51, %v3074_v23  ;;  %v3083_v31 = vrot.slane %v3081_v62, 4  ;;  %v8360_v1 = vrot.slane %v2957_v35, 9  ;;  %v2958_v23 = vld [vmem:[#allocation2 + $0x78] sm:$0xe] }
  0xfd   : > { %v1440_v17 = vpop.f32.mrf.mxu1  ;;  %v3082_v2 = vsel %vm10822_vm1, %v8359_v29, %v3081_v62  ;;  %v3090_v47 = vrot.slane %v3088_v43, 4  ;;  %v8361_v4 = vrot.slane %v2958_v23, 9  ;;  %v14419_v29 = vld [vmem:[#allocation9_spill] sm:$0xff] }
  0xfe   : > { %9305 = vmatmul.mubr.msk.bf16.gmra.mxu1 %vm1165_vm10, %v8334_v19  ;;  %v9112_v19 = vpop.f32.mrf.mxu0  ;;  %v3085_v13 = vsel %vm10822_vm1, %v3083_v31, %v3084_v14  ;;  %v3089_v25 = vsel %vm10822_vm1, %v8360_v1, %v3088_v43 }
  0xff   : > { %9344 = vmatprep.mubr.msk.bf16.mxu1 %vm1165_vm10, %v8371_v37  ;;  %v10955_v57 = vcombine.low %v3082_v2, %v3085_v13  ;;  %v3092_v62 = vsel %vm10822_vm1, %v3090_v47, %v3091_v26  ;;  %v3105_v2 = vrot.slane %v10599_v56, 5  ;;  %v2960_v13 = vld [vmem:[#allocation2 + $0x90] sm:$0xe] }
 0x100   : > { %9311 = vmatmul.mubr.msk.bf16.vlgmr.msra.gmra.mxu0 %vm1165_vm10, %v8371_v37  ;;  %v10887_v37 = vadd.f32 %v9146_v34, %v9112_v19  ;;  %v1268_v7 = vpop.f32.mrf.mxu0  ;;  %v14420_v47 = vld [vmem:[#allocation10_spill] sm:$0xff] }
 0x101   : > { %9377 = vmatpush3.bf16.msra.mxu0 %v3656_v0  ;;  %9314 = vmatprep.mubr.msk.bf16.mxu0 %vm1165_vm10, %v10862_v52  ;;  %v10901_v11 = vadd.f32 %v1440_v17, %v1268_v7  ;;  %v9147_v0 = vpop.f32.mrf.mxu1  ;;  %v10939_v7 = vcombine.low %v3075_v54, %v3078_v32  ;;  %v2959_v54 = vld [vmem:[#allocation2 + $0x84] sm:$0xe]  ;;  %v3109_v23 = vrot.slane %v14420_v47, 5 }
 0x102   : > { %v9113_v59 = vpop.f32.mrf.mxu0 }
 0x103   : > { %v10905_v55 = vadd.f32 %v9147_v0, %v9113_v59  ;;  %v1443_v6 = vpop.f32.mrf.mxu1  ;;  %v14417_v0 = vld [vmem:[#allocation8_spill] sm:$0xff] }
 0x104   : > { %v1271_v24 = vpop.f32.mrf.mxu0  ;;  %v3095_v59 = vrot.slane %v14417_v0, 5 }
 0x105   : > { %v10915_v8 = vadd.f32 %v1443_v6, %v1271_v24  ;;  %v9150_v58 = vpop.f32.mrf.mxu1 }
 0x106   : > { %9345 = vmatmul.mubr.msk.bf16.vlgmr.msra.gmra.mxu1 %vm1165_vm10, %v10862_v52  ;;  %v9116_v39 = vpop.f32.mrf.mxu0 }
 0x107   : > { %9348 = vmatprep.mubr.msk.bf16.mxu1 %vm1165_vm10, %v10876_v18  ;;  %v10919_v15 = vadd.f32 %v9150_v58, %v9116_v39  ;;  %v1456_v20 = vpop.f32.mrf.mxu1  ;;  %v3097_v58 = vrot.slane %v3095_v59, 4  ;;  %v14418_v39 = vld [vmem:[#allocation11_spill] sm:$0xff] }
 0x108   : > { %9315 = vmatmul.mubr.msk.bf16.gmra.mxu0 %vm1165_vm10, %v10876_v18  ;;  %v1284_v36 = vpop.f32.mrf.mxu0 }
 0x109   : > { %9318 = vmatprep.mubr.msk.bf16.mxu0 %vm1165_vm10, %v10891_v48  ;;  %v10933_v34 = vadd.f32 %v1456_v20, %v1284_v36  ;;  %v9151_v19 = vpop.f32.mrf.mxu1  ;;  %v3098_v20 = vrot.slane %v14418_v39, 5  ;;  %v3102_v36 = vrot.slane %v14419_v29, 5  ;;  %v3112_v39 = vrot.slane %v10659_v46, 5 }
 0x10a   : > { %v9117_v17 = vpop.f32.mrf.mxu0 }
 0x10b   : > { %v10937_v33 = vadd.f32 %v9151_v19, %v9117_v17  ;;  %v1459_v16 = vpop.f32.mrf.mxu1  ;;  %v10971_v19 = vcombine.low %v3089_v25, %v3092_v62  ;;  %v3096_v17 = vsel %vm10822_vm1, %v8361_v4, %v3095_v59  ;;  %v3099_v26 = vsel %vm10822_vm1, %v3097_v58, %v3098_v20  ;;  %v2961_v20 = vld [vmem:[#allocation2 + $0x9c] sm:$0xe] }
 0x10c   : > { %v1287_v42 = vpop.f32.mrf.mxu0  ;;  %v10987_v25 = vcombine.low %v3096_v17, %v3099_v26  ;;  %v8363_v4 = vrot.slane %v2960_v13, 9  ;;  %v3111_v58 = vrot.slane %v3109_v23, 4  ;;  %v14421_v13 = vld [vmem:[#allocation12_spill] sm:$0xff] }
 0x10d   : > { %v10947_v6 = vadd.f32 %v1459_v16, %v1287_v42  ;;  %v9154_v60 = vpop.f32.mrf.mxu1  ;;  %v8362_v16 = vrot.slane %v2959_v54, 9  ;;  %v3104_v42 = vrot.slane %v3102_v36, 4  ;;  %v3116_v54 = vrot.slane %v10592_v38, 5 }
 0x10e   : > { %9349 = vmatmul.mubr.msk.bf16.gmra.mxu1 %vm1165_vm10, %v10891_v48  ;;  %v9120_v51 = vpop.f32.mrf.mxu0  ;;  %v3110_v38 = vsel %vm10822_vm1, %v8363_v4, %v3109_v23  ;;  %v3113_v26 = vsel %vm10822_vm1, %v3111_v58, %v3112_v39  ;;  %v3123_v47 = vrot.slane %v14421_v13, 5  ;;  %v3126_v39 = vrot.slane %v10718_v9, 5 }
 0x10f   : > { %9352 = vmatprep.mubr.msk.bf16.mxu1 %vm1165_vm10, %v10907_v41  ;;  %v10951_v24 = vadd.f32 %v9154_v60, %v9120_v51  ;;  %v1472_v63 = vpop.f32.mrf.mxu1  ;;  %v3103_v56 = vsel %vm10822_vm1, %v8362_v16, %v3102_v36  ;;  %v3106_v62 = vsel %vm10822_vm1, %v3104_v42, %v3105_v2  ;;  %v8364_v16 = vrot.slane %v2961_v20, 9  ;;  %v2962_v2 = vld [vmem:[#allocation2 + $0xa8] sm:$0xe]  ;;  %v2963_v20 = vld [vmem:[#allocation2 + $0xb4] sm:$0xe] }
 0x110   : > { %9319 = vmatmul.mubr.msk.bf16.gmra.mxu0 %vm1165_vm10, %v10907_v41  ;;  %v1300_v3 = vpop.f32.mrf.mxu0  ;;  %v11005_v17 = vcombine.low %v3103_v56, %v3106_v62  ;;  %v3118_v42 = vrot.slane %v3116_v54, 4  ;;  %v11021_v56 = vcombine.low %v3110_v38, %v3113_v26  ;;  %v8365_v4 = vrot.slane %v2962_v2, 9 }
 0x111   : > { %9322 = vmatprep.mubr.msk.bf16.mxu0 %vm1165_vm10, %v10923_v30  ;;  %v10965_v32 = vadd.f32 %v1472_v63, %v1300_v3  ;;  %v9155_v31 = vpop.f32.mrf.mxu1  ;;  %v3117_v23 = vsel %vm10822_vm1, %v8364_v16, %v3116_v54  ;;  %v3125_v58 = vrot.slane %v3123_v47, 4 }
 0x112   : > { %v9121_v14 = vpop.f32.mrf.mxu0  ;;  %v3124_v9 = vsel %vm10822_vm1, %v8365_v4, %v3123_v47  ;;  %v2964_v47 = vld [vmem:[#allocation2 + $0xc0] sm:$0xe]  ;;  %v3137_v4 = vrot.slane %v10787_v28, 5 }
 0x113   : > { %v10969_v35 = vadd.f32 %v9155_v31, %v9121_v14  ;;  %v1475_v43 = vpop.f32.mrf.mxu1 }
 0x114   : > { %v1303_v1 = vpop.f32.mrf.mxu0  ;;  %v3139_v27 = vrot.slane %v3137_v4, 4 }
 0x115   : > { %v10979_v0 = vadd.f32 %v1475_v43, %v1303_v1  ;;  %v9158_v60 = vpop.f32.mrf.mxu1  ;;  %v3119_v1 = vrot.slane %v10675_v61, 5 }
 0x116   : > { %9353 = vmatmul.mubr.msk.bf16.gmra.mxu1 %vm1165_vm10, %v10923_v30  ;;  %v9124_v51 = vpop.f32.mrf.mxu0 }
 0x117   : > { %9356 = vmatprep.mubr.msk.bf16.mxu1 %vm1165_vm10, %v10939_v7  ;;  %v10983_v63 = vadd.f32 %v9158_v60, %v9124_v51  ;;  %v1488_v59 = vpop.f32.mrf.mxu1  ;;  %v3120_v62 = vsel %vm10822_vm1, %v3118_v42, %v3119_v1  ;;  %v8366_v1 = vrot.slane %v2963_v20, 9 }
 0x118   : > { %9323 = vmatmul.mubr.msk.bf16.gmra.mxu0 %vm1165_vm10, %v10939_v7  ;;  %v1316_v3 = vpop.f32.mrf.mxu0  ;;  %v11039_v2 = vcombine.low %v3117_v23, %v3120_v62 }
 0x119   : > { %9326 = vmatprep.mubr.msk.bf16.mxu0 %vm1165_vm10, %v10955_v57  ;;  %v10997_v29 = vadd.f32 %v1488_v59, %v1316_v3  ;;  %v9159_v31 = vpop.f32.mrf.mxu1 }
 0x11a   : > { %v9125_v36 = vpop.f32.mrf.mxu0 }
 0x11b   : > { %v11001_v14 = vadd.f32 %v9159_v31, %v9125_v36  ;;  %v11003_v43 = vpop.f32.mrf.mxu1  ;;  %v14422_v31 = vld [vmem:[#allocation13_spill] sm:$0xff] }
 0x11c   : > { %v11008_v46 = vpop.f32.mrf.mxu0  ;;  %v3130_v36 = vrot.slane %v14422_v31, 5 }
 0x11d   : > { %v9162_v60 = vpop.f32.mrf.mxu1 }
 0x11e   : > { %9357 = vmatmul.mubr.msk.bf16.gmra.mxu1 %vm1165_vm10, %v10955_v57  ;;  %v9128_v51 = vpop.f32.mrf.mxu0 }
 0x11f   : > { %9360 = vmatprep.mubr.msk.bf16.mxu1 %vm1165_vm10, %v10971_v19  ;;  %v11017_v59 = vadd.f32 %v9162_v60, %v9128_v51  ;;  %v1504_v61 = vpop.f32.mrf.mxu1  ;;  %v3127_v60 = vsel %vm10822_vm1, %v3125_v58, %v3126_v39  ;;  %v3132_v51 = vrot.slane %v3130_v36, 4  ;;  %v3131_v58 = vsel %vm10822_vm1, %v8366_v1, %v3130_v36 }
 0x120   : > { %9327 = vmatmul.mubr.msk.bf16.gmra.mxu0 %vm1165_vm10, %v10971_v19  ;;  %v1332_v3 = vpop.f32.mrf.mxu0  ;;  %v11054_v62 = vcombine.low %v3124_v9, %v3127_v60  ;;  %v8367_v60 = vrot.slane %v2964_v47, 9  ;;  %v3140_v36 = vrot.slane %v10801_v53, 5 }
 0x121   : > { %9330 = vmatprep.mubr.msk.bf16.mxu0 %vm1165_vm10, %v10987_v25  ;;  %v11031_v13 = vadd.f32 %v1504_v61, %v1332_v3  ;;  %v9163_v38 = vpop.f32.mrf.mxu1  ;;  %v3133_v61 = vrot.slane %v10721_v40, 5 }
 0x122   : > { %v9129_v54 = vpop.f32.mrf.mxu0 }
 0x123   : > { %v11035_v16 = vadd.f32 %v9163_v38, %v9129_v54  ;;  %v11037_v26 = vpop.f32.mrf.mxu1  ;;  %v3134_v39 = vsel %vm10822_vm1, %v3132_v51, %v3133_v61 }
 0x124   : > { %14423 = vst [vmem:[#allocation8_spill] sm:$0xff] %v11037_v26  ;;  %v11041_v42 = vpop.f32.mrf.mxu0 }
 0x125   : > { %14424 = vst [vmem:[#allocation11_spill] sm:$0xff] %v11041_v42  ;;  %v9166_v3 = vpop.f32.mrf.mxu1 }
 0x126   : > { %9361 = vmatmul.mubr.msk.bf16.gmra.mxu1 %vm1165_vm10, %v10987_v25  ;;  %v9132_v31 = vpop.f32.mrf.mxu0 }
 0x127   : > { %9364 = vmatprep.mubr.msk.bf16.mxu1 %vm1165_vm10, %v11005_v17  ;;  %v11050_v38 = vadd.f32 %v9166_v3, %v9132_v31  ;;  %v1520_v23 = vpop.f32.mrf.mxu1  ;;  %v11071_v31 = vcombine.low %v3131_v58, %v3134_v39  ;;  %v3141_v58 = vsel %vm10822_vm1, %v3139_v27, %v3140_v36 }
 0x128   : > { %9331 = vmatmul.mubr.msk.bf16.gmra.mxu0 %vm1165_vm10, %v11005_v17  ;;  %v1348_v40 = vpop.f32.mrf.mxu0 }
 0x129   : > { %9334 = vmatprep.mubr.msk.bf16.mxu0 %vm1165_vm10, %v11021_v56  ;;  %v11063_v20 = vadd.f32 %v1520_v23, %v1348_v40  ;;  %v9167_v54 = vpop.f32.mrf.mxu1  ;;  %v3138_v40 = vsel %vm10822_vm1, %v8367_v60, %v3137_v4 }
 0x12a   : > { %v9133_v9 = vpop.f32.mrf.mxu0 }
 0x12b   : > { %v11067_v3 = vadd.f32 %v9167_v54, %v9133_v9  ;;  %v11069_v28 = vpop.f32.mrf.mxu1  ;;  %v11092_v9 = vcombine.low %v3138_v40, %v3141_v58 }
 0x12c   : > { %14425 = vst [vmem:[#allocation9_spill] sm:$0xff] %v11069_v28  ;;  %v11074_v1 = vpop.f32.mrf.mxu0 }
 0x12d   : > { %14426 = vst [vmem:[#allocation10_spill] sm:$0xff] %v11074_v1  ;;  %v9170_v51 = vpop.f32.mrf.mxu1 }
 0x12e   : > { %9365 = vmatmul.mubr.msk.bf16.gmra.mxu1 %vm1165_vm10, %v11021_v56  ;;  %v9136_v61 = vpop.f32.mrf.mxu0 }
 0x12f   : > { %9368 = vmatprep.mubr.msk.bf16.mxu1 %vm1165_vm10, %v11039_v2  ;;  %v11078_v23 = vadd.f32 %v9170_v51, %v9136_v61  ;;  %v1536_v47 = vpop.f32.mrf.mxu1 }
 0x130   : > { %9335 = vmatmul.mubr.msk.bf16.gmra.mxu0 %vm1165_vm10, %v11039_v2  ;;  %v1364_v53 = vpop.f32.mrf.mxu0 }
 0x131   : > { %9338 = vmatprep.mubr.msk.bf16.mxu0 %vm1165_vm10, %v11054_v62  ;;  %v11088_v39 = vadd.f32 %v1536_v47, %v1364_v53  ;;  %v9171_v54 = vpop.f32.mrf.mxu1 }
 0x132   : > { %v9137_v51 = vpop.f32.mrf.mxu0 }
 0x133   : > { %v11094_v61 = vadd.f32 %v9171_v54, %v9137_v51  ;;  %v11096_v22 = vpop.f32.mrf.mxu1 }
 0x134   : > { %14427 = vst [vmem:[#allocation12_spill] sm:$0xff] %v11096_v22  ;;  %v11098_v4 = vpop.f32.mrf.mxu0 }
 0x135   : > { %14428 = vst [vmem:[#allocation13_spill] sm:$0xff] %v11098_v4  ;;  %v9210_v27 = vpop.f32.mrf.mxu1 }
 0x136   : > { %9369 = vmatmul.mubr.msk.bf16.gmra.mxu1 %vm1165_vm10, %v11054_v62  ;;  %v9176_v60 = vpop.f32.mrf.mxu0 }
 0x137   : > { %9372 = vmatprep.mubr.msk.bf16.mxu1 %vm1165_vm10, %v11071_v31  ;;  %v1727_v36 = vadd.f32 %v9176_v60, %v10857_v45  ;;  %v2381_v47 = vpop.f32.mrf.mxu1 }
 0x138   : > { %9339 = vmatmul.mubr.msk.bf16.gmra.mxu0 %vm1165_vm10, %v11071_v31 }
 0x139   : > { %9378 = vmatprep.mubr.msk.bf16.mxu0 %vm1165_vm10, %v10862_v52  ;;  %v1598_v52 = vpop.f32.mrf.mxu0  ;;  %v11106_v58 = vadd.f32 %v9210_v27, %v1727_v36  ;;  %v9211_v53 = vpop.f32.mrf.mxu1 }
 0x13a   : > { %v1725_v40 = vadd.f32 %v1598_v52, %v10868_v21 }
 0x13b   : > { %v9177_v54 = vpop.f32.mrf.mxu0  ;;  %v11113_v22 = vpop.f32.mrf.mxu1 }
 0x13c   : > { %v1728_v51 = vadd.f32 %v9177_v54, %v10874_v10  ;;  %v11111_v44 = vadd.f32 %v2381_v47, %v1725_v40 }
 0x13d   : > { %v1601_v45 = vpop.f32.mrf.mxu0  ;;  %v9214_v21 = vpop.f32.mrf.mxu1 }
 0x13e   : > { %9373 = vmatmul.mubr.msk.bf16.gmra.mxu1 %vm1165_vm10, %v11092_v9  ;;  %v11116_v60 = vadd.f32 %v1601_v45, %v10881_v5 }
 0x13f   : > { %v9180_v27 = vpop.f32.mrf.mxu0  ;;  %v2397_v52 = vpop.f32.mrf.mxu1 }
 0x140   : > { %9379 = vmatmul.mubr.msk.bf16.vlgmr.msra.gmra.mxu0 %vm1165_vm10, %v10876_v18  ;;  %v11118_v18 = vadd.f32 %v9211_v53, %v1728_v51  ;;  %v1731_v36 = vadd.f32 %v9180_v27, %v10887_v37 }
 0x141   : > { %9382 = vmatprep.mubr.msk.bf16.mxu0 %vm1165_vm10, %v10891_v48  ;;  %v1614_v48 = vpop.f32.mrf.mxu0  ;;  %v9215_v40 = vpop.f32.mrf.mxu1 }
 0x142   : > { %v1729_v10 = vadd.f32 %v1614_v48, %v10901_v11  ;;  %v11124_v47 = vadd.f32 %v9214_v21, %v1731_v36 }
 0x143   : > { %v9181_v5 = vpop.f32.mrf.mxu0  ;;  %v11131_v51 = vpop.f32.mrf.mxu1 }
 0x144   : > { %v1732_v53 = vadd.f32 %v9181_v5, %v10905_v55  ;;  %v11129_v54 = vadd.f32 %v2397_v52, %v1729_v10 }
 0x145   : > { %v1617_v37 = vpop.f32.mrf.mxu0  ;;  %v9218_v11 = vpop.f32.mrf.mxu1 }
 0x146   : > { %v11134_v45 = vadd.f32 %v1617_v37, %v10915_v8 }
 0x147   : > { %v9184_v21 = vpop.f32.mrf.mxu0  ;;  %v2413_v36 = vpop.f32.mrf.mxu1 }
 0x148   : > { %9383 = vmatmul.mubr.msk.bf16.gmra.mxu0 %vm1165_vm10, %v10907_v41  ;;  %v11136_v41 = vadd.f32 %v9215_v40, %v1732_v53  ;;  %v1735_v27 = vadd.f32 %v9184_v21, %v10919_v15 }
 0x149   : > { %9386 = vmatprep.mubr.msk.bf16.mxu0 %vm1165_vm10, %v10923_v30  ;;  %v1630_v30 = vpop.f32.mrf.mxu0  ;;  %v9219_v48 = vpop.f32.mrf.mxu1 }
 0x14a   : > { %v1733_v55 = vadd.f32 %v1630_v30, %v10933_v34  ;;  %v11142_v52 = vadd.f32 %v9218_v11, %v1735_v27 }
 0x14b   : > { %v9185_v8 = vpop.f32.mrf.mxu0  ;;  %v11149_v5 = vpop.f32.mrf.mxu1 }
 0x14c   : > { %v1736_v10 = vadd.f32 %v9185_v8, %v10937_v33  ;;  %v11147_v40 = vadd.f32 %v2413_v36, %v1733_v55 }
 0x14d   : > { %v1633_v15 = vpop.f32.mrf.mxu0 }
 0x14e   : > { %v11152_v53 = vadd.f32 %v1633_v15, %v10947_v6 }
 0x14f   : > { %v9188_v34 = vpop.f32.mrf.mxu0 }
 0x150   : > { %9387 = vmatmul.mubr.msk.bf16.gmra.mxu0 %vm1165_vm10, %v10939_v7  ;;  %v11154_v7 = vadd.f32 %v9219_v48, %v1736_v10  ;;  %v1739_v11 = vadd.f32 %v9188_v34, %v10951_v24 }
 0x151   : > { %9390 = vmatprep.mubr.msk.bf16.mxu0 %vm1165_vm10, %v10955_v57  ;;  %v1646_v57 = vpop.f32.mrf.mxu0 }
 0x152   : > { %v1737_v33 = vadd.f32 %v1646_v57, %v10965_v32 }
 0x153   : > { %v9222_v37 = vpop.f32.mrf.mxu1  ;;  %v9189_v6 = vpop.f32.mrf.mxu0 }
 0x154   : > { %v11160_v27 = vadd.f32 %v9222_v37, %v1739_v11  ;;  %v1740_v30 = vadd.f32 %v9189_v6, %v10969_v35 }
 0x155   : > { %v2429_v21 = vpop.f32.mrf.mxu1  ;;  %v1649_v48 = vpop.f32.mrf.mxu0 }
 0x156   : > { %v11165_v55 = vadd.f32 %v2429_v21, %v1737_v33  ;;  %v11168_v24 = vadd.f32 %v1649_v48, %v10979_v0 }
 0x157   : > { %v9223_v36 = vpop.f32.mrf.mxu1  ;;  %v9192_v32 = vpop.f32.mrf.mxu0 }
 0x158   : > { %9391 = vmatmul.mubr.msk.bf16.gmra.mxu0 %vm1165_vm10, %v10971_v19  ;;  %v11170_v19 = vadd.f32 %v9223_v36, %v1740_v30  ;;  %v1743_v10 = vadd.f32 %v9192_v32, %v10983_v63  ;;  %v3144_v30 = vrot.slane %v10799_v12, 5 }
 0x159   : > { %9394 = vmatprep.mubr.msk.bf16.mxu0 %vm1165_vm10, %v10987_v25  ;;  %v11172_v8 = vpop.f32.mrf.mxu1  ;;  %v1662_v25 = vpop.f32.mrf.mxu0 }
 0x15a   : > { %v1741_v15 = vadd.f32 %v1662_v25, %v10997_v29 }
 0x15b   : > { %v9193_v0 = vpop.f32.mrf.mxu0 }
 0x15c   : > { %v1744_v37 = vadd.f32 %v9193_v0, %v11001_v14 }
 0x15d   : > { %v11185_v21 = vpop.f32.mrf.mxu0 }
 0x160   : > { %9395 = vmatmul.mubr.msk.bf16.gmra.mxu0 %vm1165_vm10, %v11005_v17  ;;  %v9226_v35 = vpop.f32.mrf.mxu1  ;;  %v9196_v17 = vpop.f32.mrf.mxu0 }
 0x161   : > { %9398 = vmatprep.mubr.msk.bf16.mxu0 %vm1165_vm10, %v11021_v56  ;;  %v11180_v34 = vadd.f32 %v9226_v35, %v1743_v10  ;;  %v1747_v29 = vadd.f32 %v9196_v17, %v11017_v59  ;;  %v2965_v10 = vld [vmem:[#allocation2 + $0xcc] sm:$0xe] }
 0x162   : > { %v2445_v11 = vpop.f32.mrf.mxu1  ;;  %v1678_v56 = vpop.f32.mrf.mxu0  ;;  %v8368_v0 = vrot.slane %v2965_v10, 9 }
 0x163   : > { %v11183_v57 = vadd.f32 %v2445_v11, %v1741_v15  ;;  %v1745_v36 = vadd.f32 %v1678_v56, %v11031_v13  ;;  %v3146_v13 = vrot.slane %v3144_v30, 4 }
 0x164   : > { %v9227_v63 = vpop.f32.mrf.mxu1  ;;  %v9197_v32 = vpop.f32.mrf.mxu0 }
 0x165   : > { %v11187_v33 = vadd.f32 %v9227_v63, %v1744_v37  ;;  %v1748_v59 = vadd.f32 %v9197_v32, %v11035_v16  ;;  %v3147_v37 = vrot.slane %v10814_v49, 5 }
 0x166   : > { %v11190_v6 = vpop.f32.mrf.mxu1  ;;  %v11203_v35 = vpop.f32.mrf.mxu0 }
 0x167   : > { %14429 = vst [vmem:[#allocation15_spill] sm:$0xff] %v11190_v6  ;;  %14430 = vst [vmem:[#allocation16_spill] sm:$0xff] %v11203_v35  ;;  %v3148_v49 = vsel %vm10822_vm1, %v3146_v13, %v3147_v37 }
 0x168   : > { %9399 = vmatmul.mubr.msk.bf16.gmra.mxu0 %vm1165_vm10, %v11039_v2  ;;  %v9230_v14 = vpop.f32.mrf.mxu1 }
 0x169   : > { %9402 = vmatprep.mubr.msk.bf16.mxu0 %vm1165_vm10, %v11054_v62  ;;  %v11198_v48 = vadd.f32 %v9230_v14, %v1747_v29  ;;  %v9200_v62 = vpop.f32.mrf.mxu0  ;;  %v3145_v29 = vsel %vm10822_vm1, %v8368_v0, %v3144_v30 }
 0x16a   : > { %v2461_v25 = vpop.f32.mrf.mxu1  ;;  %v1751_v12 = vadd.f32 %v9200_v62, %v11050_v38  ;;  %v8421_v10 = vcombine.low %v3145_v29, %v3148_v49 }
 0x16b   : > { %v11201_v15 = vadd.f32 %v2461_v25, %v1745_v36  ;;  %v1694_v16 = vpop.f32.mrf.mxu0 }
 0x16c   : > { %v9231_v2 = vpop.f32.mrf.mxu1  ;;  %v1749_v17 = vadd.f32 %v1694_v16, %v11063_v20 }
 0x16d   : > { %v11206_v11 = vadd.f32 %v9231_v2, %v1748_v59  ;;  %v9201_v36 = vpop.f32.mrf.mxu0 }
 0x16e   : > { %v11209_v63 = vpop.f32.mrf.mxu1  ;;  %v1752_v14 = vadd.f32 %v9201_v36, %v11067_v3 }
 0x16f   : > { %14431 = vst [vmem:[#allocation17_spill] sm:$0xff] %v11209_v63 }
 0x170   : > { %9403 = vmatmul.mubr.msk.bf16.gmra.mxu0 %vm1165_vm10, %v11071_v31  ;;  %v11223_v31 = vpop.f32.mrf.mxu0 }
 0x171   : > { %9406 = vmatprep.mubr.msk.bf16.mxu0 %vm1165_vm10, %v11092_v9  ;;  %14432 = vst [vmem:[#allocation18_spill] sm:$0xff] %v11223_v31 }
 0x172   : > { %v9234_v56 = vpop.f32.mrf.mxu1 }
 0x173   : > { %v11220_v38 = vadd.f32 %v9234_v56, %v1751_v12 }
 0x174   : > { %v2477_v32 = vpop.f32.mrf.mxu1 }
 0x175   : > { %v11225_v20 = vadd.f32 %v2477_v32, %v1749_v17 }
 0x176   : > { %v9235_v59 = vpop.f32.mrf.mxu1 }
 0x177   : > { %v11227_v9 = vadd.f32 %v9235_v59, %v1752_v14  ;;  %v9204_v25 = vpop.f32.mrf.mxu0 }
 0x178   : > { %9407 = vmatmul.mubr.msk.bf16.gmra.mxu0 %vm1165_vm10, %v8421_v10  ;;  %v1755_v30 = vadd.f32 %v9204_v25, %v11078_v23  ;;  %v11231_v2 = vpop.f32.mrf.mxu1 }
 0x179   : > { %14433 = vst [vmem:[#allocation19_spill] sm:$0xff] %v11231_v2  ;;  %v1710_v0 = vpop.f32.mrf.mxu0 }
 0x17a   : > { %v1753_v13 = vadd.f32 %v1710_v0, %v11088_v39 }
 0x17b   : > { %v9205_v3 = vpop.f32.mrf.mxu0 }
 0x17c   : > { %v1756_v37 = vadd.f32 %v9205_v3, %v11094_v61 }
 0x17d   : > { %v11235_v12 = vpop.f32.mrf.mxu0 }
 0x17e   : > { %v9238_v62 = vpop.f32.mrf.mxu1  ;;  %14434 = vst [vmem:[#allocation20_spill] sm:$0xff] %v11235_v12 }
 0x17f   : > { %v11237_v16 = vadd.f32 %v9238_v62, %v1755_v30  ;;  %v9244_v29 = vpop.f32.mrf.mxu0 }
 0x180   : > { %v2493_v17 = vpop.f32.mrf.mxu1  ;;  %v2714_v56 = vadd.f32 %v9244_v29, %v11106_v58 }
 0x181   : > { %v11239_v49 = vadd.f32 %v2493_v17, %v1753_v13  ;;  %v2585_v36 = vpop.f32.mrf.mxu0 }
 0x182   : > { %v9239_v23 = vpop.f32.mrf.mxu1  ;;  %v2712_v39 = vadd.f32 %v2585_v36, %v11111_v44 }
 0x183   : > { %v11242_v14 = vadd.f32 %v9239_v23, %v1756_v37  ;;  %v9245_v61 = vpop.f32.mrf.mxu0 }
 0x184   : > { %v11245_v32 = vpop.f32.mrf.mxu1  ;;  %v2715_v10 = vadd.f32 %v9245_v61, %v11118_v18 }
 0x185   : > { %14435 = vst [vmem:[#allocation21_spill] sm:$0xff] %v11245_v32  ;;  %v11248_v25 = vpop.f32.mrf.mxu0 }
 0x186   : > { %v9278_v59 = vpop.f32.mrf.mxu1 }
 0x187   : > { %v11250_v30 = vadd.f32 %v9278_v59, %v2714_v56 }
 0x188   : > { %v2789_v0 = vpop.f32.mrf.mxu1  ;;  %v9248_v13 = vpop.f32.mrf.mxu0 }
 0x189   : > { %v11252_v3 = vadd.f32 %v2789_v0, %v2712_v39  ;;  %v2718_v58 = vadd.f32 %v9248_v13, %v11124_v47 }
 0x18a   : > { %v9279_v37 = vpop.f32.mrf.mxu1  ;;  %v2601_v62 = vpop.f32.mrf.mxu0 }
 0x18b   : > { %v11255_v17 = vadd.f32 %v9279_v37, %v2715_v10  ;;  %v11258_v44 = vadd.f32 %v2601_v62, %v11129_v54 }
 0x18c   : > { %v11260_v29 = vpop.f32.mrf.mxu1  ;;  %v9249_v18 = vpop.f32.mrf.mxu0 }
 0x18d   : > { %v2719_v23 = vadd.f32 %v9249_v18, %v11136_v41 }
 0x18e   : > { %v9282_v56 = vpop.f32.mrf.mxu1  ;;  %v11263_v36 = vpop.f32.mrf.mxu0 }
 0x18f   : > { %v11265_v61 = vadd.f32 %v9282_v56, %v2718_v58 }
 0x190   : > { %v11267_v39 = vpop.f32.mrf.mxu1  ;;  %v9252_v47 = vpop.f32.mrf.mxu0 }
 0x191   : > { %v2722_v59 = vadd.f32 %v9252_v47, %v11142_v52 }
 0x192   : > { %v9283_v10 = vpop.f32.mrf.mxu1  ;;  %v2617_v0 = vpop.f32.mrf.mxu0 }
 0x193   : > { %v11270_v13 = vadd.f32 %v9283_v10, %v2719_v23  ;;  %v11273_v54 = vadd.f32 %v2617_v0, %v11147_v40 }
 0x194   : > { %v11275_v37 = vpop.f32.mrf.mxu1  ;;  %v9253_v41 = vpop.f32.mrf.mxu0 }
 0x195   : > { %v2723_v62 = vadd.f32 %v9253_v41, %v11154_v7 }
 0x196   : > { %v9286_v18 = vpop.f32.mrf.mxu1  ;;  %v11278_v58 = vpop.f32.mrf.mxu0 }
 0x197   : > { %v11280_v56 = vadd.f32 %v9286_v18, %v2722_v59 }
 0x198   : > { %v11282_v50 = vpop.f32.mrf.mxu1  ;;  %v9256_v52 = vpop.f32.mrf.mxu0 }
 0x199   : > { %v2726_v47 = vadd.f32 %v9256_v52, %v11160_v27 }
 0x19a   : > { %v9287_v23 = vpop.f32.mrf.mxu1  ;;  %v2633_v10 = vpop.f32.mrf.mxu0 }
 0x19b   : > { %v11285_v32 = vadd.f32 %v9287_v23, %v2723_v62  ;;  %v11288_v40 = vadd.f32 %v2633_v10, %v11165_v55 }
 0x19c   : > { %v11290_v0 = vpop.f32.mrf.mxu1  ;;  %v9257_v7 = vpop.f32.mrf.mxu0 }
 0x19d   : > { %v2727_v41 = vadd.f32 %v9257_v7, %v11170_v19 }
 0x19e   : > { %v9290_v12 = vpop.f32.mrf.mxu1  ;;  %v11293_v59 = vpop.f32.mrf.mxu0 }
 0x19f   : > { %v11295_v18 = vadd.f32 %v9290_v12, %v2726_v47 }
 0x1a0   : > { %v11297_v4 = vpop.f32.mrf.mxu1  ;;  %v9260_v27 = vpop.f32.mrf.mxu0 }
 0x1a1   : > { %v2730_v52 = vadd.f32 %v9260_v27, %v11180_v34 }
 0x1a2   : > { %v9291_v62 = vpop.f32.mrf.mxu1  ;;  %v2649_v23 = vpop.f32.mrf.mxu0 }
 0x1a3   : > { %v11300_v2 = vadd.f32 %v9291_v62, %v2727_v41  ;;  %v11303_v55 = vadd.f32 %v2649_v23, %v11183_v57 }
 0x1a4   : > { %v11305_v10 = vpop.f32.mrf.mxu1  ;;  %v9261_v19 = vpop.f32.mrf.mxu0 }
 0x1a5   : > { %14436 = vst [vmem:[#allocation22_spill] sm:$0xff] %v11303_v55  ;;  %14437 = vst [vmem:[#allocation23_spill] sm:$0xff] %v11305_v10  ;;  %v2731_v7 = vadd.f32 %v9261_v19, %v11187_v33 }
 0x1a6   : > { %v9294_v31 = vpop.f32.mrf.mxu1  ;;  %v11308_v12 = vpop.f32.mrf.mxu0 }
 0x1a7   : > { %14438 = vst [vmem:[#allocation24_spill] sm:$0xff] %v11308_v12  ;;  %v11310_v47 = vadd.f32 %v9294_v31, %v2730_v52 }
 0x1a8   : > { %v11312_v28 = vpop.f32.mrf.mxu1  ;;  %v9264_v34 = vpop.f32.mrf.mxu0 }
 0x1a9   : > { %14439 = vst [vmem:[#allocation25_spill] sm:$0xff] %v11312_v28  ;;  %v2734_v27 = vadd.f32 %v9264_v34, %v11198_v48 }
 0x1aa   : > { %v9295_v41 = vpop.f32.mrf.mxu1  ;;  %v2665_v62 = vpop.f32.mrf.mxu0 }
 0x1ab   : > { %v11315_v1 = vadd.f32 %v9295_v41, %v2731_v7  ;;  %v11318_v57 = vadd.f32 %v2665_v62, %v11201_v15 }
 0x1ac   : > { %v11320_v23 = vpop.f32.mrf.mxu1  ;;  %v9265_v33 = vpop.f32.mrf.mxu0 }
 0x1ad   : > { %14440 = vst [vmem:[#allocation26_spill] sm:$0xff] %v11318_v57  ;;  %14441 = vst [vmem:[#allocation27_spill] sm:$0xff] %v11320_v23  ;;  %v2735_v19 = vadd.f32 %v9265_v33, %v11206_v11 }
 0x1ae   : > { %v9298_v63 = vpop.f32.mrf.mxu1  ;;  %v11323_v31 = vpop.f32.mrf.mxu0 }
 0x1af   : > { %14442 = vst [vmem:[#allocation28_spill] sm:$0xff] %v11323_v31  ;;  %v11325_v52 = vadd.f32 %v9298_v63, %v2734_v27 }
 0x1b0   : > { %v11327_v35 = vpop.f32.mrf.mxu1  ;;  %v9268_v48 = vpop.f32.mrf.mxu0 }
 0x1b1   : > { %14443 = vst [vmem:[#allocation29_spill] sm:$0xff] %v11327_v35  ;;  %v2738_v34 = vadd.f32 %v9268_v48, %v11220_v38 }
 0x1b2   : > { %v9299_v7 = vpop.f32.mrf.mxu1  ;;  %v2681_v41 = vpop.f32.mrf.mxu0 }
 0x1b3   : > { %v11330_v28 = vadd.f32 %v9299_v7, %v2735_v19  ;;  %v11333_v15 = vadd.f32 %v2681_v41, %v11225_v20 }
 0x1b4   : > { %v11335_v62 = vpop.f32.mrf.mxu1  ;;  %v9269_v11 = vpop.f32.mrf.mxu0 }
 0x1b5   : > { %14444 = vst [vmem:[#allocation30_spill] sm:$0xff] %v11333_v15  ;;  %14445 = vst [vmem:[#allocation31_spill] sm:$0xff] %v11335_v62  ;;  %v2739_v33 = vadd.f32 %v9269_v11, %v11227_v9 }
 0x1b6   : > { %v9302_v57 = vpop.f32.mrf.mxu1  ;;  %v11338_v63 = vpop.f32.mrf.mxu0 }
 0x1b7   : > { %14446 = vst [vmem:[#allocation32_spill] sm:$0xff] %v11338_v63  ;;  %v11340_v27 = vadd.f32 %v9302_v57, %v2738_v34 }
 0x1b8   : > { %v11342_v35 = vpop.f32.mrf.mxu1  ;;  %v9272_v38 = vpop.f32.mrf.mxu0 }
 0x1b9   : > { %14447 = vst [vmem:[#allocation33_spill] sm:$0xff] %v11342_v35  ;;  %v2742_v48 = vadd.f32 %v9272_v38, %v11237_v16 }
 0x1ba   : > { %v9303_v19 = vpop.f32.mrf.mxu1  ;;  %v2697_v7 = vpop.f32.mrf.mxu0 }
 0x1bb   : > { %v11345_v31 = vadd.f32 %v9303_v19, %v2739_v33  ;;  %v11348_v20 = vadd.f32 %v2697_v7, %v11239_v49 }
 0x1bc   : > { %v11350_v41 = vpop.f32.mrf.mxu1  ;;  %v9273_v9 = vpop.f32.mrf.mxu0 }
 0x1bd   : > { %14448 = vst [vmem:[#allocation34_spill] sm:$0xff] %v11348_v20  ;;  %14449 = vst [vmem:[#allocation35_spill] sm:$0xff] %v11350_v41  ;;  %v2743_v11 = vadd.f32 %v9273_v9, %v11242_v14 }
 0x1be   : > { %v9306_v15 = vpop.f32.mrf.mxu1  ;;  %v11353_v57 = vpop.f32.mrf.mxu0 }
 0x1bf   : > { %14450 = vst [vmem:[#allocation36_spill] sm:$0xff] %v11353_v57  ;;  %v11355_v34 = vadd.f32 %v9306_v15, %v2742_v48 }
 0x1c0   : > { %v11357_v35 = vpop.f32.mrf.mxu1  ;;  %v9312_v16 = vpop.f32.mrf.mxu0 }
 0x1c1   : > { %14451 = vst [vmem:[#allocation37_spill] sm:$0xff] %v11357_v35  ;;  %v11360_v38 = vadd.f32 %v9312_v16, %v11250_v30 }
 0x1c2   : > { %v9307_v33 = vpop.f32.mrf.mxu1  ;;  %v3284_v19 = vpop.f32.mrf.mxu0 }
 0x1c3   : > { %v11362_v49 = vadd.f32 %v9307_v33, %v2743_v11  ;;  %v11365_v7 = vadd.f32 %v3284_v19, %v11252_v3 }
 0x1c4   : > { %v11367_v20 = vpop.f32.mrf.mxu1  ;;  %v9313_v14 = vpop.f32.mrf.mxu0 }
 0x1c5   : > { %14452 = vst [vmem:[#allocation38_spill] sm:$0xff] %v11367_v20  ;;  %v11370_v9 = vadd.f32 %v9313_v14, %v11255_v17 }
 0x1c6   : > { %v11372_v15 = vpop.f32.mrf.mxu1  ;;  %v11374_v48 = vpop.f32.mrf.mxu0 }
 0x1c8   : > { %v11376_v35 = vpop.f32.mrf.mxu1  ;;  %v9316_v30 = vpop.f32.mrf.mxu0 }
 0x1c9   : > { %v11379_v16 = vadd.f32 %v9316_v30, %v11265_v61 }
 0x1ca   : > { %v11381_v11 = vpop.f32.mrf.mxu1  ;;  %v11383_v3 = vpop.f32.mrf.mxu0 }
 0x1cc   : > { %v11385_v33 = vpop.f32.mrf.mxu1  ;;  %v9317_v19 = vpop.f32.mrf.mxu0 }
 0x1cd   : > { %v11388_v17 = vadd.f32 %v9317_v19, %v11270_v13 }
 0x1ce   : > { %v11390_v14 = vpop.f32.mrf.mxu1  ;;  %v11392_v20 = vpop.f32.mrf.mxu0 }
 0x1d0   : > { %v9320_v57 = vpop.f32.mrf.mxu0  ;;  %v11397_v61 = vpop.f32.mrf.mxu1 }
 0x1d1   : > { %v11395_v41 = vadd.f32 %v9320_v57, %v11280_v56 }
 0x1d2   : > { %v11399_v30 = vpop.f32.mrf.mxu0  ;;  %v11404_v23 = vpop.f32.mrf.mxu1 }
 0x1d4   : > { %v9321_v63 = vpop.f32.mrf.mxu0  ;;  %v11411_v12 = vpop.f32.mrf.mxu1 }
 0x1d5   : > { %v11402_v62 = vadd.f32 %v9321_v63, %v11285_v32 }
 0x1d6   : > { %v11406_v13 = vpop.f32.mrf.mxu0  ;;  %v11418_v42 = vpop.f32.mrf.mxu1 }
 0x1d7   : > { %14453 = vst [vmem:[#allocation39_spill] sm:$0xff] %v11402_v62 }
 0x1d8   : > { %v9324_v19 = vpop.f32.mrf.mxu0  ;;  %v11425_v62 = vpop.f32.mrf.mxu1 }
 0x1d9   : > { %v11409_v55 = vadd.f32 %v9324_v19, %v11295_v18 }
 0x1da   : > { %v11413_v56 = vpop.f32.mrf.mxu0  ;;  %v11432_v10 = vpop.f32.mrf.mxu1 }
 0x1db   : > { %14454 = vst [vmem:[#allocation40_spill] sm:$0xff] %v11409_v55 }
 0x1dc   : > { %v9325_v57 = vpop.f32.mrf.mxu0 }
 0x1dd   : > { %v11416_v26 = vadd.f32 %v9325_v57, %v11300_v2 }
 0x1de   : > { %v11420_v32 = vpop.f32.mrf.mxu0 }
 0x1df   : > { %14455 = vst [vmem:[#allocation41_spill] sm:$0xff] %v11416_v26  ;;  %14456 = vst [vmem:[#allocation42_spill] sm:$0xff] %v11420_v32  ;;  %v11439_v32 = vpop.f32.mrf.mxu1 }
 0x1e0   : > { %v9328_v63 = vpop.f32.mrf.mxu0 }
 0x1e1   : > { %v11423_v6 = vadd.f32 %v9328_v63, %v11310_v47 }
 0x1e2   : > { %v11427_v18 = vpop.f32.mrf.mxu0 }
 0x1e3   : > { %14457 = vst [vmem:[#allocation43_spill] sm:$0xff] %v11423_v6  ;;  %14458 = vst [vmem:[#allocation44_spill] sm:$0xff] %v11427_v18  ;;  %v11446_v18 = vpop.f32.mrf.mxu1 }
 0x1e4   : > { %v9329_v19 = vpop.f32.mrf.mxu0 }
 0x1e5   : > { %v11430_v55 = vadd.f32 %v9329_v19, %v11315_v1 }
 0x1e6   : > { %v11434_v2 = vpop.f32.mrf.mxu0 }
 0x1e7   : > { %14459 = vst [vmem:[#allocation45_spill] sm:$0xff] %v11430_v55  ;;  %14460 = vst [vmem:[#allocation46_spill] sm:$0xff] %v11434_v2  ;;  %v11453_v2 = vpop.f32.mrf.mxu1 }
 0x1e8   : > { %v9332_v57 = vpop.f32.mrf.mxu0 }
 0x1e9   : > { %v11437_v26 = vadd.f32 %v9332_v57, %v11325_v52 }
 0x1ea   : > { %v11441_v47 = vpop.f32.mrf.mxu0 }
 0x1eb   : > { %14461 = vst [vmem:[#allocation47_spill] sm:$0xff] %v11437_v26  ;;  %14462 = vst [vmem:[#allocation48_spill] sm:$0xff] %v11441_v47  ;;  %v11460_v47 = vpop.f32.mrf.mxu1 }
 0x1ec   : > { %v9333_v63 = vpop.f32.mrf.mxu0 }
 0x1ed   : > { %v11444_v6 = vadd.f32 %v9333_v63, %v11330_v28 }
 0x1ee   : > { %v11448_v1 = vpop.f32.mrf.mxu0 }
 0x1ef   : > { %14463 = vst [vmem:[#allocation49_spill] sm:$0xff] %v11444_v6  ;;  %14464 = vst [vmem:[#allocation50_spill] sm:$0xff] %v11448_v1  ;;  %v2509_v6 = vadd.f32 %v11113_v22, %v11116_v60  ;;  %v2513_v22 = vadd.f32 %v11131_v51, %v11134_v45 }
 0x1f0   : > { %v9336_v19 = vpop.f32.mrf.mxu0 }
 0x1f1   : > { %v11451_v55 = vadd.f32 %v9336_v19, %v11340_v27  ;;  %v11469_v27 = vpop.f32.mrf.mxu1 }
 0x1f2   : > { %v11455_v52 = vpop.f32.mrf.mxu0 }
 0x1f3   : > { %14465 = vst [vmem:[#allocation51_spill] sm:$0xff] %v11451_v55  ;;  %14466 = vst [vmem:[#allocation52_spill] sm:$0xff] %v11455_v52  ;;  %v2713_v55 = vadd.f32 %v11248_v25, %v2509_v6  ;;  %v2920_v25 = vadd.f32 %v11267_v39, %v11258_v44  ;;  %v3618_v44 = vadd.f32 %v11381_v11, %v11370_v9 }
 0x1f4   : > { %v9337_v57 = vpop.f32.mrf.mxu0 }
 0x1f5   : > { %v11458_v26 = vadd.f32 %v9337_v57, %v11345_v31  ;;  %v11477_v57 = vpop.f32.mrf.mxu1  ;;  %v3415_v45 = vadd.f32 %v11383_v3, %v2920_v25 }
 0x1f6   : > { %v11462_v28 = vpop.f32.mrf.mxu0 }
 0x1f7   : > { %14467 = vst [vmem:[#allocation53_spill] sm:$0xff] %v11458_v26  ;;  %14468 = vst [vmem:[#allocation54_spill] sm:$0xff] %v11462_v28  ;;  %v2917_v28 = vadd.f32 %v11260_v29, %v2713_v55  ;;  %v3617_v29 = vadd.f32 %v11372_v15, %v11360_v38  ;;  %v2517_v38 = vadd.f32 %v11149_v5, %v11152_v53 }
 0x1f8   : > { %v9340_v63 = vpop.f32.mrf.mxu0  ;;  %v3619_v3 = vadd.f32 %v11397_v61, %v3415_v45  ;;  %v2924_v5 = vadd.f32 %v11282_v50, %v11273_v54 }
 0x1f9   : > { %v11467_v1 = vadd.f32 %v9340_v63, %v11355_v34  ;;  %v3412_v34 = vadd.f32 %v11374_v48, %v2917_v28  ;;  %v2717_v63 = vadd.f32 %v11263_v36, %v2513_v22  ;;  %v2721_v11 = vadd.f32 %v11278_v58, %v2517_v38 }
 0x1fa   : > { %v11471_v19 = vpop.f32.mrf.mxu0  ;;  %v3419_v58 = vadd.f32 %v11399_v30, %v2924_v5 }
 0x1fb   : > { %14469 = vst [vmem:[#allocation55_spill] sm:$0xff] %v11467_v1  ;;  %v11486_v1 = vpop.f32.mrf.mxu1  ;;  %v3616_v51 = vadd.f32 %v11385_v33, %v3412_v34  ;;  %v2921_v36 = vadd.f32 %v11275_v37, %v2717_v63 }
 0x1fc   : > { %v9341_v52 = vpop.f32.mrf.mxu0 }
 0x1fd   : > { %v11475_v31 = vadd.f32 %v9341_v52, %v11362_v49  ;;  %v3615_v49 = vadd.f32 %v11376_v35, %v11365_v7  ;;  %v11499_v48 = vpop.f32.mrf.mxu1  ;;  %v3416_v7 = vadd.f32 %v11392_v20, %v2921_v36 }
 0x1fe   : > { %v11479_v26 = vpop.f32.mrf.mxu0 }
 0x1ff   : > { %v11518_v22 = vpop.f32.mrf.mxu1  ;;  %v3620_v25 = vadd.f32 %v11411_v12, %v3416_v7 }
 0x200   : > { %v9380_v60 = vpop.f32.mrf.mxu0 }
 0x201   : > { %v11503_v39 = vadd.f32 %v9380_v60, %v3617_v29  ;;  %v11533_v50 = vpop.f32.mrf.mxu1 }
 0x202   : > { %v3692_v6 = vpop.f32.mrf.mxu0 }
 0x203   : > { %v11496_v55 = vadd.f32 %v3692_v6, %v3615_v49  ;;  %v3854_v53 = vsel %vm1165_vm10, %v11503_v39, 0.0  ;;  %v3621_v6 = vadd.f32 %v11390_v14, %v11379_v16  ;;  %v2521_v14 = vadd.f32 %v11172_v8, %v11168_v24  ;;  %v11554_v7 = vpop.f32.mrf.mxu1 }
 0x204   : > { %v9381_v52 = vpop.f32.mrf.mxu0  ;;  %v2928_v8 = vadd.f32 %v11297_v4, %v11288_v40  ;;  %v14470_v4 = vld [vmem:[#allocation23_spill] sm:$0xff] }
 0x205   : > { %v3851_v37 = vsel %vm1165_vm10, %v11496_v55, 0.0  ;;  %v11513_v33 = vadd.f32 %v9381_v52, %v3618_v44  ;;  %v2925_v52 = vadd.f32 %v11290_v0, %v2721_v11  ;;  %v3623_v0 = vadd.f32 %v11425_v62, %v3419_v58  ;;  %v14473_v58 = vld [vmem:[#allocation42_spill] sm:$0xff] }
 0x206   : > { %v3695_v28 = vpop.f32.mrf.mxu0  ;;  %v2725_v38 = vadd.f32 %v11293_v59, %v2521_v14  ;;  %v3423_v59 = vadd.f32 %v11413_v56, %v2928_v8  ;;  %v14472_v56 = vld [vmem:[#allocation15_spill] sm:$0xff] }
 0x207   : > { %v11505_v35 = vadd.f32 %v3695_v28, %v3616_v51  ;;  %v3856_v49 = vsel %vm1165_vm10, %v11513_v33, 0.0  ;;  %v3622_v51 = vadd.f32 %v11404_v23, %v11388_v17  ;;  %v3420_v28 = vadd.f32 %v11406_v13, %v2925_v52 }
 0x208   : > { %v9384_v15 = vpop.f32.mrf.mxu0  ;;  %v1492_v17 = vadd.f32 %v11003_v43, %v11008_v46  ;;  %v3625_v43 = vadd.f32 %v11418_v42, %v11395_v41  ;;  %v2929_v40 = vadd.f32 %v14470_v4, %v2725_v38 }
 0x209   : > { %v3852_v9 = vsel %vm1165_vm10, %v11505_v35, 0.0  ;;  %v11537_v45 = vadd.f32 %v9384_v15, %v3621_v6  ;;  %v3624_v46 = vadd.f32 %v11439_v32, %v3420_v28  ;;  %v14477_v28 = vld [vmem:[#allocation22_spill] sm:$0xff] }
 0x20a   : > { %v3853_v60 = vadd.f32 %v3852_v9, %v3851_v37  ;;  %v3708_v34 = vpop.f32.mrf.mxu0 }
 0x20b   : > { %v11524_v20 = vadd.f32 %v3708_v34, %v3619_v3  ;;  %v3862_v62 = vsel %vm1165_vm10, %v11537_v45, 0.0  ;;  %v1742_v3 = vadd.f32 %v11185_v21, %v1492_v17 }
 0x20c   : > { %v3855_v61 = vadd.f32 %v3854_v53, %v3853_v60  ;;  %v9385_v63 = vpop.f32.mrf.mxu0  ;;  %v11570_v60 = vpop.f32.mrf.mxu1  ;;  %v14471_v53 = vld [vmem:[#allocation39_spill] sm:$0xff] }
 0x20d   : > { %v3858_v16 = vsel %vm1165_vm10, %v11524_v20, 0.0  ;;  %v11547_v44 = vadd.f32 %v9385_v63, %v3622_v51  ;;  %v3626_v21 = vadd.f32 %v11432_v10, %v14471_v53  ;;  %v2525_v32 = vadd.f32 %v14472_v56, %v1742_v3  ;;  %v14480_v3 = vld [vmem:[#allocation40_spill] sm:$0xff]  ;;  %v14483_v53 = vld [vmem:[#allocation41_spill] sm:$0xff] }
 0x20e   : > { %v3857_v54 = vadd.f32 %v3856_v49, %v3855_v61  ;;  %v3711_v29 = vpop.f32.mrf.mxu0  ;;  %v3424_v49 = vadd.f32 %v14473_v58, %v2929_v40  ;;  %v14484_v56 = vld [vmem:[#allocation17_spill] sm:$0xff] }
 0x20f   : > { %v11541_v12 = vadd.f32 %v3711_v29, %v3620_v25  ;;  %v3864_v11 = vsel %vm1165_vm10, %v11547_v44, 0.0  ;;  %v3627_v25 = vadd.f32 %v11453_v2, %v3423_v59  ;;  %v14475_v29 = vld [vmem:[#allocation8_spill] sm:$0xff] }
 0x210   : > { %v3859_v30 = vadd.f32 %v3858_v16, %v3857_v54  ;;  %v9388_v36 = vpop.f32.mrf.mxu0  ;;  %v14474_v54 = vld [vmem:[#allocation11_spill] sm:$0xff]  ;;  %v14476_v16 = vld [vmem:[#allocation24_spill] sm:$0xff] }
 0x211   : > { %v3860_v23 = vsel %vm1165_vm10, %v11541_v12, 0.0  ;;  %v11574_v61 = vadd.f32 %v9388_v36, %v3625_v43  ;;  %v1508_v51 = vadd.f32 %v14475_v29, %v14474_v54  ;;  %v2729_v14 = vadd.f32 %v14476_v16, %v2525_v32  ;;  %v14481_v43 = vld [vmem:[#allocation44_spill] sm:$0xff]  ;;  %v14487_v29 = vld [vmem:[#allocation9_spill] sm:$0xff] }
 0x212   : > { %v3861_v15 = vadd.f32 %v3860_v23, %v3859_v30  ;;  %v3724_v24 = vpop.f32.mrf.mxu0  ;;  %v11590_v30 = vpop.f32.mrf.mxu1  ;;  %v14478_v23 = vld [vmem:[#allocation25_spill] sm:$0xff]  ;;  %v14488_v16 = vld [vmem:[#allocation28_spill] sm:$0xff] }
 0x213   : > { %v11560_v13 = vadd.f32 %v3724_v24, %v3623_v0  ;;  %v2932_v17 = vadd.f32 %v14478_v23, %v14477_v28  ;;  %v3870_v2 = vsel %vm1165_vm10, %v11574_v61, 0.0  ;;  %v14489_v23 = vld [vmem:[#allocation26_spill] sm:$0xff] }
 0x214   : > { %v3863_v37 = vadd.f32 %v3862_v62, %v3861_v15  ;;  %v9389_v9 = vpop.f32.mrf.mxu0  ;;  %v14479_v15 = vld [vmem:[#allocation16_spill] sm:$0xff]  ;;  %v11606_v40 = vpop.f32.mrf.mxu1 }
 0x215   : > { %v3866_v42 = vsel %vm1165_vm10, %v11560_v13, 0.0  ;;  %v11583_v52 = vadd.f32 %v9389_v9, %v3626_v21  ;;  %v1746_v24 = vadd.f32 %v14479_v15, %v1508_v51  ;;  %v3628_v9 = vadd.f32 %v11469_v27, %v3424_v49  ;;  %v14485_v49 = vld [vmem:[#allocation46_spill] sm:$0xff] }
 0x216   : > { %v3865_v34 = vadd.f32 %v3864_v11, %v3863_v37  ;;  %v3727_v5 = vpop.f32.mrf.mxu0  ;;  %v3629_v37 = vadd.f32 %v11446_v18, %v14480_v3  ;;  %v14482_v11 = vld [vmem:[#allocation27_spill] sm:$0xff]  ;;  %v3630_v21 = vadd.f32 %v11460_v47, %v14483_v53 }
 0x217   : > { %v11578_v41 = vadd.f32 %v3727_v5, %v3624_v46  ;;  %v3427_v46 = vadd.f32 %v14481_v43, %v2932_v17  ;;  %v3872_v59 = vsel %vm1165_vm10, %v11583_v52, 0.0  ;;  %v2933_v4 = vadd.f32 %v14482_v11, %v2729_v14  ;;  %v14490_v17 = vld [vmem:[#allocation29_spill] sm:$0xff] }
 0x218   : > { %v3867_v63 = vadd.f32 %v3866_v42, %v3865_v34  ;;  %v9392_v6 = vpop.f32.mrf.mxu0  ;;  %v2529_v32 = vadd.f32 %v14484_v56, %v1746_v24  ;;  %v14491_v24 = vld [vmem:[#allocation18_spill] sm:$0xff] }
 0x219   : > { %v3868_v10 = vsel %vm1165_vm10, %v11578_v41, 0.0  ;;  %v11610_v42 = vadd.f32 %v9392_v6, %v3629_v37  ;;  %v3631_v58 = vadd.f32 %v11486_v1, %v3427_v46  ;;  %v14486_v6 = vld [vmem:[#allocation10_spill] sm:$0xff]  ;;  %v14492_v37 = vld [vmem:[#allocation43_spill] sm:$0xff]  ;;  %v14493_v46 = vld [vmem:[#allocation48_spill] sm:$0xff] }
 0x21a   : > { %v3869_v36 = vadd.f32 %v3868_v10, %v3867_v63  ;;  %v3740_v0 = vpop.f32.mrf.mxu0  ;;  %v3428_v10 = vadd.f32 %v14485_v49, %v2933_v4  ;;  %v1524_v51 = vadd.f32 %v14487_v29, %v14486_v6  ;;  %v2733_v14 = vadd.f32 %v14488_v16, %v2529_v32  ;;  %v14494_v4 = vld [vmem:[#allocation31_spill] sm:$0xff]  ;;  %v14497_v6 = vld [vmem:[#allocation50_spill] sm:$0xff]  ;;  %v14499_v16 = vld [vmem:[#allocation12_spill] sm:$0xff] }
 0x21b   : > { %v11596_v38 = vadd.f32 %v3740_v0, %v3627_v25  ;;  %v3878_v1 = vsel %vm1165_vm10, %v11610_v42, 0.0 }
 0x21c   : > { %v3871_v8 = vadd.f32 %v3870_v2, %v3869_v36  ;;  %v9393_v62 = vpop.f32.mrf.mxu0  ;;  %v3584_v36 = vpop.f32.mrf.mxu1  ;;  %v2936_v2 = vadd.f32 %v14490_v17, %v14489_v23  ;;  %v3632_v43 = vadd.f32 %v11518_v22, %v3428_v10  ;;  %v14496_v22 = vld [vmem:[#allocation19_spill] sm:$0xff] }
 0x21d   : > { %v3874_v18 = vsel %vm1165_vm10, %v11596_v38, 0.0  ;;  %v11619_v54 = vadd.f32 %v9393_v62, %v3630_v21 }
 0x21e   : > { %v3873_v34 = vadd.f32 %v3872_v59, %v3871_v8  ;;  %v3743_v5 = vpop.f32.mrf.mxu0  ;;  %v1750_v8 = vadd.f32 %v14491_v24, %v1524_v51  ;;  %v3431_v59 = vadd.f32 %v14493_v46, %v2936_v2  ;;  %v14502_v24 = vld [vmem:[#allocation33_spill] sm:$0xff]  ;;  %v14504_v46 = vld [vmem:[#allocation47_spill] sm:$0xff] }
 0x21f   : > { %v11614_v27 = vadd.f32 %v3743_v5, %v3628_v9  ;;  %v3633_v9 = vadd.f32 %v11477_v57, %v14492_v37  ;;  %v3880_v11 = vsel %vm1165_vm10, %v11619_v54, 0.0  ;;  %v9371_v5 = vpop.f32.mrf.mxu1 }
 0x220   : > { %v3875_v63 = vadd.f32 %v3874_v18, %v3873_v34  ;;  %v9396_v25 = vpop.f32.mrf.mxu0  ;;  %v2937_v34 = vadd.f32 %v14494_v4, %v2733_v14  ;;  %v14495_v18 = vld [vmem:[#allocation45_spill] sm:$0xff]  ;;  %v14505_v4 = vld [vmem:[#allocation52_spill] sm:$0xff] }
 0x221   : > { %v3876_v47 = vsel %vm1165_vm10, %v11614_v27, 0.0  ;;  %v3634_v56 = vadd.f32 %v11499_v48, %v14495_v18  ;;  %v11642_v32 = vadd.f32 %v9396_v25, %v3633_v9  ;;  %v14498_v25 = vld [vmem:[#allocation13_spill] sm:$0xff]  ;;  %v3587_v23 = vpop.f32.mrf.mxu1 }
 0x222   : > { %v3877_v0 = vadd.f32 %v3876_v47, %v3875_v63  ;;  %v3756_v28 = vpop.f32.mrf.mxu0  ;;  %v3635_v47 = vadd.f32 %v11554_v7, %v3431_v59  ;;  %v3432_v29 = vadd.f32 %v14497_v6, %v2937_v34  ;;  %v1540_v14 = vadd.f32 %v14499_v16, %v14498_v25 }
 0x223   : > { %v11630_v15 = vadd.f32 %v3756_v28, %v3631_v58  ;;  %v2533_v58 = vadd.f32 %v14496_v22, %v1750_v8  ;;  %v3886_v7 = vsel %vm1165_vm10, %v11642_v32, 0.0  ;;  %v3637_v59 = vadd.f32 %v11533_v50, %v14504_v46 }
 0x224   : > { %v3879_v62 = vadd.f32 %v3878_v1, %v3877_v0  ;;  %v9397_v3 = vpop.f32.mrf.mxu0  ;;  %v14500_v0 = vld [vmem:[#allocation32_spill] sm:$0xff]  ;;  %v14501_v1 = vld [vmem:[#allocation30_spill] sm:$0xff] }
 0x225   : > { %v3882_v57 = vsel %vm1165_vm10, %v11630_v15, 0.0  ;;  %v11651_v51 = vadd.f32 %v9397_v3, %v3634_v56  ;;  %v2737_v28 = vadd.f32 %v14500_v0, %v2533_v58  ;;  %v2940_v8 = vadd.f32 %v14502_v24, %v14501_v1  ;;  %v14503_v3 = vld [vmem:[#allocation20_spill] sm:$0xff]  ;;  %v9374_v56 = vpop.f32.mrf.mxu1  ;;  %v14507_v58 = vld [vmem:[#allocation49_spill] sm:$0xff] }
 0x226   : > { %v3881_v53 = vadd.f32 %v3880_v11, %v3879_v62  ;;  %v3759_v21 = vpop.f32.mrf.mxu0  ;;  %v1754_v37 = vadd.f32 %v14503_v3, %v1540_v14  ;;  %v3636_v11 = vadd.f32 %v11590_v30, %v3432_v29  ;;  %v14508_v30 = vld [vmem:[#allocation21_spill] sm:$0xff]  ;;  %v14509_v14 = vld [vmem:[#allocation54_spill] sm:$0xff] }
 0x227   : > { %v11646_v63 = vadd.f32 %v3759_v21, %v3632_v43  ;;  %v3435_v34 = vadd.f32 %v14505_v4, %v2940_v8  ;;  %v14506_v21 = vld [vmem:[#allocation35_spill] sm:$0xff]  ;;  %v14511_v8 = vld [vmem:[#allocation34_spill] sm:$0xff] }
 0x228   : > { %v3883_v49 = vadd.f32 %v3882_v57, %v3881_v53  ;;  %v9400_v10 = vpop.f32.mrf.mxu0  ;;  %v3888_v53 = vsel %vm1165_vm10, %v11651_v51, 0.0  ;;  %v2941_v18 = vadd.f32 %v14506_v21, %v2737_v28  ;;  %v2537_v29 = vadd.f32 %v14508_v30, %v1754_v37 }
 0x229   : > { %v3884_v48 = vsel %vm1165_vm10, %v11646_v63, 0.0  ;;  %v3639_v16 = vadd.f32 %v3584_v36, %v3435_v34 }
 0x22a   : > { %v3885_v17 = vadd.f32 %v3884_v48, %v3883_v49  ;;  %v3772_v2 = vpop.f32.mrf.mxu0  ;;  %v3638_v49 = vadd.f32 %v11570_v60, %v14507_v58  ;;  %v3436_v0 = vadd.f32 %v14509_v14, %v2941_v18  ;;  %v14510_v60 = vld [vmem:[#allocation36_spill] sm:$0xff]  ;;  %v14515_v58 = vld [vmem:[#allocation53_spill] sm:$0xff] }
 0x22b   : > { %v11662_v62 = vadd.f32 %v3772_v2, %v3635_v47  ;;  %v11674_v47 = vadd.f32 %v9400_v10, %v3637_v59  ;;  %v2741_v10 = vadd.f32 %v14510_v60, %v2537_v29  ;;  %v3600_v2 = vpop.f32.mrf.mxu1 }
 0x22c   : > { %v3887_v9 = vadd.f32 %v3886_v7, %v3885_v17  ;;  %v9401_v43 = vpop.f32.mrf.mxu0  ;;  %v14512_v7 = vld [vmem:[#allocation37_spill] sm:$0xff] }
 0x22d   : > { %v3890_v50 = vsel %vm1165_vm10, %v11662_v62, 0.0  ;;  %v11682_v28 = vadd.f32 %v9401_v43, %v3638_v49  ;;  %v2944_v3 = vadd.f32 %v14512_v7, %v14511_v8  ;;  %v3894_v37 = vsel %vm1165_vm10, %v11674_v47, 0.0  ;;  %v14513_v43 = vld [vmem:[#allocation51_spill] sm:$0xff]  ;;  %v9375_v18 = vpop.f32.mrf.mxu1 }
 0x22e   : > { %v3889_v57 = vadd.f32 %v3888_v53, %v3887_v9  ;;  %v3775_v22 = vpop.f32.mrf.mxu0  ;;  %v3641_v59 = vadd.f32 %v11606_v40, %v14513_v43  ;;  %v14514_v53 = vld [vmem:[#allocation38_spill] sm:$0xff]  ;;  %v3642_v49 = vadd.f32 %v9371_v5, %v14515_v58 }
 0x22f   : > { %v11678_v6 = vadd.f32 %v3775_v22, %v3636_v11  ;;  %v3640_v11 = vadd.f32 %v3587_v23, %v3436_v0  ;;  %v3439_v4 = vadd.f32 %v11471_v19, %v2944_v3  ;;  %v3896_v34 = vsel %vm1165_vm10, %v11682_v28, 0.0  ;;  %v3603_v0 = vpop.f32.mrf.mxu1 }
 0x230   : > { %v3891_v48 = vadd.f32 %v3890_v50, %v3889_v57  ;;  %v9404_v25 = vpop.f32.mrf.mxu0  ;;  %v2945_v21 = vadd.f32 %v14514_v53, %v2741_v10 }
 0x231   : > { %v3892_v17 = vsel %vm1165_vm10, %v11678_v6, 0.0  ;;  %v3845_v50 = vadd.f32 %v9404_v25, %v3641_v59  ;;  %v3643_v23 = vadd.f32 %v3600_v2, %v3439_v4 }
 0x232   : > { %v3893_v1 = vadd.f32 %v3892_v17, %v3891_v48  ;;  %v3788_v24 = vpop.f32.mrf.mxu0  ;;  %v3440_v19 = vadd.f32 %v11479_v26, %v2945_v21  ;;  %v3646_v26 = vadd.f32 %v9375_v18, %v11475_v31 }
 0x233   : > { %v11691_v9 = vadd.f32 %v3788_v24, %v3639_v16  ;;  %v3902_v10 = vsel %vm1165_vm10, %v3845_v50, 0.0  ;;  %v14516_v24 = vld [vmem:[#allocation55_spill] sm:$0xff] }
 0x234   : > { %v3895_v36 = vadd.f32 %v3894_v37, %v3893_v1  ;;  %v9405_v46 = vpop.f32.mrf.mxu0  ;;  %v3645_v8 = vadd.f32 %v9374_v56, %v14516_v24  ;;  %v3644_v7 = vadd.f32 %v3603_v0, %v3440_v19 }
 0x235   : > { %v3898_v30 = vsel %vm1165_vm10, %v11691_v9, 0.0  ;;  %v3846_v16 = vadd.f32 %v9405_v46, %v3642_v49 }
 0x236   : > { %v3897_v57 = vadd.f32 %v3896_v34, %v3895_v36  ;;  %v3791_v22 = vpop.f32.mrf.mxu0 }
 0x237   : > { %v3844_v29 = vadd.f32 %v3791_v22, %v3640_v11  ;;  %v3904_v3 = vsel %vm1165_vm10, %v3846_v16, 0.0 }
 0x238   : > { %v3899_v48 = vadd.f32 %v3898_v30, %v3897_v57  ;;  %v9408_v40 = vpop.f32.mrf.mxu0 }
 0x239   : > { %v3900_v14 = vsel %vm1165_vm10, %v3844_v29, 0.0  ;;  %v3849_v36 = vadd.f32 %v9408_v40, %v3645_v8 }
 0x23a   : > { %v3901_v17 = vadd.f32 %v3900_v14, %v3899_v48  ;;  %v3804_v60 = vpop.f32.mrf.mxu0 }
 0x23b   : > { %v3847_v1 = vadd.f32 %v3804_v60, %v3643_v23  ;;  %v3910_v53 = vsel %vm1165_vm10, %v3849_v36, 0.0 }
 0x23c   : > { %v3903_v5 = vadd.f32 %v3902_v10, %v3901_v17  ;;  %v9409_v25 = vpop.f32.mrf.mxu0 }
 0x23d   : > { %v3906_v46 = vsel %vm1165_vm10, %v3847_v1, 0.0  ;;  %v3850_v11 = vadd.f32 %v9409_v25, %v3646_v26 }
 0x23e   : > { %v3905_v37 = vadd.f32 %v3904_v3, %v3903_v5  ;;  %v3807_v2 = vpop.f32.mrf.mxu0 }
 0x23f   : > { %v3848_v43 = vadd.f32 %v3807_v2, %v3644_v7  ;;  %v3912_v56 = vsel %vm1165_vm10, %v3850_v11, 0.0 }
 0x240   : > { %v3907_v59 = vadd.f32 %v3906_v46, %v3905_v37 }
 0x241   : > { %v3908_v4 = vsel %vm1165_vm10, %v3848_v43, 0.0 }
 0x242   : > { %v3909_v34 = vadd.f32 %v3908_v4, %v3907_v59 }
 0x244   : > { %v3911_v21 = vadd.f32 %v3910_v53, %v3909_v34 }
 0x246   : > { %v3913_v57 = vadd.f32 %v3912_v56, %v3911_v21 }
 0x248   : > { %v3914_v22 = vrot.slane %v3913_v57, 4 }
 0x24a   : > { %v3915_v58 = vadd.f32 %v3914_v22, %v3913_v57 }
 0x24c   : > { %v3916_v49 = vrot.slane %v3915_v58, 2 }
 0x24e   : > { %v3917_v30 = vadd.f32 %v3916_v49, %v3915_v58 }
 0x250   : > { %v3918_v31 = vrot.slane %v3917_v30, 1 }
 0x252   : > { %v3919_v18 = vadd.f32 %v3918_v31, %v3917_v30 }
 0x254   : > { %v3920_v48 = vmul.f32 0.00390625, %v3919_v18 }
 0x256   : > { %v11713_v40 = vsub.f32 %v11578_v41, %v3920_v48  ;;  %v11716_v23 = vsub.f32 %v11596_v38, %v3920_v48  ;;  %v11719_v19 = vsub.f32 %v11614_v27, %v3920_v48  ;;  %v11722_v14 = vsub.f32 %v11610_v42, %v3920_v48 }
 0x257   : > { %v11725_v0 = vsub.f32 %v11619_v54, %v3920_v48  ;;  %v11728_v17 = vsub.f32 %v11630_v15, %v3920_v48  ;;  %v11731_v60 = vsub.f32 %v11646_v63, %v3920_v48  ;;  %v11734_v41 = vsub.f32 %v11642_v32, %v3920_v48 }
 0x258   : > { %v11737_v38 = vsub.f32 %v11651_v51, %v3920_v48  ;;  %v11740_v27 = vsub.f32 %v11662_v62, %v3920_v48  ;;  %v11743_v42 = vsub.f32 %v11678_v6, %v3920_v48  ;;  %v11746_v54 = vsub.f32 %v11674_v47, %v3920_v48 }
 0x259   : > { %v11749_v15 = vsub.f32 %v11682_v28, %v3920_v48  ;;  %v11752_v63 = vsub.f32 %v11691_v9, %v3920_v48  ;;  %v11754_v32 = vsub.f32 %v3844_v29, %v3920_v48  ;;  %v11756_v10 = vsub.f32 %v3845_v50, %v3920_v48 }
 0x25a   : > { %v11758_v51 = vsub.f32 %v3846_v16, %v3920_v48  ;;  %v11760_v62 = vsub.f32 %v3847_v1, %v3920_v48  ;;  %v11762_v5 = vsub.f32 %v3848_v43, %v3920_v48  ;;  %v11764_v6 = vsub.f32 %v3849_v36, %v3920_v48 }
 0x25b   : > { %v11766_v47 = vsub.f32 %v3850_v11, %v3920_v48  ;;  %v11769_v28 = vsub.f32 %v11496_v55, %v3920_v48  ;;  %v11772_v9 = vsub.f32 %v11505_v35, %v3920_v48  ;;  %v11775_v29 = vsub.f32 %v11503_v39, %v3920_v48 }
 0x25c   : > { %v11778_v50 = vsub.f32 %v11513_v33, %v3920_v48  ;;  %v11785_v25 = vsub.f32 %v11524_v20, %v3920_v48  ;;  %v11790_v35 = vsub.f32 %v11541_v12, %v3920_v48  ;;  %v11797_v7 = vsub.f32 %v11537_v45, %v3920_v48 }
 0x25d   : > { %v3953_v16 = vmul.f32 %v11769_v28, %v11769_v28  ;;  %v3954_v1 = vmul.f32 %v11772_v9, %v11772_v9  ;;  %v3955_v55 = vmul.f32 %v11775_v29, %v11775_v29  ;;  %v11803_v12 = vsub.f32 %v11547_v44, %v3920_v48 }
 0x25e   : > { %v3956_v39 = vmul.f32 %v11778_v50, %v11778_v50  ;;  %v3957_v20 = vmul.f32 %v11785_v25, %v11785_v25  ;;  %v3958_v2 = vmul.f32 %v11790_v35, %v11790_v35  ;;  %v11809_v46 = vsub.f32 %v11560_v13, %v3920_v48 }
 0x25f   : > { %v3985_v33 = vsel %vm1165_vm10, %v3953_v16, 0.0  ;;  %v3986_v24 = vsel %vm1165_vm10, %v3954_v1, 0.0  ;;  %v3988_v3 = vsel %vm1165_vm10, %v3955_v55, 0.0  ;;  %v3959_v45 = vmul.f32 %v11797_v7, %v11797_v7 }
 0x260   : > { %v3987_v8 = vadd.f32 %v3986_v24, %v3985_v33  ;;  %v3990_v26 = vsel %vm1165_vm10, %v3956_v39, 0.0  ;;  %v3992_v43 = vsel %vm1165_vm10, %v3957_v20, 0.0  ;;  %v3960_v11 = vmul.f32 %v11803_v12, %v11803_v12 }
 0x261   : > { %v3994_v44 = vsel %vm1165_vm10, %v3958_v2, 0.0  ;;  %v11818_v34 = vsub.f32 %v11574_v61, %v3920_v48  ;;  %v3961_v53 = vmul.f32 %v11809_v46, %v11809_v46  ;;  %v3996_v13 = vsel %vm1165_vm10, %v3959_v45, 0.0 }
 0x262   : > { %v3989_v37 = vadd.f32 %v3988_v3, %v3987_v8  ;;  %v11824_v56 = vsub.f32 %v11583_v52, %v3920_v48  ;;  %v3962_v57 = vmul.f32 %v11713_v40, %v11713_v40  ;;  %v3998_v22 = vsel %vm1165_vm10, %v3960_v11, 0.0 }
 0x263   : > { %v3963_v49 = vmul.f32 %v11818_v34, %v11818_v34  ;;  %v4000_v61 = vsel %vm1165_vm10, %v3961_v53, 0.0  ;;  %v3965_v52 = vmul.f32 %v11716_v23, %v11716_v23  ;;  %v3966_v55 = vmul.f32 %v11719_v19, %v11719_v19 }
 0x264   : > { %v3991_v36 = vadd.f32 %v3990_v26, %v3989_v37  ;;  %v3964_v31 = vmul.f32 %v11824_v56, %v11824_v56  ;;  %v4002_v18 = vsel %vm1165_vm10, %v3962_v57, 0.0  ;;  %v3967_v24 = vmul.f32 %v11722_v14, %v11722_v14 }
 0x265   : > { %v4004_v48 = vsel %vm1165_vm10, %v3963_v49, 0.0  ;;  %v4008_v8 = vsel %vm1165_vm10, %v3965_v52, 0.0  ;;  %v3968_v3 = vmul.f32 %v11725_v0, %v11725_v0  ;;  %v4010_v37 = vsel %vm1165_vm10, %v3966_v55, 0.0 }
 0x266   : > { %v3993_v59 = vadd.f32 %v3992_v43, %v3991_v36  ;;  %v4006_v39 = vsel %vm1165_vm10, %v3964_v31, 0.0  ;;  %v3969_v26 = vmul.f32 %v11728_v17, %v11728_v17  ;;  %v4012_v36 = vsel %vm1165_vm10, %v3967_v24, 0.0 }
 0x267   : > { %v3970_v43 = vmul.f32 %v11731_v60, %v11731_v60 }
 0x268   : > { %v3995_v4 = vadd.f32 %v3994_v44, %v3993_v59  ;;  %v4014_v59 = vsel %vm1165_vm10, %v3968_v3, 0.0  ;;  %v3971_v44 = vmul.f32 %v11734_v41, %v11734_v41 }
 0x26a   : > { %v3997_v21 = vadd.f32 %v3996_v13, %v3995_v4  ;;  %v4016_v4 = vsel %vm1165_vm10, %v3969_v26, 0.0  ;;  %v3972_v13 = vmul.f32 %v11737_v38, %v11737_v38 }
 0x26c   : > { %v3999_v58 = vadd.f32 %v3998_v22, %v3997_v21  ;;  %v4018_v21 = vsel %vm1165_vm10, %v3970_v43, 0.0  ;;  %v3973_v22 = vmul.f32 %v11740_v27, %v11740_v27 }
 0x26e   : > { %v4001_v30 = vadd.f32 %v4000_v61, %v3999_v58  ;;  %v4020_v58 = vsel %vm1165_vm10, %v3971_v44, 0.0  ;;  %v3974_v61 = vmul.f32 %v11743_v42, %v11743_v42 }
 0x270   : > { %v4003_v16 = vadd.f32 %v4002_v18, %v4001_v30  ;;  %v4022_v30 = vsel %vm1165_vm10, %v3972_v13, 0.0  ;;  %v3975_v18 = vmul.f32 %v11746_v54, %v11746_v54 }
 0x272   : > { %v4005_v1 = vadd.f32 %v4004_v48, %v4003_v16  ;;  %v4024_v16 = vsel %vm1165_vm10, %v3973_v22, 0.0  ;;  %v3976_v48 = vmul.f32 %v11749_v15, %v11749_v15 }
 0x274   : > { %v4007_v33 = vadd.f32 %v4006_v39, %v4005_v1  ;;  %v4026_v1 = vsel %vm1165_vm10, %v3974_v61, 0.0  ;;  %v3977_v39 = vmul.f32 %v11752_v63, %v11752_v63 }
 0x276   : > { %v4009_v20 = vadd.f32 %v4008_v8, %v4007_v33  ;;  %v4028_v33 = vsel %vm1165_vm10, %v3975_v18, 0.0  ;;  %v3978_v8 = vmul.f32 %v11754_v32, %v11754_v32 }
 0x278   : > { %v4011_v2 = vadd.f32 %v4010_v37, %v4009_v20  ;;  %v4030_v20 = vsel %vm1165_vm10, %v3976_v48, 0.0  ;;  %v3979_v37 = vmul.f32 %v11756_v10, %v11756_v10 }
 0x27a   : > { %v4013_v45 = vadd.f32 %v4012_v36, %v4011_v2  ;;  %v4032_v2 = vsel %vm1165_vm10, %v3977_v39, 0.0  ;;  %v3980_v36 = vmul.f32 %v11758_v51, %v11758_v51  ;;  %v8556_v39 = vld [vmem:[%s14336_s2 + $0xc] sm:$0x3] }
 0x27c   : > { %v4015_v11 = vadd.f32 %v4014_v59, %v4013_v45  ;;  %v4034_v45 = vsel %vm1165_vm10, %v3978_v8, 0.0  ;;  %v3981_v59 = vmul.f32 %v11760_v62, %v11760_v62 }
 0x27e   : > { %v4017_v53 = vadd.f32 %v4016_v4, %v4015_v11  ;;  %v4036_v11 = vsel %vm1165_vm10, %v3979_v37, 0.0  ;;  %v3982_v4 = vmul.f32 %v11762_v5, %v11762_v5 }
 0x280   : > { %v4019_v57 = vadd.f32 %v4018_v21, %v4017_v53  ;;  %v4038_v53 = vsel %vm1165_vm10, %v3980_v36, 0.0  ;;  %v3983_v21 = vmul.f32 %v11764_v6, %v11764_v6 }
 0x282   : > { %v4021_v49 = vadd.f32 %v4020_v58, %v4019_v57  ;;  %v4040_v57 = vsel %vm1165_vm10, %v3981_v59, 0.0  ;;  %v3984_v58 = vmul.f32 %v11766_v47, %v11766_v47 }
 0x284   : > { %v4023_v31 = vadd.f32 %v4022_v30, %v4021_v49  ;;  %v4042_v49 = vsel %vm1165_vm10, %v3982_v4, 0.0  ;;  %v4044_v30 = vsel %vm1165_vm10, %v3983_v21, 0.0  ;;  %v4046_v18 = vsel %vm1165_vm10, %v3984_v58, 0.0 }
 0x286   : > { %v4025_v52 = vadd.f32 %v4024_v16, %v4023_v31 }
 0x288   : > { %v4027_v55 = vadd.f32 %v4026_v1, %v4025_v52  ;;  %v8506_v1 = vld [vmem:[%s14336_s2 + $0x6] sm:$0x3] }
 0x289   : > { %9725 = vmatprep.subr.msk.bf16.mxu1 %vm1214_vm0, %v8506_v1 }
 0x28a   : > { %v4029_v24 = vadd.f32 %v4028_v33, %v4027_v55  ;;  %v4987_v55 = vld [vmem:[%s14336_s2] sm:$0x3] }
 0x28b   : > { %9726 = vmatprep.subr.msk.bf16.mxu0 %vm1214_vm0, %v4987_v55  ;;  %v5291_v8 = vsel %vm1214_vm0, %v4987_v55, 0 }
 0x28c   : > { %v4031_v3 = vadd.f32 %v4030_v20, %v4029_v24  ;;  %v5119_v24 = vsel %vm1214_vm0, %v8506_v1, 0  ;;  %9445 = vmatpush3.bf16.msra.mxu0 %v5291_v8 }
 0x28d   : > { %9411 = vmatpush3.bf16.msra.mxu1 %v5119_v24 }
 0x28e   : > { %v4033_v26 = vadd.f32 %v4032_v2, %v4031_v3  ;;  %9727 = vmatprep.subr.msk.bf16.mxu1 %vm1214_vm0, %v8556_v39 }
 0x290   : > { %v4035_v43 = vadd.f32 %v4034_v45, %v4033_v26 }
 0x292   : > { %v4037_v44 = vadd.f32 %v4036_v11, %v4035_v43 }
 0x294   : > { %v4039_v13 = vadd.f32 %v4038_v53, %v4037_v44 }
 0x296   : > { %v4041_v22 = vadd.f32 %v4040_v57, %v4039_v13 }
 0x298   : > { %v4043_v61 = vadd.f32 %v4042_v49, %v4041_v22 }
 0x29a   : > { %v4045_v31 = vadd.f32 %v4044_v30, %v4043_v61 }
 0x29c   : > { %v4047_v16 = vadd.f32 %v4046_v18, %v4045_v31  ;;  %v4660_v31 = vld [vmem:[#allocation2 + $0xd4] sm:$0x1] }
 0x29e   : > { %v4048_v52 = vrot.slane %v4047_v16, 4 }
 0x2a0   : > { %v4049_v48 = vadd.f32 %v4048_v52, %v4047_v16 }
 0x2a2   : > { %v4050_v33 = vrot.slane %v4049_v48, 2 }
 0x2a4   : > { %v4051_v20 = vadd.f32 %v4050_v33, %v4049_v48 }
 0x2a6   : > { %v4052_v3 = vrot.slane %v4051_v20, 1 }
 0x2a8   : > { %v4053_v37 = vadd.f32 %v4052_v3, %v4051_v20 }
 0x2aa   : > { %v4054_v2 = vmul.f32 0.00390625, %v4053_v37 }
 0x2ac   : > { %v4055_v26 = vadd.f32 1e-05, %v4054_v2 }
 0x2ae   : > { %9778 = vrsqrt.f32 %v4055_v26 }
 0x2bb   : > { %v9779_v36 = vpop.eup %9778 }
 0x2bc   : > { %v4085_v45 = vmul.f32 %v9779_v36, %v11760_v62  ;;  %v4086_v43 = vmul.f32 %v9779_v36, %v11762_v5  ;;  %v11914_v59 = vmul.f32 %v9779_v36, %v11769_v28  ;;  %v11917_v11 = vmul.f32 %v9779_v36, %v11772_v9 }
 0x2bd   : > { %v11920_v44 = vmul.f32 %v9779_v36, %v11775_v29  ;;  %v11923_v4 = vmul.f32 %v9779_v36, %v11778_v50  ;;  %v11926_v53 = vmul.f32 %v9779_v36, %v11785_v25  ;;  %v11929_v13 = vmul.f32 %v9779_v36, %v11790_v35 }
 0x2be   : > { %v4117_v62 = vmax.f32 %v4085_v45, 0.0  ;;  %v4118_v5 = vmax.f32 %v4086_v43, 0.0  ;;  %v11932_v28 = vmul.f32 %v9779_v36, %v11797_v7  ;;  %v11935_v9 = vmul.f32 %v9779_v36, %v11803_v12 }
 0x2bf   : > { %v11938_v29 = vmul.f32 %v9779_v36, %v11809_v46  ;;  %v11941_v50 = vmul.f32 %v9779_v36, %v11713_v40  ;;  %v11944_v25 = vmul.f32 %v9779_v36, %v11818_v34  ;;  %v11947_v35 = vmul.f32 %v9779_v36, %v11824_v56 }
 0x2c0   : > { %v11949_v21 = vpack.c.bf16 %v4117_v62, %v4117_v62  ;;  %v8795_v57 = vpack.c.bf16 %v4118_v5, %v4118_v5  ;;  %v11952_v7 = vmul.f32 %v9779_v36, %v11716_v23  ;;  %v11955_v12 = vmul.f32 %v9779_v36, %v11719_v19 }
 0x2c1   : > { %v11958_v46 = vmul.f32 %v9779_v36, %v11722_v14  ;;  %v11961_v40 = vmul.f32 %v9779_v36, %v11725_v0  ;;  %v11964_v34 = vmul.f32 %v9779_v36, %v11728_v17  ;;  %v11967_v56 = vmul.f32 %v9779_v36, %v11731_v60 }
 0x2c2   : > { %v4456_v22 = vshrl.u32 %v11949_v21, 16  ;;  %v4464_v58 = vshrl.u32 %v8795_v57, 16  ;;  %v4467_v23 = vshll.u32 %v8795_v57, 16  ;;  %v11971_v49 = vmul.f32 %v9779_v36, %v11734_v41 }
 0x2c3   : > { %v11974_v19 = vmul.f32 %v9779_v36, %v11737_v38  ;;  %v11977_v14 = vmul.f32 %v9779_v36, %v11740_v27  ;;  %v11980_v0 = vmul.f32 %v9779_v36, %v11743_v42  ;;  %v11983_v17 = vmul.f32 %v9779_v36, %v11746_v54  ;;  %v4639_v38 = vld [vmem:[#allocation2 + $0xbc] sm:$0x1] }
 0x2c4   : > { %v11985_v60 = vrot.slane %v4456_v22, 7  ;;  %v4466_v61 = vrot.slane %v4464_v58, 7  ;;  %v11988_v30 = vmul.f32 %v9779_v36, %v11749_v15  ;;  %v11991_v41 = vmul.f32 %v9779_v36, %v11752_v63 }
 0x2c5   : > { %v11994_v27 = vmul.f32 %v9779_v36, %v11754_v32  ;;  %v11997_v42 = vmul.f32 %v9779_v36, %v11756_v10  ;;  %v12000_v54 = vmul.f32 %v9779_v36, %v11758_v51  ;;  %v12003_v18 = vmul.f32 %v9779_v36, %v11764_v6  ;;  %v12340_v51 = vld [vmem:[#allocation2] sm:$0xf] }
 0x2c6   : > { %v4462_v15 = vrot.slane %v11985_v60, 4  ;;  %v4469_v16 = vor.u32 %v4467_v23, %v4466_v61  ;;  %v4471_v52 = vrot.slane %v4466_v61, 4  ;;  %v12007_v63 = vmul.f32 %v9779_v36, %v11766_v47 }
 0x2c7   : > { %v4459_v48 = vshll.u32 %v11949_v21, 16  ;;  %v4089_v32 = vmax.f32 %v11914_v59, 0.0  ;;  %v4090_v10 = vmax.f32 %v11917_v11, 0.0  ;;  %v4091_v1 = vmax.f32 %v11920_v44, 0.0  ;;  %v4572_v21 = vld [vmem:[#allocation2 + $0x48] sm:$0xf] }
 0x2c8   : > { %v4470_v55 = vsel %vm9871_vm6, %v4462_v15, %v4469_v16  ;;  %v4640_v39 = vsel %vm9885_vm8, %v4471_v52, %v4639_v38  ;;  %v4661_v33 = vsel %vm9885_vm8, %v4471_v52, %v4660_v31  ;;  %v4092_v47 = vmax.f32 %v11923_v4, 0.0 }
 0x2c9   : > { %4638 = vst.msk [vmem:[#allocation2 + $0xb8] sm:$0xf] %vm624_vm3, %v4470_v55  ;;  %4641 = vst [vmem:[#allocation2 + $0xbc] sm:$0x1] %v4640_v39  ;;  %v4093_v24 = vmax.f32 %v11926_v53, 0.0  ;;  %v4094_v8 = vmax.f32 %v11929_v13, 0.0 }
 0x2ca   : > { %4659 = vst.msk [vmem:[#allocation2 + $0xd0] sm:$0xf] %vm624_vm3, %v4470_v55  ;;  %4662 = vst [vmem:[#allocation2 + $0xd4] sm:$0x1] %v4661_v33  ;;  %v4095_v20 = vmax.f32 %v11932_v28, 0.0  ;;  %v4096_v3 = vmax.f32 %v11935_v9, 0.0  ;;  %v8769_v22 = vpack.c.bf16 %v4092_v47, %v4092_v47 }
 0x2cb   : > { %v4097_v37 = vmax.f32 %v11938_v29, 0.0  ;;  %v4098_v2 = vmax.f32 %v11941_v50, 0.0  ;;  %v4099_v26 = vmax.f32 %v11944_v25, 0.0  ;;  %v4100_v36 = vmax.f32 %v11947_v35, 0.0 }
 0x2cc   : > { %v4101_v45 = vmax.f32 %v11952_v7, 0.0  ;;  %v4102_v43 = vmax.f32 %v11955_v12, 0.0  ;;  %v4103_v59 = vmax.f32 %v11958_v46, 0.0  ;;  %v4104_v11 = vmax.f32 %v11961_v40, 0.0 }
 0x2cd   : > { %v4105_v44 = vmax.f32 %v11964_v34, 0.0  ;;  %v4106_v4 = vmax.f32 %v11967_v56, 0.0  ;;  %v4107_v53 = vmax.f32 %v11971_v49, 0.0  ;;  %v4108_v13 = vmax.f32 %v11974_v19, 0.0 }
 0x2ce   : > { %v4109_v62 = vmax.f32 %v11977_v14, 0.0  ;;  %v4110_v5 = vmax.f32 %v11980_v0, 0.0  ;;  %v4111_v28 = vmax.f32 %v11983_v17, 0.0  ;;  %v4112_v9 = vmax.f32 %v11988_v30, 0.0 }
 0x2cf   : > { %v4113_v29 = vmax.f32 %v11991_v41, 0.0  ;;  %v4114_v50 = vmax.f32 %v11994_v27, 0.0  ;;  %v4115_v25 = vmax.f32 %v11997_v42, 0.0  ;;  %v4116_v35 = vmax.f32 %v12000_v54, 0.0 }
 0x2d0   : > { %v4119_v57 = vmax.f32 %v12003_v18, 0.0  ;;  %v4120_v7 = vmax.f32 %v12007_v63, 0.0  ;;  %v8766_v12 = vpack.c.bf16 %v4089_v32, %v4089_v32  ;;  %v8767_v46 = vpack.c.bf16 %v4090_v10, %v4090_v10  ;;  %v4822_v40 = vld [vmem:[#allocation2 + $0xb8] sm:$0x8]  ;;  %v4942_v17 = vld [vmem:[#allocation2 + $0xbc] sm:$0x1] }
 0x2d1   : > { %v4824_v34 = vld [vmem:[#allocation2 + $0xd0] sm:$0x8]  ;;  %v8768_v56 = vpack.c.bf16 %v4091_v1, %v4091_v1  ;;  %v12048_v58 = vpack.c.bf16 %v4093_v24, %v4093_v24  ;;  %v12050_v23 = vpack.c.bf16 %v4094_v8, %v4094_v8  ;;  %v8503_v49 = vrot.slane %v4822_v40, 11  ;;  %v4948_v61 = vld [vmem:[#allocation2 + $0xd4] sm:$0x1] }
 0x2d2   : > { %v8505_v19 = vrot.slane %v4824_v34, 11  ;;  %v12052_v14 = vpack.c.bf16 %v4095_v20, %v4095_v20  ;;  %v12054_v0 = vpack.c.bf16 %v4096_v3, %v4096_v3  ;;  %v12056_v30 = vpack.c.bf16 %v4097_v37, %v4097_v37 }
 0x2d3   : > { %v12058_v41 = vpack.c.bf16 %v4098_v2, %v4098_v2  ;;  %v12060_v38 = vpack.c.bf16 %v4099_v26, %v4099_v26  ;;  %v12062_v31 = vpack.c.bf16 %v4100_v36, %v4100_v36  ;;  %v4943_v42 = vsel %vm9936_vm9, %v8503_v49, %v4942_v17 }
 0x2d4   : > { %v4949_v54 = vsel %vm9936_vm9, %v8505_v19, %v4948_v61  ;;  %v12068_v18 = vpack.c.bf16 %v4101_v45, %v4101_v45  ;;  %v12070_v15 = vpack.c.bf16 %v4102_v43, %v4102_v43  ;;  %4944 = vst [vmem:[#allocation2 + $0xbc] sm:$0x1] %v4943_v42  ;;  %v12072_v16 = vpack.c.bf16 %v4103_v59, %v4103_v59 }
 0x2d5   : > { %4950 = vst [vmem:[#allocation2 + $0xd4] sm:$0x1] %v4949_v54  ;;  %v12074_v52 = vpack.c.bf16 %v4104_v11, %v4104_v11  ;;  %v12076_v63 = vpack.c.bf16 %v4105_v44, %v4105_v44  ;;  %v12078_v32 = vpack.c.bf16 %v4106_v4, %v4106_v4  ;;  %v12080_v10 = vpack.c.bf16 %v4107_v53, %v4107_v53 }
 0x2d6   : > { %v12082_v1 = vpack.c.bf16 %v4108_v13, %v4108_v13  ;;  %v12084_v55 = vpack.c.bf16 %v4109_v62, %v4109_v62  ;;  %v12086_v39 = vpack.c.bf16 %v4110_v5, %v4110_v5  ;;  %v12088_v33 = vpack.c.bf16 %v4111_v28, %v4111_v28 }
 0x2d7   : > { %v12090_v47 = vpack.c.bf16 %v4112_v9, %v4112_v9  ;;  %v12092_v24 = vpack.c.bf16 %v4113_v29, %v4113_v29  ;;  %v12094_v8 = vpack.c.bf16 %v4114_v50, %v4114_v50  ;;  %v12096_v20 = vpack.c.bf16 %v4115_v25, %v4115_v25 }
 0x2d8   : > { %v12098_v3 = vpack.c.bf16 %v4116_v35, %v4116_v35  ;;  %v12100_v37 = vpack.c.bf16 %v4119_v57, %v4119_v57  ;;  %v12102_v2 = vpack.c.bf16 %v4120_v7, %v4120_v7  ;;  %v4218_v26 = vshrl.u32 %v8766_v12, 16  ;;  %v4590_v7 = vld [vmem:[#allocation2 + $0x68] sm:$0x1] }
 0x2d9   : > { %v4221_v36 = vshll.u32 %v8766_v12, 16  ;;  %v4226_v45 = vshrl.u32 %v8767_v46, 16  ;;  %v4229_v43 = vshll.u32 %v8767_v46, 16  ;;  %v4235_v59 = vshrl.u32 %v8768_v56, 16  ;;  %v12119_v12 = vld [vmem:[%s14336_s2 + $0x2] sm:$0x3] }
 0x2da   : > { %v4238_v11 = vshll.u32 %v8768_v56, 16  ;;  %v4243_v44 = vshrl.u32 %v8769_v22, 16  ;;  %v4246_v4 = vshll.u32 %v8769_v22, 16  ;;  %v4220_v53 = vrot.slane %v4218_v26, 7  ;;  %14520 = vst [vmem:[#allocation23_spill] sm:$0xff] %v12119_v12  ;;  %9728 = vmatprep.subr.msk.bf16.mxu0 %vm1214_vm0, %v12119_v12 }
 0x2db   : > { %v12104_v13 = vrot.slane %v4226_v45, 7  ;;  %v4252_v62 = vshrl.u32 %v12048_v58, 16  ;;  %v4255_v5 = vshll.u32 %v12048_v58, 16  ;;  %v4237_v28 = vrot.slane %v4235_v59, 7  ;;  %v4586_v56 = vld [vmem:[#allocation2 + $0x60] sm:$0xf] }
 0x2dc   : > { %v12108_v9 = vrot.slane %v4243_v44, 7  ;;  %v4260_v29 = vshrl.u32 %v12050_v23, 16  ;;  %v4263_v50 = vshll.u32 %v12050_v23, 16  ;;  %v12112_v25 = vor.u32 %v4221_v36, %v4220_v53 }
 0x2dd   : > { %v4224_v35 = vrot.slane %v4220_v53, 4  ;;  %v4231_v57 = vor.u32 %v4229_v43, %v12104_v13  ;;  %v12121_v46 = vor.u32 %v4238_v11, %v4237_v28  ;;  %v4241_v40 = vrot.slane %v4237_v28, 4 }
 0x2de   : > { %v4248_v34 = vor.u32 %v4246_v4, %v12108_v9  ;;  %v4254_v58 = vrot.slane %v4252_v62, 7  ;;  %v12129_v23 = vrot.slane %v4260_v29, 7  ;;  %v4269_v49 = vshrl.u32 %v12052_v14, 16 }
 0x2df   : > { %v4232_v22 = vsel %vm9871_vm6, %v4224_v35, %v4231_v57  ;;  %v4272_v17 = vshll.u32 %v12052_v14, 16  ;;  %v4277_v61 = vshrl.u32 %v12054_v0, 16  ;;  %v4280_v42 = vshll.u32 %v12054_v0, 16 }
 0x2e0   : > { %v4249_v19 = vsel %vm9871_vm6, %v4241_v40, %v4248_v34  ;;  %4540 = vst.msk [vmem:[#allocation2 + $0x10] sm:$0xf] %vm624_vm3, %v4232_v22  ;;  %v12138_v54 = vor.u32 %v4255_v5, %v4254_v58  ;;  %v4258_v26 = vrot.slane %v4254_v58, 4  ;;  %v4265_v36 = vor.u32 %v4263_v50, %v12129_v23 }
 0x2e1   : > { %4547 = vst.msk [vmem:[#allocation2 + $0x1c] sm:$0xf] %vm624_vm3, %v4249_v19  ;;  %4652 = vst.msk [vmem:[#allocation2 + $0x4] sm:$0xf] %vm624_vm3, %v4249_v19  ;;  %v4271_v43 = vrot.slane %v4269_v49, 7  ;;  %v12144_v59 = vrot.slane %v4277_v61, 7 }
 0x2e2   : > { %v4286_v14 = vshrl.u32 %v12056_v30, 16  ;;  %v4289_v0 = vshll.u32 %v12056_v30, 16  ;;  %v4266_v11 = vsel %vm9871_vm6, %v4258_v26, %v4265_v36  ;;  %v4294_v44 = vshrl.u32 %v12058_v41, 16  ;;  %v14537_v27 = vld [vmem:[#allocation23_spill] sm:$0xff] }
 0x2e3   : > { %v4297_v4 = vshll.u32 %v12058_v41, 16  ;;  %v4303_v53 = vshrl.u32 %v12060_v38, 16  ;;  %v12153_v62 = vor.u32 %v4272_v17, %v4271_v43  ;;  %v4275_v5 = vrot.slane %v4271_v43, 4  ;;  %4554 = vst.msk [vmem:[#allocation2 + $0x28] sm:$0xf] %vm624_vm3, %v4266_v11 }
 0x2e4   : > { %v4282_v28 = vor.u32 %v4280_v42, %v12144_v59  ;;  %v4288_v50 = vrot.slane %v4286_v14, 7  ;;  %v12158_v30 = vrot.slane %v4294_v44, 7  ;;  %v4306_v57 = vshll.u32 %v12060_v38, 16  ;;  %v4604_v17 = vld [vmem:[#allocation2 + $0x80] sm:$0x1] }
 0x2e5   : > { %v4305_v35 = vrot.slane %v4303_v53, 7  ;;  %v4311_v40 = vshrl.u32 %v12062_v31, 16  ;;  %v4314_v34 = vshll.u32 %v12062_v31, 16  ;;  %v4320_v22 = vshrl.u32 %v12068_v18, 16 }
 0x2e6   : > { %v4283_v41 = vsel %vm9871_vm6, %v4275_v5, %v4282_v28  ;;  %v12166_v58 = vor.u32 %v4289_v0, %v4288_v50  ;;  %v4292_v49 = vrot.slane %v4288_v50, 4  ;;  %v4299_v19 = vor.u32 %v4297_v4, %v12158_v30 }
 0x2e7   : > { %4561 = vst.msk [vmem:[#allocation2 + $0x34] sm:$0xf] %vm624_vm3, %v4283_v41  ;;  %v12171_v61 = vor.u32 %v4306_v57, %v4305_v35  ;;  %v4309_v38 = vrot.slane %v4305_v35, 4  ;;  %v12173_v42 = vrot.slane %v4311_v40, 7  ;;  %v4322_v26 = vrot.slane %v4320_v22, 7 }
 0x2e8   : > { %v4300_v31 = vsel %vm9871_vm6, %v4292_v49, %v4299_v19  ;;  %v4323_v36 = vshll.u32 %v12068_v18, 16  ;;  %v4328_v43 = vshrl.u32 %v12070_v15, 16  ;;  %v4331_v14 = vshll.u32 %v12070_v15, 16  ;;  %v4555_v40 = vld [vmem:[#allocation2 + $0x2c] sm:$0x1] }
 0x2e9   : > { %v4316_v0 = vor.u32 %v4314_v34, %v12173_v42  ;;  %v4326_v44 = vrot.slane %v4322_v26, 4  ;;  %v4337_v4 = vshrl.u32 %v12072_v16, 16  ;;  %4568 = vst.msk [vmem:[#allocation2 + $0x40] sm:$0xf] %vm624_vm3, %v4300_v31  ;;  %v4340_v28 = vshll.u32 %v12072_v16, 16 }
 0x2ea   : > { %v12184_v53 = vor.u32 %v4323_v36, %v4322_v26  ;;  %v12186_v5 = vrot.slane %v4328_v43, 7  ;;  %v4345_v18 = vshrl.u32 %v12074_v52, 16  ;;  %v4348_v35 = vshll.u32 %v12074_v52, 16  ;;  %v4551_v31 = vld [vmem:[#allocation2 + $0x24] sm:$0xf] }
 0x2eb   : > { %v4317_v15 = vsel %vm9871_vm6, %v4309_v38, %v4316_v0  ;;  %v4339_v50 = vrot.slane %v4337_v4, 7  ;;  %v4354_v57 = vshrl.u32 %v12076_v63, 16  ;;  %v4357_v22 = vshll.u32 %v12076_v63, 16 }
 0x2ec   : > { %v4333_v41 = vor.u32 %v4331_v14, %v12186_v5  ;;  %v12196_v34 = vrot.slane %v4345_v18, 7  ;;  %4575 = vst.msk [vmem:[#allocation2 + $0x4c] sm:$0xf] %vm624_vm3, %v4317_v15  ;;  %v4362_v38 = vshrl.u32 %v12078_v32, 16  ;;  %v4365_v36 = vshll.u32 %v12078_v32, 16 }
 0x2ed   : > { %v12200_v16 = vor.u32 %v4340_v28, %v4339_v50  ;;  %v4343_v49 = vrot.slane %v4339_v50, 4  ;;  %v4356_v19 = vrot.slane %v4354_v57, 7  ;;  %v4371_v0 = vshrl.u32 %v12080_v10, 16  ;;  %v4558_v15 = vld [vmem:[#allocation2 + $0x30] sm:$0xf] }
 0x2ee   : > { %v4334_v52 = vsel %vm9871_vm6, %v4326_v44, %v4333_v41  ;;  %v4350_v26 = vor.u32 %v4348_v35, %v12196_v34  ;;  %v12210_v14 = vrot.slane %v4362_v38, 7  ;;  %v4374_v44 = vshll.u32 %v12080_v10, 16 }
 0x2ef   : > { %v12208_v43 = vor.u32 %v4357_v22, %v4356_v19  ;;  %v4360_v63 = vrot.slane %v4356_v19, 4  ;;  %4582 = vst.msk [vmem:[#allocation2 + $0x58] sm:$0xf] %vm624_vm3, %v4334_v52  ;;  %v4379_v28 = vshrl.u32 %v12082_v1, 16  ;;  %v4382_v18 = vshll.u32 %v12082_v1, 16 }
 0x2f0   : > { %v4351_v4 = vsel %vm9871_vm6, %v4343_v49, %v4350_v26  ;;  %v4367_v32 = vor.u32 %v4365_v36, %v12210_v14  ;;  %v4373_v50 = vrot.slane %v4371_v0, 7  ;;  %v4388_v35 = vshrl.u32 %v12084_v55, 16 }
 0x2f1   : > { %4589 = vst.msk [vmem:[#allocation2 + $0x64] sm:$0xf] %vm624_vm3, %v4351_v4  ;;  %v12223_v57 = vrot.slane %v4379_v28, 7  ;;  %v4391_v41 = vshll.u32 %v12084_v55, 16  ;;  %v4396_v22 = vshrl.u32 %v12086_v39, 16  ;;  %v4399_v10 = vshll.u32 %v12086_v39, 16 }
 0x2f2   : > { %v4368_v1 = vsel %vm9871_vm6, %v4360_v63, %v4367_v32  ;;  %v12230_v49 = vor.u32 %v4374_v44, %v4373_v50  ;;  %v4377_v19 = vrot.slane %v4373_v50, 4  ;;  %v4390_v38 = vrot.slane %v4388_v35, 7 }
 0x2f3   : > { %v4384_v52 = vor.u32 %v4382_v18, %v12223_v57  ;;  %v12234_v36 = vrot.slane %v4396_v22, 7  ;;  %v4405_v0 = vshrl.u32 %v12088_v33, 16  ;;  %4596 = vst.msk [vmem:[#allocation2 + $0x70] sm:$0xf] %vm624_vm3, %v4368_v1  ;;  %v4408_v4 = vshll.u32 %v12088_v33, 16 }
 0x2f4   : > { %v12238_v55 = vor.u32 %v4391_v41, %v4390_v38  ;;  %v4394_v39 = vrot.slane %v4390_v38, 4  ;;  %v4413_v63 = vshrl.u32 %v12090_v47, 16  ;;  %v4416_v35 = vshll.u32 %v12090_v47, 16 }
 0x2f5   : > { %v4385_v44 = vsel %vm9871_vm6, %v4377_v19, %v4384_v52  ;;  %v4401_v28 = vor.u32 %v4399_v10, %v12234_v36  ;;  %v4407_v32 = vrot.slane %v4405_v0, 7  ;;  %v4422_v41 = vshrl.u32 %v12092_v24, 16  ;;  %v4541_v52 = vld [vmem:[#allocation2 + $0x14] sm:$0x1] }
 0x2f6   : > { %v12246_v50 = vrot.slane %v4413_v63, 7  ;;  %v4425_v22 = vshll.u32 %v12092_v24, 16  ;;  %4603 = vst.msk [vmem:[#allocation2 + $0x7c] sm:$0xf] %vm624_vm3, %v4385_v44  ;;  %v4430_v10 = vshrl.u32 %v12094_v8, 16  ;;  %v4433_v47 = vshll.u32 %v12094_v8, 16 }
 0x2f7   : > { %v4402_v33 = vsel %vm9871_vm6, %v4394_v39, %v4401_v28  ;;  %v12254_v1 = vor.u32 %v4408_v4, %v4407_v32  ;;  %v4411_v19 = vrot.slane %v4407_v32, 4  ;;  %v4424_v0 = vrot.slane %v4422_v41, 7  ;;  %v4544_v44 = vld [vmem:[#allocation2 + $0x18] sm:$0xf]  ;;  %v4537_v28 = vld [vmem:[#allocation2 + $0xc] sm:$0xf] }
 0x2f8   : > { %v4418_v38 = vor.u32 %v4416_v35, %v12246_v50  ;;  %4610 = vst.msk [vmem:[#allocation2 + $0x88] sm:$0xf] %vm624_vm3, %v4402_v33  ;;  %v12261_v24 = vrot.slane %v4430_v10, 7  ;;  %v4439_v63 = vshrl.u32 %v12096_v20, 16  ;;  %v4442_v39 = vshll.u32 %v12096_v20, 16 }
 0x2f9   : > { %v4447_v4 = vshrl.u32 %v12098_v3, 16  ;;  %v12268_v35 = vor.u32 %v4425_v22, %v4424_v0  ;;  %v4428_v41 = vrot.slane %v4424_v0, 4  ;;  %v4450_v8 = vshll.u32 %v12098_v3, 16  ;;  %v4548_v20 = vld [vmem:[#allocation2 + $0x20] sm:$0x1] }
 0x2fa   : > { %v4419_v32 = vsel %vm9871_vm6, %v4411_v19, %v4418_v38  ;;  %v4435_v33 = vor.u32 %v4433_v47, %v12261_v24  ;;  %v4441_v18 = vrot.slane %v4439_v63, 7  ;;  %v12279_v22 = vor.u32 %v4459_v48, %v11985_v60  ;;  %v4562_v0 = vld [vmem:[#allocation2 + $0x38] sm:$0x1]  ;;  %v4565_v47 = vld [vmem:[#allocation2 + $0x3c] sm:$0xf] }
 0x2fb   : > { %v12273_v26 = vrot.slane %v4447_v4, 7  ;;  %4617 = vst.msk [vmem:[#allocation2 + $0x94] sm:$0xf] %vm624_vm3, %v4419_v32  ;;  %v4473_v3 = vshrl.u32 %v12100_v37, 16  ;;  %v4476_v19 = vshll.u32 %v12100_v37, 16  ;;  %v4481_v38 = vshrl.u32 %v12102_v2, 16 }
 0x2fc   : > { %v4569_v63 = vld [vmem:[#allocation2 + $0x44] sm:$0x1]  ;;  %v4436_v4 = vsel %vm9871_vm6, %v4428_v41, %v4435_v33  ;;  %v12286_v32 = vor.u32 %v4442_v39, %v4441_v18  ;;  %v4445_v10 = vrot.slane %v4441_v18, 4  ;;  %v4576_v60 = vld [vmem:[#allocation2 + $0x50] sm:$0x1]  ;;  %v4484_v45 = vshll.u32 %v12102_v2, 16 }
 0x2fd   : > { %v4452_v11 = vor.u32 %v4450_v8, %v12273_v26  ;;  %v4579_v48 = vld [vmem:[#allocation2 + $0x54] sm:$0xf]  ;;  %v4475_v29 = vrot.slane %v4473_v3, 7  ;;  %v12290_v37 = vrot.slane %v4481_v38, 7  ;;  %4624 = vst.msk [vmem:[#allocation2 + $0xa0] sm:$0xf] %vm624_vm3, %v4436_v4  ;;  %v4538_v8 = vsel %vm9877_vm7, %v12112_v25, %v4537_v28 }
 0x2fe   : > { %v4583_v41 = vld [vmem:[#allocation2 + $0x5c] sm:$0x1]  ;;  %v14522_v33 = vrot.slane %v12104_v13, 4  ;;  %v4545_v2 = vsel %vm9877_vm7, %v12121_v46, %v4544_v44  ;;  %v12306_v38 = vld [vmem:[#allocation2 + $0x78] sm:$0xf]  ;;  %v14523_v44 = vrot.slane %v12108_v9, 4 }
 0x2ff   : > { %v4453_v18 = vsel %vm9871_vm6, %v4445_v10, %v4452_v11  ;;  %v4593_v4 = vld [vmem:[#allocation2 + $0x6c] sm:$0xf]  ;;  %v12308_v12 = vor.u32 %v4476_v19, %v4475_v29  ;;  %v4479_v11 = vrot.slane %v4475_v29, 4  ;;  %v4486_v10 = vor.u32 %v4484_v45, %v12290_v37  ;;  %4539 = vst [vmem:[#allocation2 + $0xc] sm:$0xf] %v4538_v8 }
 0x300   : > { %v4542_v3 = vsel %vm9885_vm8, %v14522_v33, %v4541_v52  ;;  %v4488_v25 = vrot.slane %v12290_v37, 4  ;;  %4546 = vst [vmem:[#allocation2 + $0x18] sm:$0xf] %v4545_v2  ;;  %4631 = vst.msk [vmem:[#allocation2 + $0xac] sm:$0xf] %vm624_vm3, %v4453_v18  ;;  %v4549_v33 = vsel %vm9885_vm8, %v14523_v44, %v4548_v20  ;;  %v4552_v29 = vsel %vm9877_vm7, %v12138_v54, %v4551_v31 }
 0x301   : > { %4543 = vst [vmem:[#allocation2 + $0x14] sm:$0x1] %v4542_v3  ;;  %v4597_v13 = vld [vmem:[#allocation2 + $0x74] sm:$0x1]  ;;  %v4614_v52 = vld [vmem:[#allocation2 + $0x90] sm:$0xf]  ;;  %v4559_v18 = vsel %vm9877_vm7, %v12153_v62, %v4558_v15  ;;  %v4487_v2 = vsel %vm9871_vm6, %v4479_v11, %v4486_v10 }
 0x302   : > { %v4607_v28 = vld [vmem:[#allocation2 + $0x84] sm:$0xf]  ;;  %v14524_v45 = vrot.slane %v12129_v23, 4  ;;  %v4618_v8 = vld [vmem:[#allocation2 + $0x98] sm:$0x1]  ;;  %v14525_v54 = vrot.slane %v12144_v59, 4  ;;  %v4573_v59 = vsel %vm9877_vm7, %v12171_v61, %v4572_v21  ;;  %v4587_v61 = vsel %vm9877_vm7, %v12200_v16, %v4586_v56 }
 0x303   : > { %v4611_v3 = vld [vmem:[#allocation2 + $0x8c] sm:$0x1]  ;;  %4550 = vst [vmem:[#allocation2 + $0x20] sm:$0x1] %v4549_v33  ;;  %4553 = vst [vmem:[#allocation2 + $0x24] sm:$0xf] %v4552_v29  ;;  %v4608_v16 = vsel %vm9877_vm7, %v12238_v55, %v4607_v28 }
 0x304   : > { %v4556_v19 = vsel %vm9885_vm8, %v14524_v45, %v4555_v40  ;;  %4560 = vst [vmem:[#allocation2 + $0x30] sm:$0xf] %v4559_v18  ;;  %v4563_v23 = vsel %vm9885_vm8, %v14525_v54, %v4562_v0  ;;  %v4566_v40 = vsel %vm9877_vm7, %v12166_v58, %v4565_v47  ;;  %v14526_v62 = vrot.slane %v12158_v30, 4  ;;  %v4653_v15 = vld [vmem:[#allocation2 + $0x8] sm:$0x1] }
 0x305   : > { %4557 = vst [vmem:[#allocation2 + $0x2c] sm:$0x1] %v4556_v19  ;;  %v4628_v20 = vld [vmem:[#allocation2 + $0xa8] sm:$0xf]  ;;  %v4621_v11 = vld [vmem:[#allocation2 + $0x9c] sm:$0xf]  ;;  %v4580_v0 = vsel %vm9877_vm7, %v12184_v53, %v4579_v48 }
 0x306   : > { %v4570_v31 = vsel %vm9885_vm8, %v14526_v62, %v4569_v63  ;;  %v4625_v10 = vld [vmem:[#allocation2 + $0xa4] sm:$0x1]  ;;  %4564 = vst [vmem:[#allocation2 + $0x38] sm:$0x1] %v4563_v23  ;;  %4567 = vst [vmem:[#allocation2 + $0x3c] sm:$0xf] %v4566_v40 }
 0x307   : > { %4571 = vst [vmem:[#allocation2 + $0x44] sm:$0x1] %v4570_v31  ;;  %v14527_v58 = vrot.slane %v12173_v42, 4  ;;  %v14528_v47 = vrot.slane %v12186_v5, 4  ;;  %4645 = vst.msk [vmem:[#allocation2 + $0xc4] sm:$0xf] %vm624_vm3, %v4487_v2  ;;  %v4594_v5 = vsel %vm9877_vm7, %v12208_v43, %v4593_v4 }
 0x308   : > { %v4632_v44 = vld [vmem:[#allocation2 + $0xb0] sm:$0x1]  ;;  %v4642_v33 = vld [vmem:[#allocation2 + $0xc0] sm:$0xf]  ;;  %v4635_v29 = vld [vmem:[#allocation2 + $0xb4] sm:$0xf] }
 0x309   : > { %v4577_v30 = vsel %vm9885_vm8, %v14527_v58, %v4576_v60  ;;  %v4584_v63 = vsel %vm9885_vm8, %v14528_v47, %v4583_v41  ;;  %4574 = vst [vmem:[#allocation2 + $0x48] sm:$0xf] %v4573_v59  ;;  %4581 = vst [vmem:[#allocation2 + $0x54] sm:$0xf] %v4580_v0  ;;  %v14529_v42 = vrot.slane %v12196_v34, 4  ;;  %v14530_v21 = vrot.slane %v12210_v14, 4 }
 0x30a   : > { %4578 = vst [vmem:[#allocation2 + $0x50] sm:$0x1] %v4577_v30  ;;  %4585 = vst [vmem:[#allocation2 + $0x5c] sm:$0x1] %v4584_v63  ;;  %v4656_v48 = vld [vmem:[#allocation2 + $0xcc] sm:$0xf] }
 0x30b   : > { %v4591_v53 = vsel %vm9885_vm8, %v14529_v42, %v4590_v7  ;;  %v4598_v60 = vsel %vm9885_vm8, %v14530_v21, %v4597_v13  ;;  %v4646_v41 = vld [vmem:[#allocation2 + $0xc8] sm:$0x1]  ;;  %4588 = vst [vmem:[#allocation2 + $0x60] sm:$0xf] %v4587_v61  ;;  %4595 = vst [vmem:[#allocation2 + $0x6c] sm:$0xf] %v4594_v5  ;;  %v4601_v7 = vsel %vm9877_vm7, %v12230_v49, %v12306_v38 }
 0x30c   : > { %4592 = vst [vmem:[#allocation2 + $0x68] sm:$0x1] %v4591_v53  ;;  %4599 = vst [vmem:[#allocation2 + $0x74] sm:$0x1] %v4598_v60  ;;  %v14531_v56 = vrot.slane %v12223_v57, 4  ;;  %v14532_v43 = vrot.slane %v12234_v36, 4  ;;  %v4615_v57 = vsel %vm9877_vm7, %v12254_v1, %v4614_v52  ;;  %v4622_v36 = vsel %vm9877_vm7, %v12268_v35, %v4621_v11 }
 0x30d   : > { %4602 = vst [vmem:[#allocation2 + $0x78] sm:$0xf] %v4601_v7  ;;  %4609 = vst [vmem:[#allocation2 + $0x84] sm:$0xf] %v4608_v16  ;;  %v14533_v49 = vrot.slane %v12246_v50, 4  ;;  %v14534_v55 = vrot.slane %v12261_v24, 4  ;;  %v4629_v50 = vsel %vm9877_vm7, %v12286_v32, %v4628_v20  ;;  %v4636_v24 = vsel %vm9877_vm7, %v12279_v22, %v4635_v29 }
 0x30e   : > { %v4605_v34 = vsel %vm9885_vm8, %v14531_v56, %v4604_v17  ;;  %v4612_v14 = vsel %vm9885_vm8, %v14532_v43, %v4611_v3  ;;  %4616 = vst [vmem:[#allocation2 + $0x90] sm:$0xf] %v4615_v57  ;;  %4623 = vst [vmem:[#allocation2 + $0x9c] sm:$0xf] %v4622_v36  ;;  %v14535_v1 = vrot.slane %v12273_v26, 4  ;;  %v4643_v35 = vsel %vm9877_vm7, %v12308_v12, %v4642_v33 }
 0x30f   : > { %4606 = vst [vmem:[#allocation2 + $0x80] sm:$0x1] %v4605_v34  ;;  %4613 = vst [vmem:[#allocation2 + $0x8c] sm:$0x1] %v4612_v14  ;;  %v4619_v17 = vsel %vm9885_vm8, %v14533_v49, %v4618_v8  ;;  %v4626_v38 = vsel %vm9885_vm8, %v14534_v55, %v4625_v10  ;;  %v4664_v13 = vld [vmem:[#allocation2 + $0xc] sm:$0x2]  ;;  %v4647_v26 = vsel %vm9885_vm8, %v4488_v25, %v4646_v41 }
 0x310   : > { %4620 = vst [vmem:[#allocation2 + $0x98] sm:$0x1] %v4619_v17  ;;  %4627 = vst [vmem:[#allocation2 + $0xa4] sm:$0x1] %v4626_v38  ;;  %v4633_v4 = vsel %vm9885_vm8, %v14535_v1, %v4632_v44  ;;  %v4665_v52 = vld [vmem:[#allocation2 + $0x18] sm:$0x2]  ;;  %v4650_v32 = vsel %vm9877_vm7, %v12121_v46, %v12340_v51  ;;  %v4657_v45 = vsel %vm9877_vm7, %v12279_v22, %v4656_v48 }
 0x311   : > { %4630 = vst [vmem:[#allocation2 + $0xa8] sm:$0xf] %v4629_v50  ;;  %4634 = vst [vmem:[#allocation2 + $0xb0] sm:$0x1] %v4633_v4  ;;  %v14536_v28 = vrot.slane %v12108_v9, 4  ;;  %v8471_v46 = vrot.slane %v4664_v13, 9 }
 0x312   : > { %4637 = vst [vmem:[#allocation2 + $0xb4] sm:$0xf] %v4636_v24  ;;  %4644 = vst [vmem:[#allocation2 + $0xc0] sm:$0xf] %v4643_v35  ;;  %v4756_v19 = vld [vmem:[#allocation2 + $0xc] sm:$0x1] }
 0x313   : > { %v4654_v12 = vsel %vm9885_vm8, %v14536_v28, %v4653_v15  ;;  %v4759_v18 = vld [vmem:[#allocation2 + $0x18] sm:$0x1]  ;;  %v12428_v37 = vld [vmem:[#allocation2 + $0x4] sm:$0x8]  ;;  %4648 = vst [vmem:[#allocation2 + $0xc8] sm:$0x1] %v4647_v26  ;;  %v4757_v22 = vsel %vm9885_vm8, %v8471_v46, %v4756_v19 }
 0x314   : > { %4651 = vst [vmem:[#allocation2] sm:$0xf] %v4650_v32  ;;  %4655 = vst [vmem:[#allocation2 + $0x8] sm:$0x1] %v4654_v12  ;;  %v4666_v25 = vld [vmem:[#allocation2 + $0x24] sm:$0x2] }
 0x315   : > { %4658 = vst [vmem:[#allocation2 + $0xcc] sm:$0xf] %v4657_v45  ;;  %v4667_v8 = vld [vmem:[#allocation2 + $0x30] sm:$0x2]  ;;  %v8472_v3 = vrot.slane %v4665_v52, 9  ;;  %v8473_v2 = vrot.slane %v4666_v25, 9 }
 0x316   : > { %v4668_v9 = vld [vmem:[#allocation2 + $0x3c] sm:$0x2]  ;;  %v8474_v54 = vrot.slane %v4667_v8, 9  ;;  %v4762_v23 = vld [vmem:[#allocation2 + $0x24] sm:$0x1]  ;;  %v8488_v51 = vrot.slane %v12428_v37, 11 }
 0x317   : > { %v4669_v40 = vld [vmem:[#allocation2 + $0x48] sm:$0x2]  ;;  %v4670_v62 = vld [vmem:[#allocation2 + $0x54] sm:$0x2]  ;;  %v8475_v39 = vrot.slane %v4668_v9, 9  ;;  %v4760_v31 = vsel %vm9885_vm8, %v8472_v3, %v4759_v18  ;;  %v4763_v59 = vsel %vm9885_vm8, %v8473_v2, %v4762_v23 }
 0x318   : > { %v4671_v15 = vld [vmem:[#allocation2 + $0x60] sm:$0x2]  ;;  %v12435_v20 = vld [vmem:[#allocation2 + $0x6c] sm:$0x2]  ;;  %v8476_v11 = vrot.slane %v4669_v40, 9  ;;  %v8477_v10 = vrot.slane %v4670_v62, 9 }
 0x319   : > { %4758 = vst [vmem:[#allocation2 + $0xc] sm:$0x1] %v4757_v22  ;;  %4761 = vst [vmem:[#allocation2 + $0x18] sm:$0x1] %v4760_v31  ;;  %v4673_v58 = vld [vmem:[#allocation2 + $0x78] sm:$0x2] }
 0x31a   : > { %v4674_v30 = vld [vmem:[#allocation2 + $0x84] sm:$0x2]  ;;  %v8478_v0 = vrot.slane %v4671_v15, 9  ;;  %v8479_v47 = vrot.slane %v12435_v20, 9  ;;  %4764 = vst [vmem:[#allocation2 + $0x24] sm:$0x1] %v4763_v59 }
 0x31b   : > { %v4808_v63 = vld [vmem:[#allocation2 + $0x10] sm:$0x8]  ;;  %v12440_v44 = vld [vmem:[#allocation2 + $0x90] sm:$0x2]  ;;  %v12442_v33 = vld [vmem:[#allocation2 + $0x9c] sm:$0x2] }
 0x31c   : > { %v8480_v29 = vrot.slane %v4673_v58, 9  ;;  %v8481_v61 = vrot.slane %v4674_v30, 9  ;;  %v4677_v42 = vld [vmem:[#allocation2 + $0xa8] sm:$0x2]  ;;  %v12444_v53 = vld [vmem:[#allocation2 + $0xb4] sm:$0x2] }
 0x31d   : > { %v12446_v5 = vld [vmem:[#allocation2 + $0xc0] sm:$0x2]  ;;  %v12448_v60 = vld [vmem:[#allocation2 + $0xcc] sm:$0x2]  ;;  %v8482_v48 = vrot.slane %v12440_v44, 9  ;;  %v8483_v41 = vrot.slane %v12442_v33, 9 }
 0x31e   : > { %v4663_v21 = vld [vmem:[#allocation2] sm:$0x2]  ;;  %v8484_v56 = vrot.slane %v4677_v42, 9  ;;  %v8485_v34 = vrot.slane %v12444_v53, 9  ;;  %v8486_v16 = vrot.slane %v12446_v5, 9  ;;  %v8487_v57 = vrot.slane %v12448_v60, 9 }
 0x31f   : > { %v8470_v7 = vrot.slane %v4663_v21, 9  ;;  %v4753_v43 = vld [vmem:[#allocation2] sm:$0x1]  ;;  %v4900_v14 = vld [vmem:[#allocation2 + $0x14] sm:$0x1]  ;;  %v8489_v55 = vrot.slane %v4808_v63, 11 }
 0x320   : > { %v4765_v49 = vld [vmem:[#allocation2 + $0x30] sm:$0x1]  ;;  %v4768_v17 = vld [vmem:[#allocation2 + $0x3c] sm:$0x1]  ;;  %v12455_v36 = vld [vmem:[#allocation2 + $0x1c] sm:$0x8] }
 0x321   : > { %v4754_v38 = vsel %vm9885_vm8, %v8470_v7, %v4753_v43  ;;  %v4766_v50 = vsel %vm9885_vm8, %v8474_v54, %v4765_v49  ;;  %v4769_v1 = vsel %vm9885_vm8, %v8475_v39, %v4768_v17  ;;  %v4771_v4 = vld [vmem:[#allocation2 + $0x48] sm:$0x1]  ;;  %v4774_v24 = vld [vmem:[#allocation2 + $0x54] sm:$0x1]  ;;  %v4777_v35 = vld [vmem:[#allocation2 + $0x60] sm:$0x1]  ;;  %v4901_v2 = vsel %vm9936_vm9, %v8489_v55, %v4900_v14 }
 0x322   : > { %v12463_v13 = vld [vmem:[#allocation2 + $0x28] sm:$0x8]  ;;  %v12465_v52 = vld [vmem:[#allocation2 + $0x34] sm:$0x8]  ;;  %v12467_v26 = vld [vmem:[#allocation2 + $0x40] sm:$0x8]  ;;  %v4772_v28 = vsel %vm9885_vm8, %v8476_v11, %v4771_v4  ;;  %v4775_v12 = vsel %vm9885_vm8, %v8477_v10, %v4774_v24  ;;  %v4778_v45 = vsel %vm9885_vm8, %v8478_v0, %v4777_v35 }
 0x323   : > { %v12469_v32 = vld [vmem:[#allocation2 + $0x4c] sm:$0x8]  ;;  %4755 = vst [vmem:[#allocation2] sm:$0x1] %v4754_v38  ;;  %4767 = vst [vmem:[#allocation2 + $0x30] sm:$0x1] %v4766_v50 }
 0x324   : > { %4770 = vst [vmem:[#allocation2 + $0x3c] sm:$0x1] %v4769_v1  ;;  %v4780_v19 = vld [vmem:[#allocation2 + $0x6c] sm:$0x1]  ;;  %v4783_v18 = vld [vmem:[#allocation2 + $0x78] sm:$0x1] }
 0x325   : > { %v4786_v25 = vld [vmem:[#allocation2 + $0x84] sm:$0x1]  ;;  %v12477_v8 = vld [vmem:[#allocation2 + $0x58] sm:$0x8]  ;;  %v12479_v46 = vld [vmem:[#allocation2 + $0x64] sm:$0x8]  ;;  %v4781_v54 = vsel %vm9885_vm8, %v8479_v47, %v4780_v19  ;;  %v4784_v23 = vsel %vm9885_vm8, %v8480_v29, %v4783_v18 }
 0x326   : > { %v12481_v3 = vld [vmem:[#allocation2 + $0x70] sm:$0x8]  ;;  %v12483_v9 = vld [vmem:[#allocation2 + $0x7c] sm:$0x8]  ;;  %4773 = vst [vmem:[#allocation2 + $0x48] sm:$0x1] %v4772_v28  ;;  %v4787_v40 = vsel %vm9885_vm8, %v8481_v61, %v4786_v25 }
 0x327   : > { %4776 = vst [vmem:[#allocation2 + $0x54] sm:$0x1] %v4775_v12  ;;  %4779 = vst [vmem:[#allocation2 + $0x60] sm:$0x1] %v4778_v45  ;;  %v4789_v62 = vld [vmem:[#allocation2 + $0x90] sm:$0x1] }
 0x328   : > { %v4792_v39 = vld [vmem:[#allocation2 + $0x9c] sm:$0x1]  ;;  %v4795_v22 = vld [vmem:[#allocation2 + $0xa8] sm:$0x1]  ;;  %v12493_v31 = vld [vmem:[#allocation2 + $0x88] sm:$0x8]  ;;  %v4790_v11 = vsel %vm9885_vm8, %v8482_v48, %v4789_v62 }
 0x329   : > { %v12495_v15 = vld [vmem:[#allocation2 + $0x94] sm:$0x8]  ;;  %v12497_v20 = vld [vmem:[#allocation2 + $0xa0] sm:$0x8]  ;;  %4902 = vst [vmem:[#allocation2 + $0x14] sm:$0x1] %v4901_v2  ;;  %v4793_v10 = vsel %vm9885_vm8, %v8483_v41, %v4792_v39  ;;  %v4796_v59 = vsel %vm9885_vm8, %v8484_v56, %v4795_v22 }
 0x32a   : > { %4782 = vst [vmem:[#allocation2 + $0x6c] sm:$0x1] %v4781_v54  ;;  %4785 = vst [vmem:[#allocation2 + $0x78] sm:$0x1] %v4784_v23  ;;  %v4798_v58 = vld [vmem:[#allocation2 + $0xb4] sm:$0x1] }
 0x32b   : > { %4788 = vst [vmem:[#allocation2 + $0x84] sm:$0x1] %v4787_v40  ;;  %v4801_v30 = vld [vmem:[#allocation2 + $0xc0] sm:$0x1]  ;;  %v4804_v0 = vld [vmem:[#allocation2 + $0xcc] sm:$0x1]  ;;  %v4799_v47 = vsel %vm9885_vm8, %v8485_v34, %v4798_v58 }
 0x32c   : > { %4791 = vst [vmem:[#allocation2 + $0x90] sm:$0x1] %v4790_v11  ;;  %4794 = vst [vmem:[#allocation2 + $0x9c] sm:$0x1] %v4793_v10  ;;  %v4802_v63 = vsel %vm9885_vm8, %v8486_v16, %v4801_v30  ;;  %v4805_v44 = vsel %vm9885_vm8, %v8487_v57, %v4804_v0  ;;  %v12511_v33 = vld [vmem:[#allocation2 + $0xac] sm:$0x8] }
 0x32d   : > { %4797 = vst [vmem:[#allocation2 + $0xa8] sm:$0x1] %v4796_v59  ;;  %v12513_v29 = vld [vmem:[#allocation2 + $0xc4] sm:$0x8]  ;;  %v8490_v61 = vrot.slane %v12455_v36, 11  ;;  %v9760_v42 = vld [vmem:[#allocation2 + $0xc] sm:$0xff]  }
 0x32e   : > { %4800 = vst [vmem:[#allocation2 + $0xb4] sm:$0x1] %v4799_v47  ;;  %4803 = vst [vmem:[#allocation2 + $0xc0] sm:$0x1] %v4802_v63  ;;  %v8491_v53 = vrot.slane %v12463_v13, 11  ;;  %v8492_v5 = vrot.slane %v12465_v52, 11  ;;  %9412 = vmatprep.mubr.msk.bf16.mxu1 %vm1165_vm10, %v9760_v42 }
 0x32f   : > { %4806 = vst [vmem:[#allocation2 + $0xcc] sm:$0x1] %v4805_v44  ;;  %v8493_v21 = vrot.slane %v12467_v26, 11  ;;  %v8494_v60 = vrot.slane %v12469_v32, 11  ;;  %v4897_v6 = vld [vmem:[#allocation2 + $0x8] sm:$0x1] }
 0x330   : > { %v4903_v48 = vld [vmem:[#allocation2 + $0x20] sm:$0x1]  ;;  %v8495_v41 = vrot.slane %v12477_v8, 11  ;;  %v8496_v7 = vrot.slane %v12479_v46, 11  ;;  %v8497_v56 = vrot.slane %v12481_v3, 11  ;;  %v8498_v34 = vrot.slane %v12483_v9, 11 }
 0x331   : > { %v4906_v16 = vld [vmem:[#allocation2 + $0x2c] sm:$0x1]  ;;  %v8499_v43 = vrot.slane %v12493_v31, 11  ;;  %v8500_v14 = vrot.slane %v12495_v15, 11  ;;  %v8501_v57 = vrot.slane %v12497_v20, 11  ;;  %v8502_v49 = vrot.slane %v12511_v33, 11 }
 0x332   : > { %v4909_v17 = vld [vmem:[#allocation2 + $0x38] sm:$0x1]  ;;  %v8504_v36 = vrot.slane %v12513_v29, 11  ;;  %v4898_v55 = vsel %vm9936_vm9, %v8488_v51, %v4897_v6  ;;  %v4904_v38 = vsel %vm9936_vm9, %v8490_v61, %v4903_v48  ;;  %v4907_v50 = vsel %vm9936_vm9, %v8491_v53, %v4906_v16  ;;  %v4912_v1 = vld [vmem:[#allocation2 + $0x44] sm:$0x1]  ;;  %v12587_v11 = vld [vmem:[#allocation2 + $0x30] sm:$0xff]  }
 0x333   : > { %v4915_v4 = vld [vmem:[#allocation2 + $0x50] sm:$0x1]  ;;  %v9761_v24 = vld [vmem:[#allocation2] sm:$0xff]   ;;  %4899 = vst [vmem:[#allocation2 + $0x8] sm:$0x1] %v4898_v55  ;;  %v4910_v35 = vsel %vm9936_vm9, %v8492_v5, %v4909_v17  ;;  %v4913_v37 = vsel %vm9936_vm9, %v8493_v21, %v4912_v1  ;;  %v12564_v62 = vld [vmem:[#allocation2 + $0x18] sm:$0xff]  }
 0x334   : > { %4905 = vst [vmem:[#allocation2 + $0x20] sm:$0x1] %v4904_v38  ;;  %4908 = vst [vmem:[#allocation2 + $0x2c] sm:$0x1] %v4907_v50  ;;  %v4916_v51 = vsel %vm9936_vm9, %v8494_v60, %v4915_v4  ;;  %v4918_v13 = vld [vmem:[#allocation2 + $0x5c] sm:$0x1]  ;;  %9446 = vmatprep.mubr.msk.bf16.mxu0 %vm1165_vm10, %v9761_v24  ;;  %9413 = vmatmul.mubr.msk.bf16.vlgmr.msra.gmra.mxu1 %vm1165_vm10, %v12564_v62 }
 0x335   : > { %v4921_v52 = vld [vmem:[#allocation2 + $0x68] sm:$0x1]  ;;  %v4924_v26 = vld [vmem:[#allocation2 + $0x74] sm:$0x1]  ;;  %4911 = vst [vmem:[#allocation2 + $0x38] sm:$0x1] %v4910_v35  ;;  %v4919_v32 = vsel %vm9936_vm9, %v8495_v41, %v4918_v13  ;;  %9447 = vmatmul.mubr.msk.bf16.vlgmr.msra.gmra.mxu0 %vm1165_vm10, %v9760_v42 }
 0x336   : > { %4914 = vst [vmem:[#allocation2 + $0x44] sm:$0x1] %v4913_v37  ;;  %4917 = vst [vmem:[#allocation2 + $0x50] sm:$0x1] %v4916_v51  ;;  %v4922_v28 = vsel %vm9936_vm9, %v8496_v7, %v4921_v52  ;;  %v4925_v12 = vsel %vm9936_vm9, %v8497_v56, %v4924_v26  ;;  %v4927_v45 = vld [vmem:[#allocation2 + $0x80] sm:$0x1]  ;;  %9450 = vmatprep.mubr.msk.bf16.mxu0 %vm1165_vm10, %v12564_v62 }
 0x337   : > { %v4930_v19 = vld [vmem:[#allocation2 + $0x8c] sm:$0x1]  ;;  %v4933_v18 = vld [vmem:[#allocation2 + $0x98] sm:$0x1]  ;;  %4920 = vst [vmem:[#allocation2 + $0x5c] sm:$0x1] %v4919_v32  ;;  %v4928_v25 = vsel %vm9936_vm9, %v8498_v34, %v4927_v45 }
 0x338   : > { %4923 = vst [vmem:[#allocation2 + $0x68] sm:$0x1] %v4922_v28  ;;  %4926 = vst [vmem:[#allocation2 + $0x74] sm:$0x1] %v4925_v12  ;;  %v4931_v8 = vsel %vm9936_vm9, %v8499_v43, %v4930_v19  ;;  %v4934_v46 = vsel %vm9936_vm9, %v8500_v14, %v4933_v18  ;;  %v4936_v3 = vld [vmem:[#allocation2 + $0xa4] sm:$0x1] }
 0x339   : > { %v4939_v9 = vld [vmem:[#allocation2 + $0xb0] sm:$0x1]  ;;  %v4945_v2 = vld [vmem:[#allocation2 + $0xc8] sm:$0x1]  ;;  %4929 = vst [vmem:[#allocation2 + $0x80] sm:$0x1] %v4928_v25  ;;  %v4937_v54 = vsel %vm9936_vm9, %v8501_v57, %v4936_v3 }
 0x33a   : > { %4932 = vst [vmem:[#allocation2 + $0x8c] sm:$0x1] %v4931_v8  ;;  %4935 = vst [vmem:[#allocation2 + $0x98] sm:$0x1] %v4934_v46  ;;  %v4940_v23 = vsel %vm9936_vm9, %v8502_v49, %v4939_v9  ;;  %v4946_v40 = vsel %vm9936_vm9, %v8504_v36, %v4945_v2  ;;  %v9792_v39 = vld [vmem:[%s14336_s2 + $0xc] sm:$0x3] }
 0x33b   : > { %4938 = vst [vmem:[#allocation2 + $0xa4] sm:$0x1] %v4937_v54  ;;  %4941 = vst [vmem:[#allocation2 + $0xb0] sm:$0x1] %v4940_v23  ;;  %v5465_v22 = vsel %vm1214_vm0, %v9792_v39, 0  ;;  %v12575_v15 = vld [vmem:[#allocation2 + $0x24] sm:$0xff]  }
 0x33c   : > { %4947 = vst [vmem:[#allocation2 + $0xc8] sm:$0x1] %v4946_v40  ;;  %v12573_v31 = vld [vmem:[%s14336_s2 + $0x8] sm:$0x3]  ;;  %v6245_v20 = vsel %vm1214_vm0, %v14537_v27, 0  ;;  %9479 = vmatpush3.bf16.msra.mxu1 %v5465_v22  ;;  %9416 = vmatprep.mubr.msk.bf16.mxu1 %vm1165_vm10, %v12575_v15  ;;  %v12593_v10 = vld [vmem:[#allocation2 + $0x3c] sm:$0xff]  }
 0x33d   : > { %9513 = vmatpush3.bf16.msra.mxu0 %v6245_v20  ;;  %9729 = vmatprep.subr.msk.bf16.mxu1 %vm1214_vm0, %v12573_v31  ;;  %v12599_v59 = vld [vmem:[#allocation2 + $0x48] sm:$0xff]   ;;  %v5667_v58 = vld [vmem:[#allocation2 + $0x1c] sm:$0xf]  ;;  %v12605_v30 = vld [vmem:[#allocation2 + $0x20] sm:$0x1] }
 0x33e   : > { %9451 = vmatmul.mubr.msk.bf16.gmra.mxu0 %vm1165_vm10, %v12575_v15  ;;  %9417 = vmatmul.mubr.msk.bf16.gmra.mxu1 %vm1165_vm10, %v12587_v11  ;;  %v6850_v0 = vld [vmem:[#allocation2 + $0x18] sm:$0xe]  ;;  %v6936_v63 = vrot.slane %v5667_v58, 5  ;;  %v6939_v33 = vrot.slane %v12605_v30, 5  ;;  %v12614_v29 = vld [vmem:[#allocation2 + $0x60] sm:$0xff]   ;;  %v12626_v7 = vld [vmem:[#allocation2 + $0x6c] sm:$0xff]  }
 0x33f   : > { %9454 = vmatprep.mubr.msk.bf16.mxu0 %vm1165_vm10, %v12587_v11  ;;  %9420 = vmatprep.mubr.msk.bf16.mxu1 %vm1165_vm10, %v12593_v10  ;;  %v12607_v47 = vld [vmem:[#allocation2 + $0x54] sm:$0xff]   ;;  %v8645_v44 = vrot.slane %v6850_v0, 9  ;;  %v5661_v61 = vld [vmem:[#allocation2 + $0x4] sm:$0xf]  ;;  %v5660_v53 = vld [vmem:[#allocation2] sm:$0xf] }
 0x340   : > { %v6938_v42 = vrot.slane %v6936_v63, 4  ;;  %v5663_v5 = vld [vmem:[#allocation2 + $0xc] sm:$0xf]  ;;  %v5724_v48 = vshll.u32 %v5661_v61, 16  ;;  %v5715_v56 = vshrl.u32 %v5660_v53, 16  ;;  %v5718_v34 = vshll.u32 %v5660_v53, 16 }
 0x341   : > { %v6937_v60 = vsel %vm10822_vm1, %v8645_v44, %v6936_v63  ;;  %v5728_v16 = vshrl.u32 %v5661_v61, 16  ;;  %v5664_v43 = vld [vmem:[#allocation2 + $0x10] sm:$0xf]  ;;  %v5739_v14 = vshrl.u32 %v5663_v5, 16  ;;  %v5742_v57 = vshll.u32 %v5663_v5, 16  ;;  %v12634_v1 = vld [vmem:[#allocation2 + $0x78] sm:$0xff]  }
 0x342   : > { %v6940_v6 = vsel %vm10822_vm1, %v6938_v42, %v6939_v33  ;;  %v5666_v49 = vld [vmem:[#allocation2 + $0x18] sm:$0xf]  ;;  %v12632_v17 = vrot.slane %v5724_v48, 5  ;;  %v5748_v36 = vshll.u32 %v5664_v43, 16  ;;  %v5752_v55 = vshrl.u32 %v5664_v43, 16  ;;  %v12640_v45 = vld [vmem:[#allocation2 + $0x84] sm:$0xff]  }
 0x343   : > { %v12624_v41 = vcombine.low %v6937_v60, %v6940_v6  ;;  %v5772_v38 = vshll.u32 %v5667_v58, 16  ;;  %v5669_v50 = vld [vmem:[#allocation2 + $0x24] sm:$0xf]  ;;  %v5717_v4 = vrot.slane %v5715_v56, 4  ;;  %v5720_v24 = vrot.slane %v5718_v34, 5  ;;  %v12660_v61 = vld [vmem:[#allocation2 + $0x90] sm:$0xff]  }
 0x344   : > { %v5730_v35 = vrot.slane %v5728_v16, 4  ;;  %v5776_v37 = vshrl.u32 %v5667_v58, 16  ;;  %v5662_v51 = vld [vmem:[#allocation2 + $0x8] sm:$0x1]  ;;  %v5741_v13 = vrot.slane %v5739_v14, 4  ;;  %v5744_v52 = vrot.slane %v5742_v57, 5 }
 0x345   : > { %14539 = vst [vmem:[#allocation39_spill] sm:$0xff] %v12624_v41  ;;  %v5763_v26 = vshrl.u32 %v5666_v49, 16  ;;  %v5766_v32 = vshll.u32 %v5666_v49, 16  ;;  %v5787_v28 = vshrl.u32 %v5669_v50, 16  ;;  %v5790_v12 = vshll.u32 %v5669_v50, 16 }
 0x346   : > { %9455 = vmatmul.mubr.msk.bf16.gmra.mxu0 %vm1165_vm10, %v12593_v10  ;;  %9421 = vmatmul.mubr.msk.bf16.gmra.mxu1 %vm1165_vm10, %v12599_v59  ;;  %v12642_v19 = vrot.slane %v5748_v36, 5  ;;  %v5754_v18 = vrot.slane %v5752_v55, 4  ;;  %v12644_v25 = vrot.slane %v5772_v38, 5  ;;  %v5670_v8 = vld [vmem:[#allocation2 + $0x28] sm:$0xf]  ;;  %v5731_v46 = vor.u32 %v5730_v35, %v12632_v17  ;;  %v12674_v35 = vld [vmem:[#allocation2 + $0x9c] sm:$0xff]  }
 0x347   : > { %9458 = vmatprep.mubr.msk.bf16.mxu0 %vm1165_vm10, %v12599_v59  ;;  %9424 = vmatprep.mubr.msk.bf16.mxu1 %vm1165_vm10, %v12607_v47  ;;  %v5734_v3 = vshll.u32 %v5662_v51, 16  ;;  %v5778_v9 = vrot.slane %v5776_v37, 4  ;;  %v5672_v2 = vld [vmem:[#allocation2 + $0x30] sm:$0xf]  ;;  %v5721_v54 = vor.u32 %v5720_v24, %v5717_v4  ;;  %v12649_v23 = vld [vmem:[#allocation2 + $0x14] sm:$0x1]  ;;  %v5745_v40 = vor.u32 %v5744_v52, %v5741_v13 }
 0x348   : > { %14540 = vst [vmem:[#allocation15_spill] sm:$0xff] %v12649_v23  ;;  %v5765_v39 = vrot.slane %v5763_v26, 4  ;;  %v5768_v22 = vrot.slane %v5766_v32, 5  ;;  %v12654_v27 = vld [vmem:[%s14336_s2 + $0xe] sm:$0x3]  ;;  %v5789_v20 = vrot.slane %v5787_v28, 4  ;;  %v5755_v53 = vor.u32 %v5754_v18, %v12642_v19 }
 0x349   : > { %v5792_v58 = vrot.slane %v5790_v12, 5  ;;  %v5796_v0 = vshll.u32 %v5670_v8, 16  ;;  %v5800_v63 = vshrl.u32 %v5670_v8, 16  ;;  %9730 = vmatprep.subr.msk.bf16.mxu0 %vm1214_vm0, %v12654_v27  ;;  %v5811_v44 = vshrl.u32 %v5672_v2, 16  ;;  %v5673_v6 = vld [vmem:[#allocation2 + $0x34] sm:$0xf] }
 0x34a   : > { %v5814_v33 = vshll.u32 %v5672_v2, 16  ;;  %v5736_v42 = vrot.slane %v5734_v3, 5  ;;  %v5758_v5 = vshll.u32 %v12649_v23, 16  ;;  %v5779_v60 = vor.u32 %v5778_v9, %v12644_v25  ;;  %v12670_v14 = vld [vmem:[#allocation2 + $0x2c] sm:$0x1] }
 0x34b   : > { %v5722_v48 = vrot.slane %v5721_v54, 4  ;;  %v5732_v56 = vrot.slane %v5731_v46, 4  ;;  %v5769_v34 = vor.u32 %v5768_v22, %v5765_v39  ;;  %v5782_v16 = vshll.u32 %v12605_v30, 16  ;;  %14541 = vst [vmem:[#allocation42_spill] sm:$0xff] %v12670_v14  ;;  %v5675_v24 = vld [vmem:[#allocation2 + $0x3c] sm:$0xf] }
 0x34c   : > { %v5746_v43 = vrot.slane %v5745_v40, 4  ;;  %v5793_v57 = vor.u32 %v5792_v58, %v5789_v20  ;;  %v12672_v49 = vrot.slane %v5796_v0, 5  ;;  %v5802_v36 = vrot.slane %v5800_v63, 4  ;;  %v12684_v18 = vld [vmem:[#allocation2 + $0x38] sm:$0x1]  ;;  %v12696_v22 = vld [vmem:[#allocation2 + $0xa8] sm:$0xff]  }
 0x34d   : > { %v5813_v55 = vrot.slane %v5811_v44, 4  ;;  %v5816_v38 = vrot.slane %v5814_v33, 5  ;;  %v5820_v50 = vshll.u32 %v5673_v6, 16  ;;  %v5824_v4 = vshrl.u32 %v5673_v6, 16  ;;  %14543 = vst [vmem:[#allocation11_spill] sm:$0xff] %v12684_v18 }
 0x34e   : > { %9459 = vmatmul.mubr.msk.bf16.gmra.mxu0 %vm1165_vm10, %v12607_v47  ;;  %9425 = vmatmul.mubr.msk.bf16.gmra.mxu1 %vm1165_vm10, %v12614_v29  ;;  %v5737_v30 = vsel %vm10283_vm13, %v5732_v56, %v5736_v42  ;;  %v5756_v51 = vrot.slane %v5755_v53, 4  ;;  %v5760_v13 = vrot.slane %v5758_v5, 5  ;;  %v5780_v52 = vrot.slane %v5779_v60, 4  ;;  %v12694_v40 = vld [vmem:[#allocation2 + $0x40] sm:$0xf] }
 0x34f   : > { %9462 = vmatprep.mubr.msk.bf16.mxu0 %vm1165_vm10, %v12614_v29  ;;  %9428 = vmatprep.mubr.msk.bf16.mxu1 %vm1165_vm10, %v12626_v7  ;;  %v5727_v26 = vsel %vm10283_vm13, %v5722_v48, %v12632_v17  ;;  %v5770_v32 = vrot.slane %v5769_v34, 4  ;;  %v5784_v28 = vrot.slane %v5782_v16, 5  ;;  %v5806_v12 = vshll.u32 %v12670_v14, 16  ;;  %14544 = vst [vmem:[#allocation8_spill] sm:$0xff] %v12694_v40  ;;  %v12714_v53 = vld [vmem:[#allocation2 + $0x44] sm:$0x1] }
 0x350   : > { %v5751_v8 = vsel %vm10283_vm13, %v5746_v43, %v12642_v19  ;;  %v5794_v46 = vrot.slane %v5793_v57, 4  ;;  %v5803_v3 = vor.u32 %v5802_v36, %v12672_v49  ;;  %v5835_v9 = vshrl.u32 %v5675_v24, 16  ;;  %14546 = vst [vmem:[#allocation22_spill] sm:$0xff] %v12714_v53  ;;  %v5678_v5 = vld [vmem:[#allocation2 + $0x48] sm:$0xf]  ;;  %v12724_v36 = vld [vmem:[#allocation2 + $0xb4] sm:$0xff]  }
 0x351   : > { %v5817_v2 = vor.u32 %v5816_v38, %v5813_v55  ;;  %v12692_v54 = vrot.slane %v5820_v50, 5  ;;  %v5826_v17 = vrot.slane %v5824_v4, 4  ;;  %v5838_v39 = vshll.u32 %v5675_v24, 16  ;;  %v5681_v56 = vld [vmem:[#allocation2 + $0x54] sm:$0xf] }
 0x352   : > { %v8575_v20 = vcombine.low %v5727_v26, %v5737_v30  ;;  %v5761_v58 = vsel %vm10283_vm13, %v5756_v51, %v5760_v13  ;;  %v12702_v19 = vsel %vm1214_vm0, %v12573_v31, 0  ;;  %v5830_v0 = vshll.u32 %v12684_v18, 16  ;;  %v5684_v57 = vld [vmem:[#allocation2 + $0x60] sm:$0xf]  ;;  %v12733_v30 = vld [vmem:[#allocation2 + $0x4c] sm:$0xf] }
 0x353   : > { %v12707_v63 = vcombine.low %v5751_v8, %v5761_v58  ;;  %v5775_v44 = vsel %vm10283_vm13, %v5770_v32, %v12644_v25  ;;  %v5785_v33 = vsel %vm10283_vm13, %v5780_v52, %v5784_v28  ;;  %v5808_v42 = vrot.slane %v5806_v12, 5  ;;  %v12741_v32 = vld [vmem:[#allocation2 + $0x58] sm:$0xf] }
 0x354   : > { %v5799_v31 = vsel %vm10283_vm13, %v5794_v46, %v12672_v49  ;;  %v5804_v60 = vrot.slane %v5803_v3, 4  ;;  %v5837_v6 = vrot.slane %v5835_v9, 4  ;;  %v5844_v48 = vshll.u32 %v12694_v40, 16 }
 0x355   : > { %14545 = vst [vmem:[#allocation24_spill] sm:$0xff] %v12707_v63  ;;  %v5818_v25 = vrot.slane %v5817_v2, 4  ;;  %v5827_v34 = vor.u32 %v5826_v17, %v12692_v54  ;;  %v5840_v16 = vrot.slane %v5838_v39, 5  ;;  %v5848_v43 = vshrl.u32 %v12694_v40, 16  ;;  %v12746_v2 = vld [vmem:[#allocation2 + $0x64] sm:$0xf] }
 0x356   : > { %9463 = vmatmul.mubr.msk.bf16.gmra.mxu0 %vm1165_vm10, %v12626_v7  ;;  %9429 = vmatmul.mubr.msk.bf16.gmra.mxu1 %vm1165_vm10, %v12634_v1  ;;  %v12726_v55 = vcombine.low %v5775_v44, %v5785_v33  ;;  %v5832_v38 = vrot.slane %v5830_v0, 5  ;;  %v5859_v50 = vshrl.u32 %v5678_v5, 16  ;;  %v5862_v4 = vshll.u32 %v5678_v5, 16  ;;  %v5687_v44 = vld [vmem:[#allocation2 + $0x6c] sm:$0xf] }
 0x357   : > { %9466 = vmatprep.mubr.msk.bf16.mxu0 %vm1165_vm10, %v12634_v1  ;;  %9432 = vmatprep.mubr.msk.bf16.mxu1 %vm1165_vm10, %v12640_v45  ;;  %v5809_v49 = vsel %vm10283_vm13, %v5804_v60, %v5808_v42  ;;  %v5854_v24 = vshll.u32 %v12714_v53, 16  ;;  %v5883_v51 = vshrl.u32 %v5681_v56, 16  ;;  %v5886_v13 = vshll.u32 %v5681_v56, 16  ;;  %v12757_v56 = vld [vmem:[#allocation2 + $0xc0] sm:$0xff]   ;;  %v12805_v53 = vld [vmem:[#allocation2 + $0x7c] sm:$0xf] }
 0x358   : > { %14547 = vst [vmem:[#allocation25_spill] sm:$0xff] %v12726_v55  ;;  %v12737_v52 = vcombine.low %v5799_v31, %v5809_v49  ;;  %v12739_v26 = vrot.slane %v5844_v48, 5  ;;  %v5907_v28 = vshrl.u32 %v5684_v57, 16  ;;  %v5910_v12 = vshll.u32 %v5684_v57, 16  ;;  %14549 = vst [vmem:[#allocation40_spill] sm:$0xff] %v12757_v56 }
 0x359   : > { %v5823_v8 = vsel %vm10283_vm13, %v5818_v25, %v12692_v54  ;;  %v5828_v46 = vrot.slane %v5827_v34, 4  ;;  %v5841_v3 = vor.u32 %v5840_v16, %v5837_v6  ;;  %v5850_v9 = vrot.slane %v5848_v43, 4  ;;  %v12768_v49 = vld [vmem:[#allocation2 + $0x70] sm:$0xf] }
 0x35a   : > { %14548 = vst [vmem:[#allocation16_spill] sm:$0xff] %v12737_v52  ;;  %v5861_v17 = vrot.slane %v5859_v50, 4  ;;  %v5864_v39 = vrot.slane %v5862_v4, 5  ;;  %v5868_v58 = vshll.u32 %v12733_v30, 16  ;;  %v5872_v0 = vshrl.u32 %v12733_v30, 16 }
 0x35b   : > { %v5885_v33 = vrot.slane %v5883_v51, 4  ;;  %v5888_v42 = vrot.slane %v5886_v13, 5  ;;  %v5892_v5 = vshll.u32 %v12741_v32, 16  ;;  %v5896_v54 = vshrl.u32 %v12741_v32, 16  ;;  %v12772_v13 = vld [vmem:[#allocation2 + $0x50] sm:$0x1] }
 0x35c   : > { %v5909_v31 = vrot.slane %v5907_v28, 4  ;;  %v5912_v60 = vrot.slane %v5910_v12, 5  ;;  %v5916_v6 = vshll.u32 %v12746_v2, 16  ;;  %v5920_v48 = vshrl.u32 %v12746_v2, 16 }
 0x35d   : > { %v5833_v25 = vsel %vm10283_vm13, %v5828_v46, %v5832_v38  ;;  %v12761_v34 = vrot.slane %v5854_v24, 5  ;;  %v5931_v16 = vshrl.u32 %v5687_v44, 16  ;;  %v5934_v43 = vshll.u32 %v5687_v44, 16  ;;  %v12774_v24 = vld [vmem:[#allocation2 + $0x5c] sm:$0x1] }
 0x35e   : > { %9467 = vmatmul.mubr.msk.bf16.gmra.mxu0 %vm1165_vm10, %v12640_v45  ;;  %9433 = vmatmul.mubr.msk.bf16.gmra.mxu1 %vm1165_vm10, %v12660_v61  ;;  %v12763_v57 = vcombine.low %v5823_v8, %v5833_v25  ;;  %v5851_v50 = vor.u32 %v5850_v9, %v12739_v26  ;;  %v5874_v4 = vrot.slane %v5872_v0, 4  ;;  %v5842_v51 = vrot.slane %v5841_v3, 4  ;;  %v12780_v46 = vld [vmem:[#allocation2 + $0x68] sm:$0x1] }
 0x35f   : > { %9470 = vmatprep.mubr.msk.bf16.mxu0 %vm1165_vm10, %v12660_v61  ;;  %9436 = vmatprep.mubr.msk.bf16.mxu1 %vm1165_vm10, %v12674_v35  ;;  %v5865_v38 = vor.u32 %v5864_v39, %v5861_v17  ;;  %v5889_v28 = vor.u32 %v5888_v42, %v5885_v33  ;;  %v12776_v12 = vrot.slane %v5892_v5, 5  ;;  %v5898_v8 = vrot.slane %v5896_v54, 4 }
 0x360   : > { %14550 = vst [vmem:[#allocation44_spill] sm:$0xff] %v12763_v57  ;;  %v5913_v9 = vor.u32 %v5912_v60, %v5909_v31  ;;  %v5922_v0 = vrot.slane %v5920_v48, 4  ;;  %v5933_v44 = vrot.slane %v5931_v16, 4  ;;  %v5936_v3 = vrot.slane %v5934_v43, 5 }
 0x361   : > { %v5940_v25 = vshll.u32 %v12768_v49, 16  ;;  %v5944_v17 = vshrl.u32 %v12768_v49, 16  ;;  %v5852_v39 = vrot.slane %v5851_v50, 4  ;;  %v5878_v42 = vshll.u32 %v12772_v13, 16 }
 0x362   : > { %v5847_v5 = vsel %vm10283_vm13, %v5842_v51, %v12739_v26  ;;  %v5866_v54 = vrot.slane %v5865_v38, 4  ;;  %v5902_v31 = vshll.u32 %v12774_v24, 16  ;;  %v5926_v60 = vshll.u32 %v12780_v46, 16 }
 0x363   : > { %v5890_v48 = vrot.slane %v5889_v28, 4  ;;  %v5899_v16 = vor.u32 %v5898_v8, %v12776_v12  ;;  %v5914_v43 = vrot.slane %v5913_v9, 4  ;;  %v5857_v26 = vsel %vm10283_vm13, %v5852_v39, %v12761_v34  ;;  %v12810_v8 = vld [vmem:[%s14336_s2 + $0x4] sm:$0x3] }
 0x364   : > { %v5937_v51 = vor.u32 %v5936_v3, %v5933_v44  ;;  %v5942_v38 = vrot.slane %v5940_v25, 5  ;;  %v5880_v18 = vrot.slane %v5878_v42, 5  ;;  %14551 = vst [vmem:[#allocation27_spill] sm:$0xff] %v12810_v8  ;;  %v5904_v9 = vrot.slane %v5902_v31, 5  ;;  %v12818_v3 = vld [vmem:[#allocation2 + $0x80] sm:$0x1] }
 0x365   : > { %v5895_v25 = vsel %vm10283_vm13, %v5890_v48, %v12776_v12  ;;  %v5964_v42 = vshll.u32 %v12805_v53, 16  ;;  %v5974_v12 = vshll.u32 %v12818_v3, 16  ;;  %v5693_v48 = vld [vmem:[#allocation2 + $0x84] sm:$0xf] }
 0x366   : > { %9471 = vmatmul.mubr.msk.bf16.gmra.mxu0 %vm1165_vm10, %v12674_v35  ;;  %9437 = vmatmul.mubr.msk.bf16.gmra.mxu1 %vm1165_vm10, %v12696_v22  ;;  %v5938_v39 = vrot.slane %v5937_v51, 4 }
 0x367   : > { %9474 = vmatprep.mubr.msk.bf16.mxu0 %vm1165_vm10, %v12696_v22  ;;  %9440 = vmatprep.mubr.msk.bf16.mxu1 %vm1165_vm10, %v12724_v36  ;;  %v12857_v51 = vrot.slane %v5964_v42, 5 }
 0x36e   : > { %9475 = vmatmul.mubr.msk.bf16.gmra.mxu0 %vm1165_vm10, %v12724_v36  ;;  %9441 = vmatmul.mubr.msk.bf16.gmra.mxu1 %vm1165_vm10, %v12757_v56 }
 0x36f   : > { %9514 = vmatprep.mubr.msk.bf16.mxu0 %vm1165_vm10, %v8575_v20  ;;  %v12766_v20 = vrot.slane %v5868_v58, 5  ;;  %9480 = vmatprep.mubr.msk.bf16.mxu1 %vm1165_vm10, %v12564_v62  ;;  %v12782_v58 = vrot.slane %v5916_v6, 5  ;;  %v5690_v6 = vld [vmem:[#allocation2 + $0x78] sm:$0xf]  ;;  %v5946_v62 = vrot.slane %v5944_v17, 4 }
 0x370   : > { %v5955_v40 = vshrl.u32 %v5690_v6, 16  ;;  %v5958_v28 = vshll.u32 %v5690_v6, 16 }
 0x371   : > { %v5875_v33 = vor.u32 %v5874_v4, %v12766_v20  ;;  %v5923_v50 = vor.u32 %v5922_v0, %v12782_v58  ;;  %v12800_v4 = vld [vmem:[#allocation2 + $0x74] sm:$0x1]  ;;  %v5871_v34 = vsel %vm10283_vm13, %v5866_v54, %v12766_v20  ;;  %v5928_v0 = vrot.slane %v5926_v60, 5 }
 0x372   : > { %v5950_v44 = vshll.u32 %v12800_v4, 16  ;;  %v5919_v20 = vsel %vm10283_vm13, %v5914_v43, %v12782_v58  ;;  %v5968_v54 = vshrl.u32 %v12805_v53, 16  ;;  %v5960_v31 = vrot.slane %v5958_v28, 5  ;;  %v5705_v43 = vld [vmem:[#allocation2 + $0xb4] sm:$0xf] }
 0x373   : > { %v5876_v41 = vrot.slane %v5875_v33, 4  ;;  %v5924_v17 = vrot.slane %v5923_v50, 4  ;;  %v5947_v33 = vor.u32 %v5946_v62, %v5942_v38  ;;  %v5943_v50 = vsel %vm10283_vm13, %v5938_v39, %v5942_v38  ;;  %v12867_v39 = vld [vmem:[#allocation2 + $0x94] sm:$0xf] }
 0x374   : > { %v5952_v6 = vrot.slane %v5950_v44, 5  ;;  %v5970_v28 = vrot.slane %v5968_v54, 4  ;;  %v5979_v44 = vshrl.u32 %v5693_v48, 16 }
 0x375   : > { %v5881_v58 = vsel %vm10283_vm13, %v5876_v41, %v5880_v18  ;;  %v5929_v60 = vsel %vm10283_vm13, %v5924_v17, %v5928_v0  ;;  %v12853_v41 = vld [vmem:[#allocation2 + $0x88] sm:$0xf]  ;;  %v5696_v18 = vld [vmem:[#allocation2 + $0x90] sm:$0xf] }
 0x376   : > { %9515 = vmatmul.mubr.msk.bf16.vlgmr.msra.gmra.mxu0 %vm1165_vm10, %v12707_v63  ;;  %9481 = vmatmul.mubr.msk.bf16.vlgmr.msra.gmra.mxu1 %vm1165_vm10, %v12575_v15  ;;  %v5900_v15 = vrot.slane %v5899_v16, 4  ;;  %v12850_v16 = vcombine.low %v5919_v20, %v5929_v60  ;;  %v5988_v17 = vshll.u32 %v12853_v41, 16  ;;  %v5992_v38 = vshrl.u32 %v12853_v41, 16 }
 0x377   : > { %9518 = vmatprep.mubr.msk.bf16.mxu0 %vm1165_vm10, %v12726_v55  ;;  %9547 = vmatpush3.bf16.msra.mxu1 %v12702_v19  ;;  %v5957_v19 = vrot.slane %v5955_v40, 4  ;;  %v12846_v40 = vcombine.low %v5871_v34, %v5881_v58  ;;  %v12859_v34 = vrot.slane %v5974_v12, 5  ;;  %v5971_v12 = vor.u32 %v5970_v28, %v12857_v51  ;;  %v12880_v58 = vld [vmem:[#allocation2 + $0xa0] sm:$0xf] }
 0x378   : > { %9484 = vmatprep.mubr.msk.bf16.mxu1 %vm1165_vm10, %v12587_v11  ;;  %9731 = vmatprep.subr.msk.bf16.mxu1 %vm1214_vm0, %v12810_v8  ;;  %v12833_v11 = vcombine.low %v5847_v5, %v5857_v26  ;;  %v5905_v62 = vsel %vm10283_vm13, %v5900_v15, %v5904_v9  ;;  %14555 = vst [vmem:[#allocation10_spill] sm:$0xff] %v12850_v16  ;;  %v5948_v26 = vrot.slane %v5947_v33, 4  ;;  %v5699_v9 = vld [vmem:[#allocation2 + $0x9c] sm:$0xf]  ;;  %v5702_v15 = vld [vmem:[#allocation2 + $0xa8] sm:$0xf] }
 0x379   : > { %14553 = vst [vmem:[#allocation17_spill] sm:$0xff] %v12846_v40  ;;  %v12848_v5 = vcombine.low %v5895_v25, %v5905_v62  ;;  %v5961_v0 = vor.u32 %v5960_v31, %v5957_v19  ;;  %v5982_v25 = vshll.u32 %v5693_v48, 16  ;;  %v6003_v33 = vshrl.u32 %v5696_v18, 16 }
 0x37a   : > { %14552 = vst [vmem:[#allocation41_spill] sm:$0xff] %v12833_v11  ;;  %v5953_v20 = vsel %vm10283_vm13, %v5948_v26, %v5952_v6  ;;  %v6006_v19 = vshll.u32 %v5696_v18, 16  ;;  %v6027_v31 = vshrl.u32 %v5699_v9, 16  ;;  %v6030_v62 = vshll.u32 %v5699_v9, 16  ;;  %v12886_v18 = vld [vmem:[#allocation2 + $0xac] sm:$0xf] }
 0x37b   : > { %14554 = vst [vmem:[#allocation46_spill] sm:$0xff] %v12848_v5  ;;  %v12871_v42 = vcombine.low %v5943_v50, %v5953_v20  ;;  %v6051_v60 = vshrl.u32 %v5702_v15, 16  ;;  %v12884_v6 = vrot.slane %v5961_v0, 4  ;;  %v5981_v48 = vrot.slane %v5979_v44, 4 }
 0x37c   : > { %v5984_v50 = vrot.slane %v5982_v25, 5  ;;  %v6054_v26 = vshll.u32 %v5702_v15, 16  ;;  %v12890_v20 = vrot.slane %v5988_v17, 5  ;;  %v5994_v28 = vrot.slane %v5992_v38, 4 }
 0x37d   : > { %v6005_v54 = vrot.slane %v6003_v33, 4  ;;  %v6012_v9 = vshll.u32 %v12867_v39, 16  ;;  %v6008_v0 = vrot.slane %v6006_v19, 5  ;;  %v6016_v44 = vshrl.u32 %v12867_v39, 16 }
 0x37e   : > { %9519 = vmatmul.mubr.msk.bf16.gmra.mxu0 %vm1165_vm10, %v12737_v52  ;;  %9485 = vmatmul.mubr.msk.bf16.gmra.mxu1 %vm1165_vm10, %v12593_v10  ;;  %v12877_v10 = vld [vmem:[%s14336_s2 + $0xa] sm:$0x3]  ;;  %v6029_v25 = vrot.slane %v6027_v31, 4  ;;  %v6036_v15 = vshll.u32 %v12880_v58, 16  ;;  %v6032_v17 = vrot.slane %v6030_v62, 5  ;;  %v6040_v38 = vshrl.u32 %v12880_v58, 16 }
 0x37f   : > { %9522 = vmatprep.mubr.msk.bf16.mxu0 %vm1165_vm10, %v12763_v57  ;;  %9488 = vmatprep.mubr.msk.bf16.mxu1 %vm1165_vm10, %v12599_v59  ;;  %14556 = vst [vmem:[#allocation9_spill] sm:$0xff] %v12877_v10  ;;  %v6653_v59 = vsel %vm1214_vm0, %v12654_v27, 0  ;;  %v12897_v27 = vld [vmem:[#allocation2 + $0x8c] sm:$0x1]  ;;  %v6053_v33 = vrot.slane %v6051_v60, 4  ;;  %v6056_v14 = vrot.slane %v6054_v26, 5  ;;  %v5967_v19 = vsel %vm10283_vm13, %v12884_v6, %v12857_v51 }
 0x380   : > { %9581 = vmatpush3.bf16.msra.mxu0 %v6653_v59  ;;  %v6060_v59 = vshll.u32 %v12886_v18, 16  ;;  %v6064_v23 = vshrl.u32 %v12886_v18, 16  ;;  %v6078_v8 = vshll.u32 %v5705_v43, 16  ;;  %v5972_v31 = vrot.slane %v5971_v12, 4  ;;  %v12911_v60 = vld [vmem:[#allocation2 + $0xb8] sm:$0xf] }
 0x381   : > { %9732 = vmatprep.subr.msk.bf16.mxu0 %vm1214_vm0, %v12877_v10  ;;  %v5985_v62 = vor.u32 %v5984_v50, %v5981_v48  ;;  %v5995_v26 = vor.u32 %v5994_v28, %v12890_v20  ;;  %v6009_v57 = vor.u32 %v6008_v0, %v6005_v54  ;;  %v6018_v52 = vrot.slane %v6016_v44, 4  ;;  %v12920_v10 = vld [vmem:[#allocation2 + $0xa4] sm:$0x1]  ;;  %v12922_v48 = vld [vmem:[#allocation2 + $0xb0] sm:$0x1] }
 0x382   : > { %v6033_v51 = vor.u32 %v6032_v17, %v6029_v25  ;;  %v6038_v12 = vrot.slane %v6036_v15, 5  ;;  %v6042_v6 = vrot.slane %v6040_v38, 4  ;;  %v6062_v50 = vrot.slane %v6060_v59, 5 }
 0x383   : > { %v6057_v63 = vor.u32 %v6056_v14, %v6053_v33  ;;  %v6066_v55 = vrot.slane %v6064_v23, 4  ;;  %v6088_v0 = vshrl.u32 %v12911_v60, 16  ;;  %v5977_v14 = vsel %vm10283_vm13, %v5972_v31, %v12859_v34  ;;  %v12941_v31 = vld [vmem:[#allocation2 + $0xbc] sm:$0x1] }
 0x384   : > { %v5986_v23 = vrot.slane %v5985_v62, 4  ;;  %v6010_v44 = vrot.slane %v6009_v57, 4  ;;  %v6034_v25 = vrot.slane %v6033_v51, 4  ;;  %v6043_v15 = vor.u32 %v6042_v6, %v6038_v12  ;;  %v6854_v51 = vld [vmem:[#allocation2 + $0x48] sm:$0xe] }
 0x385   : > { %v5996_v17 = vrot.slane %v5995_v26, 4  ;;  %v6058_v38 = vrot.slane %v6057_v63, 4  ;;  %v6067_v33 = vor.u32 %v6066_v55, %v6062_v50 }
 0x386   : > { %9523 = vmatmul.mubr.msk.bf16.gmra.mxu0 %vm1165_vm10, %v12833_v11  ;;  %v6075_v11 = vshrl.u32 %v5705_v43, 16  ;;  %9489 = vmatmul.mubr.msk.bf16.gmra.mxu1 %vm1165_vm10, %v12607_v47  ;;  %v12916_v43 = vld [vmem:[#allocation2 + $0x98] sm:$0x1]  ;;  %v12918_v47 = vrot.slane %v6012_v9, 5  ;;  %v6084_v9 = vshll.u32 %v12911_v60, 16  ;;  %v5991_v63 = vsel %vm10283_vm13, %v5986_v23, %v12890_v20 }
 0x387   : > { %9526 = vmatprep.mubr.msk.bf16.mxu0 %vm1165_vm10, %v12846_v40  ;;  %v5998_v40 = vshll.u32 %v12897_v27, 16  ;;  %9492 = vmatprep.mubr.msk.bf16.mxu1 %vm1165_vm10, %v12614_v29  ;;  %v6080_v29 = vrot.slane %v6078_v8, 5  ;;  %v6022_v54 = vshll.u32 %v12916_v43, 16  ;;  %v6046_v8 = vshll.u32 %v12920_v10, 16 }
 0x388   : > { %v6077_v56 = vrot.slane %v6075_v11, 4  ;;  %v6070_v11 = vshll.u32 %v12922_v48, 16  ;;  %v12943_v62 = vrot.slane %v6084_v9, 5  ;;  %v6044_v26 = vrot.slane %v6043_v15, 4  ;;  %v6855_v9 = vld [vmem:[#allocation2 + $0x54] sm:$0xe] }
 0x389   : > { %v6000_v28 = vrot.slane %v5998_v40, 5  ;;  %v6019_v40 = vor.u32 %v6018_v52, %v12918_v47  ;;  %v6024_v34 = vrot.slane %v6022_v54, 5  ;;  %v6048_v52 = vrot.slane %v6046_v8, 5  ;;  %v6856_v8 = vld [vmem:[#allocation2 + $0x60] sm:$0xe] }
 0x38a   : > { %v6081_v59 = vor.u32 %v6080_v29, %v6077_v56  ;;  %v6015_v56 = vsel %vm10283_vm13, %v6010_v44, %v12918_v47  ;;  %v6068_v6 = vrot.slane %v6067_v33, 4  ;;  %v6094_v29 = vshll.u32 %v12941_v31, 16 }
 0x38b   : > { %v6001_v55 = vsel %vm10283_vm13, %v5996_v17, %v6000_v28  ;;  %v6020_v57 = vrot.slane %v6019_v40, 4  ;;  %v6964_v23 = vrot.slane %v12733_v30, 5  ;;  %v8650_v33 = vrot.slane %v6855_v9, 9 }
 0x38c   : > { %v12959_v20 = vrot.slane %v6081_v59, 4  ;;  %v12964_v28 = vcombine.low %v5991_v63, %v6001_v55  ;;  %v12988_v17 = vrot.slane %v6094_v29, 5  ;;  %v6971_v59 = vrot.slane %v12741_v32, 5  ;;  %v6858_v55 = vld [vmem:[#allocation2 + $0x78] sm:$0xe] }
 0x38d   : > { %v6025_v47 = vsel %vm10283_vm13, %v6020_v57, %v6024_v34  ;;  %v6974_v34 = vrot.slane %v12774_v24, 5  ;;  %v8651_v63 = vrot.slane %v6856_v8, 9 }
 0x38e   : > { %9527 = vmatmul.mubr.msk.bf16.gmra.mxu0 %vm1165_vm10, %v12848_v5  ;;  %9493 = vmatmul.mubr.msk.bf16.gmra.mxu1 %vm1165_vm10, %v12626_v7  ;;  %v6090_v5 = vrot.slane %v6088_v0, 4  ;;  %v6072_v7 = vrot.slane %v6070_v11, 5  ;;  %v12977_v11 = vcombine.low %v6015_v56, %v6025_v47  ;;  %v6087_v15 = vsel %vm10283_vm13, %v12959_v20, %v12943_v62  ;;  %v14561_v20 = vld [vmem:[#allocation25_spill] sm:$0xff] }
 0x38f   : > { %9530 = vmatprep.mubr.msk.bf16.mxu0 %vm1165_vm10, %v12850_v16  ;;  %v12939_v16 = vcombine.low %v5967_v19, %v5977_v14  ;;  %9496 = vmatprep.mubr.msk.bf16.mxu1 %vm1165_vm10, %v12634_v1  ;;  %v6039_v19 = vsel %vm10283_vm13, %v6034_v25, %v6038_v12  ;;  %v6063_v1 = vsel %vm10283_vm13, %v6058_v38, %v6062_v50  ;;  %v7009_v12 = vrot.slane %v12916_v43, 5  ;;  %v6857_v25 = vld [vmem:[#allocation2 + $0x6c] sm:$0xe] }
 0x390   : > { %v6091_v54 = vor.u32 %v6090_v5, %v12943_v62  ;;  %v6049_v50 = vsel %vm10283_vm13, %v6044_v26, %v6048_v52  ;;  %v6073_v0 = vsel %vm10283_vm13, %v6068_v6, %v6072_v7  ;;  %v8649_v14 = vrot.slane %v6854_v51, 9 }
 0x391   : > { %v12979_v44 = vcombine.low %v6039_v19, %v6049_v50  ;;  %v12981_v40 = vcombine.low %v6063_v1, %v6073_v0  ;;  %v7023_v5 = vrot.slane %v12922_v48, 5  ;;  %v6966_v38 = vrot.slane %v6964_v23, 4 }
 0x392   : > { %v12992_v30 = vrot.slane %v6091_v54, 4  ;;  %v6965_v52 = vsel %vm10822_vm1, %v8649_v14, %v6964_v23  ;;  %v14557_v7 = vrot.slane %v12772_v13, 5  ;;  %v8652_v57 = vrot.slane %v6857_v25, 9  ;;  %v6860_v14 = vld [vmem:[#allocation2 + $0x90] sm:$0xe] }
 0x393   : > { %v6972_v32 = vsel %vm10822_vm1, %v8650_v33, %v6971_v59  ;;  %v6973_v24 = vrot.slane %v6971_v59, 4  ;;  %v6985_v26 = vrot.slane %v12768_v49, 5  ;;  %v6988_v13 = vrot.slane %v12800_v4, 5  ;;  %v6861_v23 = vld [vmem:[#allocation2 + $0x9c] sm:$0xe] }
 0x394   : > { %v6968_v56 = vsel %vm10822_vm1, %v6966_v38, %v14557_v7  ;;  %v8653_v6 = vrot.slane %v6858_v55, 9  ;;  %v6992_v49 = vrot.slane %v12805_v53, 5  ;;  %v14558_v4 = vrot.slane %v12780_v46, 5  ;;  %v13035_v33 = vld [vmem:[#allocation2 + $0xc8] sm:$0x1] }
 0x395   : > { %v13005_v19 = vcombine.low %v6965_v52, %v6968_v56  ;;  %v6986_v29 = vsel %vm10822_vm1, %v8652_v57, %v6985_v26  ;;  %v6987_v47 = vrot.slane %v6985_v26, 4  ;;  %v6999_v0 = vrot.slane %v12853_v41, 5  ;;  %v13058_v26 = vld [vmem:[#allocation2 + $0xd0] sm:$0xf] }
 0x396   : > { %9531 = vmatmul.mubr.msk.bf16.gmra.mxu0 %vm1165_vm10, %v12871_v42  ;;  %9497 = vmatmul.mubr.msk.bf16.gmra.mxu1 %vm1165_vm10, %v12640_v45  ;;  %v6978_v45 = vrot.slane %v12746_v2, 5  ;;  %v6975_v2 = vsel %vm10822_vm1, %v6973_v24, %v6974_v34  ;;  %v6993_v25 = vsel %vm10822_vm1, %v8653_v6, %v6992_v49  ;;  %v6994_v38 = vrot.slane %v6992_v49, 4 }
 0x397   : > { %9534 = vmatprep.mubr.msk.bf16.mxu0 %vm1165_vm10, %v12939_v16  ;;  %9500 = vmatprep.mubr.msk.bf16.mxu1 %vm1165_vm10, %v12660_v61  ;;  %v6859_v61 = vld [vmem:[#allocation2 + $0x84] sm:$0xe]  ;;  %v13022_v54 = vcombine.low %v6972_v32, %v6975_v2  ;;  %v6989_v53 = vsel %vm10822_vm1, %v6987_v47, %v6988_v13  ;;  %v7001_v34 = vrot.slane %v6999_v0, 4  ;;  %v7002_v41 = vrot.slane %v12897_v27, 5  ;;  %v13064_v13 = vld [vmem:[#allocation2 + $0xd4] sm:$0x1] }
 0x398   : > { %v6979_v51 = vsel %vm10822_vm1, %v8651_v63, %v6978_v45  ;;  %v6980_v1 = vrot.slane %v6978_v45, 4  ;;  %v8654_v50 = vrot.slane %v6859_v61, 9  ;;  %v13037_v46 = vcombine.low %v6986_v29, %v6989_v53  ;;  %v6862_v63 = vld [vmem:[#allocation2 + $0xa8] sm:$0xe] }
 0x399   : > { %v14559_v55 = vrot.slane %v12818_v3, 5  ;;  %v8655_v7 = vrot.slane %v6860_v14, 9  ;;  %v7006_v56 = vrot.slane %v12867_v39, 5  ;;  %v8656_v45 = vrot.slane %v6861_v23, 9  ;;  %v6863_v3 = vld [vmem:[#allocation2 + $0xb4] sm:$0xe] }
 0x39a   : > { %v6982_v9 = vsel %vm10822_vm1, %v6980_v1, %v14558_v4  ;;  %v7000_v59 = vsel %vm10822_vm1, %v8654_v50, %v6999_v0  ;;  %v7003_v27 = vsel %vm10822_vm1, %v7001_v34, %v7002_v41  ;;  %v7013_v32 = vrot.slane %v12880_v58, 5  ;;  %v6864_v1 = vld [vmem:[#allocation2 + $0xc0] sm:$0xe] }
 0x39b   : > { %v13029_v8 = vcombine.low %v6979_v51, %v6982_v9  ;;  %v6996_v52 = vsel %vm10822_vm1, %v6994_v38, %v14559_v55  ;;  %v7037_v24 = vrot.slane %v13035_v33, 5  ;;  %v13060_v61 = vcombine.low %v7000_v59, %v7003_v27  ;;  %v6865_v9 = vld [vmem:[#allocation2 + $0xcc] sm:$0xe]  ;;  %v14562_v27 = vld [vmem:[#allocation24_spill] sm:$0xff] }
 0x39c   : > { %v13051_v57 = vcombine.low %v6993_v25, %v6996_v52  ;;  %v7008_v39 = vrot.slane %v7006_v56, 4  ;;  %v8657_v51 = vrot.slane %v6862_v63, 9  ;;  %v7007_v6 = vsel %vm10822_vm1, %v8655_v7, %v7006_v56  ;;  %v14560_v63 = vld [vmem:[#allocation40_spill] sm:$0xff] }
 0x39d   : > { %v7015_v58 = vrot.slane %v7013_v32, 4  ;;  %v7020_v2 = vrot.slane %v12886_v18, 5  ;;  %v8658_v47 = vrot.slane %v6863_v3, 9  ;;  %v7027_v49 = vrot.slane %v12911_v60, 5  ;;  %v14564_v3 = vld [vmem:[#allocation16_spill] sm:$0xff] }
 0x39e   : > { %9535 = vmatmul.mubr.msk.bf16.gmra.mxu0 %vm1165_vm10, %v12964_v28  ;;  %9501 = vmatmul.mubr.msk.bf16.gmra.mxu1 %vm1165_vm10, %v12674_v35  ;;  %v7016_v35 = vrot.slane %v12920_v10, 5  ;;  %v7014_v10 = vsel %vm10822_vm1, %v8656_v45, %v7013_v32  ;;  %v7010_v29 = vsel %vm10822_vm1, %v7008_v39, %v7009_v12  ;;  %v7030_v4 = vrot.slane %v12941_v31, 5  ;;  %v14563_v32 = vld [vmem:[#allocation9_spill] sm:$0xff]  ;;  %v14566_v39 = vld [vmem:[#allocation27_spill] sm:$0xff] }
 0x39f   : > { %9538 = vmatprep.mubr.msk.bf16.mxu0 %vm1165_vm10, %v12977_v11  ;;  %9504 = vmatprep.mubr.msk.bf16.mxu1 %vm1165_vm10, %v12696_v22  ;;  %v13062_v22 = vld [vmem:[#allocation2 + $0xc4] sm:$0xf]  ;;  %v13081_v50 = vcombine.low %v7007_v6, %v7010_v29  ;;  %v7022_v0 = vrot.slane %v7020_v2, 4  ;;  %v8659_v14 = vrot.slane %v6864_v1, 9  ;;  %v7021_v12 = vsel %vm10822_vm1, %v8657_v51, %v7020_v2  ;;  %v13153_v1 = vld [vmem:[%s14336_s2 + $0x10] sm:$0x3] }
 0x3a0   : > { %v7017_v18 = vsel %vm10822_vm1, %v7015_v58, %v7016_v35  ;;  %v7029_v23 = vrot.slane %v7027_v49, 4  ;;  %v7034_v60 = vrot.slane %v13062_v22, 5  ;;  %v8660_v53 = vrot.slane %v6865_v9, 9  ;;  %v14567_v6 = vld [vmem:[#allocation41_spill] sm:$0xff]  ;;  %v14569_v58 = vld [vmem:[#allocation46_spill] sm:$0xff] }
 0x3a1   : > { %v13085_v43 = vcombine.low %v7014_v10, %v7017_v18  ;;  %v7024_v31 = vsel %vm10822_vm1, %v7022_v0, %v7023_v5  ;;  %v7041_v25 = vrot.slane %v13058_v26, 5  ;;  %v7044_v38 = vrot.slane %v13064_v13, 5  ;;  %v14568_v10 = vld [vmem:[#allocation17_spill] sm:$0xff]  ;;  %v14570_v2 = vld [vmem:[#allocation10_spill] sm:$0xff]  ;;  %v5708_v29 = vld [vmem:[#allocation2 + $0xc0] sm:$0xf] }
 0x3a2   : > { %v13098_v59 = vcombine.low %v7021_v12, %v7024_v31  ;;  %v7028_v34 = vsel %vm10822_vm1, %v8658_v47, %v7027_v49  ;;  %v7031_v41 = vsel %vm10822_vm1, %v7029_v23, %v7030_v4  ;;  %v7036_v48 = vrot.slane %v7034_v60, 4 }
 0x3a3   : > { %v6097_v5 = vsel %vm10283_vm13, %v12992_v30, %v12988_v17  ;;  %v13110_v55 = vcombine.low %v7028_v34, %v7031_v41  ;;  %v7035_v7 = vsel %vm10822_vm1, %v8659_v14, %v7034_v60  ;;  %v13127_v17 = vsel %vm10822_vm1, %v8660_v53, %v7041_v25  ;;  %v5711_v14 = vld [vmem:[#allocation2 + $0xcc] sm:$0xf] }
 0x3a4   : > { %v13117_v52 = vcombine.low %v6087_v15, %v6097_v5  ;;  %v7038_v56 = vsel %vm10822_vm1, %v7036_v48, %v7037_v24  ;;  %v9777_v15 = vld [vmem:[#allocation2 + $0xcc] sm:$0xff]   ;;  %v7349_v35 = vsel %vm1214_vm0, %v14563_v32, 0  ;;  %v14565_v24 = vld [vmem:[#allocation44_spill] sm:$0xff]  ;;  %v7145_v51 = vsel %vm1214_vm0, %v14566_v39, 0 }
 0x3a5   : > { %v13123_v45 = vcombine.low %v7035_v7, %v7038_v56  ;;  %v6099_v47 = vshrl.u32 %v5708_v29, 16  ;;  %v6102_v49 = vshll.u32 %v5708_v29, 16  ;;  %v6108_v18 = vshll.u32 %v13062_v22, 16  ;;  %v9793_v56 = vld [vmem:[#allocation2 + $0x10] sm:$0xf] }
 0x3a6   : > { %9539 = vmatmul.mubr.msk.bf16.gmra.mxu0 %vm1165_vm10, %v12979_v44  ;;  %9505 = vmatmul.mubr.msk.bf16.gmra.mxu1 %vm1165_vm10, %v12724_v36  ;;  %v7043_v36 = vrot.slane %v7041_v25, 4  ;;  %v6112_v0 = vshrl.u32 %v13062_v22, 16  ;;  %v6123_v12 = vshrl.u32 %v5711_v14, 16  ;;  %v6126_v23 = vshll.u32 %v5711_v14, 16  ;;  %v9794_v39 = vld [vmem:[#allocation2 + $0x4] sm:$0xf] }
 0x3a7   : > { %9542 = vmatprep.mubr.msk.bf16.mxu0 %vm1165_vm10, %v12981_v40  ;;  %9508 = vmatprep.mubr.msk.bf16.mxu1 %vm1165_vm10, %v14560_v63  ;;  %v6101_v4 = vrot.slane %v6099_v47, 4  ;;  %v6104_v9 = vrot.slane %v6102_v49, 5  ;;  %v6118_v53 = vshll.u32 %v13035_v33, 16  ;;  %v6132_v22 = vshll.u32 %v13058_v26, 16  ;;  %v9796_v14 = vld [vmem:[#allocation2 + $0x28] sm:$0xf] }
 0x3a8   : > { %v13131_v30 = vsel %vm10822_vm1, %v7043_v36, %v7044_v38  ;;  %v6114_v31 = vrot.slane %v6112_v0, 4  ;;  %v6125_v25 = vrot.slane %v6123_v12, 4  ;;  %v6128_v38 = vrot.slane %v6126_v23, 5  ;;  %v6851_v23 = vld [vmem:[#allocation2 + $0x24] sm:$0xe] }
 0x3a9   : > { %v8713_v62 = vcombine.low %v13127_v17, %v13131_v30  ;;  %v6105_v60 = vor.u32 %v6104_v9, %v6101_v4  ;;  %v6136_v34 = vshrl.u32 %v13058_v26, 16  ;;  %v6134_v5 = vrot.slane %v6132_v22, 5  ;;  %v9797_v22 = vld [vmem:[#allocation2 + $0x34] sm:$0xf] }
 0x3aa   : > { %v6129_v63 = vor.u32 %v6128_v38, %v6125_v25  ;;  %v6142_v26 = vshll.u32 %v13064_v13, 16  ;;  %v6922_v13 = vrot.slane %v9794_v39, 5  ;;  %v6943_v12 = vrot.slane %v9796_v14, 5 }
 0x3ab   : > { %v6106_v41 = vrot.slane %v6105_v60, 4 }
 0x3ae   : > { %9543 = vmatmul.mubr.msk.bf16.gmra.mxu0 %vm1165_vm10, %v13117_v52  ;;  %9509 = vmatmul.mubr.msk.bf16.gmra.mxu1 %vm1165_vm10, %v9777_v15 }
 0x3af   : > { %9582 = vmatprep.mubr.msk.bf16.mxu0 %vm1165_vm10, %v14561_v20  ;;  %9548 = vmatprep.mubr.msk.bf16.mxu1 %vm1165_vm10, %v14562_v27  ;;  %v6130_v27 = vrot.slane %v6129_v63, 4 }
 0x3b6   : > { %9583 = vmatmul.mubr.msk.bf16.vlgmr.msra.gmra.mxu0 %vm1165_vm10, %v14564_v3  ;;  %9549 = vmatmul.mubr.msk.bf16.vlgmr.msra.gmra.mxu1 %vm1165_vm10, %v14561_v20  ;;  %v6929_v20 = vrot.slane %v9793_v56, 5  ;;  %v14576_v56 = vld [vmem:[#allocation22_spill] sm:$0xff] }
 0x3b7   : > { %9586 = vmatprep.mubr.msk.bf16.mxu0 %vm1165_vm10, %v14565_v24  ;;  %9649 = vmatpush3.bf16.msra.mxu0 %v7349_v35  ;;  %v6849_v35 = vld [vmem:[#allocation2 + $0xc] sm:$0xe] }
 0x3b8   : > { %9615 = vmatpush3.bf16.msra.mxu1 %v7145_v51  ;;  %9552 = vmatprep.mubr.msk.bf16.mxu1 %vm1165_vm10, %v14564_v3  ;;  %v8644_v51 = vrot.slane %v6849_v35, 9 }
 0x3b9   : > { %9733 = vmatprep.subr.msk.bf16.mxu1 %vm1214_vm0, %v13153_v1 }
 0x3ba   : > { %v6930_v0 = vsel %vm10822_vm1, %v8644_v51, %v6929_v20 }
 0x3be   : > { %9587 = vmatmul.mubr.msk.bf16.gmra.mxu0 %vm1165_vm10, %v14567_v6  ;;  %9553 = vmatmul.mubr.msk.bf16.gmra.mxu1 %vm1165_vm10, %v14565_v24  ;;  %v6144_v24 = vrot.slane %v6142_v26, 5 }
 0x3bf   : > { %9590 = vmatprep.mubr.msk.bf16.mxu0 %vm1165_vm10, %v14568_v10  ;;  %9556 = vmatprep.mubr.msk.bf16.mxu1 %vm1165_vm10, %v14567_v6  ;;  %v6931_v6 = vrot.slane %v6929_v20, 4  ;;  %v6960_v20 = vrot.slane %v14576_v56, 5 }
 0x3c6   : > { %9591 = vmatmul.mubr.msk.bf16.gmra.mxu0 %vm1165_vm10, %v14569_v58  ;;  %9557 = vmatmul.mubr.msk.bf16.gmra.mxu1 %vm1165_vm10, %v14568_v10  ;;  %v6135_v10 = vsel %vm10283_vm13, %v6130_v27, %v6134_v5 }
 0x3c7   : > { %9594 = vmatprep.mubr.msk.bf16.mxu0 %vm1165_vm10, %v14570_v2  ;;  %9560 = vmatprep.mubr.msk.bf16.mxu1 %vm1165_vm10, %v14569_v58 }
 0x3ce   : > { %9595 = vmatmul.mubr.msk.bf16.gmra.mxu0 %vm1165_vm10, %v12871_v42  ;;  %9561 = vmatmul.mubr.msk.bf16.gmra.mxu1 %vm1165_vm10, %v14570_v2  ;;  %v9795_v2 = vld [vmem:[#allocation2 + $0x8] sm:$0x1] }
 0x3cf   : > { %9598 = vmatprep.mubr.msk.bf16.mxu0 %vm1165_vm10, %v12939_v16  ;;  %9564 = vmatprep.mubr.msk.bf16.mxu1 %vm1165_vm10, %v12871_v42  ;;  %v6110_v42 = vrot.slane %v6108_v18, 5  ;;  %v6925_v29 = vrot.slane %v9795_v2, 5  ;;  %v6924_v18 = vrot.slane %v6922_v13, 4 }
 0x3d1   : > { %v6115_v48 = vor.u32 %v6114_v31, %v6110_v42  ;;  %v6111_v33 = vsel %vm10283_vm13, %v6106_v41, %v6110_v42  ;;  %v6926_v60 = vsel %vm10822_vm1, %v6924_v18, %v6925_v29  ;;  %v14572_v42 = vld [vmem:[#allocation42_spill] sm:$0xff]  ;;  %v8646_v31 = vrot.slane %v6851_v23, 9 }
 0x3d3   : > { %v6116_v36 = vrot.slane %v6115_v48, 4  ;;  %v6944_v41 = vsel %vm10822_vm1, %v8646_v31, %v6943_v12  ;;  %v6852_v48 = vld [vmem:[#allocation2 + $0x30] sm:$0xe] }
 0x3d6   : > { %9599 = vmatmul.mubr.msk.bf16.gmra.mxu0 %vm1165_vm10, %v12964_v28  ;;  %9565 = vmatmul.mubr.msk.bf16.gmra.mxu1 %vm1165_vm10, %v12939_v16  ;;  %v6120_v16 = vrot.slane %v6118_v53, 5  ;;  %v6945_v53 = vrot.slane %v6943_v12, 4 }
 0x3d7   : > { %9602 = vmatprep.mubr.msk.bf16.mxu0 %vm1165_vm10, %v12977_v11  ;;  %9568 = vmatprep.mubr.msk.bf16.mxu1 %vm1165_vm10, %v12964_v28  ;;  %v6138_v28 = vrot.slane %v6136_v34, 4  ;;  %v6950_v34 = vrot.slane %v9797_v22, 5 }
 0x3d8   : > { %v6121_v7 = vsel %vm10283_vm13, %v6116_v36, %v6120_v16  ;;  %v14573_v16 = vld [vmem:[#allocation8_spill] sm:$0xff]  ;;  %v6853_v36 = vld [vmem:[#allocation2 + $0x3c] sm:$0xe] }
 0x3d9   : > { %v8608_v15 = vcombine.low %v6111_v33, %v6121_v7  ;;  %v6139_v32 = vor.u32 %v6138_v28, %v6134_v5  ;;  %v6957_v63 = vrot.slane %v14573_v16, 5  ;;  %v14574_v5 = vld [vmem:[#allocation11_spill] sm:$0xff]  ;;  %v6952_v27 = vrot.slane %v6950_v34, 4 }
 0x3da   : > { %v6953_v28 = vrot.slane %v14574_v5, 5  ;;  %v14575_v7 = vld [vmem:[#allocation39_spill] sm:$0xff] }
 0x3db   : > { %v6140_v58 = vrot.slane %v6139_v32, 4  ;;  %v7553_v32 = vsel %vm1214_vm0, %v13153_v1, 0 }
 0x3dd   : > { %v6145_v49 = vsel %vm10283_vm13, %v6140_v58, %v6144_v24  ;;  %v6954_v24 = vsel %vm10822_vm1, %v6952_v27, %v6953_v28 }
 0x3de   : > { %9603 = vmatmul.mubr.msk.bf16.gmra.mxu0 %vm1165_vm10, %v12979_v44  ;;  %9569 = vmatmul.mubr.msk.bf16.gmra.mxu1 %vm1165_vm10, %v12977_v11  ;;  %v14571_v11 = vld [vmem:[#allocation15_spill] sm:$0xff]  ;;  %v8626_v9 = vcombine.low %v6135_v10, %v6145_v49 }
 0x3df   : > { %9606 = vmatprep.mubr.msk.bf16.mxu0 %vm1165_vm10, %v12981_v40  ;;  %9572 = vmatprep.mubr.msk.bf16.mxu1 %vm1165_vm10, %v12979_v44  ;;  %v6932_v3 = vrot.slane %v14571_v11, 5  ;;  %v6848_v44 = vld [vmem:[#allocation2] sm:$0xe]  ;;  %v8648_v11 = vrot.slane %v6853_v36, 9 }
 0x3e0   : > { %v8643_v4 = vrot.slane %v6848_v44, 9 }
 0x3e1   : > { %v6933_v47 = vsel %vm10822_vm1, %v6931_v6, %v6932_v3  ;;  %v6959_v3 = vrot.slane %v6957_v63, 4  ;;  %v6958_v2 = vsel %vm10822_vm1, %v8648_v11, %v6957_v63 }
 0x3e2   : > { %v6923_v37 = vsel %vm10822_vm1, %v8643_v4, %v6922_v13 }
 0x3e3   : > { %v8662_v25 = vcombine.low %v6923_v37, %v6926_v60  ;;  %v6961_v13 = vsel %vm10822_vm1, %v6959_v3, %v6960_v20 }
 0x3e6   : > { %9607 = vmatmul.mubr.msk.bf16.gmra.mxu0 %vm1165_vm10, %v13117_v52  ;;  %9573 = vmatmul.mubr.msk.bf16.gmra.mxu1 %vm1165_vm10, %v12981_v40  ;;  %v8663_v40 = vcombine.low %v6930_v0, %v6933_v47  ;;  %v13268_v47 = vcombine.low %v6958_v2, %v6961_v13 }
 0x3e7   : > { %9610 = vmatprep.mubr.msk.bf16.mxu0 %vm1165_vm10, %v8608_v15  ;;  %9576 = vmatprep.mubr.msk.bf16.mxu1 %vm1165_vm10, %v13117_v52  ;;  %v6946_v52 = vrot.slane %v14572_v42, 5 }
 0x3e9   : > { %v6947_v38 = vsel %vm10822_vm1, %v6945_v53, %v6946_v52 }
 0x3ea   : > { %v13242_v33 = vcombine.low %v6944_v41, %v6947_v38 }
 0x3ee   : > { %9611 = vmatmul.mubr.msk.bf16.gmra.mxu0 %vm1165_vm10, %v8626_v9  ;;  %9577 = vmatmul.mubr.msk.bf16.gmra.mxu1 %vm1165_vm10, %v8608_v15  ;;  %v8647_v15 = vrot.slane %v6852_v48, 9 }
 0x3ef   : > { %9650 = vmatprep.mubr.msk.bf16.mxu0 %vm1165_vm10, %v8663_v40  ;;  %9616 = vmatprep.mubr.msk.bf16.mxu1 %vm1165_vm10, %v8662_v25 }
 0x3f0   : > { %v6951_v1 = vsel %vm10822_vm1, %v8647_v15, %v6950_v34 }
 0x3f1   : > { %v13262_v58 = vcombine.low %v6951_v1, %v6954_v24 }
 0x3f4   : > { %v9414_v44 = vpop.f32.mrf.mxu1 }
 0x3f5   : > { %v9448_v26 = vpop.f32.mrf.mxu0 }
 0x3f6   : > { %9651 = vmatmul.mubr.msk.bf16.vlgmr.msra.gmra.mxu0 %vm1165_vm10, %v14575_v7  ;;  %9617 = vmatmul.mubr.msk.bf16.vlgmr.msra.gmra.mxu1 %vm1165_vm10, %v8663_v40  ;;  %v13256_v51 = vadd.f32 %v9448_v26, %v9414_v44  ;;  %v5155_v6 = vpop.f32.mrf.mxu1 }
 0x3f7   : > { %9654 = vmatprep.mubr.msk.bf16.mxu0 %vm1165_vm10, %v13242_v33  ;;  %v5327_v35 = vpop.f32.mrf.mxu0  ;;  %9683 = vmatpush3.bf16.msra.mxu1 %v7553_v32 }
 0x3f8   : > { %9620 = vmatprep.mubr.msk.bf16.mxu1 %vm1165_vm10, %v14575_v7  ;;  %v13266_v29 = vadd.f32 %v5327_v35, %v5155_v6  ;;  %v9415_v49 = vpop.f32.mrf.mxu1 }
 0x3f9   : > { %v9449_v39 = vpop.f32.mrf.mxu0 }
 0x3fa   : > { %v13272_v9 = vadd.f32 %v9449_v39, %v9415_v49  ;;  %v5158_v18 = vpop.f32.mrf.mxu1 }
 0x3fb   : > { %v5330_v10 = vpop.f32.mrf.mxu0 }
 0x3fc   : > { %v13276_v14 = vadd.f32 %v5330_v10, %v5158_v18 }
 0x3fe   : > { %v9452_v4 = vpop.f32.mrf.mxu0  ;;  %9655 = vmatmul.mubr.msk.bf16.gmra.mxu0 %vm1165_vm10, %v13262_v58  ;;  %v9418_v21 = vpop.f32.mrf.mxu1  ;;  %9621 = vmatmul.mubr.msk.bf16.gmra.mxu1 %vm1165_vm10, %v13242_v33 }
 0x3ff   : > { %9658 = vmatprep.mubr.msk.bf16.mxu0 %vm1165_vm10, %v13268_v47  ;;  %v13280_v40 = vadd.f32 %v9452_v4, %v9418_v21  ;;  %9624 = vmatprep.mubr.msk.bf16.mxu1 %vm1165_vm10, %v13262_v58 }
 0x400   : > { %v5343_v0 = vpop.f32.mrf.mxu0  ;;  %v5171_v23 = vpop.f32.mrf.mxu1 }
 0x401   : > { %v13284_v42 = vadd.f32 %v5343_v0, %v5171_v23 }
 0x402   : > { %v9453_v12 = vpop.f32.mrf.mxu0  ;;  %v9419_v52 = vpop.f32.mrf.mxu1 }
 0x403   : > { %v13288_v31 = vadd.f32 %v9453_v12, %v9419_v52 }
 0x404   : > { %v5346_v60 = vpop.f32.mrf.mxu0  ;;  %v5174_v53 = vpop.f32.mrf.mxu1 }
 0x405   : > { %v13292_v38 = vadd.f32 %v5346_v60, %v5174_v53 }
 0x406   : > { %v9456_v37 = vpop.f32.mrf.mxu0  ;;  %9659 = vmatmul.mubr.msk.bf16.gmra.mxu0 %vm1165_vm10, %v13005_v19  ;;  %v9422_v22 = vpop.f32.mrf.mxu1  ;;  %9625 = vmatmul.mubr.msk.bf16.gmra.mxu1 %vm1165_vm10, %v13268_v47 }
 0x407   : > { %9662 = vmatprep.mubr.msk.bf16.mxu0 %vm1165_vm10, %v13022_v54  ;;  %v13296_v41 = vadd.f32 %v9456_v37, %v9422_v22  ;;  %9628 = vmatprep.mubr.msk.bf16.mxu1 %vm1165_vm10, %v13005_v19 }
 0x408   : > { %v5359_v25 = vpop.f32.mrf.mxu0  ;;  %v5187_v48 = vpop.f32.mrf.mxu1 }
 0x409   : > { %v13300_v63 = vadd.f32 %v5359_v25, %v5187_v48 }
 0x40a   : > { %v9457_v34 = vpop.f32.mrf.mxu0  ;;  %v9423_v5 = vpop.f32.mrf.mxu1 }
 0x40b   : > { %v13304_v36 = vadd.f32 %v9457_v34, %v9423_v5 }
 0x40c   : > { %v5362_v16 = vpop.f32.mrf.mxu0  ;;  %v5190_v26 = vpop.f32.mrf.mxu1 }
 0x40d   : > { %v13308_v20 = vadd.f32 %v5362_v16, %v5190_v26 }
 0x40e   : > { %v9460_v28 = vpop.f32.mrf.mxu0  ;;  %9663 = vmatmul.mubr.msk.bf16.gmra.mxu0 %vm1165_vm10, %v13029_v8  ;;  %v9426_v15 = vpop.f32.mrf.mxu1  ;;  %9629 = vmatmul.mubr.msk.bf16.gmra.mxu1 %vm1165_vm10, %v13022_v54 }
 0x40f   : > { %9666 = vmatprep.mubr.msk.bf16.mxu0 %vm1165_vm10, %v13037_v46  ;;  %v13312_v32 = vadd.f32 %v9460_v28, %v9426_v15  ;;  %9632 = vmatprep.mubr.msk.bf16.mxu1 %vm1165_vm10, %v13029_v8 }
 0x410   : > { %v5375_v56 = vpop.f32.mrf.mxu0  ;;  %v5203_v35 = vpop.f32.mrf.mxu1 }
 0x411   : > { %v13316_v3 = vadd.f32 %v5375_v56, %v5203_v35 }
 0x412   : > { %v9461_v27 = vpop.f32.mrf.mxu0  ;;  %v9427_v24 = vpop.f32.mrf.mxu1 }
 0x413   : > { %v13320_v39 = vadd.f32 %v9461_v27, %v9427_v24 }
 0x414   : > { %v5378_v11 = vpop.f32.mrf.mxu0  ;;  %v5206_v13 = vpop.f32.mrf.mxu1 }
 0x415   : > { %v13324_v6 = vadd.f32 %v5378_v11, %v5206_v13 }
 0x416   : > { %v9464_v44 = vpop.f32.mrf.mxu0  ;;  %9667 = vmatmul.mubr.msk.bf16.gmra.mxu0 %vm1165_vm10, %v13051_v57  ;;  %v9430_v10 = vpop.f32.mrf.mxu1  ;;  %9633 = vmatmul.mubr.msk.bf16.gmra.mxu1 %vm1165_vm10, %v13037_v46 }
 0x417   : > { %9670 = vmatprep.mubr.msk.bf16.mxu0 %vm1165_vm10, %v13060_v61  ;;  %v13328_v49 = vadd.f32 %v9464_v44, %v9430_v10  ;;  %9636 = vmatprep.mubr.msk.bf16.mxu1 %vm1165_vm10, %v13051_v57 }
 0x418   : > { %v5391_v1 = vpop.f32.mrf.mxu0  ;;  %v5219_v4 = vpop.f32.mrf.mxu1 }
 0x419   : > { %v13332_v0 = vadd.f32 %v5391_v1, %v5219_v4 }
 0x41a   : > { %v9465_v2 = vpop.f32.mrf.mxu0  ;;  %v9431_v21 = vpop.f32.mrf.mxu1 }
 0x41b   : > { %v13336_v23 = vadd.f32 %v9465_v2, %v9431_v21 }
 0x41c   : > { %v5394_v18 = vpop.f32.mrf.mxu0  ;;  %v5222_v60 = vpop.f32.mrf.mxu1 }
 0x41d   : > { %v13340_v37 = vadd.f32 %v5394_v18, %v5222_v60 }
 0x41e   : > { %v9468_v12 = vpop.f32.mrf.mxu0  ;;  %9671 = vmatmul.mubr.msk.bf16.gmra.mxu0 %vm1165_vm10, %v13081_v50  ;;  %v9434_v53 = vpop.f32.mrf.mxu1  ;;  %9637 = vmatmul.mubr.msk.bf16.gmra.mxu1 %vm1165_vm10, %v13060_v61 }
 0x41f   : > { %9674 = vmatprep.mubr.msk.bf16.mxu0 %vm1165_vm10, %v13085_v43  ;;  %v13344_v22 = vadd.f32 %v9468_v12, %v9434_v53  ;;  %9640 = vmatprep.mubr.msk.bf16.mxu1 %vm1165_vm10, %v13081_v50 }
 0x420   : > { %v5407_v52 = vpop.f32.mrf.mxu0  ;;  %v5235_v34 = vpop.f32.mrf.mxu1 }
 0x421   : > { %v13348_v16 = vadd.f32 %v5407_v52, %v5235_v34 }
 0x422   : > { %v9469_v25 = vpop.f32.mrf.mxu0  ;;  %v9435_v5 = vpop.f32.mrf.mxu1 }
 0x423   : > { %v13352_v26 = vadd.f32 %v9469_v25, %v9435_v5 }
 0x424   : > { %v5410_v48 = vpop.f32.mrf.mxu0  ;;  %v5238_v56 = vpop.f32.mrf.mxu1 }
 0x425   : > { %v13356_v27 = vadd.f32 %v5410_v48, %v5238_v56 }
 0x426   : > { %v9472_v28 = vpop.f32.mrf.mxu0  ;;  %9675 = vmatmul.mubr.msk.bf16.gmra.mxu0 %vm1165_vm10, %v13098_v59  ;;  %v9438_v35 = vpop.f32.mrf.mxu1  ;;  %9641 = vmatmul.mubr.msk.bf16.gmra.mxu1 %vm1165_vm10, %v13085_v43 }
 0x427   : > { %9678 = vmatprep.mubr.msk.bf16.mxu0 %vm1165_vm10, %v13110_v55  ;;  %v13360_v24 = vadd.f32 %v9472_v28, %v9438_v35  ;;  %9644 = vmatprep.mubr.msk.bf16.mxu1 %vm1165_vm10, %v13098_v59 }
 0x428   : > { %v5423_v15 = vpop.f32.mrf.mxu0  ;;  %v5251_v44 = vpop.f32.mrf.mxu1 }
 0x429   : > { %v13364_v1 = vadd.f32 %v5423_v15, %v5251_v44 }
 0x42a   : > { %v9473_v11 = vpop.f32.mrf.mxu0  ;;  %v9439_v10 = vpop.f32.mrf.mxu1 }
 0x42b   : > { %v13368_v4 = vadd.f32 %v9473_v11, %v9439_v10 }
 0x42c   : > { %v5426_v13 = vpop.f32.mrf.mxu0  ;;  %v5254_v18 = vpop.f32.mrf.mxu1 }
 0x42d   : > { %v13370_v12 = vadd.f32 %v5426_v13, %v5254_v18 }
 0x42e   : > { %v9476_v2 = vpop.f32.mrf.mxu0  ;;  %9679 = vmatmul.mubr.msk.bf16.gmra.mxu0 %vm1165_vm10, %v13123_v45  ;;  %v9442_v60 = vpop.f32.mrf.mxu1  ;;  %9645 = vmatmul.mubr.msk.bf16.gmra.mxu1 %vm1165_vm10, %v13110_v55 }
 0x42f   : > { %v13374_v53 = vadd.f32 %v9476_v2, %v9442_v60  ;;  %9684 = vmatprep.mubr.msk.bf16.mxu1 %vm1165_vm10, %v14575_v7 }
 0x430   : > { %v5439_v21 = vpop.f32.mrf.mxu0  ;;  %v5267_v25 = vpop.f32.mrf.mxu1 }
 0x431   : > { %v13378_v48 = vadd.f32 %v5439_v21, %v5267_v25 }
 0x432   : > { %v9477_v52 = vpop.f32.mrf.mxu0  ;;  %v9443_v5 = vpop.f32.mrf.mxu1 }
 0x433   : > { %v13380_v56 = vadd.f32 %v9477_v52, %v9443_v5 }
 0x434   : > { %v5442_v34 = vpop.f32.mrf.mxu0  ;;  %v5270_v15 = vpop.f32.mrf.mxu1 }
 0x435   : > { %v13382_v11 = vadd.f32 %v5442_v34, %v5270_v15 }
 0x436   : > { %v9516_v28 = vpop.f32.mrf.mxu0  ;;  %v9482_v44 = vpop.f32.mrf.mxu1  ;;  %9685 = vmatmul.mubr.msk.bf16.vlgmr.msra.gmra.mxu1 %vm1165_vm10, %v13242_v33 }
 0x437   : > { %v5630_v10 = vadd.f32 %v9482_v44, %v13256_v51  ;;  %9688 = vmatprep.mubr.msk.bf16.mxu1 %vm1165_vm10, %v13262_v58 }
 0x438   : > { %v6281_v35 = vpop.f32.mrf.mxu0  ;;  %v5501_v7 = vpop.f32.mrf.mxu1 }
 0x439   : > { %v13389_v18 = vadd.f32 %v9516_v28, %v5630_v10  ;;  %v5628_v21 = vadd.f32 %v5501_v7, %v13266_v29 }
 0x43a   : > { %v9517_v13 = vpop.f32.mrf.mxu0  ;;  %v9483_v60 = vpop.f32.mrf.mxu1 }
 0x43b   : > { %v13392_v25 = vadd.f32 %v6281_v35, %v5628_v21  ;;  %v5631_v34 = vadd.f32 %v9483_v60, %v13272_v9 }
 0x43c   : > { %v6284_v2 = vpop.f32.mrf.mxu0  ;;  %v5504_v5 = vpop.f32.mrf.mxu1 }
 0x43d   : > { %v13395_v15 = vadd.f32 %v9517_v13, %v5631_v34  ;;  %v5629_v51 = vadd.f32 %v5504_v5, %v13276_v14 }
 0x43e   : > { %v9520_v52 = vpop.f32.mrf.mxu0  ;;  %v9486_v44 = vpop.f32.mrf.mxu1  ;;  %9689 = vmatmul.mubr.msk.bf16.gmra.mxu1 %vm1165_vm10, %v13268_v47 }
 0x43f   : > { %v13400_v28 = vadd.f32 %v6284_v2, %v5629_v51  ;;  %v5634_v29 = vadd.f32 %v9486_v44, %v13280_v40  ;;  %9692 = vmatprep.mubr.msk.bf16.mxu1 %vm1165_vm10, %v13005_v19 }
 0x440   : > { %v6297_v33 = vpop.f32.mrf.mxu0  ;;  %v5517_v35 = vpop.f32.mrf.mxu1 }
 0x441   : > { %v13405_v10 = vadd.f32 %v9520_v52, %v5634_v29  ;;  %v5632_v13 = vadd.f32 %v5517_v35, %v13284_v42 }
 0x442   : > { %v9521_v58 = vpop.f32.mrf.mxu0  ;;  %v9487_v7 = vpop.f32.mrf.mxu1 }
 0x443   : > { %v13408_v21 = vadd.f32 %v6297_v33, %v5632_v13  ;;  %v5635_v47 = vadd.f32 %v9487_v7, %v13288_v31 }
 0x444   : > { %v6300_v9 = vpop.f32.mrf.mxu0  ;;  %v5520_v60 = vpop.f32.mrf.mxu1 }
 0x445   : > { %v13411_v34 = vadd.f32 %v9521_v58, %v5635_v47  ;;  %v5633_v40 = vadd.f32 %v5520_v60, %v13292_v38 }
 0x446   : > { %v9524_v14 = vpop.f32.mrf.mxu0  ;;  %v9490_v5 = vpop.f32.mrf.mxu1  ;;  %9693 = vmatmul.mubr.msk.bf16.gmra.mxu1 %vm1165_vm10, %v13022_v54 }
 0x447   : > { %v13416_v52 = vadd.f32 %v6300_v9, %v5633_v40  ;;  %v5638_v42 = vadd.f32 %v9490_v5, %v13296_v41  ;;  %9696 = vmatprep.mubr.msk.bf16.mxu1 %vm1165_vm10, %v13029_v8 }
 0x448   : > { %v6313_v2 = vpop.f32.mrf.mxu0  ;;  %v5533_v33 = vpop.f32.mrf.mxu1 }
 0x449   : > { %v13421_v51 = vadd.f32 %v9524_v14, %v5638_v42  ;;  %v5636_v44 = vadd.f32 %v5533_v33, %v13300_v63 }
 0x44a   : > { %v9525_v19 = vpop.f32.mrf.mxu0  ;;  %v9491_v58 = vpop.f32.mrf.mxu1 }
 0x44b   : > { %v13424_v29 = vadd.f32 %v6313_v2, %v5636_v44  ;;  %v5639_v54 = vadd.f32 %v9491_v58, %v13304_v36 }
 0x44c   : > { %v6316_v31 = vpop.f32.mrf.mxu0  ;;  %v5536_v35 = vpop.f32.mrf.mxu1 }
 0x44d   : > { %v13427_v13 = vadd.f32 %v9525_v19, %v5639_v54  ;;  %v5637_v41 = vadd.f32 %v5536_v35, %v13308_v20 }
 0x44e   : > { %v9528_v38 = vpop.f32.mrf.mxu0  ;;  %v9494_v7 = vpop.f32.mrf.mxu1  ;;  %9697 = vmatmul.mubr.msk.bf16.gmra.mxu1 %vm1165_vm10, %v13037_v46 }
 0x44f   : > { %v13432_v14 = vadd.f32 %v6316_v31, %v5637_v41  ;;  %v5642_v63 = vadd.f32 %v9494_v7, %v13312_v32  ;;  %9700 = vmatprep.mubr.msk.bf16.mxu1 %vm1165_vm10, %v13051_v57 }
 0x450   : > { %v6329_v9 = vpop.f32.mrf.mxu0  ;;  %v5549_v47 = vpop.f32.mrf.mxu1 }
 0x451   : > { %v13437_v60 = vadd.f32 %v9528_v38, %v5642_v63  ;;  %v5640_v2 = vadd.f32 %v5549_v47, %v13316_v3 }
 0x452   : > { %v9529_v8 = vpop.f32.mrf.mxu0  ;;  %v9495_v40 = vpop.f32.mrf.mxu1 }
 0x453   : > { %v13440_v5 = vadd.f32 %v6329_v9, %v5640_v2  ;;  %v5643_v46 = vadd.f32 %v9495_v40, %v13320_v39 }
 0x454   : > { %v6332_v36 = vpop.f32.mrf.mxu0  ;;  %v5552_v19 = vpop.f32.mrf.mxu1 }
 0x455   : > { %v13443_v33 = vadd.f32 %v9529_v8, %v5643_v46  ;;  %v5641_v32 = vadd.f32 %v5552_v19, %v13324_v6 }
 0x456   : > { %v9532_v20 = vpop.f32.mrf.mxu0  ;;  %v9498_v31 = vpop.f32.mrf.mxu1  ;;  %9701 = vmatmul.mubr.msk.bf16.gmra.mxu1 %vm1165_vm10, %v13060_v61 }
 0x457   : > { %v13448_v44 = vadd.f32 %v6332_v36, %v5641_v32  ;;  %v5646_v3 = vadd.f32 %v9498_v31, %v13328_v49  ;;  %9704 = vmatprep.mubr.msk.bf16.mxu1 %vm1165_vm10, %v13081_v50 }
 0x458   : > { %v6345_v42 = vpop.f32.mrf.mxu0  ;;  %v5565_v58 = vpop.f32.mrf.mxu1 }
 0x459   : > { %v13453_v38 = vadd.f32 %v9532_v20, %v5646_v3  ;;  %v5644_v54 = vadd.f32 %v5565_v58, %v13332_v0 }
 0x45a   : > { %v9533_v57 = vpop.f32.mrf.mxu0  ;;  %v9499_v35 = vpop.f32.mrf.mxu1 }
 0x45b   : > { %v13456_v9 = vadd.f32 %v6345_v42, %v5644_v54  ;;  %v5647_v61 = vadd.f32 %v9499_v35, %v13336_v23 }
 0x45c   : > { %v6348_v39 = vpop.f32.mrf.mxu0  ;;  %v5568_v41 = vpop.f32.mrf.mxu1 }
 0x45d   : > { %v13459_v8 = vadd.f32 %v9533_v57, %v5647_v61  ;;  %v5645_v49 = vadd.f32 %v5568_v41, %v13340_v37 }
 0x45e   : > { %v9536_v6 = vpop.f32.mrf.mxu0  ;;  %v9502_v63 = vpop.f32.mrf.mxu1  ;;  %9705 = vmatmul.mubr.msk.bf16.gmra.mxu1 %vm1165_vm10, %v13085_v43 }
 0x45f   : > { %v13464_v47 = vadd.f32 %v6348_v39, %v5645_v49  ;;  %v5650_v0 = vadd.f32 %v9502_v63, %v13344_v22  ;;  %9708 = vmatprep.mubr.msk.bf16.mxu1 %vm1165_vm10, %v13098_v59 }
 0x460   : > { %v6361_v7 = vpop.f32.mrf.mxu0  ;;  %v5581_v36 = vpop.f32.mrf.mxu1 }
 0x461   : > { %v13469_v2 = vadd.f32 %v9536_v6, %v5650_v0  ;;  %v5648_v40 = vadd.f32 %v5581_v36, %v13348_v16 }
 0x462   : > { %v9537_v50 = vpop.f32.mrf.mxu0  ;;  %v9503_v20 = vpop.f32.mrf.mxu1 }
 0x463   : > { %v13472_v46 = vadd.f32 %v6361_v7, %v5648_v40  ;;  %v5651_v43 = vadd.f32 %v9503_v20, %v13352_v26 }
 0x464   : > { %v6364_v23 = vpop.f32.mrf.mxu0  ;;  %v5584_v19 = vpop.f32.mrf.mxu1 }
 0x465   : > { %v13475_v32 = vadd.f32 %v9537_v50, %v5651_v43  ;;  %v5649_v22 = vadd.f32 %v5584_v19, %v13356_v27 }
 0x466   : > { %v9540_v37 = vpop.f32.mrf.mxu0  ;;  %v9506_v31 = vpop.f32.mrf.mxu1  ;;  %9709 = vmatmul.mubr.msk.bf16.gmra.mxu1 %vm1165_vm10, %v13110_v55 }
 0x467   : > { %v13480_v57 = vadd.f32 %v6364_v23, %v5649_v22  ;;  %v5654_v16 = vadd.f32 %v9506_v31, %v13360_v24  ;;  %9712 = vmatprep.mubr.msk.bf16.mxu1 %vm1165_vm10, %v13123_v45 }
 0x468   : > { %v6377_v42 = vpop.f32.mrf.mxu0  ;;  %v5597_v3 = vpop.f32.mrf.mxu1 }
 0x469   : > { %v13485_v58 = vadd.f32 %v9540_v37, %v5654_v16  ;;  %v5652_v39 = vadd.f32 %v5597_v3, %v13364_v1 }
 0x46a   : > { %v9541_v59 = vpop.f32.mrf.mxu0  ;;  %v9507_v54 = vpop.f32.mrf.mxu1 }
 0x46b   : > { %v13488_v35 = vadd.f32 %v6377_v42, %v5652_v39  ;;  %v5655_v55 = vadd.f32 %v9507_v54, %v13368_v4 }
 0x46c   : > { %v6380_v26 = vpop.f32.mrf.mxu0  ;;  %v5600_v6 = vpop.f32.mrf.mxu1 }
 0x46d   : > { %v13491_v41 = vadd.f32 %v9541_v59, %v5655_v55  ;;  %v5653_v24 = vadd.f32 %v5600_v6, %v13370_v12 }
 0x46e   : > { %v9544_v27 = vpop.f32.mrf.mxu0  ;;  %v9510_v7 = vpop.f32.mrf.mxu1  ;;  %9713 = vmatmul.mubr.msk.bf16.gmra.mxu1 %vm1165_vm10, %v8713_v62 }
 0x46f   : > { %v13498_v1 = vadd.f32 %v6380_v26, %v5653_v24  ;;  %v5658_v49 = vadd.f32 %v9510_v7, %v13374_v53 }
 0x470   : > { %v6393_v61 = vpop.f32.mrf.mxu0  ;;  %v5613_v63 = vpop.f32.mrf.mxu1 }
 0x471   : > { %v13501_v4 = vadd.f32 %v9544_v27, %v5658_v49  ;;  %v5656_v0 = vadd.f32 %v5613_v63, %v13378_v48 }
 0x472   : > { %v9545_v45 = vpop.f32.mrf.mxu0  ;;  %v9511_v36 = vpop.f32.mrf.mxu1 }
 0x473   : > { %v13504_v12 = vadd.f32 %v6393_v61, %v5656_v0  ;;  %v5659_v40 = vadd.f32 %v9511_v36, %v13380_v56 }
 0x474   : > { %v6396_v50 = vpop.f32.mrf.mxu0  ;;  %v5616_v17 = vpop.f32.mrf.mxu1 }
 0x475   : > { %v13507_v62 = vadd.f32 %v9545_v45, %v5659_v40  ;;  %v5657_v20 = vadd.f32 %v5616_v17, %v13382_v11 }
 0x476   : > { %v9584_v23 = vpop.f32.mrf.mxu0  ;;  %v9550_v37 = vpop.f32.mrf.mxu1 }
 0x477   : > { %v13510_v43 = vadd.f32 %v6396_v50, %v5657_v20  ;;  %v6614_v19 = vadd.f32 %v9550_v37, %v13389_v18 }
 0x478   : > { %v6689_v30 = vpop.f32.mrf.mxu0  ;;  %v6485_v42 = vpop.f32.mrf.mxu1 }
 0x479   : > { %v13515_v22 = vadd.f32 %v9584_v23, %v6614_v19  ;;  %v6612_v31 = vadd.f32 %v6485_v42, %v13392_v25 }
 0x47a   : > { %v9585_v53 = vpop.f32.mrf.mxu0  ;;  %v9551_v56 = vpop.f32.mrf.mxu1 }
 0x47b   : > { %v13518_v16 = vadd.f32 %v6689_v30, %v6612_v31  ;;  %v6615_v3 = vadd.f32 %v9551_v56, %v13395_v15 }
 0x47c   : > { %v13513_v48 = vpop.f32.mrf.mxu0  ;;  %v6488_v11 = vpop.f32.mrf.mxu1 }
 0x47d   : > { %v13523_v39 = vadd.f32 %v9585_v53, %v6615_v3  ;;  %v13526_v18 = vadd.f32 %v6488_v11, %v13400_v28 }
 0x47e   : > { %v9588_v59 = vpop.f32.mrf.mxu0  ;;  %v9554_v54 = vpop.f32.mrf.mxu1 }
 0x47f   : > { %v6618_v55 = vadd.f32 %v9554_v54, %v13405_v10 }
 0x480   : > { %v13521_v26 = vpop.f32.mrf.mxu0  ;;  %v6501_v6 = vpop.f32.mrf.mxu1 }
 0x481   : > { %v13531_v61 = vadd.f32 %v9588_v59, %v6618_v55  ;;  %v13534_v24 = vadd.f32 %v6501_v6, %v13408_v21 }
 0x482   : > { %v9589_v27 = vpop.f32.mrf.mxu0  ;;  %v9555_v15 = vpop.f32.mrf.mxu1 }
 0x483   : > { %v6619_v45 = vadd.f32 %v9555_v15, %v13411_v34 }
 0x484   : > { %v13529_v25 = vpop.f32.mrf.mxu0  ;;  %v6504_v49 = vpop.f32.mrf.mxu1 }
 0x485   : > { %v13539_v28 = vadd.f32 %v9589_v27, %v6619_v45  ;;  %v13542_v50 = vadd.f32 %v6504_v49, %v13416_v52 }
 0x486   : > { %v9592_v7 = vpop.f32.mrf.mxu0  ;;  %v9558_v10 = vpop.f32.mrf.mxu1 }
 0x487   : > { %v6622_v36 = vadd.f32 %v9558_v10, %v13421_v51 }
 0x488   : > { %v13537_v63 = vpop.f32.mrf.mxu0  ;;  %v6517_v23 = vpop.f32.mrf.mxu1 }
 0x489   : > { %v13547_v21 = vadd.f32 %v9592_v7, %v6622_v36  ;;  %v13550_v17 = vadd.f32 %v6517_v23, %v13424_v29 }
 0x48a   : > { %v9593_v0 = vpop.f32.mrf.mxu0  ;;  %v9559_v34 = vpop.f32.mrf.mxu1 }
 0x48b   : > { %v6623_v20 = vadd.f32 %v9559_v34, %v13427_v13 }
 0x48c   : > { %v13545_v40 = vpop.f32.mrf.mxu0  ;;  %v6520_v37 = vpop.f32.mrf.mxu1 }
 0x48d   : > { %v13555_v52 = vadd.f32 %v9593_v0, %v6623_v20  ;;  %v13558_v19 = vadd.f32 %v6520_v37, %v13432_v14 }
 0x48e   : > { %v9596_v30 = vpop.f32.mrf.mxu0  ;;  %v9562_v51 = vpop.f32.mrf.mxu1 }
 0x48f   : > { %v6626_v31 = vadd.f32 %v9562_v51, %v13437_v60 }
 0x490   : > { %v13553_v53 = vpop.f32.mrf.mxu0  ;;  %v6533_v56 = vpop.f32.mrf.mxu1 }
 0x491   : > { %v13563_v29 = vadd.f32 %v9596_v30, %v6626_v31  ;;  %v13566_v3 = vadd.f32 %v6533_v56, %v13440_v5 }
 0x492   : > { %v9597_v42 = vpop.f32.mrf.mxu0  ;;  %v9563_v13 = vpop.f32.mrf.mxu1 }
 0x493   : > { %v6627_v54 = vadd.f32 %v9563_v13, %v13443_v33 }
 0x494   : > { %v13561_v59 = vpop.f32.mrf.mxu0  ;;  %v6536_v27 = vpop.f32.mrf.mxu1 }
 0x495   : > { %v13571_v14 = vadd.f32 %v9597_v42, %v6627_v54  ;;  %v13574_v6 = vadd.f32 %v6536_v27, %v13448_v44 }
 0x496   : > { %v9600_v11 = vpop.f32.mrf.mxu0  ;;  %v9566_v60 = vpop.f32.mrf.mxu1 }
 0x497   : > { %v6630_v7 = vadd.f32 %v9566_v60, %v13453_v38 }
 0x498   : > { %v13569_v55 = vpop.f32.mrf.mxu0  ;;  %v6549_v45 = vpop.f32.mrf.mxu1 }
 0x499   : > { %v13579_v5 = vadd.f32 %v9600_v11, %v6630_v7  ;;  %v13582_v10 = vadd.f32 %v6549_v45, %v13456_v9 }
 0x49a   : > { %v9601_v15 = vpop.f32.mrf.mxu0  ;;  %v9567_v33 = vpop.f32.mrf.mxu1 }
 0x49b   : > { %v6631_v36 = vadd.f32 %v9567_v33, %v13459_v8 }
 0x49c   : > { %v13577_v49 = vpop.f32.mrf.mxu0  ;;  %v6552_v23 = vpop.f32.mrf.mxu1 }
 0x49d   : > { %v13587_v44 = vadd.f32 %v9601_v15, %v6631_v36  ;;  %v13590_v30 = vadd.f32 %v6552_v23, %v13464_v47 }
 0x49e   : > { %v9604_v0 = vpop.f32.mrf.mxu0  ;;  %v9570_v38 = vpop.f32.mrf.mxu1 }
 0x49f   : > { %v6634_v37 = vadd.f32 %v9570_v38, %v13469_v2 }
 0x4a0   : > { %v13585_v34 = vpop.f32.mrf.mxu0  ;;  %v6565_v51 = vpop.f32.mrf.mxu1 }
 0x4a1   : > { %14577 = vst [vmem:[#allocation28_spill] sm:$0xff] %v13585_v34  ;;  %v13595_v9 = vadd.f32 %v9604_v0, %v6634_v37  ;;  %v13598_v31 = vadd.f32 %v6565_v51, %v13472_v46 }
 0x4a2   : > { %v9605_v20 = vpop.f32.mrf.mxu0  ;;  %v9571_v8 = vpop.f32.mrf.mxu1 }
 0x4a3   : > { %14579 = vst [vmem:[#allocation29_spill] sm:$0xff] %v13598_v31  ;;  %v6635_v13 = vadd.f32 %v9571_v8, %v13475_v32 }
 0x4a4   : > { %v13593_v42 = vpop.f32.mrf.mxu0  ;;  %v6568_v11 = vpop.f32.mrf.mxu1 }
 0x4a5   : > { %14578 = vst [vmem:[#allocation26_spill] sm:$0xff] %v13593_v42  ;;  %v13603_v47 = vadd.f32 %v9605_v20, %v6635_v13  ;;  %v13606_v27 = vadd.f32 %v6568_v11, %v13480_v57 }
 0x4a6   : > { %v9608_v56 = vpop.f32.mrf.mxu0  ;;  %v9574_v2 = vpop.f32.mrf.mxu1 }
 0x4a7   : > { %14581 = vst [vmem:[#allocation43_spill] sm:$0xff] %v13606_v27  ;;  %v6638_v15 = vadd.f32 %v9574_v2, %v13485_v58 }
 0x4a8   : > { %v13601_v54 = vpop.f32.mrf.mxu0  ;;  %v6581_v7 = vpop.f32.mrf.mxu1 }
 0x4a9   : > { %14580 = vst [vmem:[#allocation18_spill] sm:$0xff] %v13601_v54  ;;  %v13611_v46 = vadd.f32 %v9608_v56, %v6638_v15  ;;  %v13614_v33 = vadd.f32 %v6581_v7, %v13488_v35 }
 0x4aa   : > { %v9609_v60 = vpop.f32.mrf.mxu0  ;;  %v9575_v32 = vpop.f32.mrf.mxu1 }
 0x4ab   : > { %14583 = vst [vmem:[#allocation31_spill] sm:$0xff] %v13614_v33  ;;  %v6639_v36 = vadd.f32 %v9575_v32, %v13491_v41 }
 0x4ac   : > { %v13609_v45 = vpop.f32.mrf.mxu0  ;;  %v6584_v23 = vpop.f32.mrf.mxu1 }
 0x4ad   : > { %14582 = vst [vmem:[#allocation48_spill] sm:$0xff] %v13609_v45  ;;  %v13619_v57 = vadd.f32 %v9609_v60, %v6639_v36  ;;  %v13622_v20 = vadd.f32 %v6584_v23, %v13498_v1 }
 0x4ae   : > { %v9612_v0 = vpop.f32.mrf.mxu0  ;;  %v9578_v58 = vpop.f32.mrf.mxu1 }
 0x4af   : > { %14585 = vst [vmem:[#allocation19_spill] sm:$0xff] %v13622_v20  ;;  %v6642_v51 = vadd.f32 %v9578_v58, %v13501_v4 }
 0x4b0   : > { %v13617_v38 = vpop.f32.mrf.mxu0  ;;  %v6597_v8 = vpop.f32.mrf.mxu1 }
 0x4b1   : > { %14584 = vst [vmem:[#allocation45_spill] sm:$0xff] %v13617_v38  ;;  %v13625_v56 = vadd.f32 %v9612_v0, %v6642_v51  ;;  %v13628_v35 = vadd.f32 %v6597_v8, %v13504_v12 }
 0x4b2   : > { %v9613_v37 = vpop.f32.mrf.mxu0  ;;  %v9579_v13 = vpop.f32.mrf.mxu1 }
 0x4b3   : > { %14586 = vst [vmem:[#allocation50_spill] sm:$0xff] %v13628_v35  ;;  %v6643_v11 = vadd.f32 %v9579_v13, %v13507_v62 }
 0x4b4   : > { %v13630_v41 = vpop.f32.mrf.mxu0  ;;  %v6600_v2 = vpop.f32.mrf.mxu1 }
 0x4b5   : > { %14587 = vst [vmem:[#allocation13_spill] sm:$0xff] %v13630_v41  ;;  %v13633_v60 = vadd.f32 %v9613_v37, %v6643_v11  ;;  %v13636_v1 = vadd.f32 %v6600_v2, %v13510_v43 }
 0x4b6   : > { %v9618_v15 = vpop.f32.mrf.mxu1  ;;  %v13638_v7 = vpop.f32.mrf.mxu0 }
 0x4b7   : > { %14588 = vst [vmem:[#allocation12_spill] sm:$0xff] %v13636_v1  ;;  %v13641_v4 = vadd.f32 %v9618_v15, %v13515_v22 }
 0x4b8   : > { %v7181_v32 = vpop.f32.mrf.mxu1  ;;  %v13646_v0 = vpop.f32.mrf.mxu0 }
 0x4b9   : > { %v13644_v12 = vadd.f32 %v7181_v32, %v13518_v16 }
 0x4ba   : > { %v9619_v36 = vpop.f32.mrf.mxu1  ;;  %v13651_v58 = vpop.f32.mrf.mxu0 }
 0x4bb   : > { %v13649_v62 = vadd.f32 %v9619_v36, %v13523_v39 }
 0x4bc   : > { %v7184_v23 = vpop.f32.mrf.mxu1  ;;  %v13656_v22 = vpop.f32.mrf.mxu0 }
 0x4be   : > { %v9622_v43 = vpop.f32.mrf.mxu1  ;;  %v13663_v11 = vpop.f32.mrf.mxu0 }
 0x4bf   : > { %v13654_v37 = vadd.f32 %v9622_v43, %v13531_v61 }
 0x4c0   : > { %v7197_v51 = vpop.f32.mrf.mxu1  ;;  %v7401_v32 = vpop.f32.mrf.mxu0 }
 0x4c2   : > { %v9623_v8 = vpop.f32.mrf.mxu1  ;;  %v13675_v41 = vpop.f32.mrf.mxu0 }
 0x4c3   : > { %v13659_v16 = vadd.f32 %v9623_v8, %v13539_v28 }
 0x4c4   : > { %v13661_v13 = vpop.f32.mrf.mxu1  ;;  %v13682_v38 = vpop.f32.mrf.mxu0 }
 0x4c6   : > { %v9626_v39 = vpop.f32.mrf.mxu1 }
 0x4c7   : > { %v13666_v2 = vadd.f32 %v9626_v39, %v13547_v21 }
 0x4c8   : > { %v13668_v15 = vpop.f32.mrf.mxu1 }
 0x4ca   : > { %v9627_v61 = vpop.f32.mrf.mxu1 }
 0x4cb   : > { %v13671_v36 = vadd.f32 %v9627_v61, %v13555_v52  ;;  %v13689_v52 = vpop.f32.mrf.mxu0 }
 0x4cc   : > { %v13673_v43 = vpop.f32.mrf.mxu1 }
 0x4ce   : > { %v9630_v28 = vpop.f32.mrf.mxu1 }
 0x4cf   : > { %v13678_v8 = vadd.f32 %v9630_v28, %v13563_v29  ;;  %v13696_v29 = vpop.f32.mrf.mxu0 }
 0x4d0   : > { %v13680_v1 = vpop.f32.mrf.mxu1 }
 0x4d2   : > { %v9631_v21 = vpop.f32.mrf.mxu1 }
 0x4d3   : > { %v13685_v39 = vadd.f32 %v9631_v21, %v13571_v14  ;;  %v13703_v14 = vpop.f32.mrf.mxu0 }
 0x4d4   : > { %v13687_v35 = vpop.f32.mrf.mxu1 }
 0x4d6   : > { %v9634_v61 = vpop.f32.mrf.mxu1 }
 0x4d7   : > { %v13692_v45 = vadd.f32 %v9634_v61, %v13579_v5  ;;  %v13710_v5 = vpop.f32.mrf.mxu0 }
 0x4d8   : > { %v13694_v20 = vpop.f32.mrf.mxu1 }
 0x4d9   : > { %14589 = vst [vmem:[#allocation32_spill] sm:$0xff] %v13692_v45 }
 0x4da   : > { %v9635_v28 = vpop.f32.mrf.mxu1 }
 0x4db   : > { %v13699_v54 = vadd.f32 %v9635_v28, %v13587_v44  ;;  %v13717_v44 = vpop.f32.mrf.mxu0 }
 0x4dc   : > { %v13701_v33 = vpop.f32.mrf.mxu1 }
 0x4dd   : > { %14590 = vst [vmem:[#allocation30_spill] sm:$0xff] %v13699_v54  ;;  %14591 = vst [vmem:[#allocation33_spill] sm:$0xff] %v13701_v33 }
 0x4de   : > { %v9638_v21 = vpop.f32.mrf.mxu1 }
 0x4df   : > { %v13706_v42 = vadd.f32 %v9638_v21, %v13595_v9  ;;  %v13724_v9 = vpop.f32.mrf.mxu0 }
 0x4e0   : > { %v13708_v27 = vpop.f32.mrf.mxu1 }
 0x4e1   : > { %14592 = vst [vmem:[#allocation20_spill] sm:$0xff] %v13706_v42  ;;  %14593 = vst [vmem:[#allocation47_spill] sm:$0xff] %v13708_v27 }
 0x4e2   : > { %v9639_v61 = vpop.f32.mrf.mxu1 }
 0x4e3   : > { %v13713_v45 = vadd.f32 %v9639_v61, %v13603_v47  ;;  %v13731_v47 = vpop.f32.mrf.mxu0 }
 0x4e4   : > { %v13715_v34 = vpop.f32.mrf.mxu1 }
 0x4e5   : > { %14594 = vst [vmem:[#allocation52_spill] sm:$0xff] %v13713_v45  ;;  %14595 = vst [vmem:[#allocation35_spill] sm:$0xff] %v13715_v34 }
 0x4e6   : > { %v9642_v28 = vpop.f32.mrf.mxu1 }
 0x4e7   : > { %v13720_v54 = vadd.f32 %v9642_v28, %v13611_v46  ;;  %v13738_v46 = vpop.f32.mrf.mxu0 }
 0x4e8   : > { %v13722_v31 = vpop.f32.mrf.mxu1 }
 0x4e9   : > { %14596 = vst [vmem:[#allocation49_spill] sm:$0xff] %v13720_v54  ;;  %14597 = vst [vmem:[#allocation21_spill] sm:$0xff] %v13722_v31 }
 0x4ea   : > { %v9643_v21 = vpop.f32.mrf.mxu1 }
 0x4eb   : > { %v13727_v42 = vadd.f32 %v9643_v21, %v13619_v57  ;;  %v6817_v57 = vadd.f32 %v13513_v48, %v13526_v18  ;;  %v13747_v21 = vpop.f32.mrf.mxu0 }
 0x4ec   : > { %v13729_v27 = vpop.f32.mrf.mxu1 }
 0x4ed   : > { %14598 = vst [vmem:[#allocation54_spill] sm:$0xff] %v13727_v42  ;;  %14599 = vst [vmem:[#allocation36_spill] sm:$0xff] %v13729_v27  ;;  %v7309_v27 = vadd.f32 %v7184_v23, %v6817_v57  ;;  %v13753_v33 = vpop.f32.mrf.mxu0  ;;  %v6821_v23 = vadd.f32 %v13529_v25, %v13542_v50 }
 0x4ee   : > { %v9646_v61 = vpop.f32.mrf.mxu1 }
 0x4ef   : > { %v13734_v45 = vadd.f32 %v9646_v61, %v13625_v56  ;;  %v6820_v56 = vadd.f32 %v13521_v26, %v13534_v24  ;;  %v7513_v48 = vadd.f32 %v13656_v22, %v7309_v27  ;;  %v7515_v26 = vadd.f32 %v13651_v58, %v13649_v62 }
 0x4f0   : > { %v13736_v34 = vpop.f32.mrf.mxu1 }
 0x4f1   : > { %14600 = vst [vmem:[#allocation34_spill] sm:$0xff] %v13734_v45  ;;  %14601 = vst [vmem:[#allocation37_spill] sm:$0xff] %v13736_v34  ;;  %v7512_v45 = vadd.f32 %v13646_v0, %v13644_v12  ;;  %v7312_v34 = vadd.f32 %v7197_v51, %v6820_v56  ;;  %v13768_v51 = vpop.f32.mrf.mxu0 }
 0x4f2   : > { %v9647_v28 = vpop.f32.mrf.mxu1 }
 0x4f3   : > { %v13741_v54 = vadd.f32 %v9647_v28, %v13633_v60  ;;  %v7514_v28 = vadd.f32 %v13638_v7, %v13641_v4  ;;  %v7516_v0 = vadd.f32 %v7401_v32, %v7312_v34  ;;  %v7313_v7 = vadd.f32 %v13661_v13, %v6821_v23  ;;  %v13783_v62 = vpop.f32.mrf.mxu0 }
 0x4f4   : > { %v13743_v31 = vpop.f32.mrf.mxu1  ;;  %v7518_v13 = vadd.f32 %v13663_v11, %v13654_v37 }
 0x4f5   : > { %14602 = vst [vmem:[#allocation51_spill] sm:$0xff] %v13741_v54  ;;  %v7517_v32 = vadd.f32 %v13682_v38, %v7313_v7  ;;  %v13801_v38 = vpop.f32.mrf.mxu0 }
 0x4f6   : > { %v9686_v42 = vpop.f32.mrf.mxu1 }
 0x4f7   : > { %v13764_v24 = vadd.f32 %v9686_v42, %v7514_v28  ;;  %v6824_v42 = vadd.f32 %v13537_v63, %v13550_v17  ;;  %v6825_v63 = vadd.f32 %v13545_v40, %v13558_v19  ;;  %v7519_v28 = vadd.f32 %v13675_v41, %v13659_v16 }
 0x4f8   : > { %v7589_v61 = vpop.f32.mrf.mxu1 }
 0x4f9   : > { %v13758_v18 = vadd.f32 %v7589_v61, %v7512_v45  ;;  %v7751_v34 = vsel %vm1165_vm10, %v13764_v24, 0.0  ;;  %v7316_v56 = vadd.f32 %v13668_v15, %v6824_v42  ;;  %v7317_v40 = vadd.f32 %v13673_v43, %v6825_v63 }
 0x4fa   : > { %v9687_v60 = vpop.f32.mrf.mxu1  ;;  %v7522_v43 = vadd.f32 %v13689_v52, %v13666_v2  ;;  %v6832_v63 = vadd.f32 %v13569_v55, %v13582_v10  ;;  %v6833_v55 = vadd.f32 %v13577_v49, %v13590_v30 }
 0x4fb   : > { %v7748_v27 = vsel %vm1165_vm10, %v13758_v18, 0.0  ;;  %v13773_v45 = vadd.f32 %v9687_v60, %v7515_v26  ;;  %v7520_v26 = vadd.f32 %v13696_v29, %v7316_v56 }
 0x4fc   : > { %v7592_v54 = vpop.f32.mrf.mxu1 }
 0x4fd   : > { %v13766_v12 = vadd.f32 %v7592_v54, %v7513_v48  ;;  %v7753_v61 = vsel %vm1165_vm10, %v13773_v45, 0.0 }
 0x4fe   : > { %v9690_v57 = vpop.f32.mrf.mxu1 }
 0x4ff   : > { %v7749_v25 = vsel %vm1165_vm10, %v13766_v12, 0.0  ;;  %v13795_v48 = vadd.f32 %v9690_v57, %v7518_v13  ;;  %v6828_v57 = vadd.f32 %v13553_v53, %v13566_v3  ;;  %v6829_v53 = vadd.f32 %v13561_v59, %v13574_v6 }
 0x500   : > { %v7750_v50 = vadd.f32 %v7749_v25, %v7748_v27  ;;  %v7605_v4 = vpop.f32.mrf.mxu1  ;;  %v13815_v25 = vpop.f32.mrf.mxu0 }
 0x501   : > { %v13781_v54 = vadd.f32 %v7605_v4, %v7516_v0  ;;  %v7759_v7 = vsel %vm1165_vm10, %v13795_v48, 0.0  ;;  %v7521_v4 = vadd.f32 %v13710_v5, %v7317_v40  ;;  %v7320_v42 = vadd.f32 %v13680_v1, %v6828_v57 }
 0x502   : > { %v7752_v58 = vadd.f32 %v7751_v34, %v7750_v50  ;;  %v9691_v22 = vpop.f32.mrf.mxu1  ;;  %v13833_v5 = vpop.f32.mrf.mxu0  ;;  %v7321_v59 = vadd.f32 %v13687_v35, %v6829_v53  ;;  %v7526_v35 = vadd.f32 %v13717_v44, %v13678_v8 }
 0x503   : > { %v7755_v37 = vsel %vm1165_vm10, %v13781_v54, 0.0  ;;  %v13805_v19 = vadd.f32 %v9691_v22, %v7519_v28  ;;  %v7523_v22 = vadd.f32 %v13703_v14, %v13671_v36  ;;  %v7524_v56 = vadd.f32 %v13724_v9, %v7320_v42 }
 0x504   : > { %v7754_v17 = vadd.f32 %v7753_v61, %v7752_v58  ;;  %v7608_v60 = vpop.f32.mrf.mxu1  ;;  %v7468_v28 = vpop.f32.mrf.mxu0 }
 0x505   : > { %v13799_v11 = vadd.f32 %v7608_v60, %v7517_v32  ;;  %v7761_v34 = vsel %vm1165_vm10, %v13805_v19, 0.0 }
 0x506   : > { %v7756_v15 = vadd.f32 %v7755_v37, %v7754_v17  ;;  %v9694_v23 = vpop.f32.mrf.mxu1 }
 0x507   : > { %v7757_v41 = vsel %vm1165_vm10, %v13799_v11, 0.0  ;;  %v13827_v13 = vadd.f32 %v9694_v23, %v7522_v43  ;;  %v7324_v23 = vadd.f32 %v13694_v20, %v6832_v63  ;;  %v14605_v43 = vld [vmem:[#allocation28_spill] sm:$0xff] }
 0x508   : > { %v7758_v16 = vadd.f32 %v7757_v41, %v7756_v15  ;;  %v7621_v0 = vpop.f32.mrf.mxu1  ;;  %v7525_v15 = vadd.f32 %v13738_v46, %v7321_v59  ;;  %v7527_v41 = vadd.f32 %v13731_v47, %v13685_v39  ;;  %v13863_v46 = vpop.f32.mrf.mxu0  ;;  %v14608_v59 = vld [vmem:[#allocation43_spill] sm:$0xff] }
 0x509   : > { %v13813_v27 = vadd.f32 %v7621_v0, %v7520_v26  ;;  %v7767_v17 = vsel %vm1165_vm10, %v13827_v13, 0.0  ;;  %v7528_v57 = vadd.f32 %v13753_v33, %v7324_v23 }
 0x50a   : > { %v7760_v29 = vadd.f32 %v7759_v7, %v7758_v16  ;;  %v9695_v50 = vpop.f32.mrf.mxu1  ;;  %v14603_v7 = vld [vmem:[#allocation33_spill] sm:$0xff]  ;;  %v7481_v53 = vpop.f32.mrf.mxu0 }
 0x50b   : > { %v7763_v2 = vsel %vm1165_vm10, %v13813_v27, 0.0  ;;  %v13837_v6 = vadd.f32 %v9695_v50, %v7523_v22  ;;  %v7325_v49 = vadd.f32 %v14603_v7, %v6833_v55  ;;  %v14604_v50 = vld [vmem:[#allocation29_spill] sm:$0xff]  ;;  %v14611_v55 = vld [vmem:[#allocation35_spill] sm:$0xff] }
 0x50c   : > { %v7762_v3 = vadd.f32 %v7761_v34, %v7760_v29  ;;  %v7624_v58 = vpop.f32.mrf.mxu1 }
 0x50d   : > { %v13831_v52 = vadd.f32 %v7624_v58, %v7521_v4  ;;  %v7769_v26 = vsel %vm1165_vm10, %v13837_v6, 0.0  ;;  %v6836_v4 = vadd.f32 %v14605_v43, %v14604_v50  ;;  %v14606_v58 = vld [vmem:[#allocation32_spill] sm:$0xff] }
 0x50e   : > { %v7764_v1 = vadd.f32 %v7763_v2, %v7762_v3  ;;  %v9698_v32 = vpop.f32.mrf.mxu1  ;;  %v7530_v22 = vadd.f32 %v13747_v21, %v14606_v58  ;;  %v7529_v2 = vadd.f32 %v13783_v62, %v7325_v49  ;;  %v9677_v62 = vpop.f32.mrf.mxu0  ;;  %v14617_v58 = vld [vmem:[#allocation48_spill] sm:$0xff] }
 0x50f   : > { %v7765_v36 = vsel %vm1165_vm10, %v13831_v52, 0.0  ;;  %v13857_v16 = vadd.f32 %v9698_v32, %v7526_v35 }
 0x510   : > { %v7766_v14 = vadd.f32 %v7765_v36, %v7764_v1  ;;  %v7637_v61 = vpop.f32.mrf.mxu1  ;;  %v14607_v1 = vld [vmem:[#allocation47_spill] sm:$0xff]  ;;  %v14609_v36 = vld [vmem:[#allocation26_spill] sm:$0xff] }
 0x511   : > { %v13845_v60 = vadd.f32 %v7637_v61, %v7524_v56  ;;  %v7775_v42 = vsel %vm1165_vm10, %v13857_v16, 0.0  ;;  %v7328_v32 = vadd.f32 %v14607_v1, %v6836_v4  ;;  %v14615_v4 = vld [vmem:[#allocation21_spill] sm:$0xff] }
 0x512   : > { %v7768_v37 = vadd.f32 %v7767_v17, %v7766_v14  ;;  %v9699_v9 = vpop.f32.mrf.mxu1  ;;  %v6837_v14 = vadd.f32 %v14609_v36, %v14608_v59  ;;  %v14610_v17 = vld [vmem:[#allocation30_spill] sm:$0xff] }
 0x513   : > { %v7771_v8 = vsel %vm1165_vm10, %v13845_v60, 0.0  ;;  %v13867_v30 = vadd.f32 %v9699_v9, %v7527_v41 }
 0x514   : > { %v7770_v10 = vadd.f32 %v7769_v26, %v7768_v37  ;;  %v7640_v40 = vpop.f32.mrf.mxu1  ;;  %v7531_v37 = vadd.f32 %v13768_v51, %v14610_v17  ;;  %v7532_v26 = vadd.f32 %v13815_v25, %v7328_v32  ;;  %v14618_v32 = vld [vmem:[#allocation52_spill] sm:$0xff] }
 0x515   : > { %v13861_v44 = vadd.f32 %v7640_v40, %v7525_v15  ;;  %v7777_v56 = vsel %vm1165_vm10, %v13867_v30, 0.0  ;;  %v14619_v17 = vld [vmem:[#allocation36_spill] sm:$0xff] }
 0x516   : > { %v7772_v20 = vadd.f32 %v7771_v8, %v7770_v10  ;;  %v9702_v0 = vpop.f32.mrf.mxu1  ;;  %v7329_v10 = vadd.f32 %v14611_v55, %v6837_v14  ;;  %v14621_v55 = vld [vmem:[#allocation45_spill] sm:$0xff] }
 0x517   : > { %v7773_v39 = vsel %vm1165_vm10, %v13861_v44, 0.0  ;;  %v13887_v9 = vadd.f32 %v9702_v0, %v7530_v22  ;;  %v14613_v0 = vld [vmem:[#allocation18_spill] sm:$0xff] }
 0x518   : > { %v7774_v47 = vadd.f32 %v7773_v39, %v7772_v20  ;;  %v7653_v29 = vpop.f32.mrf.mxu1  ;;  %v14612_v20 = vld [vmem:[#allocation31_spill] sm:$0xff]  ;;  %v7484_v39 = vpop.f32.mrf.mxu0  ;;  %v7533_v43 = vadd.f32 %v7468_v28, %v7329_v10 }
 0x519   : > { %v13875_v34 = vadd.f32 %v7653_v29, %v7528_v57  ;;  %v6840_v57 = vadd.f32 %v14613_v0, %v14612_v20  ;;  %v7783_v7 = vsel %vm1165_vm10, %v13887_v9, 0.0  ;;  %v14614_v29 = vld [vmem:[#allocation20_spill] sm:$0xff]  ;;  %v14622_v0 = vld [vmem:[#allocation49_spill] sm:$0xff] }
 0x51a   : > { %v7776_v3 = vadd.f32 %v7775_v42, %v7774_v47  ;;  %v9703_v33 = vpop.f32.mrf.mxu1  ;;  %v7534_v50 = vadd.f32 %v13801_v38, %v14614_v29  ;;  %v9680_v28 = vpop.f32.mrf.mxu0 }
 0x51b   : > { %v7779_v21 = vsel %vm1165_vm10, %v13875_v34, 0.0  ;;  %v13895_v40 = vadd.f32 %v9703_v33, %v7531_v37  ;;  %v7332_v42 = vadd.f32 %v14615_v4, %v6840_v57  ;;  %v14616_v33 = vld [vmem:[#allocation19_spill] sm:$0xff]  ;;  %v7538_v57 = vadd.f32 %v13863_v46, %v14622_v0 }
 0x51c   : > { %v7778_v61 = vadd.f32 %v7777_v56, %v7776_v3  ;;  %v7656_v63 = vpop.f32.mrf.mxu1  ;;  %v6841_v22 = vadd.f32 %v14617_v58, %v14616_v33  ;;  %v7535_v56 = vadd.f32 %v13833_v5, %v14618_v32  ;;  %v14626_v33 = vld [vmem:[#allocation54_spill] sm:$0xff]  ;;  %v14628_v0 = vld [vmem:[#allocation51_spill] sm:$0xff] }
 0x51d   : > { %v13891_v35 = vadd.f32 %v7656_v63, %v7529_v2  ;;  %v7785_v3 = vsel %vm1165_vm10, %v13895_v40, 0.0  ;;  %v7536_v63 = vadd.f32 %v7481_v53, %v7332_v42  ;;  %v7539_v58 = vadd.f32 %v9677_v62, %v14626_v33 }
 0x51e   : > { %v7780_v15 = vadd.f32 %v7779_v21, %v7778_v61  ;;  %v9706_v23 = vpop.f32.mrf.mxu1  ;;  %v7333_v37 = vadd.f32 %v14619_v17, %v6841_v22 }
 0x51f   : > { %v7781_v41 = vsel %vm1165_vm10, %v13891_v35, 0.0  ;;  %v13914_v59 = vadd.f32 %v9706_v23, %v7534_v50  ;;  %v14620_v23 = vld [vmem:[#allocation50_spill] sm:$0xff]  ;;  %v14624_v50 = vld [vmem:[#allocation12_spill] sm:$0xff] }
 0x520   : > { %v7782_v51 = vadd.f32 %v7781_v41, %v7780_v15  ;;  %v7669_v8 = vpop.f32.mrf.mxu1  ;;  %v6844_v10 = vadd.f32 %v14621_v55, %v14620_v23  ;;  %v14627_v23 = vld [vmem:[#allocation34_spill] sm:$0xff] }
 0x521   : > { %v13903_v49 = vadd.f32 %v7669_v8, %v7532_v26  ;;  %v7791_v41 = vsel %vm1165_vm10, %v13914_v59, 0.0  ;;  %v7497_v8 = vpop.f32.mrf.mxu0  ;;  %v7542_v55 = vadd.f32 %v9680_v28, %v14627_v23 }
 0x522   : > { %v7784_v47 = vadd.f32 %v7783_v7, %v7782_v51  ;;  %v9707_v25 = vpop.f32.mrf.mxu1  ;;  %v7537_v7 = vadd.f32 %v7484_v39, %v7333_v37 }
 0x523   : > { %v7787_v36 = vsel %vm1165_vm10, %v13903_v49, 0.0  ;;  %v13921_v21 = vadd.f32 %v9707_v25, %v7535_v56  ;;  %v9681_v32 = vpop.f32.mrf.mxu0 }
 0x524   : > { %v7786_v2 = vadd.f32 %v7785_v3, %v7784_v47  ;;  %v7672_v1 = vpop.f32.mrf.mxu1  ;;  %v14623_v47 = vld [vmem:[#allocation37_spill] sm:$0xff] }
 0x525   : > { %v13918_v38 = vadd.f32 %v7672_v1, %v7533_v43  ;;  %v7336_v25 = vadd.f32 %v14623_v47, %v6844_v10  ;;  %v7793_v29 = vsel %vm1165_vm10, %v13921_v21, 0.0  ;;  %v14625_v43 = vld [vmem:[#allocation13_spill] sm:$0xff]  ;;  %v7500_v62 = vpop.f32.mrf.mxu0 }
 0x526   : > { %v7788_v14 = vadd.f32 %v7787_v36, %v7786_v2  ;;  %v9710_v61 = vpop.f32.mrf.mxu1  ;;  %v6845_v4 = vadd.f32 %v14625_v43, %v14624_v50 }
 0x527   : > { %v7789_v15 = vsel %vm1165_vm10, %v13918_v38, 0.0  ;;  %v7742_v22 = vadd.f32 %v9710_v61, %v7538_v57  ;;  %v7540_v56 = vadd.f32 %v7497_v8, %v7336_v25 }
 0x528   : > { %v7790_v26 = vadd.f32 %v7789_v15, %v7788_v14  ;;  %v7685_v5 = vpop.f32.mrf.mxu1  ;;  %v7337_v36 = vadd.f32 %v13743_v31, %v6845_v4  ;;  %v7543_v31 = vadd.f32 %v9681_v32, %v14628_v0 }
 0x529   : > { %v13929_v51 = vadd.f32 %v7685_v5, %v7536_v63  ;;  %v7799_v15 = vsel %vm1165_vm10, %v7742_v22, 0.0 }
 0x52a   : > { %v7792_v20 = vadd.f32 %v7791_v41, %v7790_v26  ;;  %v9711_v53 = vpop.f32.mrf.mxu1  ;;  %v7541_v10 = vadd.f32 %v7500_v62, %v7337_v36 }
 0x52b   : > { %v7795_v2 = vsel %vm1165_vm10, %v13929_v51, 0.0  ;;  %v7743_v14 = vadd.f32 %v9711_v53, %v7539_v58 }
 0x52c   : > { %v7794_v42 = vadd.f32 %v7793_v29, %v7792_v20  ;;  %v7688_v3 = vpop.f32.mrf.mxu1 }
 0x52d   : > { %v7741_v1 = vadd.f32 %v7688_v3, %v7537_v7  ;;  %v7801_v41 = vsel %vm1165_vm10, %v7743_v14, 0.0 }
 0x52e   : > { %v7796_v46 = vadd.f32 %v7795_v2, %v7794_v42  ;;  %v9714_v39 = vpop.f32.mrf.mxu1 }
 0x52f   : > { %v7797_v63 = vsel %vm1165_vm10, %v7741_v1, 0.0  ;;  %v7746_v53 = vadd.f32 %v9714_v39, %v7542_v55 }
 0x530   : > { %v7798_v17 = vadd.f32 %v7797_v63, %v7796_v46  ;;  %v7701_v37 = vpop.f32.mrf.mxu1 }
 0x531   : > { %v7744_v26 = vadd.f32 %v7701_v37, %v7540_v56  ;;  %v7807_v43 = vsel %vm1165_vm10, %v7746_v53, 0.0 }
 0x532   : > { %v7800_v61 = vadd.f32 %v7799_v15, %v7798_v17  ;;  %v9715_v5 = vpop.f32.mrf.mxu1 }
 0x533   : > { %v7803_v57 = vsel %vm1165_vm10, %v7744_v26, 0.0  ;;  %v7747_v25 = vadd.f32 %v9715_v5, %v7543_v31 }
 0x534   : > { %v7802_v20 = vadd.f32 %v7801_v41, %v7800_v61  ;;  %v7704_v8 = vpop.f32.mrf.mxu1 }
 0x535   : > { %v7745_v7 = vadd.f32 %v7704_v8, %v7541_v10  ;;  %v7809_v28 = vsel %vm1165_vm10, %v7747_v25, 0.0 }
 0x536   : > { %v7804_v47 = vadd.f32 %v7803_v57, %v7802_v20 }
 0x537   : > { %v7805_v29 = vsel %vm1165_vm10, %v7745_v7, 0.0 }
 0x538   : > { %v7806_v50 = vadd.f32 %v7805_v29, %v7804_v47 }
 0x53a   : > { %v7808_v4 = vadd.f32 %v7807_v43, %v7806_v50 }
 0x53c   : > { %v7810_v42 = vadd.f32 %v7809_v28, %v7808_v4 }
 0x53e   : > { %v7811_v3 = vrot.slane %v7810_v42, 4 }
 0x540   : > { %v7812_v33 = vadd.f32 %v7811_v3, %v7810_v42 }
 0x542   : > { %v7813_v58 = vrot.slane %v7812_v33, 2 }
 0x544   : > { %v7814_v2 = vadd.f32 %v7813_v58, %v7812_v33 }
 0x546   : > { %v7815_v32 = vrot.slane %v7814_v2, 1 }
 0x548   : > { %v7816_v46 = vadd.f32 %v7815_v32, %v7814_v2 }
 0x54a   : > { %v7817_v39 = vmul.f32 0.00390625, %v7816_v46 }
 0x54c   : > { %v13952_v56 = vsub.f32 %v13831_v52, %v7817_v39  ;;  %v13955_v36 = vsub.f32 %v13845_v60, %v7817_v39  ;;  %v13958_v63 = vsub.f32 %v13861_v44, %v7817_v39  ;;  %v13961_v17 = vsub.f32 %v13857_v16, %v7817_v39 }
 0x54d   : > { %v13964_v37 = vsub.f32 %v13867_v30, %v7817_v39  ;;  %v13967_v15 = vsub.f32 %v13875_v34, %v7817_v39  ;;  %v13970_v62 = vsub.f32 %v13891_v35, %v7817_v39  ;;  %v13973_v52 = vsub.f32 %v13887_v9, %v7817_v39 }
 0x54e   : > { %v13976_v60 = vsub.f32 %v13895_v40, %v7817_v39  ;;  %v13979_v44 = vsub.f32 %v13903_v49, %v7817_v39  ;;  %v13982_v16 = vsub.f32 %v13918_v38, %v7817_v39  ;;  %v13985_v30 = vsub.f32 %v13914_v59, %v7817_v39 }
 0x54f   : > { %v13988_v34 = vsub.f32 %v13921_v21, %v7817_v39  ;;  %v13991_v35 = vsub.f32 %v13929_v51, %v7817_v39  ;;  %v13993_v9 = vsub.f32 %v7741_v1, %v7817_v39  ;;  %v13995_v61 = vsub.f32 %v7742_v22, %v7817_v39 }
 0x550   : > { %v13997_v40 = vsub.f32 %v7743_v14, %v7817_v39  ;;  %v13999_v49 = vsub.f32 %v7744_v26, %v7817_v39  ;;  %v14001_v5 = vsub.f32 %v7745_v7, %v7817_v39  ;;  %v14003_v38 = vsub.f32 %v7746_v53, %v7817_v39 }
 0x551   : > { %v14005_v59 = vsub.f32 %v7747_v25, %v7817_v39  ;;  %v14008_v21 = vsub.f32 %v13758_v18, %v7817_v39  ;;  %v14011_v51 = vsub.f32 %v13766_v12, %v7817_v39  ;;  %v14014_v1 = vsub.f32 %v13764_v24, %v7817_v39 }
 0x552   : > { %v14017_v22 = vsub.f32 %v13773_v45, %v7817_v39  ;;  %v14024_v23 = vsub.f32 %v13781_v54, %v7817_v39  ;;  %v14029_v12 = vsub.f32 %v13799_v11, %v7817_v39  ;;  %v14036_v41 = vsub.f32 %v13795_v48, %v7817_v39 }
 0x553   : > { %v7850_v14 = vmul.f32 %v14008_v21, %v14008_v21  ;;  %v7851_v26 = vmul.f32 %v14011_v51, %v14011_v51  ;;  %v7852_v18 = vmul.f32 %v14014_v1, %v14014_v1  ;;  %v14042_v11 = vsub.f32 %v13805_v19, %v7817_v39 }
 0x554   : > { %v7853_v24 = vmul.f32 %v14017_v22, %v14017_v22  ;;  %v7854_v54 = vmul.f32 %v14024_v23, %v14024_v23  ;;  %v7855_v0 = vmul.f32 %v14029_v12, %v14029_v12  ;;  %v14048_v57 = vsub.f32 %v13813_v27, %v7817_v39 }
 0x555   : > { %v7882_v45 = vsel %vm1165_vm10, %v7850_v14, 0.0  ;;  %v7883_v55 = vsel %vm1165_vm10, %v7851_v26, 0.0  ;;  %v7885_v20 = vsel %vm1165_vm10, %v7852_v18, 0.0  ;;  %v7856_v48 = vmul.f32 %v14036_v41, %v14036_v41 }
 0x556   : > { %v7884_v10 = vadd.f32 %v7883_v55, %v7882_v45  ;;  %v7887_v31 = vsel %vm1165_vm10, %v7853_v24, 0.0  ;;  %v7889_v7 = vsel %vm1165_vm10, %v7854_v54, 0.0  ;;  %v7857_v25 = vmul.f32 %v14042_v11, %v14042_v11 }
 0x557   : > { %v7891_v19 = vsel %vm1165_vm10, %v7855_v0, 0.0  ;;  %v14057_v50 = vsub.f32 %v13827_v13, %v7817_v39  ;;  %v7858_v43 = vmul.f32 %v14048_v57, %v14048_v57  ;;  %v7893_v27 = vsel %vm1165_vm10, %v7856_v48, 0.0 }
 0x558   : > { %v7886_v8 = vadd.f32 %v7885_v20, %v7884_v10  ;;  %v14063_v28 = vsub.f32 %v13837_v6, %v7817_v39  ;;  %v7859_v42 = vmul.f32 %v13952_v56, %v13952_v56  ;;  %v7895_v3 = vsel %vm1165_vm10, %v7857_v25, 0.0 }
 0x559   : > { %v7860_v58 = vmul.f32 %v14057_v50, %v14057_v50  ;;  %v7897_v13 = vsel %vm1165_vm10, %v7858_v43, 0.0  ;;  %v7862_v6 = vmul.f32 %v13955_v36, %v13955_v36  ;;  %v7863_v18 = vmul.f32 %v13958_v63, %v13958_v63 }
 0x55a   : > { %v7888_v53 = vadd.f32 %v7887_v31, %v7886_v8  ;;  %v7861_v32 = vmul.f32 %v14063_v28, %v14063_v28  ;;  %v7899_v46 = vsel %vm1165_vm10, %v7859_v42, 0.0  ;;  %v7864_v55 = vmul.f32 %v13961_v17, %v13961_v17 }
 0x55b   : > { %v7901_v39 = vsel %vm1165_vm10, %v7860_v58, 0.0  ;;  %v7905_v10 = vsel %vm1165_vm10, %v7862_v6, 0.0  ;;  %v7865_v20 = vmul.f32 %v13964_v37, %v13964_v37  ;;  %v7907_v8 = vsel %vm1165_vm10, %v7863_v18, 0.0 }
 0x55c   : > { %v7890_v47 = vadd.f32 %v7889_v7, %v7888_v53  ;;  %v7903_v24 = vsel %vm1165_vm10, %v7861_v32, 0.0  ;;  %v7866_v31 = vmul.f32 %v13967_v15, %v13967_v15  ;;  %v7909_v53 = vsel %vm1165_vm10, %v7864_v55, 0.0 }
 0x55d   : > { %v7867_v7 = vmul.f32 %v13970_v62, %v13970_v62 }
 0x55e   : > { %v7892_v29 = vadd.f32 %v7891_v19, %v7890_v47  ;;  %v7911_v47 = vsel %vm1165_vm10, %v7865_v20, 0.0  ;;  %v7868_v19 = vmul.f32 %v13973_v52, %v13973_v52 }
 0x560   : > { %v7894_v4 = vadd.f32 %v7893_v27, %v7892_v29  ;;  %v7913_v29 = vsel %vm1165_vm10, %v7866_v31, 0.0  ;;  %v7869_v27 = vmul.f32 %v13976_v60, %v13976_v60 }
 0x562   : > { %v7896_v33 = vadd.f32 %v7895_v3, %v7894_v4  ;;  %v7915_v4 = vsel %vm1165_vm10, %v7867_v7, 0.0  ;;  %v7870_v3 = vmul.f32 %v13979_v44, %v13979_v44 }
 0x564   : > { %v7898_v2 = vadd.f32 %v7897_v13, %v7896_v33  ;;  %v7917_v33 = vsel %vm1165_vm10, %v7868_v19, 0.0  ;;  %v7871_v13 = vmul.f32 %v13982_v16, %v13982_v16 }
 0x566   : > { %v7900_v14 = vadd.f32 %v7899_v46, %v7898_v2  ;;  %v7919_v2 = vsel %vm1165_vm10, %v7869_v27, 0.0  ;;  %v7872_v46 = vmul.f32 %v13985_v30, %v13985_v30 }
 0x568   : > { %v7902_v26 = vadd.f32 %v7901_v39, %v7900_v14  ;;  %v7921_v14 = vsel %vm1165_vm10, %v7870_v3, 0.0  ;;  %v7873_v39 = vmul.f32 %v13988_v34, %v13988_v34 }
 0x56a   : > { %v7904_v45 = vadd.f32 %v7903_v24, %v7902_v26  ;;  %v7923_v26 = vsel %vm1165_vm10, %v7871_v13, 0.0  ;;  %v7874_v24 = vmul.f32 %v13991_v35, %v13991_v35 }
 0x56c   : > { %v7906_v54 = vadd.f32 %v7905_v10, %v7904_v45  ;;  %v7925_v45 = vsel %vm1165_vm10, %v7872_v46, 0.0  ;;  %v7875_v10 = vmul.f32 %v13993_v9, %v13993_v9 }
 0x56e   : > { %v7908_v0 = vadd.f32 %v7907_v8, %v7906_v54  ;;  %v7927_v54 = vsel %vm1165_vm10, %v7873_v39, 0.0  ;;  %v7876_v8 = vmul.f32 %v13995_v61, %v13995_v61 }
 0x570   : > { %v7910_v48 = vadd.f32 %v7909_v53, %v7908_v0  ;;  %v7929_v0 = vsel %vm1165_vm10, %v7874_v24, 0.0  ;;  %v7877_v53 = vmul.f32 %v13997_v40, %v13997_v40 }
 0x572   : > { %v7912_v25 = vadd.f32 %v7911_v47, %v7910_v48  ;;  %v7931_v48 = vsel %vm1165_vm10, %v7875_v10, 0.0  ;;  %v7878_v47 = vmul.f32 %v13999_v49, %v13999_v49 }
 0x574   : > { %v7914_v43 = vadd.f32 %v7913_v29, %v7912_v25  ;;  %v7933_v25 = vsel %vm1165_vm10, %v7876_v8, 0.0  ;;  %v7879_v29 = vmul.f32 %v14001_v5, %v14001_v5 }
 0x576   : > { %v7916_v42 = vadd.f32 %v7915_v4, %v7914_v43  ;;  %v7935_v43 = vsel %vm1165_vm10, %v7877_v53, 0.0  ;;  %v7880_v4 = vmul.f32 %v14003_v38, %v14003_v38 }
 0x578   : > { %v7918_v58 = vadd.f32 %v7917_v33, %v7916_v42  ;;  %v7937_v42 = vsel %vm1165_vm10, %v7878_v47, 0.0  ;;  %v7881_v33 = vmul.f32 %v14005_v59, %v14005_v59 }
 0x57a   : > { %v7920_v32 = vadd.f32 %v7919_v2, %v7918_v58  ;;  %v7939_v58 = vsel %vm1165_vm10, %v7879_v29, 0.0  ;;  %v7941_v2 = vsel %vm1165_vm10, %v7880_v4, 0.0  ;;  %v7943_v46 = vsel %vm1165_vm10, %v7881_v33, 0.0  ;;  %v7992_v29 = vld [vmem:[%s9852_s21 + $0x30] sm:$0xff]  ;;  %v7995_v4 = vld [vmem:[%s9852_s21 + $0x48] sm:$0xff]  ;;  %v7998_v33 = vld [vmem:[%s9852_s21 + $0x60] sm:$0xff] }
 0x57c   : > { %v7922_v6 = vadd.f32 %v7921_v14, %v7920_v32 }
 0x57e   : > { %v7924_v18 = vadd.f32 %v7923_v26, %v7922_v6 }
 0x580   : > { %v7926_v55 = vadd.f32 %v7925_v45, %v7924_v18 }
 0x582   : > { %v7928_v20 = vadd.f32 %v7927_v54, %v7926_v55 }
 0x584   : > { %v7930_v31 = vadd.f32 %v7929_v0, %v7928_v20 }
 0x586   : > { %v7932_v7 = vadd.f32 %v7931_v48, %v7930_v31 }
 0x588   : > { %v7934_v19 = vadd.f32 %v7933_v25, %v7932_v7 }
 0x58a   : > { %v7936_v27 = vadd.f32 %v7935_v43, %v7934_v19  ;;  %v7991_v19 = vld [vmem:[%s9852_s21 + $0x28] sm:$0xff]  ;;  %v7993_v43 = vld [vmem:[%s9852_s21 + $0x38] sm:$0xff] }
 0x58c   : > { %v7938_v3 = vadd.f32 %v7937_v42, %v7936_v27  ;;  %v7994_v27 = vld [vmem:[%s9852_s21 + $0x40] sm:$0xff]  ;;  %v7996_v42 = vld [vmem:[%s9852_s21 + $0x50] sm:$0xff] }
 0x58e   : > { %v7940_v13 = vadd.f32 %v7939_v58, %v7938_v3  ;;  %v7999_v58 = vld [vmem:[%s9852_s21 + $0x68] sm:$0xff] }
 0x590   : > { %v7942_v32 = vadd.f32 %v7941_v2, %v7940_v13  ;;  %v8000_v13 = vld [vmem:[%s9852_s21 + $0x70] sm:$0xff]  ;;  %v8001_v2 = vld [vmem:[%s9852_s21 + $0x78] sm:$0xff] }
 0x592   : > { %v7944_v14 = vadd.f32 %v7943_v46, %v7942_v32  ;;  %v8002_v32 = vld [vmem:[%s9852_s21 + $0x80] sm:$0xff]  ;;  %v8003_v46 = vld [vmem:[%s9852_s21 + $0x88] sm:$0xff] }
 0x594   : > { %v7945_v6 = vrot.slane %v7944_v14, 4 }
 0x596   : > { %v7946_v39 = vadd.f32 %v7945_v6, %v7944_v14  ;;  %v8004_v14 = vld [vmem:[%s9852_s21 + $0x90] sm:$0xff] }
 0x598   : > { %v7947_v26 = vrot.slane %v7946_v39, 2 }
 0x59a   : > { %v7948_v18 = vadd.f32 %v7947_v26, %v7946_v39 }
 0x59c   : > { %v7949_v24 = vrot.slane %v7948_v18, 1 }
 0x59e   : > { %v7950_v45 = vadd.f32 %v7949_v24, %v7948_v18  ;;  %v8007_v18 = vld [vmem:[%s9852_s21 + $0xa8] sm:$0xff] }
 0x5a0   : > { %v7951_v55 = vmul.f32 0.00390625, %v7950_v45 }
 0x5a2   : > { %v7952_v10 = vadd.f32 1e-05, %v7951_v55 }
 0x5a4   : > { %9780 = vrsqrt.f32 %v7952_v10 }
 0x5b1   : > { %v9781_v54 = vpop.eup %9780 }
 0x5b2   : > { %v7954_v20 = vmul.f32 %v9781_v54, %v14008_v21  ;;  %v7955_v8 = vmul.f32 %v9781_v54, %v14011_v51  ;;  %v7956_v0 = vmul.f32 %v9781_v54, %v14014_v1  ;;  %v7957_v31 = vmul.f32 %v9781_v54, %v14017_v22 }
 0x5b3   : > { %v7958_v53 = vmul.f32 %v9781_v54, %v14024_v23  ;;  %v7959_v48 = vmul.f32 %v9781_v54, %v14029_v12  ;;  %v7960_v7 = vmul.f32 %v9781_v54, %v14036_v41  ;;  %v7961_v47 = vmul.f32 %v9781_v54, %v14042_v11 }
 0x5b4   : > { %v7962_v21 = vmul.f32 %v9781_v54, %v14048_v57  ;;  %v7963_v51 = vmul.f32 %v9781_v54, %v13952_v56  ;;  %v7964_v1 = vmul.f32 %v9781_v54, %v14057_v50  ;;  %v7965_v22 = vmul.f32 %v9781_v54, %v14063_v28  ;;  %v7986_v56 = vld [vmem:[%s9852_s21] sm:$0xff]  ;;  %v7987_v57 = vld [vmem:[%s9852_s21 + $0x8] sm:$0xff]  ;;  %v7988_v50 = vld [vmem:[%s9852_s21 + $0x10] sm:$0xff] }
 0x5b5   : > { %v14149_v23 = vmul.f32 %v9781_v54, %v13955_v36  ;;  %v14152_v12 = vmul.f32 %v9781_v54, %v13958_v63  ;;  %v14155_v41 = vmul.f32 %v9781_v54, %v13961_v17  ;;  %v14158_v11 = vmul.f32 %v9781_v54, %v13964_v37  ;;  %v7989_v28 = vld [vmem:[%s9852_s21 + $0x18] sm:$0xff]  ;;  %v7990_v37 = vld [vmem:[%s9852_s21 + $0x20] sm:$0xff] }
 0x5b6   : > { %v14165_v25 = vmul.f32 %v9781_v54, %v13967_v15  ;;  %v14168_v36 = vmul.f32 %v9781_v54, %v13970_v62  ;;  %v14171_v63 = vmul.f32 %v9781_v54, %v13973_v52  ;;  %v14174_v17 = vmul.f32 %v9781_v54, %v13976_v60 }
 0x5b7   : > { %v14181_v15 = vmul.f32 %v9781_v54, %v13979_v44  ;;  %v14184_v62 = vmul.f32 %v9781_v54, %v13982_v16  ;;  %v14187_v52 = vmul.f32 %v9781_v54, %v13985_v30  ;;  %v14190_v60 = vmul.f32 %v9781_v54, %v13988_v34  ;;  %v7997_v34 = vld [vmem:[%s9852_s21 + $0x58] sm:$0xff] }
 0x5b8   : > { %v14196_v3 = vmul.f32 %v9781_v54, %v13991_v35  ;;  %v14199_v44 = vmul.f32 %v9781_v54, %v13993_v9  ;;  %v14202_v16 = vmul.f32 %v9781_v54, %v13995_v61  ;;  %v14205_v30 = vmul.f32 %v9781_v54, %v13997_v40 }
 0x5b9   : > { %v14218_v35 = vmul.f32 %v9781_v54, %v13999_v49  ;;  %v14221_v9 = vmul.f32 %v9781_v54, %v14001_v5  ;;  %v14224_v61 = vmul.f32 %v9781_v54, %v14003_v38  ;;  %v14227_v40 = vmul.f32 %v9781_v54, %v14005_v59  ;;  %v8005_v49 = vld [vmem:[%s9852_s21 + $0x98] sm:$0xff]  ;;  %v8006_v38 = vld [vmem:[%s9852_s21 + $0xa0] sm:$0xff]  ;;  %v8008_v59 = vld [vmem:[%s9852_s21 + $0xb0] sm:$0xff] }
 0x5ba   : > { %v8018_v6 = vadd.f32 %v7986_v56, %v7954_v20  ;;  %v8019_v39 = vadd.f32 %v7987_v57, %v7955_v8  ;;  %v8020_v26 = vadd.f32 %v7988_v50, %v7956_v0  ;;  %v8021_v5 = vadd.f32 %v7989_v28, %v7957_v31  ;;  %v8009_v54 = vld [vmem:[%s9852_s21 + $0xb8] sm:$0xff]  ;;  %v8011_v20 = vld [vmem:[%s9852_s21 + $0xc8] sm:$0xff] }
 0x5bb   : > { %14629 = vst [vmem:[#allocation38_spill] sm:$0xff] %v14227_v40  ;;  %v8022_v24 = vadd.f32 %v7990_v37, %v7958_v53  ;;  %v8023_v45 = vadd.f32 %v7991_v19, %v7959_v48  ;;  %v8024_v55 = vadd.f32 %v7992_v29, %v7960_v7  ;;  %v8025_v10 = vadd.f32 %v7993_v43, %v7961_v47  ;;  %v8010_v40 = vld [vmem:[%s9852_s21 + $0xc0] sm:$0xff]  ;;  %v8012_v53 = vld [vmem:[%s9852_s21 + $0xd0] sm:$0xff]  ;;  %v8013_v48 = vld [vmem:[%s9852_s21 + $0xd8] sm:$0xff] }
 0x5bc   : > { %v8026_v8 = vadd.f32 %v7994_v27, %v7962_v21  ;;  %v8027_v0 = vadd.f32 %v7995_v4, %v7963_v51  ;;  %v8028_v31 = vadd.f32 %v7996_v42, %v7964_v1  ;;  %v8029_v56 = vadd.f32 %v7997_v34, %v7965_v22  ;;  %8050 = vst.msk [vmem:[%s14215_s8] sm:$0xff] %vm1165_vm10, %v8018_v6  ;;  %v8014_v7 = vld [vmem:[%s9852_s21 + $0xe0] sm:$0xff]  ;;  %v8015_v22 = vld [vmem:[%s9852_s21 + $0xe8] sm:$0xff] }
 0x5bd   : > { %8051 = vst.msk [vmem:[%s14215_s8 + $0x8] sm:$0xff] %vm1165_vm10, %v8019_v39  ;;  %8052 = vst.msk [vmem:[%s14215_s8 + $0x10] sm:$0xff] %vm1165_vm10, %v8020_v26  ;;  %v8030_v47 = vadd.f32 %v7998_v33, %v14149_v23  ;;  %v8031_v21 = vadd.f32 %v7999_v58, %v14152_v12  ;;  %v8032_v51 = vadd.f32 %v8000_v13, %v14155_v41  ;;  %v8016_v23 = vld [vmem:[%s9852_s21 + $0xf0] sm:$0xff]  ;;  %v8017_v12 = vld [vmem:[%s9852_s21 + $0xf8] sm:$0xff] }
 0x5be   : > { %8053 = vst.msk [vmem:[%s14215_s8 + $0x18] sm:$0xff] %vm1165_vm10, %v8021_v5  ;;  %v8033_v1 = vadd.f32 %v8001_v2, %v14158_v11  ;;  %8054 = vst.msk [vmem:[%s14215_s8 + $0x20] sm:$0xff] %vm1165_vm10, %v8022_v24  ;;  %v8034_v41 = vadd.f32 %v8002_v32, %v14165_v25  ;;  %v8035_v57 = vadd.f32 %v8003_v46, %v14168_v36 }
 0x5bf   : > { %8055 = vst.msk [vmem:[%s14215_s8 + $0x28] sm:$0xff] %vm1165_vm10, %v8023_v45  ;;  %8056 = vst.msk [vmem:[%s14215_s8 + $0x30] sm:$0xff] %vm1165_vm10, %v8024_v55  ;;  %v8036_v11 = vadd.f32 %v8004_v14, %v14171_v63  ;;  %v8037_v50 = vadd.f32 %v8005_v49, %v14174_v17  ;;  %v8038_v28 = vadd.f32 %v8006_v38, %v14181_v15 }
 0x5c0   : > { %8057 = vst.msk [vmem:[%s14215_s8 + $0x38] sm:$0xff] %vm1165_vm10, %v8025_v10  ;;  %8058 = vst.msk [vmem:[%s14215_s8 + $0x40] sm:$0xff] %vm1165_vm10, %v8026_v8  ;;  %v8039_v25 = vadd.f32 %v8007_v18, %v14184_v62  ;;  %v8040_v36 = vadd.f32 %v8008_v59, %v14187_v52  ;;  %v8041_v63 = vadd.f32 %v8009_v54, %v14190_v60 }
 0x5c1   : > { %8059 = vst.msk [vmem:[%s14215_s8 + $0x48] sm:$0xff] %vm1165_vm10, %v8027_v0  ;;  %8060 = vst.msk [vmem:[%s14215_s8 + $0x50] sm:$0xff] %vm1165_vm10, %v8028_v31  ;;  %v8042_v17 = vadd.f32 %v8010_v40, %v14196_v3  ;;  %v8043_v37 = vadd.f32 %v8011_v20, %v14199_v44  ;;  %v8044_v19 = vadd.f32 %v8012_v53, %v14202_v16 }
 0x5c2   : > { %8061 = vst.msk [vmem:[%s14215_s8 + $0x58] sm:$0xff] %vm1165_vm10, %v8029_v56  ;;  %8062 = vst.msk [vmem:[%s14215_s8 + $0x60] sm:$0xff] %vm1165_vm10, %v8030_v47  ;;  %v8045_v29 = vadd.f32 %v8013_v48, %v14205_v30  ;;  %v8046_v43 = vadd.f32 %v8014_v7, %v14218_v35  ;;  %v8047_v15 = vadd.f32 %v8015_v22, %v14221_v9  ;;  %v14630_v52 = vld [vmem:[#allocation38_spill] sm:$0xff] }
 0x5c3   : > { %8063 = vst.msk [vmem:[%s14215_s8 + $0x68] sm:$0xff] %vm1165_vm10, %v8031_v21  ;;  %8064 = vst.msk [vmem:[%s14215_s8 + $0x70] sm:$0xff] %vm1165_vm10, %v8032_v51  ;;  %v8048_v62 = vadd.f32 %v8016_v23, %v14224_v61  ;;  %v8049_v60 = vadd.f32 %v8017_v12, %v14630_v52 }
 0x5c4   : > { %8065 = vst.msk [vmem:[%s14215_s8 + $0x78] sm:$0xff] %vm1165_vm10, %v8033_v1  ;;  %8066 = vst.msk [vmem:[%s14215_s8 + $0x80] sm:$0xff] %vm1165_vm10, %v8034_v41 }
 0x5c5   : > { %8067 = vst.msk [vmem:[%s14215_s8 + $0x88] sm:$0xff] %vm1165_vm10, %v8035_v57  ;;  %8068 = vst.msk [vmem:[%s14215_s8 + $0x90] sm:$0xff] %vm1165_vm10, %v8036_v11 }
 0x5c6   : > { %8069 = vst.msk [vmem:[%s14215_s8 + $0x98] sm:$0xff] %vm1165_vm10, %v8037_v50  ;;  %8070 = vst.msk [vmem:[%s14215_s8 + $0xa0] sm:$0xff] %vm1165_vm10, %v8038_v28 }
 0x5c7   : > { %8071 = vst.msk [vmem:[%s14215_s8 + $0xa8] sm:$0xff] %vm1165_vm10, %v8039_v25  ;;  %8072 = vst.msk [vmem:[%s14215_s8 + $0xb0] sm:$0xff] %vm1165_vm10, %v8040_v36 }
 0x5c8   : > { %8073 = vst.msk [vmem:[%s14215_s8 + $0xb8] sm:$0xff] %vm1165_vm10, %v8041_v63  ;;  %8074 = vst.msk [vmem:[%s14215_s8 + $0xc0] sm:$0xff] %vm1165_vm10, %v8042_v17 }
 0x5c9   : > { %8075 = vst.msk [vmem:[%s14215_s8 + $0xc8] sm:$0xff] %vm1165_vm10, %v8043_v37  ;;  %8076 = vst.msk [vmem:[%s14215_s8 + $0xd0] sm:$0xff] %vm1165_vm10, %v8044_v19 }
 0x5ca   : > { %8077 = vst.msk [vmem:[%s14215_s8 + $0xd8] sm:$0xff] %vm1165_vm10, %v8045_v29  ;;  %8078 = vst.msk [vmem:[%s14215_s8 + $0xe0] sm:$0xff] %vm1165_vm10, %v8046_v43 }
 0x5cb   : > { %8079 = vst.msk [vmem:[%s14215_s8 + $0xe8] sm:$0xff] %vm1165_vm10, %v8047_v15  ;;  %8080 = vst.msk [vmem:[%s14215_s8 + $0xf0] sm:$0xff] %vm1165_vm10, %v8048_v62 }
 0x5cc   : > { %8081 = vst.msk [vmem:[%s14215_s8 + $0xf8] sm:$0xff] %vm1165_vm10, %v8049_v60 }
 0x5cd PF: > { %s13_s12 = sadd.s32 1, %s9804_s12  }
 0x5ce   : > { %p10_p4 = scmp.ge.s32.totalorder %s13_s12, 4  }
 0x5d0   :  { %12 = sbr.rel (!%p10_p4) target bundleno = 1 (0x1), region = 80 }

</bundles_post_ra>
